<compile_context>
chip_gen: v7x
topology: tpu7x:2x2x1
jax: 0.10.0
libtpu: 0.0.40
codegen_flags: <defaults>
</compile_context>

<pallas_src>
import functools
import numpy as np
import jax
import jax.numpy as jnp
from jax import lax
from jax.experimental import pallas as pl
from jax.experimental.pallas import tpu as pltpu


# ---------------------------------------------------------------------------
# Kernel A: stage_conv (BN-folded 1x1 + ReLU) -> spatial sigmoid gate ->
#           fusion_conv (BN-folded 1x1 + ReLU, concat replaced by 2 dots)
# ---------------------------------------------------------------------------
def _stage_fusion_kernel(stg_ref, feat_ref, w1_ref, wsp_ref, wfa_ref, wfb_ref,
                         b1_ref, bsp_ref, bf_ref, featg_ref, fused_ref):
    stg = stg_ref[...]                                   # bf16 input
    sc = jnp.dot(stg, w1_ref[...], preferred_element_type=jnp.float32) + b1_ref[...]
    sc = jnp.maximum(sc, 0.0)                            # stage_conv output (f32)
    sc_b = sc.astype(jnp.bfloat16)

    gate = jax.nn.sigmoid(
        jnp.dot(sc_b, wsp_ref[...], preferred_element_type=jnp.float32) + bsp_ref[...])
    feat_g = feat_ref[...].astype(jnp.float32) * gate    # feat * sigmoid(spatial), f32
    fg_b = feat_g.astype(jnp.bfloat16)

    fused = (jnp.dot(fg_b, wfa_ref[...], preferred_element_type=jnp.float32)
             + jnp.dot(sc_b, wfb_ref[...], preferred_element_type=jnp.float32)
             + bf_ref[...])                              # fusion_conv(cat(feat, stagecur))
    featg_ref[...] = fg_b
    fused_ref[...] = jnp.maximum(fused, 0.0).astype(jnp.bfloat16)


def stage_fusion(stg2d, feat2d, prm):
    p, cin_s = stg2d.shape
    c = 256
    tp = min(1024, p)
    vec = lambda: pl.BlockSpec((1, c), lambda i: (0, 0))
    full = lambda shape: pl.BlockSpec(shape, lambda i: (0,) * len(shape))
    return pl.pallas_call(
        _stage_fusion_kernel,
        out_shape=(jax.ShapeDtypeStruct((p, c), jnp.bfloat16),
                   jax.ShapeDtypeStruct((p, c), jnp.bfloat16)),
        grid=(pl.cdiv(p, tp),),
        in_specs=[pl.BlockSpec((tp, cin_s), lambda i: (i, 0)),
                  pl.BlockSpec((tp, c), lambda i: (i, 0)),
                  full((cin_s, c)), full((c, c)), full((c, c)), full((c, c)),
                  vec(), vec(), vec()],
        out_specs=[pl.BlockSpec((tp, c), lambda i: (i, 0)),
                   pl.BlockSpec((tp, c), lambda i: (i, 0))],
        compiler_params=pltpu.CompilerParams(dimension_semantics=("parallel",)),
    )(stg2d, feat2d, prm['stage_conv_w'], prm['spatial_w'],
      prm['fusion_w_feat'], prm['fusion_w_stage'],
      prm['stage_conv_b'], prm['spatial_b'], prm['fusion_b'])


# ---------------------------------------------------------------------------
# Tail kernel (old kernels B+C fused), one image per grid step:
#   * rebuild bilinear-upsampled GAP from the (9,C) GAP + (HW,9) interp matrix
#   * cosine similarity over channels, rescale, last_conv1 (BN-folded 1x1+ReLU)
#   * build zero-halo'd feat_g / lc1 in VMEM scratch (no HBM pad round trip)
#   * last_conv2 (3x3, 512->256) as 9 K=512 matmuls, patches sliced JIT
#   * stage0_conv 1x1 + sigmoid gate
# ---------------------------------------------------------------------------
def _tail_kernel(fused_ref, fg_ref, gap_ref, u_ref, s0_ref,
                 w1_ref, b1_ref, w2_ref, b2_ref, w0_ref, b0_ref,
                 o_ref, pa_ref, pb_ref):
    _, h, w, c = fg_ref.shape
    hw = h * w
    cout = w2_ref.shape[3]

    # ---- cosine similarity + rescale + last_conv1 ----
    fused = fused_ref[0].astype(jnp.float32)                           # (hw, C)
    up = jnp.dot(u_ref[...], gap_ref[0],
                 preferred_element_type=jnp.float32)                   # (hw, C)
    d = jnp.sum(fused * up, axis=-1, keepdims=True)
    na2 = jnp.sum(fused * fused, axis=-1, keepdims=True)
    nb2 = jnp.sum(up * up, axis=-1, keepdims=True)
    # torch clamps each norm to 1e-8; here the product is clamped (only
    # differs when a norm underflows 1e-8).
    cos = d * lax.rsqrt(jnp.maximum(na2 * nb2, 1e-16))
    scaled = (fused * cos).astype(jnp.bfloat16)
    lc1 = jnp.maximum(
        jnp.dot(scaled, w1_ref[...], preferred_element_type=jnp.float32)
        + b1_ref[...], 0.0)                                            # (hw, C) f32

    # ---- zero-halo'd 3x3 inputs built in VMEM scratch ----
    pa_ref[...] = jnp.zeros_like(pa_ref)
    pb_ref[...] = jnp.zeros_like(pb_ref)
    pa_ref[1:h + 1, 1:w + 1, :] = fg_ref[0]
    pb_ref[1:h + 1, 1:w + 1, :] = lc1.astype(jnp.bfloat16).reshape(h, w, c)

    # ---- last_conv2: 3x3 over cat(feat_g, lc1); 9 taps, K=512 each;
    #      patches are loaded just-in-time so only `acc` stays live ----
    acc = jnp.zeros((hw, cout), jnp.float32)
    for dy in range(3):
        for dx in range(3):
            pa = pa_ref[dy:dy + h, dx:dx + w, :].reshape(hw, c)
            pb = pb_ref[dy:dy + h, dx:dx + w, :].reshape(hw, c)
            patch = jnp.concatenate([pa, pb], axis=-1)                 # (hw, 2C)
            acc = acc + jnp.dot(patch, w2_ref[dy, dx],
                                preferred_element_type=jnp.float32)
    y = jnp.maximum(acc + b2_ref[...], 0.0)

    # ---- stage0_conv sigmoid gate ----
    gate = jax.nn.sigmoid(
        jnp.dot(s0_ref[0], w0_ref[...], preferred_element_type=jnp.float32)
        + b0_ref[...])
    o_ref[0] = y * gate


def dig_tail(fused3d, fg4d, gapf, u_mat, s03d, prm):
    n, h, w, c = fg4d.shape
    hw = h * w
    c0 = s03d.shape[-1]
    full = lambda shape: pl.BlockSpec(shape, lambda i: (0,) * len(shape))
    vec = lambda: pl.BlockSpec((1, c), lambda i: (0, 0))
    return pl.pallas_call(
        _tail_kernel,
        out_shape=jax.ShapeDtypeStruct((n, hw, c), jnp.float32),
        grid=(n,),
        in_specs=[pl.BlockSpec((1, hw, c), lambda i: (i, 0, 0)),       # fused
                  pl.BlockSpec((1, h, w, c), lambda i: (i, 0, 0, 0)),  # feat_g
                  pl.BlockSpec((1, 9, c), lambda i: (i, 0, 0)),        # GAP
                  full((hw, 9)),                                       # bilinear mat
                  pl.BlockSpec((1, hw, c0), lambda i: (i, 0, 0)),      # stage0
                  full((c, c)), vec(),                                 # last1 w/b
                  full((3, 3, 2 * c, c)), vec(),                       # last2 w/b
                  full((c0, c)), vec()],                               # stage0 w/b
        out_specs=pl.BlockSpec((1, hw, c), lambda i: (i, 0, 0)),
        scratch_shapes=[pltpu.VMEM((h + 2, w + 2, c), jnp.bfloat16),   # feat_g halo
                        pltpu.VMEM((h + 2, w + 2, c), jnp.bfloat16)],  # lc1 halo
        compiler_params=pltpu.CompilerParams(dimension_semantics=("parallel",)),
    )(fused3d, fg4d, gapf, u_mat, s03d,
      prm['last1_w'], prm['last1_b'], prm['last2_w'], prm['last2_b'],
      prm['stage0_w'], prm['stage0_b'])


# ---------------------------------------------------------------------------
# Plain-JAX glue: adaptive avg-pool (3,3) and bilinear(align_corners=True)
# interpolation matrices (tiny, computed at trace time).
# ---------------------------------------------------------------------------
def adaptive_avg_pool_matrix(in_size, out_size):
    m = np.zeros((out_size, in_size), np.float32)
    for i in range(out_size):
        s = (i * in_size) // out_size
        e = -((-(i + 1) * in_size) // out_size)  # ceil
        m[i, s:e] = 1.0 / (e - s)
    return jnp.asarray(m)


def bilinear_upsample_matrix(in_size, out_size):
    m = np.zeros((out_size, in_size), np.float32)
    scale = (in_size - 1) / (out_size - 1) if out_size > 1 else 0.0
    for h in range(out_size):
        src = h * scale
        x0 = min(int(np.floor(src)), max(in_size - 2, 0))
        frac = src - x0
        m[h, x0] += 1.0 - frac
        m[h, min(x0 + 1, in_size - 1)] += frac
    return jnp.asarray(m)


# ---------------------------------------------------------------------------
# DIGModule forward (defaults: stagecur_stage0=0, featstagecur=0, stage_channel=128)
# ---------------------------------------------------------------------------
def dig_forward(params, feat, stagecur, stage0):
    # inputs: NCHW (PyTorch); transpose to NHWC fused with the bf16 cast
    feat = jnp.transpose(feat, (0, 2, 3, 1)).astype(jnp.bfloat16)
    stagecur = jnp.transpose(stagecur, (0, 2, 3, 1)).astype(jnp.bfloat16)
    stage0 = jnp.transpose(stage0, (0, 2, 3, 1)).astype(jnp.bfloat16)
    n, h, w, _ = stagecur.shape
    hw = h * w
    p = n * hw
    c = 256

    # TODO(synk): featstagecur=0 and stagecur_stage0=0 (module defaults), so the
    # optional feat bilinear-resize and the stage0 maxpool loop are no-ops here.

    # Kernel A: stage_conv + spatial gate + fusion_conv (one pass over P)
    feat_g2d, fused2d = stage_fusion(stagecur.reshape(p, -1),
                                     feat.reshape(p, -1), params)

    # GAP(3,3) in glue (reads bf16 fused once, f32 accumulate, (n,9,256) out);
    # the upsampled GAP is reconstructed inside the tail kernel from this GAP
    # and a (HW, 9) interpolation matrix, so `up` never hits HBM.
    ph_m = adaptive_avg_pool_matrix(h, 3)
    pw_m = adaptive_avg_pool_matrix(w, 3)
    gap = jnp.einsum('ih,jw,nhwc->nijc', ph_m, pw_m,
                     fused2d.reshape(n, h, w, c))               # promotes to f32
    gapf = gap.reshape(n, 9, c).astype(jnp.bfloat16)
    uh = bilinear_upsample_matrix(3, h)                         # (h, 3)
    uw = bilinear_upsample_matrix(3, w)                         # (w, 3)
    u_mat = (uh[:, None, :, None] * uw[None, :, None, :]).reshape(hw, 9)
    u_mat = u_mat.astype(jnp.bfloat16)

    # Fused tail: cosine + last_conv1 + last_conv2(3x3) + stage0 gate
    out2d = dig_tail(fused2d.reshape(n, hw, c),
                     feat_g2d.reshape(n, h, w, c),
                     gapf, u_mat, stage0.reshape(n, hw, -1), params)
    return jnp.transpose(out2d.reshape(n, h, w, c), (0, 3, 1, 2))   # back to NCHW


# ---------------------------------------------------------------------------
# Parameter initialization (kaiming_normal_(a=1) => std=1/sqrt(fan_in),
# conv bias=0, BN at PyTorch defaults in eval mode) and offline folding.
# ---------------------------------------------------------------------------
def init_params(key):
    def conv_w(k, cin, cout, ksz=1):
        std = 1.0 / np.sqrt(cin * ksz * ksz)
        shape = (cin, cout) if ksz == 1 else (ksz, ksz, cin, cout)
        return std * jax.random.normal(k, shape, jnp.float32)

    bn_scale = lambda c: jnp.full((c,), 1.0 / np.sqrt(1.0 + 1e-5), jnp.float32)
    bn_shift = lambda c: jnp.zeros((c,), jnp.float32)
    zeros = lambda c: jnp.zeros((c,), jnp.float32)

    keys = jax.random.split(key, 6)
    p = {}
    p['stage_conv_w'] = conv_w(keys[0], 128, 256)
    p['stage_conv_b'] = zeros(256)
    p['stage_conv_scale'], p['stage_conv_shift'] = bn_scale(256), bn_shift(256)
    p['spatial_w'] = conv_w(keys[1], 256, 256)
    p['spatial_b'] = zeros(256)
    p['fusion_w'] = conv_w(keys[2], 512, 256)
    p['fusion_b'] = zeros(256)
    p['fusion_scale'], p['fusion_shift'] = bn_scale(256), bn_shift(256)
    p['last1_w'] = conv_w(keys[3], 256, 256)
    p['last1_b'] = zeros(256)
    p['last1_scale'], p['last1_shift'] = bn_scale(256), bn_shift(256)
    p['last2_w'] = conv_w(keys[4], 512, 256, ksz=3)
    p['last2_b'] = zeros(256)
    p['last2_scale'], p['last2_shift'] = bn_scale(256), bn_shift(256)
    p['stage0_w'] = conv_w(keys[5], 128, 256)
    p['stage0_b'] = zeros(256)
    return p


def prepare_params(raw):
    """Fold BN into conv (W'=W*scale, b'=b*scale+shift), split the fusion_conv
    concat weights along Cin, cast matmul weights to bf16, biases to (1, Cout)."""
    def fold1x1(w, b, scale, shift):
        return w * scale[None, :], b * scale + shift

    def fold3x3(w, b, scale, shift):
        return w * scale[None, None, None, :], b * scale + shift

    p = {}
    w, b = fold1x1(raw['stage_conv_w'], raw['stage_conv_b'],
                   raw['stage_conv_scale'], raw['stage_conv_shift'])
    p['stage_conv_w'] = w.astype(jnp.bfloat16)
    p['stage_conv_b'] = b.reshape(1, -1)

    p['spatial_w'] = raw['spatial_w'].astype(jnp.bfloat16)
    p['spatial_b'] = raw['spatial_b'].reshape(1, -1)

    w, b = fold1x1(raw['fusion_w'], raw['fusion_b'],
                   raw['fusion_scale'], raw['fusion_shift'])
    p['fusion_w_feat'] = w[:256].astype(jnp.bfloat16)    # cat order: (feat, stagecur)
    p['fusion_w_stage'] = w[256:].astype(jnp.bfloat16)
    p['fusion_b'] = b.reshape(1, -1)

    w, b = fold1x1(raw['last1_w'], raw['last1_b'],
                   raw['last1_scale'], raw['last1_shift'])
    p['last1_w'] = w.astype(jnp.bfloat16)
    p['last1_b'] = b.reshape(1, -1)

    w, b = fold3x3(raw['last2_w'], raw['last2_b'],
                   raw['last2_scale'], raw['last2_shift'])
    p['last2_w'] = w.astype(jnp.bfloat16)   # (3,3,512,256); Cin order: (feat_g, lc1)
    p['last2_b'] = b.reshape(1, -1)

    p['stage0_w'] = raw['stage0_w'].astype(jnp.bfloat16)
    p['stage0_b'] = raw['stage0_b'].reshape(1, -1)
    return p


if __name__ == "__main__":
    key = jax.random.PRNGKey(0)
    kp, kf, ks, k0 = jax.random.split(key, 4)
    params = prepare_params(init_params(kp))

    N, H, W = 2, 8, 8
    feat = jax.random.normal(kf, (N, 256, H, W), jnp.float32)       # NCHW
    stagecur = jax.random.normal(ks, (N, 128, H, W), jnp.float32)   # NCHW
    stage0 = jax.random.normal(k0, (N, 128, H, W), jnp.float32)     # NCHW

    out = jax.jit(functools.partial(dig_forward, params))(feat, stagecur, stage0)
    out = jax.block_until_ready(out)
    assert out.shape == (N, 256, H, W) and out.dtype == jnp.float32
    print("KERNEL_OK")
</pallas_src>

<mosaic_0001>
module attributes {stable_mosaic.version = 11 : i64} {
  func.func @_stage_fusion_kernel(%arg0: i32, %arg1: memref<128x128xbf16, #tpu.memory_space<vmem>>, %arg2: memref<128x256xbf16, #tpu.memory_space<vmem>>, %arg3: memref<128x256xbf16, #tpu.memory_space<vmem>>, %arg4: memref<256x256xbf16, #tpu.memory_space<vmem>>, %arg5: memref<256x256xbf16, #tpu.memory_space<vmem>>, %arg6: memref<256x256xbf16, #tpu.memory_space<vmem>>, %arg7: memref<1x256xf32, #tpu.memory_space<vmem>>, %arg8: memref<1x256xf32, #tpu.memory_space<vmem>>, %arg9: memref<1x256xf32, #tpu.memory_space<vmem>>, %arg10: memref<128x256xbf16, #tpu.memory_space<vmem>>, %arg11: memref<128x256xbf16, #tpu.memory_space<vmem>>) attributes {dimension_semantics = [#tpu.dimension_semantics<parallel>], iteration_bounds = array<i64: 1>, scalar_prefetch = 0 : i64, scratch_operands = 0 : i64, tpu.core_type = #tpu.core_type<tc>, window_params = [{transform_indices = @transform_0, window_bounds = array<i64: 128, 128>}, {transform_indices = @transform_1, window_bounds = array<i64: 128, 256>}, {pipeline_mode = #tpu.pipeline_mode<synchronous>, transform_indices = @transform_2, window_bounds = array<i64: 128, 256>}, {pipeline_mode = #tpu.pipeline_mode<synchronous>, transform_indices = @transform_3, window_bounds = array<i64: 256, 256>}, {pipeline_mode = #tpu.pipeline_mode<synchronous>, transform_indices = @transform_4, window_bounds = array<i64: 256, 256>}, {pipeline_mode = #tpu.pipeline_mode<synchronous>, transform_indices = @transform_5, window_bounds = array<i64: 256, 256>}, {pipeline_mode = #tpu.pipeline_mode<synchronous>, transform_indices = @transform_6, window_bounds = array<i64: 1, 256>}, {pipeline_mode = #tpu.pipeline_mode<synchronous>, transform_indices = @transform_7, window_bounds = array<i64: 1, 256>}, {pipeline_mode = #tpu.pipeline_mode<synchronous>, transform_indices = @transform_8, window_bounds = array<i64: 1, 256>}, {transform_indices = @transform_9, window_bounds = array<i64: 128, 256>}, {transform_indices = @transform_10, window_bounds = array<i64: 128, 256>}]} {
    %c0 = arith.constant 0 : index
    %c0_0 = arith.constant 0 : index
    %0 = vector.load %arg1[%c0, %c0_0] : memref<128x128xbf16, #tpu.memory_space<vmem>>, vector<128x128xbf16>
    %c0_1 = arith.constant 0 : index
    %c0_2 = arith.constant 0 : index
    %1 = vector.load %arg3[%c0_1, %c0_2] : memref<128x256xbf16, #tpu.memory_space<vmem>>, vector<128x256xbf16>
    %cst = arith.constant dense<0.000000e+00> : vector<128x256xf32>
    %2 = tpu.matmul %0, %1, %cst {dimension_numbers = #tpu.dot_dimension_numbers<[1], [0], [0], [1], [0, 0, 1, 1], [], []>} : vector<128x128xbf16>, vector<128x256xbf16>, vector<128x256xf32> -> vector<128x256xf32>
    %c0_3 = arith.constant 0 : index
    %c0_4 = arith.constant 0 : index
    %3 = vector.load %arg7[%c0_3, %c0_4] : memref<1x256xf32, #tpu.memory_space<vmem>>, vector<1x256xf32>
    %4 = vector.broadcast %3 : vector<1x256xf32> to vector<128x256xf32>
    %5 = arith.addf %2, %4 : vector<128x256xf32>
    %cst_5 = arith.constant 0.000000e+00 : f32
    %6 = vector.broadcast %cst_5 : f32 to vector<128x256xf32>
    %7 = arith.maximumf %5, %6 : vector<128x256xf32>
    %8 = arith.truncf %7 : vector<128x256xf32> to vector<128x256xbf16>
    %c0_6 = arith.constant 0 : index
    %c0_7 = arith.constant 0 : index
    %9 = vector.load %arg4[%c0_6, %c0_7] : memref<256x256xbf16, #tpu.memory_space<vmem>>, vector<256x256xbf16>
    %cst_8 = arith.constant dense<0.000000e+00> : vector<128x256xf32>
    %10 = tpu.matmul %8, %9, %cst_8 {dimension_numbers = #tpu.dot_dimension_numbers<[1], [0], [0], [1], [0, 0, 1, 1], [], []>} : vector<128x256xbf16>, vector<256x256xbf16>, vector<128x256xf32> -> vector<128x256xf32>
    %c0_9 = arith.constant 0 : index
    %c0_10 = arith.constant 0 : index
    %11 = vector.load %arg8[%c0_9, %c0_10] : memref<1x256xf32, #tpu.memory_space<vmem>>, vector<1x256xf32>
    %12 = vector.broadcast %11 : vector<1x256xf32> to vector<128x256xf32>
    %13 = arith.addf %10, %12 : vector<128x256xf32>
    %14 = arith.negf %13 : vector<128x256xf32>
    %15 = math.exp %14 : vector<128x256xf32>
    %cst_11 = arith.constant 1.000000e+00 : f32
    %16 = vector.broadcast %cst_11 : f32 to vector<128x256xf32>
    %17 = arith.addf %16, %15 : vector<128x256xf32>
    %18 = arith.divf %16, %17 : vector<128x256xf32>
    %c0_12 = arith.constant 0 : index
    %c0_13 = arith.constant 0 : index
    %19 = vector.load %arg2[%c0_12, %c0_13] : memref<128x256xbf16, #tpu.memory_space<vmem>>, vector<128x256xbf16>
    %20 = arith.extf %19 : vector<128x256xbf16> to vector<128x256xf32>
    %21 = arith.mulf %20, %18 : vector<128x256xf32>
    %22 = arith.truncf %21 : vector<128x256xf32> to vector<128x256xbf16>
    %c0_14 = arith.constant 0 : index
    %c0_15 = arith.constant 0 : index
    %23 = vector.load %arg5[%c0_14, %c0_15] : memref<256x256xbf16, #tpu.memory_space<vmem>>, vector<256x256xbf16>
    %cst_16 = arith.constant dense<0.000000e+00> : vector<128x256xf32>
    %24 = tpu.matmul %22, %23, %cst_16 {dimension_numbers = #tpu.dot_dimension_numbers<[1], [0], [0], [1], [0, 0, 1, 1], [], []>} : vector<128x256xbf16>, vector<256x256xbf16>, vector<128x256xf32> -> vector<128x256xf32>
    %c0_17 = arith.constant 0 : index
    %c0_18 = arith.constant 0 : index
    %25 = vector.load %arg6[%c0_17, %c0_18] : memref<256x256xbf16, #tpu.memory_space<vmem>>, vector<256x256xbf16>
    %cst_19 = arith.constant dense<0.000000e+00> : vector<128x256xf32>
    %26 = tpu.matmul %8, %25, %cst_19 {dimension_numbers = #tpu.dot_dimension_numbers<[1], [0], [0], [1], [0, 0, 1, 1], [], []>} : vector<128x256xbf16>, vector<256x256xbf16>, vector<128x256xf32> -> vector<128x256xf32>
    %27 = arith.addf %24, %26 : vector<128x256xf32>
    %c0_20 = arith.constant 0 : index
    %c0_21 = arith.constant 0 : index
    %28 = vector.load %arg9[%c0_20, %c0_21] : memref<1x256xf32, #tpu.memory_space<vmem>>, vector<1x256xf32>
    %29 = vector.broadcast %28 : vector<1x256xf32> to vector<128x256xf32>
    %30 = arith.addf %27, %29 : vector<128x256xf32>
    %c0_22 = arith.constant 0 : index
    %c0_23 = arith.constant 0 : index
    %31 = vector.load %arg10[%c0_22, %c0_23] : memref<128x256xbf16, #tpu.memory_space<vmem>>, vector<128x256xbf16>
    tpu.vector_store %arg10[%c0_22, %c0_23], %22 {strides = array<i32>} : memref<128x256xbf16, #tpu.memory_space<vmem>>, vector<128x256xbf16>,
    %cst_24 = arith.constant 0.000000e+00 : f32
    %32 = vector.broadcast %cst_24 : f32 to vector<128x256xf32>
    %33 = arith.maximumf %30, %32 : vector<128x256xf32>
    %34 = arith.truncf %33 : vector<128x256xf32> to vector<128x256xbf16>
    %c0_25 = arith.constant 0 : index
    %c0_26 = arith.constant 0 : index
    %35 = vector.load %arg11[%c0_25, %c0_26] : memref<128x256xbf16, #tpu.memory_space<vmem>>, vector<128x256xbf16>
    tpu.vector_store %arg11[%c0_25, %c0_26], %34 {strides = array<i32>} : memref<128x256xbf16, #tpu.memory_space<vmem>>, vector<128x256xbf16>,
    return
  }
  func.func @transform_0(%arg0: i32) -> (i32, i32) {
    %c0_i32 = arith.constant 0 : i32
    %c0_i32_0 = arith.constant 0 : i32
    return %arg0, %c0_i32 : i32, i32
  }
  func.func @transform_1(%arg0: i32) -> (i32, i32) {
    %c0_i32 = arith.constant 0 : i32
    %c0_i32_0 = arith.constant 0 : i32
    return %arg0, %c0_i32 : i32, i32
  }
  func.func @transform_2(%arg0: i32) -> (i32, i32) {
    %c0_i32 = arith.constant 0 : i32
    %c0_i32_0 = arith.constant 0 : i32
    %c0_i32_1 = arith.constant 0 : i32
    return %c0_i32, %c0_i32_0 : i32, i32
  }
  func.func @transform_3(%arg0: i32) -> (i32, i32) {
    %c0_i32 = arith.constant 0 : i32
    %c0_i32_0 = arith.constant 0 : i32
    %c0_i32_1 = arith.constant 0 : i32
    return %c0_i32, %c0_i32_0 : i32, i32
  }
  func.func @transform_4(%arg0: i32) -> (i32, i32) {
    %c0_i32 = arith.constant 0 : i32
    %c0_i32_0 = arith.constant 0 : i32
    %c0_i32_1 = arith.constant 0 : i32
    return %c0_i32, %c0_i32_0 : i32, i32
  }
  func.func @transform_5(%arg0: i32) -> (i32, i32) {
    %c0_i32 = arith.constant 0 : i32
    %c0_i32_0 = arith.constant 0 : i32
    %c0_i32_1 = arith.constant 0 : i32
    return %c0_i32, %c0_i32_0 : i32, i32
  }
  func.func @transform_6(%arg0: i32) -> (i32, i32) {
    %c0_i32 = arith.constant 0 : i32
    %c0_i32_0 = arith.constant 0 : i32
    %c0_i32_1 = arith.constant 0 : i32
    return %c0_i32, %c0_i32_0 : i32, i32
  }
  func.func @transform_7(%arg0: i32) -> (i32, i32) {
    %c0_i32 = arith.constant 0 : i32
    %c0_i32_0 = arith.constant 0 : i32
    %c0_i32_1 = arith.constant 0 : i32
    return %c0_i32, %c0_i32_0 : i32, i32
  }
  func.func @transform_8(%arg0: i32) -> (i32, i32) {
    %c0_i32 = arith.constant 0 : i32
    %c0_i32_0 = arith.constant 0 : i32
    %c0_i32_1 = arith.constant 0 : i32
    return %c0_i32, %c0_i32_0 : i32, i32
  }
  func.func @transform_9(%arg0: i32) -> (i32, i32) {
    %c0_i32 = arith.constant 0 : i32
    %c0_i32_0 = arith.constant 0 : i32
    return %arg0, %c0_i32 : i32, i32
  }
  func.func @transform_10(%arg0: i32) -> (i32, i32) {
    %c0_i32 = arith.constant 0 : i32
    %c0_i32_0 = arith.constant 0 : i32
    return %arg0, %c0_i32 : i32, i32
  }
}

module attributes {stable_mosaic.version = 11 : i64} {
  func.func @_tail_kernel(%arg0: i32, %arg1: memref<1x64x256xbf16, #tpu.memory_space<vmem>>, %arg2: memref<1x8x8x256xbf16, #tpu.memory_space<vmem>>, %arg3: memref<1x9x256xbf16, #tpu.memory_space<vmem>>, %arg4: memref<64x9xbf16, #tpu.memory_space<vmem>>, %arg5: memref<1x64x128xbf16, #tpu.memory_space<vmem>>, %arg6: memref<256x256xbf16, #tpu.memory_space<vmem>>, %arg7: memref<1x256xf32, #tpu.memory_space<vmem>>, %arg8: memref<3x3x512x256xbf16, #tpu.memory_space<vmem>>, %arg9: memref<1x256xf32, #tpu.memory_space<vmem>>, %arg10: memref<128x256xbf16, #tpu.memory_space<vmem>>, %arg11: memref<1x256xf32, #tpu.memory_space<vmem>>, %arg12: memref<1x64x256xf32, #tpu.memory_space<vmem>>, %arg13: memref<10x10x256xbf16, #tpu.memory_space<vmem>>, %arg14: memref<10x10x256xbf16, #tpu.memory_space<vmem>>) attributes {dimension_semantics = [#tpu.dimension_semantics<parallel>], iteration_bounds = array<i64: 2>, scalar_prefetch = 0 : i64, scratch_operands = 2 : i64, tpu.core_type = #tpu.core_type<tc>, window_params = [{transform_indices = @transform_0, window_bounds = array<i64: 1, 64, 256>}, {transform_indices = @transform_1, window_bounds = array<i64: 1, 8, 8, 256>}, {transform_indices = @transform_2, window_bounds = array<i64: 1, 9, 256>}, {pipeline_mode = #tpu.pipeline_mode<synchronous>, transform_indices = @transform_3, window_bounds = array<i64: 64, 9>}, {transform_indices = @transform_4, window_bounds = array<i64: 1, 64, 128>}, {pipeline_mode = #tpu.pipeline_mode<synchronous>, transform_indices = @transform_5, window_bounds = array<i64: 256, 256>}, {pipeline_mode = #tpu.pipeline_mode<synchronous>, transform_indices = @transform_6, window_bounds = array<i64: 1, 256>}, {pipeline_mode = #tpu.pipeline_mode<synchronous>, transform_indices = @transform_7, window_bounds = array<i64: 3, 3, 512, 256>}, {pipeline_mode = #tpu.pipeline_mode<synchronous>, transform_indices = @transform_8, window_bounds = array<i64: 1, 256>}, {pipeline_mode = #tpu.pipeline_mode<synchronous>, transform_indices = @transform_9, window_bounds = array<i64: 128, 256>}, {pipeline_mode = #tpu.pipeline_mode<synchronous>, transform_indices = @transform_10, window_bounds = array<i64: 1, 256>}, {transform_indices = @transform_11, window_bounds = array<i64: 1, 64, 256>}]} {
    %c0 = arith.constant 0 : index
    %c0_0 = arith.constant 0 : index
    %c0_1 = arith.constant 0 : index
    %0 = vector.load %arg1[%c0, %c0_0, %c0_1] : memref<1x64x256xbf16, #tpu.memory_space<vmem>>, vector<1x64x256xbf16>
    %1 = vector.shape_cast %0 : vector<1x64x256xbf16> to vector<64x256xbf16>
    %2 = arith.extf %1 : vector<64x256xbf16> to vector<64x256xf32>
    %c0_2 = arith.constant 0 : index
    %c0_3 = arith.constant 0 : index
    %3 = vector.load %arg4[%c0_2, %c0_3] : memref<64x9xbf16, #tpu.memory_space<vmem>>, vector<64x9xbf16>
    %c0_4 = arith.constant 0 : index
    %c0_5 = arith.constant 0 : index
    %c0_6 = arith.constant 0 : index
    %4 = vector.load %arg3[%c0_4, %c0_5, %c0_6] : memref<1x9x256xbf16, #tpu.memory_space<vmem>>, vector<1x9x256xbf16>
    %5 = vector.shape_cast %4 : vector<1x9x256xbf16> to vector<9x256xbf16>
    %cst = arith.constant dense<0.000000e+00> : vector<64x256xf32>
    %6 = tpu.matmul %3, %5, %cst {dimension_numbers = #tpu.dot_dimension_numbers<[1], [0], [0], [1], [0, 0, 1, 1], [], []>} : vector<64x9xbf16>, vector<9x256xbf16>, vector<64x256xf32> -> vector<64x256xf32>
    %7 = arith.mulf %2, %6 : vector<64x256xf32>
    %cst_7 = arith.constant dense<0.000000e+00> : vector<64xf32>
    %8 = vector.multi_reduction <add>, %7, %cst_7 [1] : vector<64x256xf32> to vector<64xf32>
    %9 = vector.shape_cast %8 : vector<64xf32> to vector<64x1xf32>
    %10 = arith.mulf %2, %2 : vector<64x256xf32>
    %cst_8 = arith.constant dense<0.000000e+00> : vector<64xf32>
    %11 = vector.multi_reduction <add>, %10, %cst_8 [1] : vector<64x256xf32> to vector<64xf32>
    %12 = vector.shape_cast %11 : vector<64xf32> to vector<64x1xf32>
    %13 = arith.mulf %6, %6 : vector<64x256xf32>
    %cst_9 = arith.constant dense<0.000000e+00> : vector<64xf32>
    %14 = vector.multi_reduction <add>, %13, %cst_9 [1] : vector<64x256xf32> to vector<64xf32>
    %15 = vector.shape_cast %14 : vector<64xf32> to vector<64x1xf32>
    %16 = arith.mulf %12, %15 : vector<64x1xf32>
    %cst_10 = arith.constant 1.000000e-16 : f32
    %17 = vector.broadcast %cst_10 : f32 to vector<64x1xf32>
    %18 = arith.maximumf %16, %17 : vector<64x1xf32>
    %19 = math.rsqrt %18 : vector<64x1xf32>
    %20 = arith.mulf %9, %19 : vector<64x1xf32>
    %21 = vector.broadcast %20 : vector<64x1xf32> to vector<64x256xf32>
    %22 = arith.mulf %2, %21 : vector<64x256xf32>
    %23 = arith.truncf %22 : vector<64x256xf32> to vector<64x256xbf16>
    %c0_11 = arith.constant 0 : index
    %c0_12 = arith.constant 0 : index
    %24 = vector.load %arg6[%c0_11, %c0_12] : memref<256x256xbf16, #tpu.memory_space<vmem>>, vector<256x256xbf16>
    %cst_13 = arith.constant dense<0.000000e+00> : vector<64x256xf32>
    %25 = tpu.matmul %23, %24, %cst_13 {dimension_numbers = #tpu.dot_dimension_numbers<[1], [0], [0], [1], [0, 0, 1, 1], [], []>} : vector<64x256xbf16>, vector<256x256xbf16>, vector<64x256xf32> -> vector<64x256xf32>
    %c0_14 = arith.constant 0 : index
    %c0_15 = arith.constant 0 : index
    %26 = vector.load %arg7[%c0_14, %c0_15] : memref<1x256xf32, #tpu.memory_space<vmem>>, vector<1x256xf32>
    %27 = vector.broadcast %26 : vector<1x256xf32> to vector<64x256xf32>
    %28 = arith.addf %25, %27 : vector<64x256xf32>
    %cst_16 = arith.constant 0.000000e+00 : f32
    %29 = vector.broadcast %cst_16 : f32 to vector<64x256xf32>
    %30 = arith.maximumf %28, %29 : vector<64x256xf32>
    %cst_17 = arith.constant 0.000000e+00 : bf16
    %31 = vector.broadcast %cst_17 : bf16 to vector<10x10x256xbf16>
    %c0_18 = arith.constant 0 : index
    %c0_19 = arith.constant 0 : index
    %c0_20 = arith.constant 0 : index
    %32 = vector.load %arg13[%c0_18, %c0_19, %c0_20] : memref<10x10x256xbf16, #tpu.memory_space<vmem>>, vector<10x10x256xbf16>
    tpu.vector_store %arg13[%c0_18, %c0_19, %c0_20], %31 {strides = array<i32>} : memref<10x10x256xbf16, #tpu.memory_space<vmem>>, vector<10x10x256xbf16>,
    %cst_21 = arith.constant 0.000000e+00 : bf16
    %33 = vector.broadcast %cst_21 : bf16 to vector<10x10x256xbf16>
    %c0_22 = arith.constant 0 : index
    %c0_23 = arith.constant 0 : index
    %c0_24 = arith.constant 0 : index
    %34 = vector.load %arg14[%c0_22, %c0_23, %c0_24] : memref<10x10x256xbf16, #tpu.memory_space<vmem>>, vector<10x10x256xbf16>
    tpu.vector_store %arg14[%c0_22, %c0_23, %c0_24], %33 {strides = array<i32>} : memref<10x10x256xbf16, #tpu.memory_space<vmem>>, vector<10x10x256xbf16>,
    %c0_25 = arith.constant 0 : index
    %c0_26 = arith.constant 0 : index
    %c0_27 = arith.constant 0 : index
    %c0_28 = arith.constant 0 : index
    %35 = vector.load %arg2[%c0_25, %c0_26, %c0_27, %c0_28] : memref<1x8x8x256xbf16, #tpu.memory_space<vmem>>, vector<1x8x8x256xbf16>
    %36 = vector.shape_cast %35 : vector<1x8x8x256xbf16> to vector<8x8x256xbf16>
    %c1 = arith.constant 1 : index
    %c1_29 = arith.constant 1 : index
    %c0_30 = arith.constant 0 : index
    %37 = vector.load %arg13[%c1, %c1_29, %c0_30] : memref<10x10x256xbf16, #tpu.memory_space<vmem>>, vector<8x8x256xbf16>
    tpu.vector_store %arg13[%c1, %c1_29, %c0_30], %36 {strides = array<i32>} : memref<10x10x256xbf16, #tpu.memory_space<vmem>>, vector<8x8x256xbf16>,
    %38 = arith.truncf %30 : vector<64x256xf32> to vector<64x256xbf16>
    %39 = vector.shape_cast %38 : vector<64x256xbf16> to vector<8x8x256xbf16>
    %c1_31 = arith.constant 1 : index
    %c1_32 = arith.constant 1 : index
    %c0_33 = arith.constant 0 : index
    %40 = vector.load %arg14[%c1_31, %c1_32, %c0_33] : memref<10x10x256xbf16, #tpu.memory_space<vmem>>, vector<8x8x256xbf16>
    tpu.vector_store %arg14[%c1_31, %c1_32, %c0_33], %39 {strides = array<i32>} : memref<10x10x256xbf16, #tpu.memory_space<vmem>>, vector<8x8x256xbf16>,
    %cst_34 = arith.constant 0.000000e+00 : f32
    %41 = vector.broadcast %cst_34 : f32 to vector<64x256xf32>
    %c0_35 = arith.constant 0 : index
    %c0_36 = arith.constant 0 : index
    %c0_37 = arith.constant 0 : index
    %42 = vector.load %arg13[%c0_35, %c0_36, %c0_37] : memref<10x10x256xbf16, #tpu.memory_space<vmem>>, vector<8x8x256xbf16>
    %43 = vector.shape_cast %42 : vector<8x8x256xbf16> to vector<64x256xbf16>
    %c0_38 = arith.constant 0 : index
    %c0_39 = arith.constant 0 : index
    %c0_40 = arith.constant 0 : index
    %44 = vector.load %arg14[%c0_38, %c0_39, %c0_40] : memref<10x10x256xbf16, #tpu.memory_space<vmem>>, vector<8x8x256xbf16>
    %45 = vector.shape_cast %44 : vector<8x8x256xbf16> to vector<64x256xbf16>
    %46 = tpu.concatenate %43, %45 in 1 : vector<64x256xbf16>, vector<64x256xbf16> -> vector<64x512xbf16>
    %c0_41 = arith.constant 0 : index
    %c0_42 = arith.constant 0 : index
    %c0_43 = arith.constant 0 : index
    %c0_44 = arith.constant 0 : index
    %47 = vector.load %arg8[%c0_41, %c0_42, %c0_43, %c0_44] : memref<3x3x512x256xbf16, #tpu.memory_space<vmem>>, vector<1x1x512x256xbf16>
    %48 = vector.shape_cast %47 : vector<1x1x512x256xbf16> to vector<512x256xbf16>
    %cst_45 = arith.constant dense<0.000000e+00> : vector<64x256xf32>
    %49 = tpu.matmul %46, %48, %cst_45 {dimension_numbers = #tpu.dot_dimension_numbers<[1], [0], [0], [1], [0, 0, 1, 1], [], []>} : vector<64x512xbf16>, vector<512x256xbf16>, vector<64x256xf32> -> vector<64x256xf32>
    %50 = arith.addf %41, %49 : vector<64x256xf32>
    %c0_46 = arith.constant 0 : index
    %c1_47 = arith.constant 1 : index
    %c0_48 = arith.constant 0 : index
    %51 = vector.load %arg13[%c0_46, %c1_47, %c0_48] : memref<10x10x256xbf16, #tpu.memory_space<vmem>>, vector<8x8x256xbf16>
    %52 = vector.shape_cast %51 : vector<8x8x256xbf16> to vector<64x256xbf16>
    %c0_49 = arith.constant 0 : index
    %c1_50 = arith.constant 1 : index
    %c0_51 = arith.constant 0 : index
    %53 = vector.load %arg14[%c0_49, %c1_50, %c0_51] : memref<10x10x256xbf16, #tpu.memory_space<vmem>>, vector<8x8x256xbf16>
    %54 = vector.shape_cast %53 : vector<8x8x256xbf16> to vector<64x256xbf16>
    %55 = tpu.concatenate %52, %54 in 1 : vector<64x256xbf16>, vector<64x256xbf16> -> vector<64x512xbf16>
    %c0_52 = arith.constant 0 : index
    %c1_53 = arith.constant 1 : index
    %c0_54 = arith.constant 0 : index
    %c0_55 = arith.constant 0 : index
    %56 = vector.load %arg8[%c0_52, %c1_53, %c0_54, %c0_55] : memref<3x3x512x256xbf16, #tpu.memory_space<vmem>>, vector<1x1x512x256xbf16>
    %57 = vector.shape_cast %56 : vector<1x1x512x256xbf16> to vector<512x256xbf16>
    %cst_56 = arith.constant dense<0.000000e+00> : vector<64x256xf32>
    %58 = tpu.matmul %55, %57, %cst_56 {dimension_numbers = #tpu.dot_dimension_numbers<[1], [0], [0], [1], [0, 0, 1, 1], [], []>} : vector<64x512xbf16>, vector<512x256xbf16>, vector<64x256xf32> -> vector<64x256xf32>
    %59 = arith.addf %50, %58 : vector<64x256xf32>
    %c0_57 = arith.constant 0 : index
    %c2 = arith.constant 2 : index
    %c0_58 = arith.constant 0 : index
    %60 = vector.load %arg13[%c0_57, %c2, %c0_58] : memref<10x10x256xbf16, #tpu.memory_space<vmem>>, vector<8x8x256xbf16>
    %61 = vector.shape_cast %60 : vector<8x8x256xbf16> to vector<64x256xbf16>
    %c0_59 = arith.constant 0 : index
    %c2_60 = arith.constant 2 : index
    %c0_61 = arith.constant 0 : index
    %62 = vector.load %arg14[%c0_59, %c2_60, %c0_61] : memref<10x10x256xbf16, #tpu.memory_space<vmem>>, vector<8x8x256xbf16>
    %63 = vector.shape_cast %62 : vector<8x8x256xbf16> to vector<64x256xbf16>
    %64 = tpu.concatenate %61, %63 in 1 : vector<64x256xbf16>, vector<64x256xbf16> -> vector<64x512xbf16>
    %c0_62 = arith.constant 0 : index
    %c2_63 = arith.constant 2 : index
    %c0_64 = arith.constant 0 : index
    %c0_65 = arith.constant 0 : index
    %65 = vector.load %arg8[%c0_62, %c2_63, %c0_64, %c0_65] : memref<3x3x512x256xbf16, #tpu.memory_space<vmem>>, vector<1x1x512x256xbf16>
    %66 = vector.shape_cast %65 : vector<1x1x512x256xbf16> to vector<512x256xbf16>
    %cst_66 = arith.constant dense<0.000000e+00> : vector<64x256xf32>
    %67 = tpu.matmul %64, %66, %cst_66 {dimension_numbers = #tpu.dot_dimension_numbers<[1], [0], [0], [1], [0, 0, 1, 1], [], []>} : vector<64x512xbf16>, vector<512x256xbf16>, vector<64x256xf32> -> vector<64x256xf32>
    %68 = arith.addf %59, %67 : vector<64x256xf32>
    %c1_67 = arith.constant 1 : index
    %c0_68 = arith.constant 0 : index
    %c0_69 = arith.constant 0 : index
    %69 = vector.load %arg13[%c1_67, %c0_68, %c0_69] : memref<10x10x256xbf16, #tpu.memory_space<vmem>>, vector<8x8x256xbf16>
    %70 = vector.shape_cast %69 : vector<8x8x256xbf16> to vector<64x256xbf16>
    %c1_70 = arith.constant 1 : index
    %c0_71 = arith.constant 0 : index
    %c0_72 = arith.constant 0 : index
    %71 = vector.load %arg14[%c1_70, %c0_71, %c0_72] : memref<10x10x256xbf16, #tpu.memory_space<vmem>>, vector<8x8x256xbf16>
    %72 = vector.shape_cast %71 : vector<8x8x256xbf16> to vector<64x256xbf16>
    %73 = tpu.concatenate %70, %72 in 1 : vector<64x256xbf16>, vector<64x256xbf16> -> vector<64x512xbf16>
    %c1_73 = arith.constant 1 : index
    %c0_74 = arith.constant 0 : index
    %c0_75 = arith.constant 0 : index
    %c0_76 = arith.constant 0 : index
    %74 = vector.load %arg8[%c1_73, %c0_74, %c0_75, %c0_76] : memref<3x3x512x256xbf16, #tpu.memory_space<vmem>>, vector<1x1x512x256xbf16>
    %75 = vector.shape_cast %74 : vector<1x1x512x256xbf16> to vector<512x256xbf16>
    %cst_77 = arith.constant dense<0.000000e+00> : vector<64x256xf32>
    %76 = tpu.matmul %73, %75, %cst_77 {dimension_numbers = #tpu.dot_dimension_numbers<[1], [0], [0], [1], [0, 0, 1, 1], [], []>} : vector<64x512xbf16>, vector<512x256xbf16>, vector<64x256xf32> -> vector<64x256xf32>
    %77 = arith.addf %68, %76 : vector<64x256xf32>
    %c1_78 = arith.constant 1 : index
    %c1_79 = arith.constant 1 : index
    %c0_80 = arith.constant 0 : index
    %78 = vector.load %arg13[%c1_78, %c1_79, %c0_80] : memref<10x10x256xbf16, #tpu.memory_space<vmem>>, vector<8x8x256xbf16>
    %79 = vector.shape_cast %78 : vector<8x8x256xbf16> to vector<64x256xbf16>
    %c1_81 = arith.constant 1 : index
    %c1_82 = arith.constant 1 : index
    %c0_83 = arith.constant 0 : index
    %80 = vector.load %arg14[%c1_81, %c1_82, %c0_83] : memref<10x10x256xbf16, #tpu.memory_space<vmem>>, vector<8x8x256xbf16>
    %81 = vector.shape_cast %80 : vector<8x8x256xbf16> to vector<64x256xbf16>
    %82 = tpu.concatenate %79, %81 in 1 : vector<64x256xbf16>, vector<64x256xbf16> -> vector<64x512xbf16>
    %c1_84 = arith.constant 1 : index
    %c1_85 = arith.constant 1 : index
    %c0_86 = arith.constant 0 : index
    %c0_87 = arith.constant 0 : index
    %83 = vector.load %arg8[%c1_84, %c1_85, %c0_86, %c0_87] : memref<3x3x512x256xbf16, #tpu.memory_space<vmem>>, vector<1x1x512x256xbf16>
    %84 = vector.shape_cast %83 : vector<1x1x512x256xbf16> to vector<512x256xbf16>
    %cst_88 = arith.constant dense<0.000000e+00> : vector<64x256xf32>
    %85 = tpu.matmul %82, %84, %cst_88 {dimension_numbers = #tpu.dot_dimension_numbers<[1], [0], [0], [1], [0, 0, 1, 1], [], []>} : vector<64x512xbf16>, vector<512x256xbf16>, vector<64x256xf32> -> vector<64x256xf32>
    %86 = arith.addf %77, %85 : vector<64x256xf32>
    %c1_89 = arith.constant 1 : index
    %c2_90 = arith.constant 2 : index
    %c0_91 = arith.constant 0 : index
    %87 = vector.load %arg13[%c1_89, %c2_90, %c0_91] : memref<10x10x256xbf16, #tpu.memory_space<vmem>>, vector<8x8x256xbf16>
    %88 = vector.shape_cast %87 : vector<8x8x256xbf16> to vector<64x256xbf16>
    %c1_92 = arith.constant 1 : index
    %c2_93 = arith.constant 2 : index
    %c0_94 = arith.constant 0 : index
    %89 = vector.load %arg14[%c1_92, %c2_93, %c0_94] : memref<10x10x256xbf16, #tpu.memory_space<vmem>>, vector<8x8x256xbf16>
    %90 = vector.shape_cast %89 : vector<8x8x256xbf16> to vector<64x256xbf16>
    %91 = tpu.concatenate %88, %90 in 1 : vector<64x256xbf16>, vector<64x256xbf16> -> vector<64x512xbf16>
    %c1_95 = arith.constant 1 : index
    %c2_96 = arith.constant 2 : index
    %c0_97 = arith.constant 0 : index
    %c0_98 = arith.constant 0 : index
    %92 = vector.load %arg8[%c1_95, %c2_96, %c0_97, %c0_98] : memref<3x3x512x256xbf16, #tpu.memory_space<vmem>>, vector<1x1x512x256xbf16>
    %93 = vector.shape_cast %92 : vector<1x1x512x256xbf16> to vector<512x256xbf16>
    %cst_99 = arith.constant dense<0.000000e+00> : vector<64x256xf32>
    %94 = tpu.matmul %91, %93, %cst_99 {dimension_numbers = #tpu.dot_dimension_numbers<[1], [0], [0], [1], [0, 0, 1, 1], [], []>} : vector<64x512xbf16>, vector<512x256xbf16>, vector<64x256xf32> -> vector<64x256xf32>
    %95 = arith.addf %86, %94 : vector<64x256xf32>
    %c2_100 = arith.constant 2 : index
    %c0_101 = arith.constant 0 : index
    %c0_102 = arith.constant 0 : index
    %96 = vector.load %arg13[%c2_100, %c0_101, %c0_102] : memref<10x10x256xbf16, #tpu.memory_space<vmem>>, vector<8x8x256xbf16>
    %97 = vector.shape_cast %96 : vector<8x8x256xbf16> to vector<64x256xbf16>
    %c2_103 = arith.constant 2 : index
    %c0_104 = arith.constant 0 : index
    %c0_105 = arith.constant 0 : index
    %98 = vector.load %arg14[%c2_103, %c0_104, %c0_105] : memref<10x10x256xbf16, #tpu.memory_space<vmem>>, vector<8x8x256xbf16>
    %99 = vector.shape_cast %98 : vector<8x8x256xbf16> to vector<64x256xbf16>
    %100 = tpu.concatenate %97, %99 in 1 : vector<64x256xbf16>, vector<64x256xbf16> -> vector<64x512xbf16>
    %c2_106 = arith.constant 2 : index
    %c0_107 = arith.constant 0 : index
    %c0_108 = arith.constant 0 : index
    %c0_109 = arith.constant 0 : index
    %101 = vector.load %arg8[%c2_106, %c0_107, %c0_108, %c0_109] : memref<3x3x512x256xbf16, #tpu.memory_space<vmem>>, vector<1x1x512x256xbf16>
    %102 = vector.shape_cast %101 : vector<1x1x512x256xbf16> to vector<512x256xbf16>
    %cst_110 = arith.constant dense<0.000000e+00> : vector<64x256xf32>
    %103 = tpu.matmul %100, %102, %cst_110 {dimension_numbers = #tpu.dot_dimension_numbers<[1], [0], [0], [1], [0, 0, 1, 1], [], []>} : vector<64x512xbf16>, vector<512x256xbf16>, vector<64x256xf32> -> vector<64x256xf32>
    %104 = arith.addf %95, %103 : vector<64x256xf32>
    %c2_111 = arith.constant 2 : index
    %c1_112 = arith.constant 1 : index
    %c0_113 = arith.constant 0 : index
    %105 = vector.load %arg13[%c2_111, %c1_112, %c0_113] : memref<10x10x256xbf16, #tpu.memory_space<vmem>>, vector<8x8x256xbf16>
    %106 = vector.shape_cast %105 : vector<8x8x256xbf16> to vector<64x256xbf16>
    %c2_114 = arith.constant 2 : index
    %c1_115 = arith.constant 1 : index
    %c0_116 = arith.constant 0 : index
    %107 = vector.load %arg14[%c2_114, %c1_115, %c0_116] : memref<10x10x256xbf16, #tpu.memory_space<vmem>>, vector<8x8x256xbf16>
    %108 = vector.shape_cast %107 : vector<8x8x256xbf16> to vector<64x256xbf16>
    %109 = tpu.concatenate %106, %108 in 1 : vector<64x256xbf16>, vector<64x256xbf16> -> vector<64x512xbf16>
    %c2_117 = arith.constant 2 : index
    %c1_118 = arith.constant 1 : index
    %c0_119 = arith.constant 0 : index
    %c0_120 = arith.constant 0 : index
    %110 = vector.load %arg8[%c2_117, %c1_118, %c0_119, %c0_120] : memref<3x3x512x256xbf16, #tpu.memory_space<vmem>>, vector<1x1x512x256xbf16>
    %111 = vector.shape_cast %110 : vector<1x1x512x256xbf16> to vector<512x256xbf16>
    %cst_121 = arith.constant dense<0.000000e+00> : vector<64x256xf32>
    %112 = tpu.matmul %109, %111, %cst_121 {dimension_numbers = #tpu.dot_dimension_numbers<[1], [0], [0], [1], [0, 0, 1, 1], [], []>} : vector<64x512xbf16>, vector<512x256xbf16>, vector<64x256xf32> -> vector<64x256xf32>
    %113 = arith.addf %104, %112 : vector<64x256xf32>
    %c2_122 = arith.constant 2 : index
    %c2_123 = arith.constant 2 : index
    %c0_124 = arith.constant 0 : index
    %114 = vector.load %arg13[%c2_122, %c2_123, %c0_124] : memref<10x10x256xbf16, #tpu.memory_space<vmem>>, vector<8x8x256xbf16>
    %115 = vector.shape_cast %114 : vector<8x8x256xbf16> to vector<64x256xbf16>
    %c2_125 = arith.constant 2 : index
    %c2_126 = arith.constant 2 : index
    %c0_127 = arith.constant 0 : index
    %116 = vector.load %arg14[%c2_125, %c2_126, %c0_127] : memref<10x10x256xbf16, #tpu.memory_space<vmem>>, vector<8x8x256xbf16>
    %117 = vector.shape_cast %116 : vector<8x8x256xbf16> to vector<64x256xbf16>
    %118 = tpu.concatenate %115, %117 in 1 : vector<64x256xbf16>, vector<64x256xbf16> -> vector<64x512xbf16>
    %c2_128 = arith.constant 2 : index
    %c2_129 = arith.constant 2 : index
    %c0_130 = arith.constant 0 : index
    %c0_131 = arith.constant 0 : index
    %119 = vector.load %arg8[%c2_128, %c2_129, %c0_130, %c0_131] : memref<3x3x512x256xbf16, #tpu.memory_space<vmem>>, vector<1x1x512x256xbf16>
    %120 = vector.shape_cast %119 : vector<1x1x512x256xbf16> to vector<512x256xbf16>
    %cst_132 = arith.constant dense<0.000000e+00> : vector<64x256xf32>
    %121 = tpu.matmul %118, %120, %cst_132 {dimension_numbers = #tpu.dot_dimension_numbers<[1], [0], [0], [1], [0, 0, 1, 1], [], []>} : vector<64x512xbf16>, vector<512x256xbf16>, vector<64x256xf32> -> vector<64x256xf32>
    %122 = arith.addf %113, %121 : vector<64x256xf32>
    %c0_133 = arith.constant 0 : index
    %c0_134 = arith.constant 0 : index
    %123 = vector.load %arg9[%c0_133, %c0_134] : memref<1x256xf32, #tpu.memory_space<vmem>>, vector<1x256xf32>
    %124 = vector.broadcast %123 : vector<1x256xf32> to vector<64x256xf32>
    %125 = arith.addf %122, %124 : vector<64x256xf32>
    %cst_135 = arith.constant 0.000000e+00 : f32
    %126 = vector.broadcast %cst_135 : f32 to vector<64x256xf32>
    %127 = arith.maximumf %125, %126 : vector<64x256xf32>
    %c0_136 = arith.constant 0 : index
    %c0_137 = arith.constant 0 : index
    %c0_138 = arith.constant 0 : index
    %128 = vector.load %arg5[%c0_136, %c0_137, %c0_138] : memref<1x64x128xbf16, #tpu.memory_space<vmem>>, vector<1x64x128xbf16>
    %129 = vector.shape_cast %128 : vector<1x64x128xbf16> to vector<64x128xbf16>
    %c0_139 = arith.constant 0 : index
    %c0_140 = arith.constant 0 : index
    %130 = vector.load %arg10[%c0_139, %c0_140] : memref<128x256xbf16, #tpu.memory_space<vmem>>, vector<128x256xbf16>
    %cst_141 = arith.constant dense<0.000000e+00> : vector<64x256xf32>
    %131 = tpu.matmul %129, %130, %cst_141 {dimension_numbers = #tpu.dot_dimension_numbers<[1], [0], [0], [1], [0, 0, 1, 1], [], []>} : vector<64x128xbf16>, vector<128x256xbf16>, vector<64x256xf32> -> vector<64x256xf32>
    %c0_142 = arith.constant 0 : index
    %c0_143 = arith.constant 0 : index
    %132 = vector.load %arg11[%c0_142, %c0_143] : memref<1x256xf32, #tpu.memory_space<vmem>>, vector<1x256xf32>
    %133 = vector.broadcast %132 : vector<1x256xf32> to vector<64x256xf32>
    %134 = arith.addf %131, %133 : vector<64x256xf32>
    %135 = arith.negf %134 : vector<64x256xf32>
    %136 = math.exp %135 : vector<64x256xf32>
    %cst_144 = arith.constant 1.000000e+00 : f32
    %137 = vector.broadcast %cst_144 : f32 to vector<64x256xf32>
    %138 = arith.addf %137, %136 : vector<64x256xf32>
    %139 = arith.divf %137, %138 : vector<64x256xf32>
    %140 = arith.mulf %127, %139 : vector<64x256xf32>
    %c0_145 = arith.constant 0 : index
    %c0_146 = arith.constant 0 : index
    %c0_147 = arith.constant 0 : index
    %141 = vector.load %arg12[%c0_145, %c0_146, %c0_147] : memref<1x64x256xf32, #tpu.memory_space<vmem>>, vector<1x64x256xf32>
    %142 = vector.shape_cast %141 : vector<1x64x256xf32> to vector<64x256xf32>
    %143 = vector.shape_cast %140 : vector<64x256xf32> to vector<1x64x256xf32>
    tpu.vector_store %arg12[%c0_145, %c0_146, %c0_147], %143 {strides = array<i32>} : memref<1x64x256xf32, #tpu.memory_space<vmem>>, vector<1x64x256xf32>,
    return
  }
  func.func @transform_0(%arg0: i32) -> (i32, i32, i32) {
    %c0_i32 = arith.constant 0 : i32
    %c0_i32_0 = arith.constant 0 : i32
    %c0_i32_1 = arith.constant 0 : i32
    return %arg0, %c0_i32, %c0_i32_0 : i32, i32, i32
  }
  func.func @transform_1(%arg0: i32) -> (i32, i32, i32, i32) {
    %c0_i32 = arith.constant 0 : i32
    %c0_i32_0 = arith.constant 0 : i32
    %c0_i32_1 = arith.constant 0 : i32
    %c0_i32_2 = arith.constant 0 : i32
    return %arg0, %c0_i32, %c0_i32_0, %c0_i32_1 : i32, i32, i32, i32
  }
  func.func @transform_2(%arg0: i32) -> (i32, i32, i32) {
    %c0_i32 = arith.constant 0 : i32
    %c0_i32_0 = arith.constant 0 : i32
    %c0_i32_1 = arith.constant 0 : i32
    return %arg0, %c0_i32, %c0_i32_0 : i32, i32, i32
  }
  func.func @transform_3(%arg0: i32) -> (i32, i32) {
    %c0_i32 = arith.constant 0 : i32
    %c0_i32_0 = arith.constant 0 : i32
    %c0_i32_1 = arith.constant 0 : i32
    return %c0_i32, %c0_i32_0 : i32, i32
  }
  func.func @transform_4(%arg0: i32) -> (i32, i32, i32) {
    %c0_i32 = arith.constant 0 : i32
    %c0_i32_0 = arith.constant 0 : i32
    %c0_i32_1 = arith.constant 0 : i32
    return %arg0, %c0_i32, %c0_i32_0 : i32, i32, i32
  }
  func.func @transform_5(%arg0: i32) -> (i32, i32) {
    %c0_i32 = arith.constant 0 : i32
    %c0_i32_0 = arith.constant 0 : i32
    %c0_i32_1 = arith.constant 0 : i32
    return %c0_i32, %c0_i32_0 : i32, i32
  }
  func.func @transform_6(%arg0: i32) -> (i32, i32) {
    %c0_i32 = arith.constant 0 : i32
    %c0_i32_0 = arith.constant 0 : i32
    %c0_i32_1 = arith.constant 0 : i32
    return %c0_i32, %c0_i32_0 : i32, i32
  }
  func.func @transform_7(%arg0: i32) -> (i32, i32, i32, i32) {
    %c0_i32 = arith.constant 0 : i32
    %c0_i32_0 = arith.constant 0 : i32
    %c0_i32_1 = arith.constant 0 : i32
    %c0_i32_2 = arith.constant 0 : i32
    %c0_i32_3 = arith.constant 0 : i32
    return %c0_i32, %c0_i32_0, %c0_i32_1, %c0_i32_2 : i32, i32, i32, i32
  }
  func.func @transform_8(%arg0: i32) -> (i32, i32) {
    %c0_i32 = arith.constant 0 : i32
    %c0_i32_0 = arith.constant 0 : i32
    %c0_i32_1 = arith.constant 0 : i32
    return %c0_i32, %c0_i32_0 : i32, i32
  }
  func.func @transform_9(%arg0: i32) -> (i32, i32) {
    %c0_i32 = arith.constant 0 : i32
    %c0_i32_0 = arith.constant 0 : i32
    %c0_i32_1 = arith.constant 0 : i32
    return %c0_i32, %c0_i32_0 : i32, i32
  }
  func.func @transform_10(%arg0: i32) -> (i32, i32) {
    %c0_i32 = arith.constant 0 : i32
    %c0_i32_0 = arith.constant 0 : i32
    %c0_i32_1 = arith.constant 0 : i32
    return %c0_i32, %c0_i32_0 : i32, i32
  }
  func.func @transform_11(%arg0: i32) -> (i32, i32, i32) {
    %c0_i32 = arith.constant 0 : i32
    %c0_i32_0 = arith.constant 0 : i32
    %c0_i32_1 = arith.constant 0 : i32
    return %arg0, %c0_i32, %c0_i32_0 : i32, i32, i32
  }
}

</mosaic_0001>

<bundles_post_ra>
// kernel: dig_forward.2
= control target key start
LH: loop header
LB: loop body
LE: loop exit
PB: predicated region body
PF: predicated region fallthrough
CT: control target
= control target key end

     0   :  { %v2460_v1 = vmov 0   ;;  %s3255_s2 = inlined_call_operand.vmem [shape: bf16[128,256], index: 2, kind: input, shape index: {}]   ;;  %s3256_s0 = inlined_call_operand.vmem [shape: bf16[128,128], index: 0, kind: input, shape index: {}]   ;;  %s3257_s3 = inlined_call_operand.vmem [shape: bf16[256,256], index: 3, kind: input, shape index: {}]   ;;  %s3258_s5 = inlined_call_operand.vmem [shape: bf16[256,256], index: 5, kind: input, shape index: {}]   ;;  %s3259_s4 = inlined_call_operand.vmem [shape: bf16[256,256], index: 4, kind: input, shape index: {}]   ;;  %s3260_s6 = inlined_call_operand.vmem [shape: f32[1,256], index: 6, kind: input, shape index: {}, may-alias: {6,7,8}]   ;;  %s3261_s7 = inlined_call_operand.vmem [shape: f32[1,256], index: 7, kind: input, shape index: {}, may-alias: {6,7,8}]   ;;  %s3262_s1 = inlined_call_operand.vmem [shape: bf16[128,256], index: 1, kind: input, shape index: {}]   ;;  %s3263_s9 = inlined_call_operand.vmem [shape: bf16[128,256], index: 9, kind: output, shape index: {0}]   ;;  %s3264_s8 = inlined_call_operand.vmem [shape: f32[1,256], index: 8, kind: input, shape index: {}, may-alias: {6,7,8}]   ;;  %s3265_s10 = inlined_call_operand.vmem [shape: bf16[128,256], index: 10, kind: output, shape index: {1}]  }
   0x1   :  { %v2156_v0 = vld [vmem:[%s3255_s2 + $0x4] ss:$8 sps:$4 sm:$0xff]   ;;  %239 = vmatprep.mubr.bf16.mxu0 %v2460_v1  ;;  %v2158_v2 = vld [vmem:[%s3255_s2] ss:$8 sps:$4 sm:$0xff]   ;;  %v2159_v3 = vld [vmem:[%s3255_s2 + $0x14] ss:$8 sps:$4 sm:$0xff]  }
   0x2   :  { %207 = vmatprep.subr.bf16.mxu0 %v2156_v0  ;;  %v2161_v4 = vld [vmem:[%s3255_s2 + $0x10] ss:$8 sps:$4 sm:$0xff]   ;;  %v2162_v5 = vld [vmem:[%s3255_s2 + $0x24] ss:$8 sps:$4 sm:$0xff]   ;;  %v2164_v6 = vld [vmem:[%s3255_s2 + $0x20] ss:$8 sps:$4 sm:$0xff]  }
   0x3   :  { %208 = vmatpush1.bf16.msra.mxu0 %v2158_v2  ;;  %v2165_v7 = vld [vmem:[%s3255_s2 + $0x34] ss:$8 sps:$4 sm:$0xff]   ;;  %v2167_v8 = vld [vmem:[%s3255_s2 + $0x30] ss:$8 sps:$4 sm:$0xff]   ;;  %v2168_v9 = vld [vmem:[%s3255_s2 + $0x44] ss:$8 sps:$4 sm:$0xff]  }
   0x4   :  { %209 = vmatprep.subr.bf16.mxu0 %v2159_v3  ;;  %v2170_v10 = vld [vmem:[%s3255_s2 + $0x40] ss:$8 sps:$4 sm:$0xff]   ;;  %v2171_v11 = vld [vmem:[%s3255_s2 + $0x54] ss:$8 sps:$4 sm:$0xff]   ;;  %v2173_v12 = vld [vmem:[%s3255_s2 + $0x50] ss:$8 sps:$4 sm:$0xff]  }
   0x5   :  { %v2188_v13 = vld [vmem:[%s3257_s3 + $0x4] ss:$8 sps:$4 sm:$0xff]   ;;  %v2193_v15 = vld [vmem:[%s3257_s3] ss:$8 sps:$4 sm:$0xff]   ;;  %v2194_v16 = vld [vmem:[%s3257_s3 + $0x14] ss:$8 sps:$4 sm:$0xff]  }
   0x6   :  { %v2174_v14 = vld [vmem:[%s3255_s2 + $0x64] ss:$8 sps:$4 sm:$0xff]   ;;  %572 = vmatprep.subr.bf16.mxu1 %v2188_v13  ;;  %v2176_v17 = vld [vmem:[%s3255_s2 + $0x60] ss:$8 sps:$4 sm:$0xff]   ;;  %v2177_v18 = vld [vmem:[%s3255_s2 + $0x74] ss:$8 sps:$4 sm:$0xff]  }
   0x7   :  { %210 = vmatpush1.bf16.msra.mxu0 %v2161_v4  ;;  %573 = vmatpush1.bf16.msra.mxu1 %v2193_v15  ;;  %v2199_v19 = vld [vmem:[%s3257_s3 + $0x10] ss:$8 sps:$4 sm:$0xff]   ;;  %v2200_v20 = vld [vmem:[%s3257_s3 + $0x24] ss:$8 sps:$4 sm:$0xff]   ;;  %v2205_v22 = vld [vmem:[%s3257_s3 + $0x20] ss:$8 sps:$4 sm:$0xff]  }
   0x8   :  { %211 = vmatprep.subr.bf16.mxu0 %v2162_v5  ;;  %574 = vmatprep.subr.bf16.mxu1 %v2194_v16  ;;  %v2179_v21 = vld [vmem:[%s3255_s2 + $0x70] ss:$8 sps:$4 sm:$0xff]   ;;  %v2192_v23 = vld [vmem:[%s3258_s5 + $0x4] ss:$8 sps:$4 sm:$0xff]   ;;  %v2206_v24 = vld [vmem:[%s3257_s3 + $0x34] ss:$8 sps:$4 sm:$0xff]  }
   0x9   :  { %v2180_v25 = vld [vmem:[%s3256_s0] sm:$0xff]   ;;  %v2198_v27 = vld [vmem:[%s3258_s5 + $0x14] ss:$8 sps:$4 sm:$0xff]   ;;  %v2211_v28 = vld [vmem:[%s3257_s3 + $0x30] ss:$8 sps:$4 sm:$0xff]  }
   0xa   :  { %v2190_v26 = vld [vmem:[%s3258_s5] ss:$8 sps:$4 sm:$0xff]   ;;  %v2212_v29 = vld [vmem:[%s3257_s3 + $0x44] ss:$8 sps:$4 sm:$0xff]   ;;  %v2196_v30 = vld [vmem:[%s3258_s5 + $0x10] ss:$8 sps:$4 sm:$0xff]  }
   0xb   :  { %212 = vmatpush1.bf16.msra.mxu0 %v2164_v6  ;;  %575 = vmatpush1.bf16.msra.mxu1 %v2199_v19  ;;  %v2204_v31 = vld [vmem:[%s3258_s5 + $0x24] ss:$8 sps:$4 sm:$0xff]   ;;  %v2217_v32 = vld [vmem:[%s3257_s3 + $0x40] ss:$8 sps:$4 sm:$0xff]   ;;  %v2218_v33 = vld [vmem:[%s3257_s3 + $0x54] ss:$8 sps:$4 sm:$0xff]  }
   0xc   :  { %213 = vmatprep.subr.bf16.mxu0 %v2165_v7  ;;  %576 = vmatprep.subr.bf16.mxu1 %v2200_v20  ;;  %v2181_v34 = vld [vmem:[%s3256_s0 + $0x8] sm:$0xff]   ;;  %v2210_v36 = vld [vmem:[%s3258_s5 + $0x34] ss:$8 sps:$4 sm:$0xff]   ;;  %v2223_v37 = vld [vmem:[%s3257_s3 + $0x50] ss:$8 sps:$4 sm:$0xff]  }
   0xd   :  { %v2202_v35 = vld [vmem:[%s3258_s5 + $0x20] ss:$8 sps:$4 sm:$0xff]   ;;  %v2224_v38 = vld [vmem:[%s3257_s3 + $0x64] ss:$8 sps:$4 sm:$0xff]   ;;  %v2208_v39 = vld [vmem:[%s3258_s5 + $0x30] ss:$8 sps:$4 sm:$0xff]  }
   0xe   :  { %v2216_v40 = vld [vmem:[%s3258_s5 + $0x44] ss:$8 sps:$4 sm:$0xff]   ;;  %v2229_v41 = vld [vmem:[%s3257_s3 + $0x60] ss:$8 sps:$4 sm:$0xff]   ;;  %v2230_v42 = vld [vmem:[%s3257_s3 + $0x74] ss:$8 sps:$4 sm:$0xff]  }
   0xf   :  { %214 = vmatpush1.bf16.msra.mxu0 %v2167_v8  ;;  %577 = vmatpush1.bf16.msra.mxu1 %v2205_v22  ;;  %v2182_v43 = vld [vmem:[%s3256_s0 + $0x10] sm:$0xff]   ;;  %v2214_v44 = vld [vmem:[%s3258_s5 + $0x40] ss:$8 sps:$4 sm:$0xff]   ;;  %v2236_v47 = vld [vmem:[%s3257_s3 + $0x84] ss:$8 sps:$4 sm:$0xff]  }
  0x10   :  { %215 = vmatprep.subr.bf16.mxu0 %v2168_v9  ;;  %578 = vmatprep.subr.bf16.mxu1 %v2206_v24  ;;  %v2222_v45 = vld [vmem:[%s3258_s5 + $0x54] ss:$8 sps:$4 sm:$0xff]   ;;  %v2235_v46 = vld [vmem:[%s3257_s3 + $0x70] ss:$8 sps:$4 sm:$0xff]   ;;  %v2228_v50 = vld [vmem:[%s3258_s5 + $0x64] ss:$8 sps:$4 sm:$0xff]  }
  0x11   :  { %v2220_v48 = vld [vmem:[%s3258_s5 + $0x50] ss:$8 sps:$4 sm:$0xff]   ;;  %v2241_v51 = vld [vmem:[%s3257_s3 + $0x80] ss:$8 sps:$4 sm:$0xff]   ;;  %v2242_v52 = vld [vmem:[%s3257_s3 + $0x94] ss:$8 sps:$4 sm:$0xff]  }
  0x12   :  { %v2183_v49 = vld [vmem:[%s3256_s0 + $0x18] sm:$0xff]   ;;  %v2226_v53 = vld [vmem:[%s3258_s5 + $0x60] ss:$8 sps:$4 sm:$0xff]   ;;  %v2248_v56 = vld [vmem:[%s3257_s3 + $0xa4] ss:$8 sps:$4 sm:$0xff]  }
  0x13   :  { %216 = vmatpush1.bf16.msra.mxu0 %v2170_v10  ;;  %579 = vmatpush1.bf16.msra.mxu1 %v2211_v28  ;;  %v2234_v54 = vld [vmem:[%s3258_s5 + $0x74] ss:$8 sps:$4 sm:$0xff]   ;;  %v2247_v55 = vld [vmem:[%s3257_s3 + $0x90] ss:$8 sps:$4 sm:$0xff]   ;;  %v2240_v58 = vld [vmem:[%s3258_s5 + $0x84] ss:$8 sps:$4 sm:$0xff]  }
  0x14   :  { %217 = vmatprep.subr.bf16.mxu0 %v2171_v11  ;;  %580 = vmatprep.subr.bf16.mxu1 %v2212_v29  ;;  %v2232_v57 = vld [vmem:[%s3258_s5 + $0x70] ss:$8 sps:$4 sm:$0xff]   ;;  %v2253_v59 = vld [vmem:[%s3257_s3 + $0xa0] ss:$8 sps:$4 sm:$0xff]   ;;  %v2254_v60 = vld [vmem:[%s3257_s3 + $0xb4] ss:$8 sps:$4 sm:$0xff]  }
  0x15   :  { %v2184_v61 = vld [vmem:[%s3256_s0 + $0x20] sm:$0xff]   ;;  %v2246_v63 = vld [vmem:[%s3258_s5 + $0x94] ss:$8 sps:$4 sm:$0xff]   ;;  %v2259_v0 = vld [vmem:[%s3257_s3 + $0xb0] ss:$8 sps:$4 sm:$0xff]  }
  0x16   :  { %v2238_v62 = vld [vmem:[%s3258_s5 + $0x80] ss:$8 sps:$4 sm:$0xff]   ;;  %v2260_v2 = vld [vmem:[%s3257_s3 + $0xc4] ss:$8 sps:$4 sm:$0xff]   ;;  %v2244_v3 = vld [vmem:[%s3258_s5 + $0x90] ss:$8 sps:$4 sm:$0xff]  }
  0x17   :  { %218 = vmatpush1.bf16.msra.mxu0 %v2173_v12  ;;  %581 = vmatpush1.bf16.msra.mxu1 %v2217_v32  ;;  %v2252_v4 = vld [vmem:[%s3258_s5 + $0xa4] ss:$8 sps:$4 sm:$0xff]   ;;  %v2265_v5 = vld [vmem:[%s3257_s3 + $0xc0] ss:$8 sps:$4 sm:$0xff]   ;;  %v2266_v6 = vld [vmem:[%s3257_s3 + $0xd4] ss:$8 sps:$4 sm:$0xff]  }
  0x18   :  { %219 = vmatprep.subr.bf16.mxu0 %v2174_v14  ;;  %582 = vmatprep.subr.bf16.mxu1 %v2218_v33  ;;  %v2185_v7 = vld [vmem:[%s3256_s0 + $0x28] sm:$0xff]   ;;  %v2258_v9 = vld [vmem:[%s3258_s5 + $0xb4] ss:$8 sps:$4 sm:$0xff]   ;;  %v2256_v10 = vld [vmem:[%s3258_s5 + $0xb0] ss:$8 sps:$4 sm:$0xff]  }
  0x19   :  { %v2250_v8 = vld [vmem:[%s3258_s5 + $0xa0] ss:$8 sps:$4 sm:$0xff]   ;;  %v2264_v11 = vld [vmem:[%s3258_s5 + $0xc4] ss:$8 sps:$4 sm:$0xff]   ;;  %v2186_v12 = vld [vmem:[%s3256_s0 + $0x30] sm:$0xff]  }
  0x1a   :  { %v2262_v13 = vld [vmem:[%s3258_s5 + $0xc0] ss:$8 sps:$4 sm:$0xff]   ;;  %v2270_v14 = vld [vmem:[%s3258_s5 + $0xd4] ss:$8 sps:$4 sm:$0xff]   ;;  %v2268_v15 = vld [vmem:[%s3258_s5 + $0xd0] ss:$8 sps:$4 sm:$0xff]  }
  0x1b   :  { %220 = vmatpush1.bf16.msra.mxu0 %v2176_v17  ;;  %583 = vmatpush1.bf16.msra.mxu1 %v2223_v37  ;;  %v2187_v16 = vld [vmem:[%s3256_s0 + $0x38] sm:$0xff]   ;;  %v2274_v19 = vld [vmem:[%s3258_s5 + $0xe0] ss:$8 sps:$4 sm:$0xff]  }
  0x1c   :  { %221 = vmatprep.subr.bf16.mxu0 %v2177_v18  ;;  %584 = vmatprep.subr.bf16.mxu1 %v2224_v38  ;;  %v2271_v17 = vld [vmem:[%s3257_s3 + $0xd0] ss:$8 sps:$4 sm:$0xff]   ;;  %v2276_v18 = vld [vmem:[%s3258_s5 + $0xe4] ss:$8 sps:$4 sm:$0xff]   ;;  %v2277_v20 = vld [vmem:[%s3257_s3 + $0xe0] ss:$8 sps:$4 sm:$0xff]  }
  0x1d   :  { %v2282_v22 = vld [vmem:[%s3258_s5 + $0xf4] ss:$8 sps:$4 sm:$0xff]   ;;  %v2283_v24 = vld [vmem:[%s3257_s3 + $0xf0] ss:$8 sps:$4 sm:$0xff]   ;;  %v67_v29 = vld [vmem:[%s3260_s6] sm:$0x3] }
  0x1f   :  { %222 = vmatpush1.bf16.msra.mxu0 %v2179_v21  ;;  %585 = vmatpush1.bf16.msra.mxu1 %v2229_v41  ;;  %v2278_v21 = vld [vmem:[%s3257_s3 + $0xf4] ss:$8 sps:$4 sm:$0xff]  }
  0x20   :  { %1197 = vmatprep.subr.bf16.mxu0 %v2192_v23  ;;  %586 = vmatprep.subr.bf16.mxu1 %v2230_v42  ;;  %v2280_v23 = vld [vmem:[%s3258_s5 + $0xf0] ss:$8 sps:$4 sm:$0xff]  }
  0x22   :  { %240 = vmatmul.mubr.bf16.vlgmr.msra.gmra.mrb[0].mxu0 %v2180_v25  ;;  %v2286_v25 = vld [vmem:[%s3259_s4 + $0x4] ss:$8 sps:$4 sm:$0xff]  }
  0x23   :  { %249 = vmatprep.mubr.bf16.mxu0 %v2460_v1  ;;  %1198 = vmatpush1.bf16.msra.mxu0 %v2190_v26  ;;  %v69_v26 = vlaneseq }
  0x24   :  { %1199 = vmatprep.subr.bf16.mxu0 %v2198_v27  ;;  %587 = vmatpush1.bf16.msra.mxu1 %v2235_v46 }
  0x25   :  { %588 = vmatprep.subr.bf16.mxu1 %v2236_v47  ;;  %v70_v27 = vshrl.u32 %v69_v26, 7 }
  0x27   :  { %1200 = vmatpush1.bf16.msra.mxu0 %v2196_v30  ;;  %v2791_v28 = vsub.s32 0, %v70_v27  ;;  %v2796_v30 = vsub.s32 1, %v70_v27 }
  0x28   :  { %1201 = vmatprep.subr.bf16.mxu0 %v2204_v31  ;;  %589 = vmatpush1.bf16.msra.mxu1 %v2241_v51  ;;  %v2289_v51 = vld [vmem:[%s3259_s4 + $0x14] ss:$8 sps:$4 sm:$0xff]  }
  0x29   :  { %590 = vmatprep.subr.bf16.mxu1 %v2242_v52  ;;  %v2799_v31 = vrot.slane %v67_v29, %v2791_v28  ;;  %v2802_v32 = vrot.slane %v67_v29, %v2796_v30 }
  0x2a   :  { %250 = vmatmul.mubr.bf16.gmra.mrb[4].mxu0 %v2181_v34 }
  0x2b   :  { %259 = vmatprep.mubr.bf16.mxu0 %v2460_v1  ;;  %1202 = vmatpush1.bf16.msra.mxu0 %v2202_v35 }
  0x2c   :  { %1203 = vmatprep.subr.bf16.mxu0 %v2210_v36  ;;  %591 = vmatpush1.bf16.msra.mxu1 %v2247_v55 }
  0x2d   :  { %592 = vmatprep.subr.bf16.mxu1 %v2248_v56 }
  0x2f   :  { %1204 = vmatpush1.bf16.msra.mxu0 %v2208_v39 }
  0x30   :  { %1205 = vmatprep.subr.bf16.mxu0 %v2216_v40  ;;  %593 = vmatpush1.bf16.msra.mxu1 %v2253_v59 }
  0x31   :  { %594 = vmatprep.subr.bf16.mxu1 %v2254_v60  ;;  %v2292_v60 = vld [vmem:[%s3259_s4 + $0x24] ss:$8 sps:$4 sm:$0xff]  }
  0x32   :  { %260 = vmatmul.mubr.bf16.gmra.mrb[8].mxu0 %v2182_v43 }
  0x33   :  { %269 = vmatprep.mubr.bf16.mxu0 %v2460_v1  ;;  %1206 = vmatpush1.bf16.msra.mxu0 %v2214_v44 }
  0x34   :  { %1207 = vmatprep.subr.bf16.mxu0 %v2222_v45  ;;  %595 = vmatpush1.bf16.msra.mxu1 %v2259_v0 }
  0x35   :  { %596 = vmatprep.subr.bf16.mxu1 %v2260_v2 }
  0x37   :  { %1208 = vmatpush1.bf16.msra.mxu0 %v2220_v48  ;;  %v2284_v48 = vld [vmem:[%s3259_s4] ss:$8 sps:$4 sm:$0xff]  }
  0x38   :  { %1209 = vmatprep.subr.bf16.mxu0 %v2228_v50  ;;  %597 = vmatpush1.bf16.msra.mxu1 %v2265_v5 }
  0x39   :  { %598 = vmatprep.subr.bf16.mxu1 %v2266_v6  ;;  %v2295_v6 = vld [vmem:[%s3259_s4 + $0x34] ss:$8 sps:$4 sm:$0xff]  }
  0x3a   :  { %270 = vmatmul.mubr.bf16.gmra.mrb[12].mxu0 %v2183_v49 }
  0x3b   :  { %279 = vmatprep.mubr.bf16.mxu0 %v2460_v1  ;;  %1210 = vmatpush1.bf16.msra.mxu0 %v2226_v53 }
  0x3c   :  { %1211 = vmatprep.subr.bf16.mxu0 %v2234_v54  ;;  %599 = vmatpush1.bf16.msra.mxu1 %v2271_v17 }
  0x3f   :  { %1212 = vmatpush1.bf16.msra.mxu0 %v2232_v57  ;;  %v2287_v57 = vld [vmem:[%s3259_s4 + $0x10] ss:$8 sps:$4 sm:$0xff]  }
  0x40   :  { %1213 = vmatprep.subr.bf16.mxu0 %v2240_v58 }
  0x42   :  { %280 = vmatmul.mubr.bf16.gmra.mrb[16].mxu0 %v2184_v61 }
  0x43   :  { %289 = vmatprep.mubr.bf16.mxu0 %v2460_v1  ;;  %1214 = vmatpush1.bf16.msra.mxu0 %v2238_v62 }
  0x44   :  { %1215 = vmatprep.subr.bf16.mxu0 %v2246_v63 }
  0x47   :  { %1216 = vmatpush1.bf16.msra.mxu0 %v2244_v3  ;;  %v2290_v3 = vld [vmem:[%s3259_s4 + $0x20] ss:$8 sps:$4 sm:$0xff]  }
  0x48   :  { %1217 = vmatprep.subr.bf16.mxu0 %v2252_v4 }
  0x4a   :  { %290 = vmatmul.mubr.bf16.gmra.mrb[20].mxu0 %v2185_v7 }
  0x4b   :  { %299 = vmatprep.mubr.bf16.mxu0 %v2460_v1  ;;  %1218 = vmatpush1.bf16.msra.mxu0 %v2250_v8 }
  0x4c   :  { %1219 = vmatprep.subr.bf16.mxu0 %v2258_v9 }
  0x4f   :  { %1220 = vmatpush1.bf16.msra.mxu0 %v2256_v10 }
  0x50   :  { %1221 = vmatprep.subr.bf16.mxu0 %v2264_v11 }
  0x52   :  { %300 = vmatmul.mubr.bf16.gmra.mrb[24].mxu0 %v2186_v12  ;;  %v2293_v12 = vld [vmem:[%s3259_s4 + $0x30] ss:$8 sps:$4 sm:$0xff]  }
  0x53   :  { %309 = vmatprep.mubr.bf16.mxu0 %v2460_v1  ;;  %1222 = vmatpush1.bf16.msra.mxu0 %v2262_v13  ;;  %v2272_v1 = vld [vmem:[%s3257_s3 + $0xe4] ss:$8 sps:$4 sm:$0xff]  }
  0x54   :  { %1223 = vmatprep.subr.bf16.mxu0 %v2270_v14  ;;  %600 = vmatprep.subr.bf16.mxu1 %v2272_v1 }
  0x55   :  { %601 = vmatpush1.bf16.msra.mxu1 %v2277_v20  ;;  %v2296_v20 = vld [vmem:[%s3259_s4 + $0x40] ss:$8 sps:$4 sm:$0xff]  }
  0x56   :  { %602 = vmatprep.subr.bf16.mxu1 %v2278_v21 }
  0x57   :  { %1224 = vmatpush1.bf16.msra.mxu0 %v2268_v15  ;;  %v2298_v15 = vld [vmem:[%s3259_s4 + $0x44] ss:$8 sps:$4 sm:$0xff]  }
  0x58   :  { %1225 = vmatprep.subr.bf16.mxu0 %v2276_v18 }
  0x59   :  { %603 = vmatpush1.bf16.msra.mxu1 %v2283_v24 }
  0x5a   :  { %310 = vmatmul.mubr.bf16.gmra.mrb[28].mxu0 %v2187_v16  ;;  %2091 = vmatprep.subr.bf16.mxu1 %v2286_v25 }
  0x5b   :  { %1226 = vmatpush1.bf16.msra.mxu0 %v2274_v19 }
  0x5c   :  { %1227 = vmatprep.subr.bf16.mxu0 %v2282_v22 }
  0x5f   :  { %1228 = vmatpush1.bf16.msra.mxu0 %v2280_v23  ;;  %v2301_v23 = vld [vmem:[%s3259_s4 + $0x54] ss:$8 sps:$4 sm:$0xff]  }
  0x60   :  { %1470 = vmatprep.subr.bf16.mxu0 %v2286_v25 }
  0xf5   :  { %v241_v33 = vpop.f32.mrb[0].mxu0 }
  0xf6   :  { %v242_v34 = vadd.f32 %v241_v33, %v2799_v31  ;;  %v243_v35 = vpop.f32.mrb[1].mxu0  ;;  %v2299_v33 = vld [vmem:[%s3259_s4 + $0x50] ss:$8 sps:$4 sm:$0xff]  }
  0xf7   :  { %v244_v36 = vadd.f32 %v243_v35, %v2802_v32  ;;  %v245_v37 = vpop.f32.mrb[2].mxu0 }
  0xf8   :  { %v246_v38 = vadd.f32 %v245_v37, %v2799_v31  ;;  %v247_v39 = vpop.f32.mrb[3].mxu0  ;;  %v320_v41 = vmax.f32 %v242_v34, 0.0 }
  0xf9   :  { %v248_v40 = vadd.f32 %v247_v39, %v2802_v32  ;;  %v321_v43 = vmax.f32 %v244_v36, 0.0  ;;  %v2304_v36 = vld [vmem:[%s3259_s4 + $0x64] ss:$8 sps:$4 sm:$0xff]  }
  0xfa   :  { %v322_v42 = vmax.f32 %v246_v38, 0.0 }
  0xfb   :  { %v323_v44 = vmax.f32 %v248_v40, 0.0 }
  0xfc   :  { %v352_v45 = vpack.c.bf16 %v322_v42, %v320_v41  ;;  %v2302_v42 = vld [vmem:[%s3259_s4 + $0x60] ss:$8 sps:$4 sm:$0xff]  }
  0xfd   :  { %v251_v46 = vpop.f32.mrb[4].mxu0  ;;  %v353_v47 = vpack.c.bf16 %v323_v44, %v321_v43 }
  0xfe   :  { %v252_v49 = vadd.f32 %v251_v46, %v2799_v31  ;;  %v253_v50 = vpop.f32.mrb[5].mxu0 }
  0xff   :  { %v254_v52 = vadd.f32 %v253_v50, %v2802_v32  ;;  %v255_v53 = vpop.f32.mrb[6].mxu0  ;;  %604 = vmatprep.mubr.bf16.mxu1 %v353_v47  ;;  %1229 = vmatprep.mubr.bf16.mxu0 %v353_v47 }
 0x100   :  { %v256_v54 = vadd.f32 %v255_v53, %v2799_v31  ;;  %v257_v55 = vpop.f32.mrb[7].mxu0  ;;  %605 = vmatmul.mubr.bf16.vlgmr.msra.gmra.mrb[0].mxu1 %v352_v45  ;;  %1230 = vmatmul.mubr.bf16.vlgmr.msra.gmra.mrb[32].mxu0 %v352_v45  ;;  %v324_v58 = vmax.f32 %v252_v49, 0.0 }
 0x101   :  { %v258_v56 = vadd.f32 %v257_v55, %v2802_v32  ;;  %1471 = vmatpush1.bf16.msra.mxu0 %v2284_v48  ;;  %2107 = vmatpush1.bf16.msra.mxu1 %v2284_v48  ;;  %v325_v61 = vmax.f32 %v254_v52, 0.0 }
 0x102   :  { %v326_v59 = vmax.f32 %v256_v54, 0.0  ;;  %1472 = vmatprep.subr.bf16.mxu0 %v2289_v51  ;;  %2092 = vmatprep.subr.bf16.mxu1 %v2289_v51 }
 0x103   :  { %v327_v62 = vmax.f32 %v258_v56, 0.0 }
 0x104   :  { %v354_v63 = vpack.c.bf16 %v326_v59, %v324_v58 }
 0x105   :  { %v355_v0 = vpack.c.bf16 %v327_v62, %v325_v61  ;;  %v261_v2 = vpop.f32.mrb[8].mxu0  ;;  %1473 = vmatpush1.bf16.msra.mxu0 %v2287_v57  ;;  %2108 = vmatpush1.bf16.msra.mxu1 %v2287_v57 }
 0x106   :  { %v262_v4 = vadd.f32 %v261_v2, %v2799_v31  ;;  %v263_v5 = vpop.f32.mrb[9].mxu0  ;;  %1474 = vmatprep.subr.bf16.mxu0 %v2292_v60  ;;  %2093 = vmatprep.subr.bf16.mxu1 %v2292_v60 }
 0x107   :  { %v264_v7 = vadd.f32 %v263_v5, %v2802_v32  ;;  %v265_v8 = vpop.f32.mrb[10].mxu0  ;;  %614 = vmatprep.mubr.bf16.mxu1 %v355_v0  ;;  %1239 = vmatprep.mubr.bf16.mxu0 %v355_v0 }
 0x108   :  { %v266_v9 = vadd.f32 %v265_v8, %v2799_v31  ;;  %v267_v10 = vpop.f32.mrb[11].mxu0  ;;  %615 = vmatmul.mubr.bf16.gmra.mrb[4].mxu1 %v354_v63  ;;  %1240 = vmatmul.mubr.bf16.gmra.mrb[36].mxu0 %v354_v63  ;;  %v328_v13 = vmax.f32 %v262_v4, 0.0 }
 0x109   :  { %v268_v11 = vadd.f32 %v267_v10, %v2802_v32  ;;  %1475 = vmatpush1.bf16.msra.mxu0 %v2290_v3  ;;  %2109 = vmatpush1.bf16.msra.mxu1 %v2290_v3  ;;  %v329_v16 = vmax.f32 %v264_v7, 0.0 }
 0x10a   :  { %v330_v14 = vmax.f32 %v266_v9, 0.0  ;;  %1476 = vmatprep.subr.bf16.mxu0 %v2295_v6  ;;  %2094 = vmatprep.subr.bf16.mxu1 %v2295_v6 }
 0x10b   :  { %v331_v17 = vmax.f32 %v268_v11, 0.0 }
 0x10c   :  { %v356_v1 = vpack.c.bf16 %v330_v14, %v328_v13 }
 0x10d   :  { %v357_v18 = vpack.c.bf16 %v331_v17, %v329_v16  ;;  %v271_v19 = vpop.f32.mrb[12].mxu0  ;;  %1477 = vmatpush1.bf16.msra.mxu0 %v2293_v12  ;;  %2110 = vmatpush1.bf16.msra.mxu1 %v2293_v12 }
 0x10e   :  { %v272_v21 = vadd.f32 %v271_v19, %v2799_v31  ;;  %v273_v22 = vpop.f32.mrb[13].mxu0  ;;  %1478 = vmatprep.subr.bf16.mxu0 %v2298_v15  ;;  %2095 = vmatprep.subr.bf16.mxu1 %v2298_v15 }
 0x10f   :  { %v274_v24 = vadd.f32 %v273_v22, %v2802_v32  ;;  %v275_v25 = vpop.f32.mrb[14].mxu0  ;;  %624 = vmatprep.mubr.bf16.mxu1 %v357_v18  ;;  %1249 = vmatprep.mubr.bf16.mxu0 %v357_v18 }
 0x110   :  { %v276_v26 = vadd.f32 %v275_v25, %v2799_v31  ;;  %v277_v27 = vpop.f32.mrb[15].mxu0  ;;  %625 = vmatmul.mubr.bf16.gmra.mrb[8].mxu1 %v356_v1  ;;  %1250 = vmatmul.mubr.bf16.gmra.mrb[40].mxu0 %v356_v1  ;;  %v332_v34 = vmax.f32 %v272_v21, 0.0 }
 0x111   :  { %v278_v29 = vadd.f32 %v277_v27, %v2802_v32  ;;  %1479 = vmatpush1.bf16.msra.mxu0 %v2296_v20  ;;  %2111 = vmatpush1.bf16.msra.mxu1 %v2296_v20  ;;  %v333_v37 = vmax.f32 %v274_v24, 0.0 }
 0x112   :  { %v334_v35 = vmax.f32 %v276_v26, 0.0  ;;  %1480 = vmatprep.subr.bf16.mxu0 %v2301_v23  ;;  %2096 = vmatprep.subr.bf16.mxu1 %v2301_v23 }
 0x113   :  { %v335_v38 = vmax.f32 %v278_v29, 0.0 }
 0x114   :  { %v358_v39 = vpack.c.bf16 %v334_v35, %v332_v34 }
 0x115   :  { %v359_v40 = vpack.c.bf16 %v335_v38, %v333_v37  ;;  %v281_v41 = vpop.f32.mrb[16].mxu0  ;;  %1481 = vmatpush1.bf16.msra.mxu0 %v2299_v33  ;;  %2112 = vmatpush1.bf16.msra.mxu1 %v2299_v33  ;;  %v2307_v38 = vld [vmem:[%s3259_s4 + $0x74] ss:$8 sps:$4 sm:$0xff]  }
 0x116   :  { %v282_v43 = vadd.f32 %v281_v41, %v2799_v31  ;;  %v283_v44 = vpop.f32.mrb[17].mxu0  ;;  %1482 = vmatprep.subr.bf16.mxu0 %v2304_v36  ;;  %2097 = vmatprep.subr.bf16.mxu1 %v2304_v36  ;;  %v2311_v41 = vld [vmem:[%s3259_s4 + $0x90] ss:$8 sps:$4 sm:$0xff]  }
 0x117   :  { %v284_v45 = vadd.f32 %v283_v44, %v2802_v32  ;;  %v285_v46 = vpop.f32.mrb[18].mxu0  ;;  %634 = vmatprep.mubr.bf16.mxu1 %v359_v40  ;;  %1259 = vmatprep.mubr.bf16.mxu0 %v359_v40  ;;  %v2313_v40 = vld [vmem:[%s3259_s4 + $0x94] ss:$8 sps:$4 sm:$0xff]  }
 0x118   :  { %v286_v47 = vadd.f32 %v285_v46, %v2799_v31  ;;  %v287_v48 = vpop.f32.mrb[19].mxu0  ;;  %635 = vmatmul.mubr.bf16.gmra.mrb[12].mxu1 %v358_v39  ;;  %1260 = vmatmul.mubr.bf16.gmra.mrb[44].mxu0 %v358_v39  ;;  %v336_v50 = vmax.f32 %v282_v43, 0.0  ;;  %v2308_v39 = vld [vmem:[%s3259_s4 + $0x80] ss:$8 sps:$4 sm:$0xff]   ;;  %v2319_v44 = vld [vmem:[%s3259_s4 + $0xb4] ss:$8 sps:$4 sm:$0xff]  }
 0x119   :  { %v288_v49 = vadd.f32 %v287_v48, %v2802_v32  ;;  %1483 = vmatpush1.bf16.msra.mxu0 %v2302_v42  ;;  %2113 = vmatpush1.bf16.msra.mxu1 %v2302_v42  ;;  %v337_v52 = vmax.f32 %v284_v45, 0.0  ;;  %v2316_v42 = vld [vmem:[%s3259_s4 + $0xa4] ss:$8 sps:$4 sm:$0xff]   ;;  %v2314_v43 = vld [vmem:[%s3259_s4 + $0xa0] ss:$8 sps:$4 sm:$0xff]  }
 0x11a   :  { %v338_v51 = vmax.f32 %v286_v47, 0.0  ;;  %1484 = vmatprep.subr.bf16.mxu0 %v2307_v38  ;;  %2098 = vmatprep.subr.bf16.mxu1 %v2307_v38  ;;  %v2317_v45 = vld [vmem:[%s3259_s4 + $0xb0] ss:$8 sps:$4 sm:$0xff]   ;;  %v2322_v46 = vld [vmem:[%s3259_s4 + $0xc4] ss:$8 sps:$4 sm:$0xff]  }
 0x11b   :  { %v339_v53 = vmax.f32 %v288_v49, 0.0  ;;  %v2320_v47 = vld [vmem:[%s3259_s4 + $0xc0] ss:$8 sps:$4 sm:$0xff]   ;;  %v2325_v48 = vld [vmem:[%s3259_s4 + $0xd4] ss:$8 sps:$4 sm:$0xff]  }
 0x11c   :  { %v360_v54 = vpack.c.bf16 %v338_v51, %v336_v50  ;;  %v2323_v49 = vld [vmem:[%s3259_s4 + $0xd0] ss:$8 sps:$4 sm:$0xff]   ;;  %v2328_v50 = vld [vmem:[%s3259_s4 + $0xe4] ss:$8 sps:$4 sm:$0xff]   ;;  %v2326_v51 = vld [vmem:[%s3259_s4 + $0xe0] ss:$8 sps:$4 sm:$0xff]  }
 0x11d   :  { %v361_v55 = vpack.c.bf16 %v339_v53, %v337_v52  ;;  %v291_v56 = vpop.f32.mrb[20].mxu0  ;;  %v2331_v52 = vld [vmem:[%s3259_s4 + $0xf4] ss:$8 sps:$4 sm:$0xff]   ;;  %v2329_v53 = vld [vmem:[%s3259_s4 + $0xf0] ss:$8 sps:$4 sm:$0xff]  }
 0x11e   :  { %v292_v57 = vadd.f32 %v291_v56, %v2799_v31  ;;  %v293_v58 = vpop.f32.mrb[21].mxu0 }
 0x11f   :  { %v294_v59 = vadd.f32 %v293_v58, %v2802_v32  ;;  %v295_v60 = vpop.f32.mrb[22].mxu0  ;;  %644 = vmatprep.mubr.bf16.mxu1 %v361_v55  ;;  %1269 = vmatprep.mubr.bf16.mxu0 %v361_v55 }
 0x120   :  { %v296_v61 = vadd.f32 %v295_v60, %v2799_v31  ;;  %v297_v62 = vpop.f32.mrb[23].mxu0  ;;  %645 = vmatmul.mubr.bf16.gmra.mrb[16].mxu1 %v360_v54  ;;  %1270 = vmatmul.mubr.bf16.gmra.mrb[48].mxu0 %v360_v54  ;;  %v340_v0 = vmax.f32 %v292_v57, 0.0  ;;  %v400_v54 = vld [vmem:[%s3261_s7] sm:$0x3] }
 0x121   :  { %v298_v63 = vadd.f32 %v297_v62, %v2802_v32  ;;  %v341_v3 = vmax.f32 %v294_v59, 0.0  ;;  %v2933_v55 = vrot.slane %v400_v54, %v2791_v28  ;;  %v2936_v56 = vrot.slane %v400_v54, %v2796_v30 }
 0x122   :  { %v342_v2 = vmax.f32 %v296_v61, 0.0 }
 0x123   :  { %v343_v4 = vmax.f32 %v298_v63, 0.0 }
 0x124   :  { %v362_v5 = vpack.c.bf16 %v342_v2, %v340_v0 }
 0x125   :  { %v363_v6 = vpack.c.bf16 %v343_v4, %v341_v3  ;;  %v301_v7 = vpop.f32.mrb[24].mxu0 }
 0x126   :  { %v302_v8 = vadd.f32 %v301_v7, %v2799_v31  ;;  %v303_v9 = vpop.f32.mrb[25].mxu0 }
 0x127   :  { %v304_v10 = vadd.f32 %v303_v9, %v2802_v32  ;;  %v305_v11 = vpop.f32.mrb[26].mxu0  ;;  %654 = vmatprep.mubr.bf16.mxu1 %v363_v6  ;;  %1279 = vmatprep.mubr.bf16.mxu0 %v363_v6 }
 0x128   :  { %v306_v12 = vadd.f32 %v305_v11, %v2799_v31  ;;  %v307_v13 = vpop.f32.mrb[27].mxu0  ;;  %655 = vmatmul.mubr.bf16.gmra.mrb[20].mxu1 %v362_v5  ;;  %1280 = vmatmul.mubr.bf16.gmra.mrb[52].mxu0 %v362_v5  ;;  %v344_v15 = vmax.f32 %v302_v8, 0.0 }
 0x129   :  { %v308_v14 = vadd.f32 %v307_v13, %v2802_v32  ;;  %v345_v17 = vmax.f32 %v304_v10, 0.0 }
 0x12a   :  { %v346_v16 = vmax.f32 %v306_v12, 0.0 }
 0x12b   :  { %v347_v1 = vmax.f32 %v308_v14, 0.0 }
 0x12c   :  { %v364_v18 = vpack.c.bf16 %v346_v16, %v344_v15 }
 0x12d   :  { %v365_v19 = vpack.c.bf16 %v347_v1, %v345_v17  ;;  %v311_v20 = vpop.f32.mrb[28].mxu0 }
 0x12e   :  { %v312_v21 = vadd.f32 %v311_v20, %v2799_v31  ;;  %v313_v22 = vpop.f32.mrb[29].mxu0 }
 0x12f   :  { %v314_v23 = vadd.f32 %v313_v22, %v2802_v32  ;;  %v315_v24 = vpop.f32.mrb[30].mxu0  ;;  %664 = vmatprep.mubr.bf16.mxu1 %v365_v19  ;;  %1289 = vmatprep.mubr.bf16.mxu0 %v365_v19 }
 0x130   :  { %v316_v25 = vadd.f32 %v315_v24, %v2799_v31  ;;  %v317_v26 = vpop.f32.mrb[31].mxu0  ;;  %665 = vmatmul.mubr.bf16.gmra.mrb[24].mxu1 %v364_v18  ;;  %1290 = vmatmul.mubr.bf16.gmra.mrb[56].mxu0 %v364_v18  ;;  %v348_v29 = vmax.f32 %v312_v21, 0.0  ;;  %v2305_v31 = vld [vmem:[%s3259_s4 + $0x70] ss:$8 sps:$4 sm:$0xff]  }
 0x131   :  { %v318_v27 = vadd.f32 %v317_v26, %v2802_v32  ;;  %v349_v34 = vmax.f32 %v314_v23, 0.0  ;;  %1485 = vmatpush1.bf16.msra.mxu0 %v2305_v31  ;;  %2114 = vmatpush1.bf16.msra.mxu1 %v2305_v31  ;;  %v2310_v32 = vld [vmem:[%s3259_s4 + $0x84] ss:$8 sps:$4 sm:$0xff]  }
 0x132   :  { %v350_v33 = vmax.f32 %v316_v25, 0.0  ;;  %1486 = vmatprep.subr.bf16.mxu0 %v2310_v32  ;;  %2099 = vmatprep.subr.bf16.mxu1 %v2310_v32 }
 0x133   :  { %v351_v35 = vmax.f32 %v318_v27, 0.0 }
 0x134   :  { %v366_v36 = vpack.c.bf16 %v350_v33, %v348_v29 }
 0x135   :  { %v367_v37 = vpack.c.bf16 %v351_v35, %v349_v34  ;;  %1487 = vmatpush1.bf16.msra.mxu0 %v2308_v39  ;;  %2115 = vmatpush1.bf16.msra.mxu1 %v2308_v39 }
 0x136   :  { %1488 = vmatprep.subr.bf16.mxu0 %v2313_v40  ;;  %2100 = vmatprep.subr.bf16.mxu1 %v2313_v40 }
 0x137   :  { %674 = vmatprep.mubr.bf16.mxu1 %v367_v37  ;;  %1299 = vmatprep.mubr.bf16.mxu0 %v367_v37 }
 0x138   :  { %675 = vmatmul.mubr.bf16.gmra.mrb[28].mxu1 %v366_v36  ;;  %1300 = vmatmul.mubr.bf16.gmra.mrb[60].mxu0 %v366_v36 }
 0x139   :  { %1489 = vmatpush1.bf16.msra.mxu0 %v2311_v41  ;;  %2116 = vmatpush1.bf16.msra.mxu1 %v2311_v41 }
 0x13a   :  { %1490 = vmatprep.subr.bf16.mxu0 %v2316_v42  ;;  %2101 = vmatprep.subr.bf16.mxu1 %v2316_v42  ;;  %v877_v42 = vld [vmem:[%s3262_s1] sm:$0xff] }
 0x13d   :  { %1491 = vmatpush1.bf16.msra.mxu0 %v2314_v43  ;;  %2117 = vmatpush1.bf16.msra.mxu1 %v2314_v43 }
 0x13e   :  { %1492 = vmatprep.subr.bf16.mxu0 %v2319_v44  ;;  %2102 = vmatprep.subr.bf16.mxu1 %v2319_v44 }
 0x141   :  { %1493 = vmatpush1.bf16.msra.mxu0 %v2317_v45  ;;  %2118 = vmatpush1.bf16.msra.mxu1 %v2317_v45  ;;  %v878_v45 = vld [vmem:[%s3262_s1 + $0x8] sm:$0xff] }
 0x142   :  { %1494 = vmatprep.subr.bf16.mxu0 %v2322_v46  ;;  %2103 = vmatprep.subr.bf16.mxu1 %v2322_v46 }
 0x145   :  { %1495 = vmatpush1.bf16.msra.mxu0 %v2320_v47  ;;  %2119 = vmatpush1.bf16.msra.mxu1 %v2320_v47 }
 0x146   :  { %1496 = vmatprep.subr.bf16.mxu0 %v2325_v48  ;;  %2104 = vmatprep.subr.bf16.mxu1 %v2325_v48 }
 0x149   :  { %1497 = vmatpush1.bf16.msra.mxu0 %v2323_v49  ;;  %2120 = vmatpush1.bf16.msra.mxu1 %v2323_v49 }
 0x14a   :  { %1498 = vmatprep.subr.bf16.mxu0 %v2328_v50  ;;  %2105 = vmatprep.subr.bf16.mxu1 %v2328_v50  ;;  %v893_v50 = vunpack.c.l.bf16 %v877_v42 }
 0x14d   :  { %1499 = vmatpush1.bf16.msra.mxu0 %v2326_v51  ;;  %2121 = vmatpush1.bf16.msra.mxu1 %v2326_v51 }
 0x14e   :  { %1500 = vmatprep.subr.bf16.mxu0 %v2331_v52  ;;  %2106 = vmatprep.subr.bf16.mxu1 %v2331_v52 }
 0x151   :  { %1501 = vmatpush1.bf16.msra.mxu0 %v2329_v53  ;;  %2122 = vmatpush1.bf16.msra.mxu1 %v2329_v53 }
 0x1d3   :  { %v606_v57 = vpop.f32.mrb[0].mxu1 }
 0x1d4   :  { %v607_v58 = vadd.f32 %v606_v57, %v2933_v55  ;;  %v608_v59 = vpop.f32.mrb[1].mxu1 }
 0x1d5   :  { %v609_v60 = vadd.f32 %v608_v59, %v2936_v56  ;;  %v610_v61 = vpop.f32.mrb[2].mxu1 }
 0x1d6   :  { %v1931_v62 = vmul.f32 -1.442695, %v607_v58  ;;  %v611_v63 = vadd.f32 %v610_v61, %v2933_v55  ;;  %v612_v0 = vpop.f32.mrb[3].mxu1  ;;  %v894_v58 = vunpack.c.h.bf16 %v877_v42 }
 0x1d7   :  { %v1932_v2 = vmul.f32 -1.442695, %v609_v60  ;;  %v613_v3 = vadd.f32 %v612_v0, %v2936_v56  ;;  %v895_v0 = vunpack.c.l.bf16 %v878_v45 }
 0x1d8   :  { %2332 = vpow2.f32 %v1931_v62  ;;  %v1933_v4 = vmul.f32 -1.442695, %v611_v63 }
 0x1d9   :  { %2334 = vpow2.f32 %v1932_v2  ;;  %v1934_v5 = vmul.f32 -1.442695, %v613_v3 }
 0x1da   :  { %2336 = vpow2.f32 %v1933_v4 }
 0x1db   :  { %2338 = vpow2.f32 %v1934_v5  ;;  %v616_v6 = vpop.f32.mrb[4].mxu1 }
 0x1dc   :  { %v617_v7 = vadd.f32 %v616_v6, %v2933_v55  ;;  %v618_v8 = vpop.f32.mrb[5].mxu1 }
 0x1dd   :  { %v619_v9 = vadd.f32 %v618_v8, %v2936_v56  ;;  %v620_v10 = vpop.f32.mrb[6].mxu1 }
 0x1de   :  { %v1935_v11 = vmul.f32 -1.442695, %v617_v7  ;;  %v621_v12 = vadd.f32 %v620_v10, %v2933_v55  ;;  %v622_v13 = vpop.f32.mrb[7].mxu1  ;;  %v2978_v7 = vld [vmem:[%s3262_s1 + $0x10] sm:$0xff] }
 0x1df   :  { %v1936_v14 = vmul.f32 -1.442695, %v619_v9  ;;  %v623_v15 = vadd.f32 %v622_v13, %v2936_v56 }
 0x1e0   :  { %2340 = vpow2.f32 %v1935_v11  ;;  %v1937_v16 = vmul.f32 -1.442695, %v621_v12  ;;  %v896_v11 = vunpack.c.h.bf16 %v878_v45  ;;  %v2984_v12 = vld [vmem:[%s3262_s1 + $0x18] sm:$0xff] }
 0x1e1   :  { %2342 = vpow2.f32 %v1936_v14  ;;  %v1938_v17 = vmul.f32 -1.442695, %v623_v15 }
 0x1e2   :  { %v2333_v1 = vpop.eup %2332  ;;  %2344 = vpow2.f32 %v1937_v16 }
 0x1e3   :  { %v2335_v18 = vpop.eup %2334  ;;  %v781_v19 = vadd.f32 1.0, %v2333_v1  ;;  %2346 = vpow2.f32 %v1938_v17  ;;  %v626_v20 = vpop.f32.mrb[8].mxu1 }
 0x1e4   :  { %v2946_v21 = vpop.f32.mrb[40].mxu0  ;;  %v2337_v22 = vpop.eup %2336  ;;  %v782_v23 = vadd.f32 1.0, %v2335_v18  ;;  %v627_v24 = vadd.f32 %v626_v20, %v2933_v55  ;;  %v897_v18 = vunpack.c.l.bf16 %v2978_v7 }
 0x1e5   :  { %v628_v25 = vpop.f32.mrb[9].mxu1  ;;  %v2949_v26 = vpop.f32.mrb[41].mxu0  ;;  %2348 = vrcp.f32 %v781_v19  ;;  %v783_v29 = vadd.f32 1.0, %v2337_v22  ;;  %v898_v22 = vunpack.c.h.bf16 %v2978_v7 }
 0x1e6   :  { %v2339_v27 = vpop.eup %2338  ;;  %v629_v33 = vadd.f32 %v628_v25, %v2936_v56  ;;  %v630_v34 = vpop.f32.mrb[10].mxu1  ;;  %2350 = vrcp.f32 %v782_v23  ;;  %v1939_v37 = vmul.f32 -1.442695, %v627_v24  ;;  %v899_v23 = vunpack.c.l.bf16 %v2984_v12 }
 0x1e7   :  { %v2952_v35 = vpop.f32.mrb[42].mxu0  ;;  %v784_v36 = vadd.f32 1.0, %v2339_v27  ;;  %v631_v38 = vadd.f32 %v630_v34, %v2933_v55  ;;  %v632_v31 = vpop.f32.mrb[11].mxu1  ;;  %2352 = vrcp.f32 %v783_v29  ;;  %v900_v34 = vunpack.c.h.bf16 %v2984_v12 }
 0x1e8   :  { %v2955_v32 = vpop.f32.mrb[43].mxu0  ;;  %v1940_v39 = vmul.f32 -1.442695, %v629_v33  ;;  %v633_v40 = vadd.f32 %v632_v31, %v2936_v56 }
 0x1e9   :  { %2354 = vrcp.f32 %v784_v36  ;;  %v1941_v41 = vmul.f32 -1.442695, %v631_v38 }
 0x1ea   :  { %2356 = vpow2.f32 %v1939_v37  ;;  %v1942_v43 = vmul.f32 -1.442695, %v633_v40  ;;  %v2341_v44 = vpop.eup %2340 }
 0x1eb   :  { %2358 = vpow2.f32 %v1940_v39  ;;  %v2343_v46 = vpop.eup %2342  ;;  %v785_v47 = vadd.f32 1.0, %v2341_v44  ;;  %v636_v48 = vpop.f32.mrb[12].mxu1 }
 0x1ec   :  { %2360 = vpow2.f32 %v1941_v41  ;;  %v2964_v49 = vpop.f32.mrb[44].mxu0  ;;  %v2345_v51 = vpop.eup %2344  ;;  %v786_v52 = vadd.f32 1.0, %v2343_v46  ;;  %v637_v53 = vadd.f32 %v636_v48, %v2933_v55 }
 0x1ed   :  { %2362 = vpow2.f32 %v1942_v43  ;;  %v638_v54 = vpop.f32.mrb[13].mxu1  ;;  %v2967_v57 = vpop.f32.mrb[45].mxu0  ;;  %v787_v60 = vadd.f32 1.0, %v2345_v51 }
 0x1ee   :  { %v2347_v59 = vpop.eup %2346  ;;  %2364 = vrcp.f32 %v785_v47  ;;  %v639_v61 = vadd.f32 %v638_v54, %v2936_v56  ;;  %v640_v62 = vpop.f32.mrb[14].mxu1  ;;  %v1943_v3 = vmul.f32 -1.442695, %v637_v53 }
 0x1ef   :  { %v2970_v63 = vpop.f32.mrb[46].mxu0  ;;  %2366 = vrcp.f32 %v786_v52  ;;  %v788_v2 = vadd.f32 1.0, %v2347_v59  ;;  %v641_v4 = vadd.f32 %v640_v62, %v2933_v55  ;;  %v642_v5 = vpop.f32.mrb[15].mxu1  ;;  %v3011_v62 = vld [vmem:[%s3262_s1 + $0x20] sm:$0xff] }
 0x1f0   :  { %v2973_v6 = vpop.f32.mrb[47].mxu0  ;;  %v2349_v8 = vpop.eup %2348  ;;  %2368 = vrcp.f32 %v787_v60  ;;  %v1944_v9 = vmul.f32 -1.442695, %v639_v61  ;;  %v643_v10 = vadd.f32 %v642_v5, %v2936_v56  ;;  %v902_v12 = vunpack.c.h.bf16 %v3011_v62 }
 0x1f1   :  { %v2351_v13 = vpop.eup %2350  ;;  %2370 = vrcp.f32 %v788_v2  ;;  %v1945_v14 = vmul.f32 -1.442695, %v641_v4  ;;  %v925_v15 = vmul.f32 %v2349_v8, %v893_v50  ;;  %v3016_v4 = vld [vmem:[%s3262_s1 + $0x28] sm:$0xff] }
 0x1f2   :  { %v2353_v16 = vpop.eup %2352  ;;  %2372 = vpow2.f32 %v1943_v3  ;;  %v1946_v17 = vmul.f32 -1.442695, %v643_v10  ;;  %v926_v1 = vmul.f32 %v2351_v13, %v894_v58 }
 0x1f3   :  { %v2355_v19 = vpop.eup %2354  ;;  %2374 = vpow2.f32 %v1944_v9  ;;  %v927_v20 = vmul.f32 %v2353_v16, %v895_v0  ;;  %v646_v25 = vpop.f32.mrb[16].mxu1 }
 0x1f4   :  { %v2357_v24 = vpop.eup %2356  ;;  %2376 = vpow2.f32 %v1945_v14  ;;  %v2989_v27 = vpop.f32.mrb[48].mxu0  ;;  %v928_v29 = vmul.f32 %v2355_v19, %v896_v11  ;;  %v2059_v33 = vpack.c.bf16 %v926_v1, %v925_v15  ;;  %v647_v38 = vadd.f32 %v646_v25, %v2933_v55 }
 0x1f5   :  { %v2359_v36 = vpop.eup %2358  ;;  %v789_v37 = vadd.f32 1.0, %v2357_v24  ;;  %2378 = vpow2.f32 %v1946_v17  ;;  %v648_v31 = vpop.f32.mrb[17].mxu1  ;;  %v957_v40 = vpack.c.bf16 %v927_v20, %v925_v15  ;;  %v901_v11 = vunpack.c.l.bf16 %v3011_v62 }
 0x1f6   :  { %v2993_v39 = vpop.f32.mrb[49].mxu0  ;;  %v2361_v41 = vpop.eup %2360  ;;  %v790_v42 = vadd.f32 1.0, %v2359_v36  ;;  %v649_v43 = vadd.f32 %v648_v31, %v2936_v56  ;;  %v958_v46 = vpack.c.bf16 %v928_v29, %v926_v1  ;;  %v2060_v47 = vpack.c.bf16 %v928_v29, %v927_v20  ;;  %1707 = vst [vmem:[%s3263_s9] sm:$0xff] %v2059_v33 }
 0x1f7   :  { %v650_v44 = vpop.f32.mrb[18].mxu1  ;;  %v2996_v45 = vpop.f32.mrb[50].mxu0  ;;  %2380 = vrcp.f32 %v789_v37  ;;  %v791_v50 = vadd.f32 1.0, %v2361_v41  ;;  %v1947_v51 = vmul.f32 -1.442695, %v647_v38  ;;  %v903_v1 = vunpack.c.l.bf16 %v3016_v4 }
 0x1f8   :  { %v2363_v48 = vpop.eup %2362  ;;  %v651_v52 = vadd.f32 %v650_v44, %v2933_v55  ;;  %v652_v53 = vpop.f32.mrb[19].mxu1  ;;  %2382 = vrcp.f32 %v790_v42  ;;  %v1948_v60 = vmul.f32 -1.442695, %v649_v43  ;;  %1502 = vmatprep.mubr.bf16.mxu0 %v958_v46  ;;  %1708 = vst [vmem:[%s3263_s9 + $0x8] sm:$0xff] %v2060_v47 }
 0x1f9   :  { %v3002_v54 = vpop.f32.mrb[51].mxu0  ;;  %v2365_v58 = vpop.eup %2364  ;;  %v792_v59 = vadd.f32 1.0, %v2363_v48  ;;  %v653_v61 = vadd.f32 %v652_v53, %v2936_v56  ;;  %2384 = vrcp.f32 %v791_v50  ;;  %1503 = vmatmul.mubr.bf16.vlgmr.msra.gmra.mrb[32].mxu0 %v957_v40  ;;  %v3039_v48 = vld [vmem:[%s3262_s1 + $0x30] sm:$0xff]  ;;  %v904_v53 = vunpack.c.h.bf16 %v3016_v4 }
 0x1fa   :  { %v2367_v0 = vpop.eup %2366  ;;  %v1949_v2 = vmul.f32 -1.442695, %v651_v52  ;;  %v929_v3 = vmul.f32 %v2365_v58, %v897_v18  ;;  %v3045_v58 = vld [vmem:[%s3262_s1 + $0x38] sm:$0xff] }
 0x1fb   :  { %v2369_v5 = vpop.eup %2368  ;;  %2386 = vrcp.f32 %v792_v59  ;;  %v1950_v7 = vmul.f32 -1.442695, %v653_v61  ;;  %v930_v8 = vmul.f32 %v2367_v0, %v898_v22  ;;  %v656_v14 = vpop.f32.mrb[20].mxu1 }
 0x1fc   :  { %v2371_v9 = vpop.eup %2370  ;;  %2388 = vpow2.f32 %v1947_v51  ;;  %v931_v10 = vmul.f32 %v2369_v5, %v899_v23  ;;  %v3020_v15 = vpop.f32.mrb[52].mxu0  ;;  %v657_v20 = vadd.f32 %v656_v14, %v2933_v55 }
 0x1fd   :  { %v2373_v13 = vpop.eup %2372  ;;  %2390 = vpow2.f32 %v1948_v60  ;;  %v932_v16 = vmul.f32 %v2371_v9, %v900_v34  ;;  %v2061_v17 = vpack.c.bf16 %v930_v8, %v929_v3  ;;  %v658_v22 = vpop.f32.mrb[21].mxu1  ;;  %v907_v9 = vunpack.c.l.bf16 %v3045_v58 }
 0x1fe   :  { %v2375_v18 = vpop.eup %2374  ;;  %v793_v19 = vadd.f32 1.0, %v2373_v13  ;;  %2392 = vpow2.f32 %v1949_v2  ;;  %v3024_v23 = vpop.f32.mrb[53].mxu0  ;;  %v959_v24 = vpack.c.bf16 %v931_v10, %v929_v3  ;;  %v659_v33 = vadd.f32 %v658_v22, %v2936_v56 }
 0x1ff   :  { %v2377_v25 = vpop.eup %2376  ;;  %v794_v29 = vadd.f32 1.0, %v2375_v18  ;;  %2394 = vpow2.f32 %v1950_v7  ;;  %v660_v36 = vpop.f32.mrb[22].mxu1  ;;  %v960_v34 = vpack.c.bf16 %v932_v16, %v930_v8  ;;  %1709 = vst [vmem:[%s3263_s9 + $0x10] sm:$0xff] %v2061_v17  ;;  %v1951_v40 = vmul.f32 -1.442695, %v657_v20 }
 0x200   :  { %v3027_v37 = vpop.f32.mrb[54].mxu0  ;;  %v2379_v38 = vpop.eup %2378  ;;  %2396 = vrcp.f32 %v793_v19  ;;  %v795_v31 = vadd.f32 1.0, %v2377_v25  ;;  %v661_v41 = vadd.f32 %v660_v36, %v2933_v55  ;;  %v1952_v46 = vmul.f32 -1.442695, %v659_v33 }
 0x201   :  { %v662_v42 = vpop.f32.mrb[23].mxu1  ;;  %v3033_v43 = vpop.f32.mrb[55].mxu0  ;;  %2398 = vrcp.f32 %v794_v29  ;;  %v796_v44 = vadd.f32 1.0, %v2379_v38  ;;  %1512 = vmatprep.mubr.bf16.mxu0 %v960_v34  ;;  %v2062_v52 = vpack.c.bf16 %v932_v16, %v931_v10  ;;  %v905_v2 = vunpack.c.l.bf16 %v3039_v48 }
 0x202   :  { %v663_v47 = vadd.f32 %v662_v42, %v2936_v56  ;;  %v2381_v50 = vpop.eup %2380  ;;  %2400 = vrcp.f32 %v795_v31  ;;  %v1953_v51 = vmul.f32 -1.442695, %v661_v41  ;;  %1513 = vmatmul.mubr.bf16.gmra.mrb[36].mxu0 %v959_v24  ;;  %v906_v8 = vunpack.c.h.bf16 %v3039_v48 }
 0x203   :  { %v2383_v59 = vpop.eup %2382  ;;  %2402 = vrcp.f32 %v796_v44  ;;  %v933_v61 = vmul.f32 %v2381_v50, %v901_v11  ;;  %1710 = vst [vmem:[%s3263_s9 + $0x18] sm:$0xff] %v2062_v52  ;;  %v666_v4 = vpop.f32.mrb[24].mxu1  ;;  %v908_v38 = vunpack.c.h.bf16 %v3045_v58  ;;  %v3072_v50 = vld [vmem:[%s3262_s1 + $0x40] sm:$0xff] }
 0x204   :  { %v1954_v60 = vmul.f32 -1.442695, %v663_v47  ;;  %v2385_v62 = vpop.eup %2384  ;;  %2404 = vpow2.f32 %v1951_v40  ;;  %v934_v0 = vmul.f32 %v2383_v59, %v902_v12  ;;  %v3051_v5 = vpop.f32.mrb[56].mxu0  ;;  %v667_v11 = vadd.f32 %v666_v4, %v2933_v55  ;;  %v886_v4 = vld [vmem:[%s3262_s1 + $0x48] sm:$0xff] }
 0x205   :  { %v2387_v3 = vpop.eup %2386  ;;  %2406 = vpow2.f32 %v1952_v46  ;;  %v935_v7 = vmul.f32 %v2385_v62, %v903_v1  ;;  %v668_v13 = vpop.f32.mrb[25].mxu1 }
 0x206   :  { %v2389_v10 = vpop.eup %2388  ;;  %2408 = vpow2.f32 %v1953_v51  ;;  %v3056_v14 = vpop.f32.mrb[57].mxu0  ;;  %v936_v12 = vmul.f32 %v2387_v3, %v904_v53  ;;  %v2063_v16 = vpack.c.bf16 %v934_v0, %v933_v61  ;;  %v669_v19 = vadd.f32 %v668_v13, %v2936_v56 }
 0x207   :  { %v2391_v17 = vpop.eup %2390  ;;  %v797_v18 = vadd.f32 1.0, %v2389_v10  ;;  %2410 = vpow2.f32 %v1954_v60  ;;  %v670_v20 = vpop.f32.mrb[26].mxu1  ;;  %v961_v22 = vpack.c.bf16 %v935_v7, %v933_v61  ;;  %v1955_v41 = vmul.f32 -1.442695, %v667_v11 }
 0x208   :  { %v3059_v1 = vpop.f32.mrb[58].mxu0  ;;  %v2393_v24 = vpop.eup %2392  ;;  %v798_v25 = vadd.f32 1.0, %v2391_v17  ;;  %v671_v29 = vadd.f32 %v670_v20, %v2933_v55  ;;  %v962_v34 = vpack.c.bf16 %v936_v12, %v934_v0  ;;  %1711 = vst [vmem:[%s3263_s9 + $0x20] sm:$0xff] %v2063_v16  ;;  %v1956_v47 = vmul.f32 -1.442695, %v669_v19 }
 0x209   :  { %v672_v33 = vpop.f32.mrb[27].mxu1  ;;  %v3062_v36 = vpop.f32.mrb[59].mxu0  ;;  %2412 = vrcp.f32 %v797_v18  ;;  %v799_v40 = vadd.f32 1.0, %v2393_v24  ;;  %v2064_v48 = vpack.c.bf16 %v936_v12, %v935_v7  ;;  %v909_v7 = vunpack.c.l.bf16 %v3072_v50 }
 0x20a   :  { %v2395_v31 = vpop.eup %2394  ;;  %v673_v42 = vadd.f32 %v672_v33, %v2936_v56  ;;  %2414 = vrcp.f32 %v798_v25  ;;  %1522 = vmatprep.mubr.bf16.mxu1 %v962_v34  ;;  %v1957_v52 = vmul.f32 -1.442695, %v671_v29 }
 0x20b   :  { %v2397_v44 = vpop.eup %2396  ;;  %v800_v46 = vadd.f32 1.0, %v2395_v31  ;;  %2416 = vrcp.f32 %v799_v40  ;;  %1523 = vmatmul.mubr.bf16.vlgmr.msra.gmra.mrb[32].mxu1 %v961_v22  ;;  %1712 = vst [vmem:[%s3263_s9 + $0x28] sm:$0xff] %v2064_v48  ;;  %v676_v62 = vpop.f32.mrb[28].mxu1 }
 0x20c   :  { %v2399_v51 = vpop.eup %2398  ;;  %v937_v53 = vmul.f32 %v2397_v44, %v905_v2  ;;  %v1958_v59 = vmul.f32 -1.442695, %v673_v42  ;;  %v3077_v0 = vpop.f32.mrb[60].mxu0  ;;  %v910_v2 = vunpack.c.h.bf16 %v3072_v50  ;;  %v677_v11 = vadd.f32 %v676_v62, %v2933_v55 }
 0x20d   :  { %v2401_v58 = vpop.eup %2400  ;;  %2418 = vrcp.f32 %v800_v46  ;;  %v938_v60 = vmul.f32 %v2399_v51, %v906_v8  ;;  %v678_v13 = vpop.f32.mrb[29].mxu1  ;;  %v912_v51 = vunpack.c.h.bf16 %v886_v4 }
 0x20e   :  { %v2403_v61 = vpop.eup %2402  ;;  %2420 = vpow2.f32 %v1955_v41  ;;  %v939_v3 = vmul.f32 %v2401_v58, %v907_v9  ;;  %v3085_v8 = vpop.f32.mrb[61].mxu0  ;;  %v679_v9 = vadd.f32 %v678_v13, %v2936_v56  ;;  %v1959_v41 = vmul.f32 -1.442695, %v677_v11 }
 0x20f   :  { %v2405_v10 = vpop.eup %2404  ;;  %2422 = vpow2.f32 %v1956_v47  ;;  %v940_v12 = vmul.f32 %v2403_v61, %v908_v38  ;;  %v2065_v16 = vpack.c.bf16 %v938_v60, %v937_v53  ;;  %v680_v19 = vpop.f32.mrb[30].mxu1  ;;  %v911_v38 = vunpack.c.l.bf16 %v886_v4 }
 0x210   :  { %v2407_v17 = vpop.eup %2406  ;;  %v801_v18 = vadd.f32 1.0, %v2405_v10  ;;  %2424 = vpow2.f32 %v1957_v52  ;;  %v3088_v20 = vpop.f32.mrb[62].mxu0  ;;  %v963_v22 = vpack.c.bf16 %v939_v3, %v937_v53  ;;  %v681_v29 = vadd.f32 %v680_v19, %v2933_v55 }
 0x211   :  { %v2409_v24 = vpop.eup %2408  ;;  %v802_v25 = vadd.f32 1.0, %v2407_v17  ;;  %2426 = vpow2.f32 %v1958_v59  ;;  %v682_v33 = vpop.f32.mrb[31].mxu1  ;;  %1713 = vst [vmem:[%s3263_s9 + $0x30] sm:$0xff] %v2065_v16  ;;  %v1960_v46 = vmul.f32 -1.442695, %v679_v9  ;;  %v964_v47 = vpack.c.bf16 %v940_v12, %v938_v60  ;;  %v887_v60 = vld [vmem:[%s3262_s1 + $0x50] sm:$0xff] }
 0x212   :  { %v3091_v34 = vpop.f32.mrb[63].mxu0  ;;  %v2411_v31 = vpop.eup %2410  ;;  %2428 = vrcp.f32 %v801_v18  ;;  %v803_v40 = vadd.f32 1.0, %v2409_v24  ;;  %v683_v42 = vadd.f32 %v682_v33, %v2936_v56  ;;  %v1961_v55 = vmul.f32 -1.442695, %v681_v29 }
 0x213   :  { %2430 = vrcp.f32 %v802_v25  ;;  %v804_v44 = vadd.f32 1.0, %v2411_v31  ;;  %v2413_v48 = vpop.eup %2412  ;;  %v2066_v50 = vpack.c.bf16 %v940_v12, %v939_v3  ;;  %1532 = vmatprep.mubr.bf16.mxu1 %v964_v47  ;;  %v914_v19 = vunpack.c.h.bf16 %v887_v60  ;;  %v889_v47 = vld [vmem:[%s3262_s1 + $0x60] sm:$0xff] }
 0x214   :  { %2432 = vrcp.f32 %v803_v40  ;;  %v2415_v52 = vpop.eup %2414  ;;  %v1962_v53 = vmul.f32 -1.442695, %v683_v42  ;;  %v941_v58 = vmul.f32 %v2413_v48, %v909_v7  ;;  %1533 = vmatmul.mubr.bf16.gmra.mrb[36].mxu1 %v963_v22  ;;  %v888_v7 = vld [vmem:[%s3262_s1 + $0x58] sm:$0xff] }
 0x215   :  { %2434 = vrcp.f32 %v804_v44  ;;  %v2417_v59 = vpop.eup %2416  ;;  %1714 = vst [vmem:[%s3263_s9 + $0x38] sm:$0xff] %v2066_v50  ;;  %v942_v56 = vmul.f32 %v2415_v52, %v910_v2  ;;  %v913_v2 = vunpack.c.l.bf16 %v887_v60  ;;  %v915_v25 = vunpack.c.l.bf16 %v888_v7 }
 0x216   :  { %2436 = vpow2.f32 %v1959_v41  ;;  %v943_v62 = vmul.f32 %v2417_v59, %v911_v38  ;;  %v916_v38 = vunpack.c.h.bf16 %v888_v7 }
 0x217   :  { %v2419_v61 = vpop.eup %2418  ;;  %2438 = vpow2.f32 %v1960_v46  ;;  %v2067_v10 = vpack.c.bf16 %v942_v56, %v941_v58 }
 0x218   :  { %v2421_v3 = vpop.eup %2420  ;;  %2440 = vpow2.f32 %v1961_v55  ;;  %v944_v4 = vmul.f32 %v2419_v61, %v912_v51  ;;  %v965_v12 = vpack.c.bf16 %v943_v62, %v941_v58  ;;  %v890_v58 = vld [vmem:[%s3262_s1 + $0x68] sm:$0xff] }
 0x219   :  { %v2423_v11 = vpop.eup %2422  ;;  %v805_v13 = vadd.f32 1.0, %v2421_v3  ;;  %2442 = vpow2.f32 %v1962_v53  ;;  %1715 = vst [vmem:[%s3263_s9 + $0x40] sm:$0xff] %v2067_v10  ;;  %v918_v10 = vunpack.c.h.bf16 %v889_v47 }
 0x21a   :  { %v2425_v16 = vpop.eup %2424  ;;  %v806_v17 = vadd.f32 1.0, %v2423_v11  ;;  %v966_v18 = vpack.c.bf16 %v944_v4, %v942_v56  ;;  %v2068_v9 = vpack.c.bf16 %v944_v4, %v943_v62  ;;  %v917_v62 = vunpack.c.l.bf16 %v889_v47 }
 0x21b   :  { %v2427_v22 = vpop.eup %2426  ;;  %2444 = vrcp.f32 %v805_v13  ;;  %v807_v24 = vadd.f32 1.0, %v2425_v16  ;;  %v919_v11 = vunpack.c.l.bf16 %v890_v58 }
 0x21c   :  { %v2429_v29 = vpop.eup %2428  ;;  %2446 = vrcp.f32 %v806_v17  ;;  %v808_v33 = vadd.f32 1.0, %v2427_v22  ;;  %1542 = vmatprep.mubr.bf16.mxu1 %v966_v18  ;;  %1716 = vst [vmem:[%s3263_s9 + $0x48] sm:$0xff] %v2068_v9  ;;  %v891_v9 = vld [vmem:[%s3262_s1 + $0x70] sm:$0xff] }
 0x21d   :  { %v2431_v31 = vpop.eup %2430  ;;  %2448 = vrcp.f32 %v807_v24  ;;  %v945_v40 = vmul.f32 %v2429_v29, %v913_v2  ;;  %1543 = vmatmul.mubr.bf16.gmra.mrb[40].mxu1 %v965_v12  ;;  %v920_v12 = vunpack.c.h.bf16 %v890_v58  ;;  %v892_v29 = vld [vmem:[%s3262_s1 + $0x78] sm:$0xff] }
 0x21e   :  { %v2433_v41 = vpop.eup %2432  ;;  %2450 = vrcp.f32 %v808_v33  ;;  %v946_v42 = vmul.f32 %v2431_v31, %v914_v19 }
 0x21f   :  { %v2435_v44 = vpop.eup %2434  ;;  %v947_v46 = vmul.f32 %v2433_v41, %v915_v25  ;;  %v922_v41 = vunpack.c.h.bf16 %v891_v9 }
 0x220   :  { %v2437_v48 = vpop.eup %2436  ;;  %v948_v55 = vmul.f32 %v2435_v44, %v916_v38  ;;  %v2069_v50 = vpack.c.bf16 %v946_v42, %v945_v40  ;;  %v921_v38 = vunpack.c.l.bf16 %v891_v9 }
 0x221   :  { %v2439_v51 = vpop.eup %2438  ;;  %v809_v52 = vadd.f32 1.0, %v2437_v48  ;;  %v967_v53 = vpack.c.bf16 %v947_v46, %v945_v40 }
 0x222   :  { %v2441_v59 = vpop.eup %2440  ;;  %v810_v56 = vadd.f32 1.0, %v2439_v51  ;;  %v968_v60 = vpack.c.bf16 %v948_v55, %v946_v42  ;;  %v2070_v61 = vpack.c.bf16 %v948_v55, %v947_v46  ;;  %1717 = vst [vmem:[%s3263_s9 + $0x50] sm:$0xff] %v2069_v50  ;;  %v923_v42 = vunpack.c.l.bf16 %v892_v29 }
 0x223   :  { %v2443_v3 = vpop.eup %2442  ;;  %2452 = vrcp.f32 %v809_v52  ;;  %v811_v4 = vadd.f32 1.0, %v2441_v59  ;;  %v924_v46 = vunpack.c.h.bf16 %v892_v29 }
 0x224   :  { %2454 = vrcp.f32 %v810_v56  ;;  %v812_v7 = vadd.f32 1.0, %v2443_v3  ;;  %1552 = vmatprep.mubr.bf16.mxu1 %v968_v60  ;;  %1718 = vst [vmem:[%s3263_s9 + $0x58] sm:$0xff] %v2070_v61  ;;  %v1583_v61 = vld [vmem:[%s3264_s8] sm:$0x3] }
 0x225   :  { %v2445_v13 = vpop.eup %2444  ;;  %2456 = vrcp.f32 %v811_v4  ;;  %1553 = vmatmul.mubr.bf16.gmra.mrb[44].mxu1 %v967_v53  ;;  %v3149_v3 = vrot.slane %v1583_v61, %v2796_v30 }
 0x226   :  { %v2447_v2 = vpop.eup %2446  ;;  %2458 = vrcp.f32 %v812_v7  ;;  %v949_v16 = vmul.f32 %v2445_v13, %v917_v62  ;;  %v3146_v62 = vrot.slane %v1583_v61, %v2791_v28 }
 0x227   :  { %v2449_v17 = vpop.eup %2448  ;;  %v950_v18 = vmul.f32 %v2447_v2, %v918_v10 }
 0x228   :  { %v2451_v19 = vpop.eup %2450  ;;  %v951_v22 = vmul.f32 %v2449_v17, %v919_v11 }
 0x229   :  { %v952_v24 = vmul.f32 %v2451_v19, %v920_v12  ;;  %v2071_v25 = vpack.c.bf16 %v950_v18, %v949_v16 }
 0x22a   :  { %v969_v33 = vpack.c.bf16 %v951_v22, %v949_v16 }
 0x22b   :  { %v970_v31 = vpack.c.bf16 %v952_v24, %v950_v18  ;;  %v2072_v40 = vpack.c.bf16 %v952_v24, %v951_v22  ;;  %1719 = vst [vmem:[%s3263_s9 + $0x60] sm:$0xff] %v2071_v25 }
 0x22d   :  { %v2453_v44 = vpop.eup %2452  ;;  %1562 = vmatprep.mubr.bf16.mxu1 %v970_v31  ;;  %1720 = vst [vmem:[%s3263_s9 + $0x68] sm:$0xff] %v2072_v40 }
 0x22e   :  { %v2455_v47 = vpop.eup %2454  ;;  %1563 = vmatmul.mubr.bf16.gmra.mrb[48].mxu1 %v969_v33  ;;  %v953_v48 = vmul.f32 %v2453_v44, %v921_v38 }
 0x22f   :  { %v2457_v55 = vpop.eup %2456  ;;  %v954_v50 = vmul.f32 %v2455_v47, %v922_v41 }
 0x230   :  { %v2459_v51 = vpop.eup %2458  ;;  %v955_v52 = vmul.f32 %v2457_v55, %v923_v42 }
 0x231   :  { %v956_v53 = vmul.f32 %v2459_v51, %v924_v46  ;;  %v2073_v58 = vpack.c.bf16 %v954_v50, %v953_v48 }
 0x232   :  { %v971_v59 = vpack.c.bf16 %v955_v52, %v953_v48 }
 0x233   :  { %v972_v56 = vpack.c.bf16 %v956_v53, %v954_v50  ;;  %v2074_v60 = vpack.c.bf16 %v956_v53, %v955_v52  ;;  %1721 = vst [vmem:[%s3263_s9 + $0x70] sm:$0xff] %v2073_v58 }
 0x235   :  { %1572 = vmatprep.mubr.bf16.mxu1 %v972_v56  ;;  %1722 = vst [vmem:[%s3263_s9 + $0x78] sm:$0xff] %v2074_v60 }
 0x236   :  { %1573 = vmatmul.mubr.bf16.gmra.mrb[52].mxu1 %v971_v59 }
 0x2cc   :  { %v1504_v4 = vpop.f32.mrb[32].mxu0 }
 0x2cd   :  { %v1595_v10 = vadd.f32 %v3146_v62, %v1504_v4  ;;  %v1506_v7 = vpop.f32.mrb[33].mxu0 }
 0x2ce   :  { %v1596_v11 = vadd.f32 %v3149_v3, %v1506_v7  ;;  %v1508_v13 = vpop.f32.mrb[34].mxu0 }
 0x2cf   :  { %v1723_v12 = vmax.f32 %v1595_v10, 0.0  ;;  %v1597_v2 = vadd.f32 %v3146_v62, %v1508_v13  ;;  %v1510_v16 = vpop.f32.mrb[35].mxu0 }
 0x2d0   :  { %v1724_v17 = vmax.f32 %v1596_v11, 0.0  ;;  %v1598_v18 = vadd.f32 %v3149_v3, %v1510_v16 }
 0x2d1   :  { %v1725_v9 = vmax.f32 %v1597_v2, 0.0 }
 0x2d2   :  { %v2075_v28 = vpack.c.bf16 %v1724_v17, %v1723_v12  ;;  %v1726_v19 = vmax.f32 %v1598_v18, 0.0 }
 0x2d4   :  { %1851 = vst [vmem:[%s3265_s10] sm:$0xff] %v2075_v28  ;;  %v2076_v30 = vpack.c.bf16 %v1726_v19, %v1725_v9 }
 0x2d5   :  { %v1514_v22 = vpop.f32.mrb[36].mxu0 }
 0x2d6   :  { %v1599_v24 = vadd.f32 %v3146_v62, %v1514_v22  ;;  %v1516_v25 = vpop.f32.mrb[37].mxu0  ;;  %1852 = vst [vmem:[%s3265_s10 + $0x8] sm:$0xff] %v2076_v30 }
 0x2d7   :  { %v1600_v29 = vadd.f32 %v3149_v3, %v1516_v25  ;;  %v1518_v33 = vpop.f32.mrb[38].mxu0 }
 0x2d8   :  { %v1727_v38 = vmax.f32 %v1599_v24, 0.0  ;;  %v1601_v31 = vadd.f32 %v3146_v62, %v1518_v33  ;;  %v1520_v40 = vpop.f32.mrb[39].mxu0 }
 0x2d9   :  { %v1728_v41 = vmax.f32 %v1600_v29, 0.0  ;;  %v1602_v42 = vadd.f32 %v3149_v3, %v1520_v40 }
 0x2da   :  { %v1729_v44 = vmax.f32 %v1601_v31, 0.0 }
 0x2db   :  { %v2077_v46 = vpack.c.bf16 %v1728_v41, %v1727_v38  ;;  %v1730_v47 = vmax.f32 %v1602_v42, 0.0 }
 0x2dd   :  { %1853 = vst [vmem:[%s3265_s10 + $0x10] sm:$0xff] %v2077_v46  ;;  %v2078_v48 = vpack.c.bf16 %v1730_v47, %v1729_v44 }
 0x2de   :  { %v1524_v55 = vpop.f32.mrb[32].mxu1 }
 0x2df   :  { %1854 = vst [vmem:[%s3265_s10 + $0x18] sm:$0xff] %v2078_v48  ;;  %v1525_v50 = vadd.f32 %v1524_v55, %v2946_v21  ;;  %v1526_v51 = vpop.f32.mrb[33].mxu1 }
 0x2e0   :  { %v1527_v52 = vadd.f32 %v1526_v51, %v2949_v26  ;;  %v1528_v53 = vpop.f32.mrb[34].mxu1 }
 0x2e1   :  { %v1603_v58 = vadd.f32 %v3146_v62, %v1525_v50  ;;  %v1529_v59 = vadd.f32 %v1528_v53, %v2952_v35  ;;  %v1530_v56 = vpop.f32.mrb[35].mxu1 }
 0x2e2   :  { %v1604_v60 = vadd.f32 %v3149_v3, %v1527_v52  ;;  %v1531_v61 = vadd.f32 %v1530_v56, %v2955_v32 }
 0x2e3   :  { %v1731_v4 = vmax.f32 %v1603_v58, 0.0  ;;  %v1605_v10 = vadd.f32 %v3146_v62, %v1529_v59 }
 0x2e4   :  { %v1732_v7 = vmax.f32 %v1604_v60, 0.0  ;;  %v1606_v11 = vadd.f32 %v3149_v3, %v1531_v61 }
 0x2e5   :  { %v1733_v21 = vmax.f32 %v1605_v10, 0.0 }
 0x2e6   :  { %v2079_v13 = vpack.c.bf16 %v1732_v7, %v1731_v4  ;;  %v1734_v12 = vmax.f32 %v1606_v11, 0.0 }
 0x2e7   :  { %v1534_v35 = vpop.f32.mrb[36].mxu1 }
 0x2e8   :  { %1855 = vst [vmem:[%s3265_s10 + $0x20] sm:$0xff] %v2079_v13  ;;  %v2080_v26 = vpack.c.bf16 %v1734_v12, %v1733_v21  ;;  %v1535_v2 = vadd.f32 %v1534_v35, %v2964_v49  ;;  %v1536_v16 = vpop.f32.mrb[37].mxu1 }
 0x2e9   :  { %v1537_v32 = vadd.f32 %v1536_v16, %v2967_v57  ;;  %v1538_v17 = vpop.f32.mrb[38].mxu1 }
 0x2ea   :  { %1856 = vst [vmem:[%s3265_s10 + $0x28] sm:$0xff] %v2080_v26  ;;  %v1607_v18 = vadd.f32 %v3146_v62, %v1535_v2  ;;  %v1539_v9 = vadd.f32 %v1538_v17, %v2970_v63  ;;  %v1540_v28 = vpop.f32.mrb[39].mxu1 }
 0x2eb   :  { %v1608_v19 = vadd.f32 %v3149_v3, %v1537_v32  ;;  %v1541_v30 = vadd.f32 %v1540_v28, %v2973_v6 }
 0x2ec   :  { %v1735_v22 = vmax.f32 %v1607_v18, 0.0  ;;  %v1609_v49 = vadd.f32 %v3146_v62, %v1539_v9 }
 0x2ed   :  { %v1736_v24 = vmax.f32 %v1608_v19, 0.0  ;;  %v1610_v25 = vadd.f32 %v3149_v3, %v1541_v30 }
 0x2ee   :  { %v1737_v29 = vmax.f32 %v1609_v49, 0.0 }
 0x2ef   :  { %v2081_v33 = vpack.c.bf16 %v1736_v24, %v1735_v22  ;;  %v1738_v38 = vmax.f32 %v1610_v25, 0.0 }
 0x2f0   :  { %v1544_v57 = vpop.f32.mrb[40].mxu1 }
 0x2f1   :  { %v1545_v31 = vadd.f32 %v1544_v57, %v2989_v27  ;;  %v1546_v40 = vpop.f32.mrb[41].mxu1  ;;  %1857 = vst [vmem:[%s3265_s10 + $0x30] sm:$0xff] %v2081_v33  ;;  %v2082_v63 = vpack.c.bf16 %v1738_v38, %v1737_v29 }
 0x2f2   :  { %v1547_v6 = vadd.f32 %v1546_v40, %v2993_v39  ;;  %v1548_v41 = vpop.f32.mrb[42].mxu1 }
 0x2f3   :  { %v1611_v42 = vadd.f32 %v3146_v62, %v1545_v31  ;;  %v1549_v44 = vadd.f32 %v1548_v41, %v2996_v45  ;;  %v1550_v46 = vpop.f32.mrb[43].mxu1  ;;  %1858 = vst [vmem:[%s3265_s10 + $0x38] sm:$0xff] %v2082_v63 }
 0x2f4   :  { %v1612_v27 = vadd.f32 %v3149_v3, %v1547_v6  ;;  %v1551_v47 = vadd.f32 %v1550_v46, %v3002_v54 }
 0x2f5   :  { %v1739_v48 = vmax.f32 %v1611_v42, 0.0  ;;  %v1613_v55 = vadd.f32 %v3146_v62, %v1549_v44 }
 0x2f6   :  { %v1740_v50 = vmax.f32 %v1612_v27, 0.0  ;;  %v1614_v39 = vadd.f32 %v3149_v3, %v1551_v47 }
 0x2f7   :  { %v1741_v51 = vmax.f32 %v1613_v55, 0.0 }
 0x2f8   :  { %v2083_v52 = vpack.c.bf16 %v1740_v50, %v1739_v48  ;;  %v1742_v53 = vmax.f32 %v1614_v39, 0.0  ;;  %v1554_v58 = vpop.f32.mrb[44].mxu1 }
 0x2f9   :  { %v1555_v45 = vadd.f32 %v1554_v58, %v3020_v15  ;;  %v1556_v59 = vpop.f32.mrb[45].mxu1 }
 0x2fa   :  { %1859 = vst [vmem:[%s3265_s10 + $0x40] sm:$0xff] %v2083_v52  ;;  %v2084_v56 = vpack.c.bf16 %v1742_v53, %v1741_v51  ;;  %v1557_v54 = vadd.f32 %v1556_v59, %v3024_v23  ;;  %v1558_v60 = vpop.f32.mrb[46].mxu1 }
 0x2fb   :  { %v1615_v61 = vadd.f32 %v3146_v62, %v1555_v45  ;;  %v1559_v4 = vadd.f32 %v1558_v60, %v3027_v37  ;;  %v1560_v10 = vpop.f32.mrb[47].mxu1 }
 0x2fc   :  { %1860 = vst [vmem:[%s3265_s10 + $0x48] sm:$0xff] %v2084_v56  ;;  %v1616_v15 = vadd.f32 %v3149_v3, %v1557_v54  ;;  %v1561_v7 = vadd.f32 %v1560_v10, %v3033_v43 }
 0x2fd   :  { %v1743_v11 = vmax.f32 %v1615_v61, 0.0  ;;  %v1617_v21 = vadd.f32 %v3146_v62, %v1559_v4 }
 0x2fe   :  { %v1744_v13 = vmax.f32 %v1616_v15, 0.0  ;;  %v1618_v23 = vadd.f32 %v3149_v3, %v1561_v7 }
 0x2ff   :  { %v1745_v12 = vmax.f32 %v1617_v21, 0.0 }
 0x300   :  { %v2085_v26 = vpack.c.bf16 %v1744_v13, %v1743_v11  ;;  %v1746_v35 = vmax.f32 %v1618_v23, 0.0 }
 0x301   :  { %v1564_v2 = vpop.f32.mrb[48].mxu1 }
 0x302   :  { %v1565_v37 = vadd.f32 %v1564_v2, %v3051_v5  ;;  %v1566_v16 = vpop.f32.mrb[49].mxu1  ;;  %1861 = vst [vmem:[%s3265_s10 + $0x50] sm:$0xff] %v2085_v26  ;;  %v2086_v32 = vpack.c.bf16 %v1746_v35, %v1745_v12 }
 0x303   :  { %v1567_v43 = vadd.f32 %v1566_v16, %v3056_v14  ;;  %v1568_v17 = vpop.f32.mrb[50].mxu1 }
 0x304   :  { %v1619_v18 = vadd.f32 %v3146_v62, %v1565_v37  ;;  %v1569_v9 = vadd.f32 %v1568_v17, %v3059_v1  ;;  %v1570_v28 = vpop.f32.mrb[51].mxu1  ;;  %1862 = vst [vmem:[%s3265_s10 + $0x58] sm:$0xff] %v2086_v32 }
 0x305   :  { %v1620_v5 = vadd.f32 %v3149_v3, %v1567_v43  ;;  %v1571_v19 = vadd.f32 %v1570_v28, %v3062_v36 }
 0x306   :  { %v1747_v30 = vmax.f32 %v1619_v18, 0.0  ;;  %v1621_v22 = vadd.f32 %v3146_v62, %v1569_v9 }
 0x307   :  { %v1748_v49 = vmax.f32 %v1620_v5, 0.0  ;;  %v1622_v14 = vadd.f32 %v3149_v3, %v1571_v19 }
 0x308   :  { %v1749_v24 = vmax.f32 %v1621_v22, 0.0 }
 0x309   :  { %v2087_v25 = vpack.c.bf16 %v1748_v49, %v1747_v30  ;;  %v1750_v29 = vmax.f32 %v1622_v14, 0.0  ;;  %v1574_v33 = vpop.f32.mrb[52].mxu1 }
 0x30a   :  { %v1575_v1 = vadd.f32 %v1574_v33, %v3077_v0  ;;  %v1576_v38 = vpop.f32.mrb[53].mxu1 }
 0x30b   :  { %1863 = vst [vmem:[%s3265_s10 + $0x60] sm:$0xff] %v2087_v25  ;;  %v2088_v57 = vpack.c.bf16 %v1750_v29, %v1749_v24  ;;  %v1577_v36 = vadd.f32 %v1576_v38, %v3085_v8  ;;  %v1578_v31 = vpop.f32.mrb[54].mxu1 }
 0x30c   :  { %v1623_v40 = vadd.f32 %v3146_v62, %v1575_v1  ;;  %v1579_v63 = vadd.f32 %v1578_v31, %v3088_v20  ;;  %v1580_v6 = vpop.f32.mrb[55].mxu1 }
 0x30d   :  { %1864 = vst [vmem:[%s3265_s10 + $0x68] sm:$0xff] %v2088_v57  ;;  %v1624_v0 = vadd.f32 %v3149_v3, %v1577_v36  ;;  %v1581_v41 = vadd.f32 %v1580_v6, %v3091_v34 }
 0x30e   :  { %v1751_v42 = vmax.f32 %v1623_v40, 0.0  ;;  %v1625_v44 = vadd.f32 %v3146_v62, %v1579_v63 }
 0x30f   :  { %v1752_v46 = vmax.f32 %v1624_v0, 0.0  ;;  %v1626_v8 = vadd.f32 %v3149_v3, %v1581_v41 }
 0x310   :  { %v1753_v27 = vmax.f32 %v1625_v44, 0.0 }
 0x311   :  { %v2089_v47 = vpack.c.bf16 %v1752_v46, %v1751_v42  ;;  %v1754_v48 = vmax.f32 %v1626_v8, 0.0 }
 0x313   :  { %1865 = vst [vmem:[%s3265_s10 + $0x70] sm:$0xff] %v2089_v47  ;;  %v2090_v20 = vpack.c.bf16 %v1754_v48, %v1753_v27 }
 0x315   :  { %1866 = vst [vmem:[%s3265_s10 + $0x78] sm:$0xff] %v2090_v20 }

// kernel: dig_forward.3
= control target key start
LH: loop header
LB: loop body
LE: loop exit
PB: predicated region body
PF: predicated region fallthrough
CT: control target
= control target key end

     0   :  { %s14760_s0 = inlined_call_operand.vmem [shape: bf16[2,64,256], index: 0, kind: input, shape index: {}]   ;;  %s14761_s1 = inlined_call_operand.vmem [shape: bf16[2,8,8,256], index: 1, kind: input, shape index: {}]   ;;  %s14762_s2 = inlined_call_operand.vmem [shape: bf16[2,9,256], index: 2, kind: input, shape index: {}]   ;;  %s14763_s3 = inlined_call_operand.vmem [shape: bf16[64,9], index: 3, kind: input, shape index: {}]   ;;  %s14764_s4 = inlined_call_operand.vmem [shape: bf16[2,64,128], index: 4, kind: input, shape index: {}]   ;;  %s14765_s5 = inlined_call_operand.vmem [shape: bf16[256,256], index: 5, kind: input, shape index: {}]   ;;  %s14766_s6 = inlined_call_operand.vmem [shape: f32[1,256], index: 6, kind: input, shape index: {}, may-alias: {6,8,10}]   ;;  %s14767_s7 = inlined_call_operand.vmem [shape: bf16[3,3,512,256], index: 7, kind: input, shape index: {}]   ;;  %s14768_s8 = inlined_call_operand.vmem [shape: f32[1,256], index: 8, kind: input, shape index: {}, may-alias: {6,8,10}]   ;;  %s14769_s9 = inlined_call_operand.vmem [shape: bf16[128,256], index: 9, kind: input, shape index: {}]   ;;  %s14770_s10 = inlined_call_operand.vmem [shape: f32[1,256], index: 10, kind: input, shape index: {}, may-alias: {6,8,10}]   ;;  %s14771_s11 = inlined_call_operand.hbm [shape: f32[2,64,256], index: 11, kind: output, shape index: {}]  }
   0x1   :  { %14772 = sst [smem:[#allocation7_spill]] %s14760_s0 }
   0x2   :  { %14773 = sst [smem:[#allocation8_spill]] %s14761_s1 }
   0x3   :  { %16 = vsyncpa [#allocation5], 0 }
   0x4   :  { %18 = vsyncpa [#allocation5 + $0x1], 0  ;;  %s11529_s17 = smov 0   ;;  %s11531_s18 = smov 0  }
   0x5   :  { %s11533_s19 = smov 0   ;;  %s11535_s20 = smov 0  }
   0x6 LB: > { %s11550_s21 = sadd.s32 4294967295, %s11462_s20   ;;  %s8588_s22 = sadd.s32 4294967294, %s11462_s20   ;;  %s11462_s20 = sphi %s11535_s20, %s14821_s20   ;;  %s11458_s19 = sphi %s11533_s19, %s14820_s19   ;;  %s11454_s18 = sphi %s11531_s18, %s14819_s18   ;;  %s11450_s17 = sphi %s11529_s17, %s14818_s17  }
   0x7   : > { %s11554_s23 = sadd.s32 1, %s11462_s20   ;;  %s282_s24 = sadd.s32 1, %s11458_s19 }
   0x8   : > { %s279_s25 = ssub.s32 %s11462_s20, %s11554_s23  ;;  %p292_p0 = scmp.ne.s32.totalorder %s11458_s19, %s11454_s18 }
   0x9   : > { %p280_p1 = scmp.eq.s32.totalorder %s279_s25, 0  ;;  %p293_p2 = scmp.eq.s32.totalorder %s11550_s21, 1 }
   0xa   : > { %p298_p3 = scmp.ne.s32.totalorder %s11454_s18, %s11450_s17  ;;  %p299_p4 = scmp.eq.s32.totalorder %s8588_s22, 1 }
   0xb   : > { %s11565_s26 = scalar_select %p280_p1, %s11458_s19, %s282_s24  }
   0xc   : > { %p11567_p5 = por %p293_p2, %p292_p0  ;;  %p11571_p6 = por %p299_p4, %p298_p3 }
   0xd   : > { %p8591_p7 = scmp.ge.s32.totalorder %s11462_s20, 1  ;;  %p370_p8 = scmp.lt.s32.totalorder %s11462_s20, 3 }
   0xf   : > { %p371_p9 = pnand %p8591_p7, %p370_p8 }
  0x10   : > { %p425_p10 = scmp.lt.s32.totalorder (!%p371_p9), %s11550_s21, 1  ;;  %vm521_vm0 = vcmask (!%p371_p9), 1043456   ;;  %vm522_vm1 = vcmask (!%p371_p9), 1044480   ;;  %v11464_v0 = vmov (!%p371_p9), 65535   ;;  %v11465_v2 = vmov (!%p371_p9), 0   ;;  %s14776_s1 = sld [smem:[#allocation8_spill]] (!%p371_p9) }
  0x11   : > { %374 = sbr.rel (%p371_p9) target bundleno = 1459 (0x5b3), region = 64  ;;  %v523_v1 = vsel (!%p371_p9), %vm521_vm0, 4294967295, %v11464_v0  ;;  %1076 = vst [vmem:[#allocation2 + $0x18] sm:$0x11] (!%p371_p9), %v11465_v2  ;;  %1078 = vst [vmem:[#allocation2 + $0x28] sm:$0x11] (!%p371_p9), %v11465_v2  ;;  %563 = vmatprep.mubr.bf16.mxu1 (!%p371_p9), %v11465_v2 }
  0x12   : > { %1080 = vst [vmem:[#allocation2 + $0x38] sm:$0x11] (!%p371_p9), %v11465_v2  ;;  %1082 = vst [vmem:[#allocation2 + $0x48] sm:$0x11] (!%p371_p9), %v11465_v2  ;;  %vm1203_vm2 = vsmask.f32 (!%p371_p9), 7938 }
  0x13   : > { %1084 = vst [vmem:[#allocation2 + $0x58] sm:$0x11] (!%p371_p9), %v11465_v2  ;;  %1086 = vst [vmem:[#allocation2 + $0x68] sm:$0x11] (!%p371_p9), %v11465_v2  ;;  %vm1205_vm3 = vcmask (!%p371_p9), 1047556   ;;  %v11612_v3 = vsel (!%p371_p9), %vm522_vm1, %v523_v1, 0 }
  0x14   : > { %1088 = vst [vmem:[#allocation2 + $0x78] sm:$0x11] (!%p371_p9), %v11465_v2  ;;  %1090 = vst [vmem:[#allocation2 + $0x88] sm:$0x11] (!%p371_p9), %v11465_v2  ;;  %vm1206_vm4 = vsmask.f32 (!%p371_p9), 7954 }
  0x15   : > { %1073 = vst [vmem:[#allocation2] sm:$0xff] (!%p371_p9), %v11465_v2  ;;  %1074 = vst [vmem:[#allocation2 + $0x8] sm:$0x11] (!%p371_p9), %v11465_v2  ;;  %vm1212_vm5 = vcmask (!%p371_p9), 1040384   ;;  %vm1213_vm7 = vsmask.f32 (!%p371_p9), 256 }
  0x16   : > { %1091 = vst [vmem:[#allocation2 + $0x90] sm:$0xff] (!%p371_p9), %v11465_v2  ;;  %1092 = vst [vmem:[#allocation2 + $0x98] sm:$0x11] (!%p371_p9), %v11465_v2  ;;  %vm1215_vm8 = vcmask (!%p371_p9), 1044484   ;;  %vm1216_vm9 = vsmask.f32 (!%p371_p9), 4352 }
  0x17   : > { %1093 = vst [vmem:[#allocation3] sm:$0xff] (!%p371_p9), %v11465_v2  ;;  %1094 = vst [vmem:[#allocation3 + $0x8] sm:$0x11] (!%p371_p9), %v11465_v2  ;;  %s14789_s0 = sld [smem:[#allocation7_spill]] (!%p371_p9)  ;;  %vm508_vm15 = vcmask (!%p371_p9), 72704  }
  0x18   : > { %1096 = vst [vmem:[#allocation3 + $0x18] sm:$0x11] %v11465_v2  ;;  %1098 = vst [vmem:[#allocation3 + $0x28] sm:$0x11] %v11465_v2  ;;  %s11607_s29 = scalar_select %p425_p10, %s11550_s21, 1 }
  0x19   : > { %1100 = vst [vmem:[#allocation3 + $0x38] sm:$0x11] %v11465_v2  ;;  %1102 = vst [vmem:[#allocation3 + $0x48] sm:$0x11] %v11465_v2  ;;  %v1219_v35 = vld [vmem:[#allocation2 + $0x18] sm:$0x11] }
  0x1a   : > { %1104 = vst [vmem:[#allocation3 + $0x58] sm:$0x11] %v11465_v2  ;;  %1106 = vst [vmem:[#allocation3 + $0x68] sm:$0x11] %v11465_v2  ;;  %s9972_s30 = sshll.u32 %s11607_s29, 6  ;;  %s9974_s12 = sshll.u32 %s11607_s29, 4 }
  0x1b   : > { %1108 = vst [vmem:[#allocation3 + $0x78] sm:$0x11] %v11465_v2  ;;  %1110 = vst [vmem:[#allocation3 + $0x88] sm:$0x11] %v11465_v2  ;;  %s11619_s15 = scalar_lea.vmem %s14776_s1, %s9972_s30  ;;  %s11629_s24 = scalar_lea.vmem %s14762_s2, %s9974_s12  ;;  %v1225_v42 = vld [vmem:[#allocation2 + $0x28] sm:$0x11] }
  0x1c   : > { %1111 = vst [vmem:[#allocation3 + $0x90] sm:$0xff] %v11465_v2  ;;  %1112 = vst [vmem:[#allocation3 + $0x98] sm:$0x11] %v11465_v2  ;;  %v1113_v5 = vld [vmem:[%s11619_s15] sm:$0xff]  ;;  %v1114_v6 = vld [vmem:[%s11619_s15 + $0x8] sm:$0xff]  ;;  %s11466_s1 = smov [#allocation4]  }
  0x1d   : > { %vm11622_vm6 = vmand %vm521_vm0, %vm1203_vm2  ;;  %v1115_v7 = vld [vmem:[%s11619_s15 + $0x10] sm:$0xff]  ;;  %v10300_v8 = vld [vmem:[%s11629_s24 + $0x4] ss:$8 sps:$4 sm:$0x1f]   ;;  %v1122_v12 = vshrl.u32 %v1113_v5, 16  ;;  %v1125_v13 = vshll.u32 %v1113_v5, 16  ;;  %s11680_s13 = scalar_lea.vmem %s14789_s0, %s9972_s30 }
  0x1e   : > { %v1116_v9 = vld [vmem:[%s11619_s15 + $0x18] sm:$0xff]  ;;  %v1117_v10 = vld [vmem:[%s11619_s15 + $0x20] sm:$0xff]  ;;  %v1118_v11 = vld [vmem:[%s11619_s15 + $0x28] sm:$0xff]  ;;  %v1130_v14 = vshrl.u32 %v1114_v6, 16  ;;  %v529_v15 = vand.u32 %v10300_v8, %v11612_v3  ;;  %v1133_v16 = vshll.u32 %v1114_v6, 16  ;;  %v1138_v17 = vshrl.u32 %v1115_v7, 16 }
  0x1f   : > { %v1141_v18 = vshll.u32 %v1115_v7, 16  ;;  %vm11641_vm10 = vmand %vm1205_vm3, %vm1206_vm4  ;;  %v1124_v20 = vrot.slane %v1122_v12, 7  ;;  %v1146_v22 = vshrl.u32 %v1116_v9, 16  ;;  %v1149_v23 = vshll.u32 %v1116_v9, 16  ;;  %v1119_v25 = vld [vmem:[%s11619_s15 + $0x30] sm:$0xff]  ;;  %v1120_v36 = vld [vmem:[%s11619_s15 + $0x38] sm:$0xff] }
  0x20   : > { %v1132_v21 = vrot.slane %v1130_v14, 7  ;;  %vm11647_vm11 = vmand %vm1212_vm5, %vm1213_vm7  ;;  %531 = vmatprep.subr.bf16.mxu1 %v529_v15  ;;  %v1140_v26 = vrot.slane %v1138_v17, 7  ;;  %v1154_v27 = vshrl.u32 %v1117_v10, 16  ;;  %v1157_v28 = vshll.u32 %v1117_v10, 16  ;;  %v1231_v48 = vld [vmem:[#allocation2 + $0x38] sm:$0x11] }
  0x21   : > { %v1162_v29 = vshrl.u32 %v1118_v11, 16  ;;  %vm11654_vm12 = vmand %vm1215_vm8, %vm1216_vm9  ;;  %v1127_v31 = vor.u32 %v1125_v13, %v1124_v20  ;;  %v1128_v32 = vrot.slane %v1124_v20, 4  ;;  %v1148_v39 = vrot.slane %v1146_v22, 7  ;;  %v1237_v53 = vld [vmem:[#allocation2 + $0x48] sm:$0x11]  ;;  %v446_v9 = vld [vmem:[%s11680_s13] sm:$0xff] }
  0x22   : > { %v1135_v33 = vor.u32 %v1133_v16, %v1132_v21  ;;  %v1136_v34 = vrot.slane %v1132_v21, 4  ;;  %v1143_v37 = vor.u32 %v1141_v18, %v1140_v26  ;;  %v1144_v38 = vrot.slane %v1140_v26, 4  ;;  %vm11663_vm13 = vmor %vm11641_vm10, %vm11622_vm6  ;;  %v1243_v54 = vld [vmem:[#allocation2 + $0x58] sm:$0x11]  ;;  %v1249_v59 = vld [vmem:[#allocation2 + $0x68] sm:$0x11] }
  0x23   : > { %v1156_v40 = vrot.slane %v1154_v27, 7  ;;  %v1164_v43 = vrot.slane %v1162_v29, 7  ;;  %v1165_v44 = vshll.u32 %v1118_v11, 16  ;;  %v1170_v45 = vshrl.u32 %v1119_v25, 16  ;;  %vm11671_vm14 = vmor %vm11654_vm12, %vm11647_vm11  ;;  %v1255_v60 = vld [vmem:[#allocation2 + $0x78] sm:$0x11] }
  0x24   : > { %v1173_v46 = vshll.u32 %v1119_v25, 16  ;;  %v1151_v49 = vor.u32 %v1149_v23, %v1148_v39  ;;  %v1152_v50 = vrot.slane %v1148_v39, 4  ;;  %v1178_v58 = vshrl.u32 %v1120_v36, 16  ;;  %v10302_v61 = vld [vmem:[%s11629_s24] ss:$8 sps:$4 sm:$0x1f]  }
  0x25   : > { %v1159_v51 = vor.u32 %v1157_v28, %v1156_v40  ;;  %v1160_v52 = vrot.slane %v1156_v40, 4  ;;  %v1167_v55 = vor.u32 %v1165_v44, %v1164_v43  ;;  %v1168_v56 = vrot.slane %v1164_v43, 4  ;;  %v1261_v4 = vld [vmem:[#allocation2 + $0x88] sm:$0x11]  ;;  %v10303_v22 = vld [vmem:[%s14763_s3] sm:$0xff]   ;;  %s9975_s30 = sshll.u32 %s11607_s29, 5 }
  0x26   : > { %v1172_v57 = vrot.slane %v1170_v45, 7  ;;  %v1181_v62 = vshll.u32 %v1120_v36, 16  ;;  %v1210_v63 = vsel %vm11663_vm13, %v1127_v31, 0  ;;  %v1220_v0 = vsel %vm11671_vm14, %v1128_v32, %v1219_v35  ;;  %v10305_v31 = vld [vmem:[%s14763_s3 + $0x10] sm:$0xff]   ;;  %v10306_v32 = vld [vmem:[%s14763_s3 + $0x18] sm:$0xff]   ;;  %s11814_s16 = scalar_lea.vmem %s14764_s4, %s9975_s30  ;;  %s9984_s29 = sshll.u32 %s11550_s21, 11 }
  0x27   : > { %v1223_v1 = vsel %vm11663_vm13, %v1135_v33, 0  ;;  %v1180_v7 = vrot.slane %v1178_v58, 7  ;;  %1211 = vst [vmem:[#allocation2 + $0x10] sm:$0xff] %v1210_v63  ;;  %1221 = vst [vmem:[#allocation2 + $0x18] sm:$0x11] %v1220_v0  ;;  %v1226_v8 = vsel %vm11671_vm14, %v1136_v34, %v1225_v42  ;;  %v1229_v10 = vsel %vm11663_vm13, %v1143_v37, 0  ;;  %s14710_s12 = scalar_lea.hbm %s14771_s11, %s9984_s29 }
  0x28   : > { %v1175_v5 = vor.u32 %v1173_v46, %v1172_v57  ;;  %v1176_v6 = vrot.slane %v1172_v57, 4  ;;  %1224 = vst [vmem:[#allocation2 + $0x20] sm:$0xff] %v1223_v1  ;;  %v1232_v11 = vsel %vm11671_vm14, %v1144_v38, %v1231_v48  ;;  %v1235_v12 = vsel %vm11663_vm13, %v1151_v49, 0  ;;  %1227 = vst [vmem:[#allocation2 + $0x28] sm:$0x11] %v1226_v8  ;;  %v447_v33 = vld [vmem:[%s11680_s13 + $0x8] sm:$0xff] }
  0x29   : > { %v1238_v13 = vsel %vm11671_vm14, %v1152_v50, %v1237_v53  ;;  %v1183_v14 = vor.u32 %v1181_v62, %v1180_v7  ;;  %v1184_v15 = vrot.slane %v1180_v7, 4  ;;  %1230 = vst [vmem:[#allocation2 + $0x30] sm:$0xff] %v1229_v10  ;;  %1233 = vst [vmem:[#allocation2 + $0x38] sm:$0x11] %v1232_v11  ;;  %v1241_v16 = vsel %vm11663_vm13, %v1159_v51, 0  ;;  %v450_v62 = vld [vmem:[%s11680_s13 + $0x20] sm:$0xff] }
  0x2a   : > { %1236 = vst [vmem:[#allocation2 + $0x40] sm:$0xff] %v1235_v12  ;;  %1239 = vst [vmem:[#allocation2 + $0x48] sm:$0x11] %v1238_v13  ;;  %v1244_v17 = vsel %vm11671_vm14, %v1160_v52, %v1243_v54  ;;  %v1247_v18 = vsel %vm11663_vm13, %v1167_v55, 0  ;;  %v1250_v19 = vsel %vm11671_vm14, %v1168_v56, %v1249_v59  ;;  %v1253_v20 = vsel %vm11663_vm13, %v1175_v5, 0  ;;  %v449_v0 = vld [vmem:[%s11680_s13 + $0x18] sm:$0xff] }
  0x2b   : > { %1242 = vst [vmem:[#allocation2 + $0x50] sm:$0xff] %v1241_v16  ;;  %1245 = vst [vmem:[#allocation2 + $0x58] sm:$0x11] %v1244_v17  ;;  %v1256_v21 = vsel %vm11671_vm14, %v1176_v6, %v1255_v60  ;;  %v1259_v23 = vsel %vm11663_vm13, %v1183_v14, 0  ;;  %v1262_v24 = vsel %vm11671_vm14, %v1184_v15, %v1261_v4  ;;  %v526_v25 = vand.u32 %v10302_v61, %v11612_v3  ;;  %v10304_v3 = vld [vmem:[%s14763_s3 + $0x8] sm:$0xff]   ;;  %v448_v60 = vld [vmem:[%s11680_s13 + $0x10] sm:$0xff] }
  0x2c   : > { %1248 = vst [vmem:[#allocation2 + $0x60] sm:$0xff] %v1247_v18  ;;  %1251 = vst [vmem:[#allocation2 + $0x68] sm:$0x11] %v1250_v19  ;;  %v11720_v26 = vunpack.c.l.bf16 %v446_v9  ;;  %v11722_v27 = vunpack.c.h.bf16 %v446_v9  ;;  %v11741_v34 = vunpack.c.l.bf16 %v447_v33  ;;  %v11743_v35 = vunpack.c.h.bf16 %v447_v33  ;;  %v10309_v39 = vld [vmem:[%s14765_s5 + $0x4] ss:$8 sps:$4 sm:$0xff]   ;;  %s11404_s30 = sshll.u32 %s11466_s1, 4  ;;  %s11405_s30 = int_to_ptr.vmem [resolvable:$false] %s11404_s30 }
  0x2d   : > { %1254 = vst [vmem:[#allocation2 + $0x70] sm:$0xff] %v1253_v20  ;;  %1257 = vst [vmem:[#allocation2 + $0x78] sm:$0x11] %v1256_v21  ;;  %532 = vmatpush1.bf16.msra.mxu1 %v526_v25  ;;  %v10312_v40 = vld [vmem:[%s14765_s5 + $0x14] ss:$8 sps:$4 sm:$0xff]   ;;  %v11816_v61 = vunpack.c.l.bf16 %v448_v60  ;;  %v11819_v63 = vunpack.c.h.bf16 %v448_v60  ;;  %v11827_v9 = vunpack.c.l.bf16 %v450_v62  ;;  %v11830_v13 = vunpack.c.h.bf16 %v450_v62 }
  0x2e   : > { %1260 = vst [vmem:[#allocation2 + $0x80] sm:$0xff] %v1259_v23  ;;  %1263 = vst [vmem:[#allocation2 + $0x88] sm:$0x11] %v1262_v24  ;;  %v644_v28 = vmul.f32 %v11720_v26, %v11720_v26  ;;  %v645_v29 = vmul.f32 %v11722_v27, %v11722_v27  ;;  %v646_v36 = vmul.f32 %v11741_v34, %v11741_v34  ;;  %984 = vmatprep.subr.bf16.mxu1 %v10309_v39  ;;  %v10310_v42 = vld [vmem:[%s14765_s5 + $0x10] ss:$8 sps:$4 sm:$0xff]   ;;  %vm2921_vm3 = vcmask 1042432  }
  0x2f   : > { %v647_v37 = vmul.f32 %v11743_v35, %v11743_v35  ;;  %v10315_v43 = vld [vmem:[%s14765_s5 + $0x24] ss:$8 sps:$4 sm:$0xff]   ;;  %v10313_v44 = vld [vmem:[%s14765_s5 + $0x20] ss:$8 sps:$4 sm:$0xff]   ;;  %v10318_v45 = vld [vmem:[%s14765_s5 + $0x34] ss:$8 sps:$4 sm:$0xff]   ;;  %v648_v4 = vmul.f32 %v11816_v61, %v11816_v61  ;;  %v649_v8 = vmul.f32 %v11819_v63, %v11819_v63  ;;  %v11833_v17 = vunpack.c.l.bf16 %v449_v0 }
  0x30   : > { %8607 = vmatmul.mubr.msk.bf16.vlgmr.msra.gmra.mrb[0].mxu1 %vm508_vm15, %v10303_v22  ;;  %v660_v30 = vadd.f32 %v645_v29, %v644_v28  ;;  %v10316_v46 = vld [vmem:[%s14765_s5 + $0x30] ss:$8 sps:$4 sm:$0xff]   ;;  %v10321_v48 = vld [vmem:[%s14765_s5 + $0x44] ss:$8 sps:$4 sm:$0xff]   ;;  %v10319_v49 = vld [vmem:[%s14765_s5 + $0x40] ss:$8 sps:$4 sm:$0xff]   ;;  %v11836_v22 = vunpack.c.h.bf16 %v449_v0  ;;  %v652_v24 = vmul.f32 %v11827_v9, %v11827_v9 }
  0x31   : > { %573 = vmatprep.mubr.bf16.mxu1 %v11465_v2  ;;  %v663_v38 = vadd.f32 %v647_v37, %v646_v36  ;;  %v10324_v50 = vld [vmem:[%s14765_s5 + $0x54] ss:$8 sps:$4 sm:$0xff]   ;;  %v10322_v51 = vld [vmem:[%s14765_s5 + $0x50] ss:$8 sps:$4 sm:$0xff]   ;;  %v10327_v52 = vld [vmem:[%s14765_s5 + $0x64] ss:$8 sps:$4 sm:$0xff]   ;;  %v666_v23 = vadd.f32 %v649_v8, %v648_v4 }
  0x32   : > { %661 = vadd.xlane.f32.xlu0 %v660_v30  ;;  %v10325_v53 = vld [vmem:[%s14765_s5 + $0x60] ss:$8 sps:$4 sm:$0xff]   ;;  %v10330_v54 = vld [vmem:[%s14765_s5 + $0x74] ss:$8 sps:$4 sm:$0xff]   ;;  %v10328_v55 = vld [vmem:[%s14765_s5 + $0x70] ss:$8 sps:$4 sm:$0xff]   ;;  %v653_v30 = vmul.f32 %v11830_v13, %v11830_v13  ;;  %v651_v36 = vmul.f32 %v11836_v22, %v11836_v22 }
  0x33   : > { %v10333_v56 = vld [vmem:[%s14765_s5 + $0x84] ss:$8 sps:$4 sm:$0xff]   ;;  %v10331_v57 = vld [vmem:[%s14765_s5 + $0x80] ss:$8 sps:$4 sm:$0xff]   ;;  %v10336_v58 = vld [vmem:[%s14765_s5 + $0x94] ss:$8 sps:$4 sm:$0xff]  }
  0x34   : > { %v10334_v59 = vld [vmem:[%s14765_s5 + $0x90] ss:$8 sps:$4 sm:$0xff]   ;;  %v451_v29 = vld [vmem:[%s11680_s13 + $0x28] sm:$0xff]  ;;  %vm1601_vm0 = vsmask.f32 3328  ;;  %vm2922_vm4 = vcmask 1046532  }
  0x35   : > { %vm1602_vm1 = vsmask.f32 7440  ;;  %vm12386_vm5 = vmor %vm2921_vm3, %vm2922_vm4  ;;  %v10577_v47 = vld [vmem:[%s14767_s7 + $0x50] ss:$8 sps:$4 sm:$0xff]  }
  0x36   : > { %664 = vadd.xlane.f32.xlu0 %v663_v38  ;;  %v11848_v38 = vunpack.c.l.bf16 %v451_v29  ;;  %vm12001_vm2 = vmor %vm1601_vm0, %vm1602_vm1 }
  0x38   : > { %8608 = vmatmul.mubr.msk.bf16.gmra.mrb[4].mxu1 %vm508_vm15, %v10304_v3 }
  0x39   : > { %583 = vmatprep.mubr.bf16.mxu1 %v11465_v2 }
  0x40   : > { %8609 = vmatmul.mubr.msk.bf16.gmra.mrb[8].mxu1 %vm508_vm15, %v10305_v31  ;;  %v650_v31 = vmul.f32 %v11833_v17, %v11833_v17 }
  0x41   : > { %593 = vmatprep.mubr.bf16.mxu1 %v11465_v2  ;;  %v10307_v2 = vld [vmem:[%s14765_s5] ss:$8 sps:$4 sm:$0xff]  }
  0x42   : > { %985 = vmatpush1.bf16.msra.mxu1 %v10307_v2 }
  0x43   : > { %986 = vmatprep.subr.bf16.mxu1 %v10312_v40 }
  0x46   : > { %987 = vmatpush1.bf16.msra.mxu1 %v10310_v42  ;;  %v11851_v42 = vunpack.c.h.bf16 %v451_v29  ;;  %v10342_v29 = vld [vmem:[%s14765_s5 + $0xb4] ss:$8 sps:$4 sm:$0xff]  }
  0x47   : > { %988 = vmatprep.subr.bf16.mxu1 %v10315_v43  ;;  %v672_v43 = vadd.f32 %v653_v30, %v652_v24 }
  0x48   : > { %8610 = vmatmul.mubr.msk.bf16.gmra.mrb[12].mxu1 %vm508_vm15, %v10306_v32 }
  0x4a   : > { %989 = vmatpush1.bf16.msra.mxu1 %v10313_v44 }
  0x4b   : > { %990 = vmatprep.subr.bf16.mxu1 %v10318_v45 }
  0x4e   : > { %991 = vmatpush1.bf16.msra.mxu1 %v10316_v46 }
  0x4f   : > { %992 = vmatprep.subr.bf16.mxu1 %v10321_v48 }
  0x52   : > { %993 = vmatpush1.bf16.msra.mxu1 %v10319_v49 }
  0x53   : > { %994 = vmatprep.subr.bf16.mxu1 %v10324_v50 }
  0x56   : > { %995 = vmatpush1.bf16.msra.mxu1 %v10322_v51 }
  0x57   : > { %996 = vmatprep.subr.bf16.mxu1 %v10327_v52  ;;  %v669_v52 = vadd.f32 %v651_v36, %v650_v31 }
  0x5a   : > { %997 = vmatpush1.bf16.msra.mxu1 %v10325_v53  ;;  %v654_v53 = vmul.f32 %v11848_v38, %v11848_v38 }
  0x5b   : > { %998 = vmatprep.subr.bf16.mxu1 %v10330_v54  ;;  %v655_v54 = vmul.f32 %v11851_v42, %v11851_v42 }
  0x5e   : > { %999 = vmatpush1.bf16.msra.mxu1 %v10328_v55 }
  0x5f   : > { %1000 = vmatprep.subr.bf16.mxu1 %v10333_v56 }
  0x62   : > { %1001 = vmatpush1.bf16.msra.mxu1 %v10331_v57  ;;  %v452_v57 = vld [vmem:[%s11680_s13 + $0x30] sm:$0xff] }
  0x63   : > { %1002 = vmatprep.subr.bf16.mxu1 %v10336_v58  ;;  %v11861_v0 = vunpack.c.l.bf16 %v452_v57 }
  0x66   : > { %1003 = vmatpush1.bf16.msra.mxu1 %v10334_v59 }
 0x103   : > { %v565_v1 = vpop.f32.mrb[0].mxu1 }
 0x104   : > { %v604_v5 = vmul.f32 %v565_v1, %v11720_v26  ;;  %v684_v6 = vmul.f32 %v565_v1, %v565_v1  ;;  %v567_v7 = vpop.f32.mrb[1].mxu1  ;;  %v675_v1 = vadd.f32 %v655_v54, %v654_v53  ;;  %v10343_v53 = vld [vmem:[%s14765_s5 + $0xc0] ss:$8 sps:$4 sm:$0xff]  }
 0x105   : > { %v605_v10 = vmul.f32 %v567_v7, %v11722_v27  ;;  %v685_v11 = vmul.f32 %v567_v7, %v567_v7  ;;  %v569_v12 = vpop.f32.mrb[2].mxu1  ;;  %v11864_v7 = vunpack.c.h.bf16 %v452_v57 }
 0x106   : > { %v606_v14 = vmul.f32 %v569_v12, %v11741_v34  ;;  %v686_v15 = vmul.f32 %v569_v12, %v569_v12  ;;  %v571_v16 = vpop.f32.mrb[3].mxu1 }
 0x107   : > { %v607_v18 = vmul.f32 %v571_v16, %v11743_v35  ;;  %v687_v19 = vmul.f32 %v571_v16, %v571_v16  ;;  %v700_v20 = vadd.f32 %v685_v11, %v684_v6  ;;  %v620_v21 = vadd.f32 %v605_v10, %v604_v5 }
 0x108   : > { %v657_v24 = vmul.f32 %v11864_v7, %v11864_v7 }
 0x109   : > { %701 = vadd.xlane.f32.xlu1 %v700_v20  ;;  %621 = vadd.xlane.f32.xlu0 %v620_v21  ;;  %v703_v25 = vadd.f32 %v687_v19, %v686_v15  ;;  %v623_v28 = vadd.f32 %v607_v18, %v606_v14  ;;  %v10339_v18 = vld [vmem:[%s14765_s5 + $0xa4] ss:$8 sps:$4 sm:$0xff]   ;;  %v656_v19 = vmul.f32 %v11861_v0, %v11861_v0  ;;  %v10337_v20 = vld [vmem:[%s14765_s5 + $0xa0] ss:$8 sps:$4 sm:$0xff]  }
 0x10a   : > { %1004 = vmatprep.subr.bf16.mxu1 %v10339_v18  ;;  %v10382_v18 = vld [vmem:[%s14767_s7 + $0x844] ss:$8 sps:$4 sm:$0xff]  }
 0x10b   : > { %v575_v3 = vpop.f32.mrb[4].mxu1  ;;  %1005 = vmatpush1.bf16.msra.mxu1 %v10337_v20  ;;  %v10388_v20 = vld [vmem:[%s14767_s7 + $0x854] ss:$8 sps:$4 sm:$0xff]  }
 0x10c   : > { %v608_v32 = vmul.f32 %v575_v3, %v11816_v61  ;;  %v688_v33 = vmul.f32 %v575_v3, %v575_v3  ;;  %v577_v37 = vpop.f32.mrb[5].mxu1  ;;  %1006 = vmatprep.subr.bf16.mxu1 %v10342_v29  ;;  %v10406_v29 = vld [vmem:[%s14767_s7 + $0x884] ss:$8 sps:$4 sm:$0xff]  }
 0x10d   : > { %704 = vadd.xlane.f32.xlu1 %v703_v25  ;;  %667 = vadd.xlane.f32.xlu0 %v666_v23  ;;  %v609_v2 = vmul.f32 %v577_v37, %v11819_v63  ;;  %v689_v39 = vmul.f32 %v577_v37, %v577_v37  ;;  %v579_v40 = vpop.f32.mrb[6].mxu1  ;;  %v453_v23 = vld [vmem:[%s11680_s13 + $0x38] sm:$0xff]  ;;  %s11406_s13 = scalar_lea.vmem %s11405_s30, 4096 }
 0x10e   : > { %v610_v44 = vmul.f32 %v579_v40, %v11833_v17  ;;  %v690_v45 = vmul.f32 %v579_v40, %v579_v40  ;;  %v581_v46 = vpop.f32.mrb[7].mxu1  ;;  %v678_v40 = vadd.f32 %v657_v24, %v656_v19  ;;  %v10384_v19 = vld [vmem:[%s14767_s7 + $0x840] ss:$8 sps:$4 sm:$0xff]  }
 0x10f   : > { %v611_v48 = vmul.f32 %v581_v46, %v11836_v22  ;;  %v691_v49 = vmul.f32 %v581_v46, %v581_v46  ;;  %v706_v50 = vadd.f32 %v689_v39, %v688_v33  ;;  %v626_v51 = vadd.f32 %v609_v2, %v608_v32  ;;  %v10340_v33 = vld [vmem:[%s14765_s5 + $0xb0] ss:$8 sps:$4 sm:$0xff]   ;;  %v10396_v24 = vld [vmem:[%s14767_s7 + $0x860] ss:$8 sps:$4 sm:$0xff]  }
 0x110   : > { %v11883_v32 = vunpack.c.l.bf16 %v453_v23  ;;  %v11889_v39 = vunpack.c.h.bf16 %v453_v23  ;;  %1007 = vmatpush1.bf16.msra.mxu1 %v10340_v33  ;;  %v10394_v23 = vld [vmem:[%s14767_s7 + $0x864] ss:$8 sps:$4 sm:$0xff]  }
 0x111   : > { %624 = vadd.xlane.f32.xlu1 %v623_v28  ;;  %673 = vadd.xlane.f32.xlu0 %v672_v43  ;;  %v709_v55 = vadd.f32 %v691_v49, %v690_v45  ;;  %v629_v56 = vadd.f32 %v611_v48, %v610_v44 }
 0x112   : > { %v659_v54 = vmul.f32 %v11889_v39, %v11889_v39 }
 0x113   : > { %v585_v58 = vpop.f32.mrb[8].mxu1 }
 0x114   : > { %v612_v59 = vmul.f32 %v585_v58, %v11827_v9  ;;  %v692_v60 = vmul.f32 %v585_v58, %v585_v58  ;;  %v587_v62 = vpop.f32.mrb[9].mxu1  ;;  %v10348_v58 = vld [vmem:[%s14765_s5 + $0xd4] ss:$8 sps:$4 sm:$0xff]  }
 0x115   : > { %670 = vadd.xlane.f32.xlu1 %v669_v52  ;;  %707 = vadd.xlane.f32.xlu0 %v706_v50  ;;  %v613_v4 = vmul.f32 %v587_v62, %v11830_v13  ;;  %v693_v5 = vmul.f32 %v587_v62, %v587_v62  ;;  %v589_v6 = vpop.f32.mrb[10].mxu1  ;;  %v658_v52 = vmul.f32 %v11883_v32, %v11883_v32  ;;  %v10349_v62 = vld [vmem:[%s14765_s5 + $0xe0] ss:$8 sps:$4 sm:$0xff]  }
 0x116   : > { %v614_v8 = vmul.f32 %v589_v6, %v11848_v38  ;;  %v694_v10 = vmul.f32 %v589_v6, %v589_v6  ;;  %v591_v11 = vpop.f32.mrb[11].mxu1  ;;  %v10358_v6 = vld [vmem:[%s14767_s7 + $0x804] ss:$8 sps:$4 sm:$0xff]  }
 0x117   : > { %v615_v12 = vmul.f32 %v591_v11, %v11851_v42  ;;  %v695_v14 = vmul.f32 %v591_v11, %v591_v11  ;;  %v712_v15 = vadd.f32 %v693_v5, %v692_v60  ;;  %v632_v16 = vadd.f32 %v613_v4, %v612_v59  ;;  %v10346_v59 = vld [vmem:[%s14765_s5 + $0xd0] ss:$8 sps:$4 sm:$0xff]   ;;  %v10357_v5 = vld [vmem:[%s14767_s7 + $0x204] ss:$8 sps:$4 sm:$0xff]   ;;  %4971 = vmatprep.subr.bf16.mxu0 %v10358_v6 }
 0x118   : > { %v681_v60 = vadd.f32 %v659_v54, %v658_v52  ;;  %v10352_v4 = vld [vmem:[%s14765_s5 + $0xf0] ss:$8 sps:$4 sm:$0xff]  }
 0x119   : > { %676 = vadd.xlane.f32.xlu1 %v675_v1  ;;  %627 = vadd.xlane.f32.xlu0 %v626_v51  ;;  %v715_v21 = vadd.f32 %v695_v14, %v694_v10  ;;  %v635_v25 = vadd.f32 %v615_v12, %v614_v8  ;;  %v10345_v51 = vld [vmem:[%s14765_s5 + $0xc4] ss:$8 sps:$4 sm:$0xff]   ;;  %v10354_v1 = vld [vmem:[%s14765_s5 + $0xf4] ss:$8 sps:$4 sm:$0xff]   ;;  %v10360_v8 = vld [vmem:[%s14767_s7 + $0x800] ss:$8 sps:$4 sm:$0xff]  }
 0x11a   : > { %1008 = vmatprep.subr.bf16.mxu1 %v10345_v51  ;;  %v10364_v10 = vld [vmem:[%s14767_s7 + $0x814] ss:$8 sps:$4 sm:$0xff]   ;;  %4972 = vmatpush1.bf16.msra.mxu0 %v10360_v8  ;;  %v10366_v11 = vld [vmem:[%s14767_s7 + $0x810] ss:$8 sps:$4 sm:$0xff]   ;;  %v10370_v12 = vld [vmem:[%s14767_s7 + $0x824] ss:$8 sps:$4 sm:$0xff]  }
 0x11b   : > { %v595_v28 = vpop.f32.mrb[12].mxu1  ;;  %1009 = vmatpush1.bf16.msra.mxu1 %v10343_v53  ;;  %4973 = vmatprep.subr.bf16.mxu0 %v10364_v10  ;;  %v10372_v14 = vld [vmem:[%s14767_s7 + $0x820] ss:$8 sps:$4 sm:$0xff]   ;;  %v10430_v8 = vld [vmem:[%s14767_s7 + $0x8c4] ss:$8 sps:$4 sm:$0xff]  }
 0x11c   : > { %v616_v30 = vmul.f32 %v595_v28, %v11861_v0  ;;  %v696_v3 = vmul.f32 %v595_v28, %v595_v28  ;;  %v597_v31 = vpop.f32.mrb[13].mxu1  ;;  %1010 = vmatprep.subr.bf16.mxu1 %v10348_v58  ;;  %v10402_v28 = vld [vmem:[%s14767_s7 + $0x870] ss:$8 sps:$4 sm:$0xff]  }
 0x11d   : > { %710 = vadd.xlane.f32.xlu1 %v709_v55  ;;  %713 = vadd.xlane.f32.xlu0 %v712_v15  ;;  %v617_v36 = vmul.f32 %v597_v31, %v11864_v7  ;;  %v697_v37 = vmul.f32 %v597_v31, %v597_v31  ;;  %v599_v2 = vpop.f32.mrb[14].mxu1  ;;  %v10376_v15 = vld [vmem:[%s14767_s7 + $0x834] ss:$8 sps:$4 sm:$0xff]  }
 0x11e   : > { %v618_v43 = vmul.f32 %v599_v2, %v11883_v32  ;;  %v698_v44 = vmul.f32 %v599_v2, %v599_v2  ;;  %v601_v45 = vpop.f32.mrb[15].mxu1  ;;  %4974 = vmatpush1.bf16.msra.mxu0 %v10366_v11  ;;  %v10412_v31 = vld [vmem:[%s14767_s7 + $0x894] ss:$8 sps:$4 sm:$0xff]   ;;  %v10432_v11 = vld [vmem:[%s14767_s7 + $0x8c0] ss:$8 sps:$4 sm:$0xff]  }
 0x11f   : > { %v619_v46 = vmul.f32 %v601_v45, %v11889_v39  ;;  %v699_v48 = vmul.f32 %v601_v45, %v601_v45  ;;  %v718_v49 = vadd.f32 %v697_v37, %v696_v3  ;;  %v638_v50 = vadd.f32 %v617_v36, %v616_v30  ;;  %1011 = vmatpush1.bf16.msra.mxu1 %v10346_v59  ;;  %v1434_v30 = vld [vmem:[#allocation2 + $0x10] sm:$0xff]  ;;  %v10408_v3 = vld [vmem:[%s14767_s7 + $0x880] ss:$8 sps:$4 sm:$0xff]   ;;  %v11981_v37 = vld [vmem:[#allocation2 + $0x18] sm:$0x11] }
 0x120   : > { %4975 = vmatprep.subr.bf16.mxu0 %v10370_v12  ;;  %v1619_v33 = vshrl.u32 %v1434_v30, 16  ;;  %v1622_v36 = vshll.u32 %v1434_v30, 16  ;;  %v10414_v45 = vld [vmem:[%s14767_s7 + $0x890] ss:$8 sps:$4 sm:$0xff]   ;;  %v10436_v12 = vld [vmem:[%s14767_s7 + $0x8d4] ss:$8 sps:$4 sm:$0xff]  }
 0x121   : > { %630 = vadd.xlane.f32.xlu1 %v629_v56  ;;  %679 = vadd.xlane.f32.xlu0 %v678_v40  ;;  %v721_v55 = vadd.f32 %v699_v48, %v698_v44  ;;  %v641_v57 = vadd.f32 %v619_v46, %v618_v43  ;;  %v10351_v56 = vld [vmem:[%s14765_s5 + $0xe4] ss:$8 sps:$4 sm:$0xff]   ;;  %v4292_v46 = vshll.u32 %v11981_v37, 16 }
 0x122   : > { %1012 = vmatprep.subr.bf16.mxu1 %v10351_v56  ;;  %4976 = vmatpush1.bf16.msra.mxu0 %v10372_v14  ;;  %v1621_v2 = vrot.slane %v1619_v33, 4  ;;  %v1624_v40 = vrot.slane %v1622_v36, 5  ;;  %v4268_v43 = vld [vmem:[#allocation2 + $0x20] sm:$0xff]  ;;  %v11983_v44 = vld [vmem:[#allocation2 + $0x28] sm:$0x11] }
 0x123   : > { %1013 = vmatpush1.bf16.msra.mxu1 %v10349_v62  ;;  %4977 = vmatprep.subr.bf16.mxu0 %v10376_v15  ;;  %v4297_v48 = vshrl.u32 %v4268_v43, 16  ;;  %v4306_v52 = vshll.u32 %v11983_v44, 16  ;;  %v4294_v53 = vrot.slane %v4292_v46, 5  ;;  %v10424_v56 = vld [vmem:[%s14767_s7 + $0x8b4] ss:$8 sps:$4 sm:$0xff]  }
 0x124   : > { %1014 = vmatprep.subr.bf16.mxu1 %v10354_v1  ;;  %v1625_v51 = vor.u32 %v1624_v40, %v1621_v2  ;;  %v10438_v14 = vld [vmem:[%s14767_s7 + $0x8d0] ss:$8 sps:$4 sm:$0xff]   ;;  %v10442_v15 = vld [vmem:[%s14767_s7 + $0x8e4] ss:$8 sps:$4 sm:$0xff]   ;;  %v10466_v36 = vld [vmem:[%s14767_s7 + $0x920] ss:$8 sps:$4 sm:$0xff]  }
 0x125   : > { %716 = vadd.xlane.f32.xlu1 %v715_v21  ;;  %719 = vadd.xlane.f32.xlu0 %v718_v49  ;;  %v10390_v21 = vld [vmem:[%s14767_s7 + $0x850] ss:$8 sps:$4 sm:$0xff]   ;;  %v4300_v49 = vshll.u32 %v4268_v43, 16  ;;  %v4299_v54 = vrot.slane %v4297_v48, 4  ;;  %v10468_v30 = vld [vmem:[%s14767_s7 + $0x924] ss:$8 sps:$4 sm:$0xff]  }
 0x126   : > { %v11996_v58 = vrot.slane %v1625_v51, 4  ;;  %v10474_v40 = vld [vmem:[%s14767_s7 + $0x934] ss:$8 sps:$4 sm:$0xff]   ;;  %v10472_v48 = vld [vmem:[%s14767_s7 + $0x930] ss:$8 sps:$4 sm:$0xff]  }
 0x127   : > { %1015 = vmatpush1.bf16.msra.mxu1 %v10352_v4 }
 0x128   : > { %2285 = vmatprep.subr.bf16.mxu1 %v10357_v5  ;;  %v4295_v1 = vsel %vm12001_vm2, %v11996_v58, %v4294_v53  ;;  %v10426_v5 = vld [vmem:[%s14767_s7 + $0x8b0] ss:$8 sps:$4 sm:$0xff]   ;;  %v10478_v53 = vld [vmem:[%s14767_s7 + $0x940] ss:$8 sps:$4 sm:$0xff]  }
 0x129   : > { %682 = vadd.xlane.f32.xlu1 %v681_v60  ;;  %633 = vadd.xlane.f32.xlu0 %v632_v16  ;;  %v10378_v16 = vld [vmem:[%s14767_s7 + $0x830] ss:$8 sps:$4 sm:$0xff]   ;;  %v4308_v60 = vrot.slane %v4306_v52, 5 }
 0x12a   : > { %4978 = vmatpush1.bf16.msra.mxu0 %v10378_v16  ;;  %v10444_v16 = vld [vmem:[%s14767_s7 + $0x8e0] ss:$8 sps:$4 sm:$0xff]  }
 0x12b   : > { %4979 = vmatprep.subr.bf16.mxu0 %v10382_v18  ;;  %v10448_v18 = vld [vmem:[%s14767_s7 + $0x8f4] ss:$8 sps:$4 sm:$0xff]  }
 0x12d   : > { %722 = vadd.xlane.f32.xlu1 %v721_v55  ;;  %639 = vadd.xlane.f32.xlu0 %v638_v50  ;;  %v10418_v50 = vld [vmem:[%s14767_s7 + $0x8a4] ss:$8 sps:$4 sm:$0xff]   ;;  %v4302_v55 = vrot.slane %v4300_v49, 5 }
 0x12e   : > { %4980 = vmatpush1.bf16.msra.mxu0 %v10384_v19  ;;  %v662_v19 = vpop.xlane.xlu0 %661 }
 0x12f   : > { %4981 = vmatprep.subr.bf16.mxu0 %v10388_v20  ;;  %v4303_v59 = vor.u32 %v4302_v55, %v4299_v54  ;;  %v10450_v20 = vld [vmem:[%s14767_s7 + $0x8f0] ss:$8 sps:$4 sm:$0xff]   ;;  %v10486_v54 = vld [vmem:[%s14767_s7 + $0x954] ss:$8 sps:$4 sm:$0xff]  }
 0x131   : > { %636 = vadd.xlane.f32.xlu1 %v635_v25  ;;  %v10400_v25 = vld [vmem:[%s14767_s7 + $0x874] ss:$8 sps:$4 sm:$0xff]   ;;  %v12008_v4 = vrot.slane %v4303_v59, 4 }
 0x132   : > { %4982 = vmatpush1.bf16.msra.mxu0 %v10390_v21  ;;  %v10456_v21 = vld [vmem:[%s14767_s7 + $0x904] ss:$8 sps:$4 sm:$0xff]  }
 0x133   : > { %4983 = vmatprep.subr.bf16.mxu0 %v10394_v23  ;;  %v4309_v6 = vsel %vm12001_vm2, %v12008_v4, %v4308_v60  ;;  %v10484_v60 = vld [vmem:[%s14767_s7 + $0x950] ss:$8 sps:$4 sm:$0xff]  }
 0x134   : > { %v9180_v10 = vcombine.high %v4295_v1, %v4309_v6  ;;  %v9179_v23 = vcombine.low %v4295_v1, %v4309_v6 }
 0x135   : > { %642 = vadd.xlane.f32.xlu1 %v641_v57  ;;  %v10420_v57 = vld [vmem:[%s14767_s7 + $0x8a0] ss:$8 sps:$4 sm:$0xff]  }
 0x136   : > { %4984 = vmatpush1.bf16.msra.mxu0 %v10396_v24  ;;  %5003 = vmatprep.mubr.bf16.mxu0 %v9180_v10  ;;  %v665_v24 = vpop.xlane.xlu0 %664 }
 0x137   : > { %4985 = vmatprep.subr.bf16.mxu0 %v10400_v25  ;;  %v10454_v25 = vld [vmem:[%s14767_s7 + $0x900] ss:$8 sps:$4 sm:$0xff]  }
 0x13a   : > { %4986 = vmatpush1.bf16.msra.mxu0 %v10402_v28  ;;  %v10462_v28 = vld [vmem:[%s14767_s7 + $0x914] ss:$8 sps:$4 sm:$0xff]  }
 0x13b   : > { %4987 = vmatprep.subr.bf16.mxu0 %v10406_v29  ;;  %v10460_v29 = vld [vmem:[%s14767_s7 + $0x910] ss:$8 sps:$4 sm:$0xff]  }
 0x13e   : > { %4988 = vmatpush1.bf16.msra.mxu0 %v10408_v3 }
 0x13f   : > { %4989 = vmatprep.subr.bf16.mxu0 %v10412_v31 }
 0x142   : > { %4990 = vmatpush1.bf16.msra.mxu0 %v10414_v45 }
 0x143   : > { %4991 = vmatprep.subr.bf16.mxu0 %v10418_v50  ;;  %v10480_v50 = vld [vmem:[%s14767_s7 + $0x944] ss:$8 sps:$4 sm:$0xff]  }
 0x146   : > { %4992 = vmatpush1.bf16.msra.mxu0 %v10420_v57 }
 0x147   : > { %4993 = vmatprep.subr.bf16.mxu0 %v10424_v56 }
 0x14a   : > { %4994 = vmatpush1.bf16.msra.mxu0 %v10426_v5  ;;  %v10492_v5 = vld [vmem:[%s14767_s7 + $0x964] ss:$8 sps:$4 sm:$0xff]  }
 0x14b   : > { %4995 = vmatprep.subr.bf16.mxu0 %v10430_v8 }
 0x14e   : > { %4996 = vmatpush1.bf16.msra.mxu0 %v10432_v11  ;;  %v10490_v11 = vld [vmem:[%s14767_s7 + $0x960] ss:$8 sps:$4 sm:$0xff]  }
 0x14f   : > { %4997 = vmatprep.subr.bf16.mxu0 %v10436_v12 }
 0x152   : > { %4998 = vmatpush1.bf16.msra.mxu0 %v10438_v14 }
 0x153   : > { %4999 = vmatprep.subr.bf16.mxu0 %v10442_v15 }
 0x156   : > { %5000 = vmatpush1.bf16.msra.mxu0 %v10444_v16 }
 0x157   : > { %5001 = vmatprep.subr.bf16.mxu0 %v10448_v18 }
 0x15a   : > { %5002 = vmatpush1.bf16.msra.mxu0 %v10450_v20 }
 0x15b   : > { %5044 = vmatprep.subr.bf16.mxu0 %v10456_v21 }
 0x15d   : > { %5004 = vmatmul.mubr.bf16.vlgmr.msra.gmra.mrb[0].mxu0 %v9179_v23 }
 0x15e   : > { %5045 = vmatpush1.bf16.msra.mxu0 %v10454_v25 }
 0x15f   : > { %5046 = vmatprep.subr.bf16.mxu0 %v10462_v28 }
 0x162   : > { %5047 = vmatpush1.bf16.msra.mxu0 %v10460_v29 }
 0x163   : > { %5048 = vmatprep.subr.bf16.mxu0 %v10468_v30 }
 0x166   : > { %5049 = vmatpush1.bf16.msra.mxu0 %v10466_v36 }
 0x167   : > { %5050 = vmatprep.subr.bf16.mxu0 %v10474_v40 }
 0x16a   : > { %5051 = vmatpush1.bf16.msra.mxu0 %v10472_v48 }
 0x16b   : > { %5052 = vmatprep.subr.bf16.mxu0 %v10480_v50  ;;  %v10367_v50 = vld [vmem:[%s14767_s7 + $0x220] ss:$8 sps:$4 sm:$0xff]  }
 0x16e   : > { %5053 = vmatpush1.bf16.msra.mxu0 %v10478_v53 }
 0x16f   : > { %5054 = vmatprep.subr.bf16.mxu0 %v10486_v54 }
 0x172   : > { %5055 = vmatpush1.bf16.msra.mxu0 %v10484_v60 }
 0x173   : > { %5056 = vmatprep.subr.bf16.mxu0 %v10492_v5  ;;  %v10381_v5 = vld [vmem:[%s14767_s7 + $0x244] ss:$8 sps:$4 sm:$0xff]  }
 0x176   : > { %5057 = vmatpush1.bf16.msra.mxu0 %v10490_v11 }
 0x196   : > { %v702_v3 = vpop.xlane.xlu1 %701  ;;  %v622_v31 = vpop.xlane.xlu0 %621 }
 0x197   : > { %v724_v33 = vmul.f32 %v702_v3, %v662_v19 }
 0x199   : > { %v732_v2 = vmax.f32 %v724_v33, 1e-16  ;;  %v10355_v33 = vld [vmem:[%s14767_s7 + $0x200] ss:$8 sps:$4 sm:$0xff]  }
 0x19a   : > { %v705_v43 = vpop.xlane.xlu1 %704  ;;  %v668_v45 = vpop.xlane.xlu0 %667 }
 0x19b   : > { %11286 = vrsqrt.f32 %v732_v2  ;;  %v725_v46 = vmul.f32 %v705_v43, %v665_v24  ;;  %v10369_v43 = vld [vmem:[%s14767_s7 + $0x224] ss:$8 sps:$4 sm:$0xff]  }
 0x19d   : > { %v733_v49 = vmax.f32 %v725_v46, 1e-16 }
 0x19e   : > { %v625_v51 = vpop.xlane.xlu1 %624  ;;  %v674_v52 = vpop.xlane.xlu0 %673 }
 0x19f   : > { %11288 = vrsqrt.f32 %v733_v49 }
 0x1a2   : > { %v671_v55 = vpop.xlane.xlu1 %670  ;;  %v708_v57 = vpop.xlane.xlu0 %707 }
 0x1a3   : > { %v726_v59 = vmul.f32 %v708_v57, %v668_v45 }
 0x1a5   : > { %v11287_v56 = vpop.eup %11286  ;;  %v734_v1 = vmax.f32 %v726_v59, 1e-16  ;;  %v10373_v59 = vld [vmem:[%s14767_s7 + $0x230] ss:$8 sps:$4 sm:$0xff]  }
 0x1a6   : > { %v677_v6 = vpop.xlane.xlu1 %676  ;;  %v628_v8 = vpop.xlane.xlu0 %627  ;;  %v748_v10 = vmul.f32 %v11287_v56, %v622_v31 }
 0x1a7   : > { %11290 = vrsqrt.f32 %v734_v1 }
 0x1a8   : > { %v756_v20 = vmul.f32 %v748_v10, %v11720_v26  ;;  %v757_v21 = vmul.f32 %v748_v10, %v11722_v27  ;;  %v10363_v26 = vld [vmem:[%s14767_s7 + $0x214] ss:$8 sps:$4 sm:$0xff]  }
 0x1a9   : > { %v11289_v12 = vpop.eup %11288 }
 0x1aa   : > { %v749_v14 = vmul.f32 %v11289_v12, %v625_v51  ;;  %v711_v15 = vpop.xlane.xlu1 %710  ;;  %v714_v16 = vpop.xlane.xlu0 %713  ;;  %v10375_v51 = vld [vmem:[%s14767_s7 + $0x234] ss:$8 sps:$4 sm:$0xff]  }
 0x1ab   : > { %v727_v18 = vmul.f32 %v711_v15, %v671_v55  ;;  %v728_v19 = vmul.f32 %v714_v16, %v674_v52  ;;  %v10379_v16 = vld [vmem:[%s14767_s7 + $0x240] ss:$8 sps:$4 sm:$0xff]  }
 0x1ac   : > { %v758_v23 = vmul.f32 %v749_v14, %v11741_v34  ;;  %v759_v24 = vmul.f32 %v749_v14, %v11743_v35  ;;  %v10361_v35 = vld [vmem:[%s14767_s7 + $0x210] ss:$8 sps:$4 sm:$0xff]  }
 0x1ad   : > { %v735_v25 = vmax.f32 %v727_v18, 1e-16  ;;  %v736_v28 = vmax.f32 %v728_v19, 1e-16  ;;  %v10387_v19 = vld [vmem:[%s14767_s7 + $0x254] ss:$8 sps:$4 sm:$0xff]  }
 0x1ae   : > { %v772_v29 = vpack.c.bf16 %v758_v23, %v756_v20  ;;  %v631_v30 = vpop.xlane.xlu1 %630  ;;  %v773_v3 = vpack.c.bf16 %v759_v24, %v757_v21  ;;  %v680_v31 = vpop.xlane.xlu0 %679  ;;  %v1594_v21 = vld [vmem:[#allocation2 + $0x18] sm:$0x11] }
 0x1af   : > { %11292 = vrsqrt.f32 %v735_v25 }
 0x1b0   : > { %1016 = vmatprep.mubr.bf16.mxu1 %v773_v3  ;;  %11294 = vrsqrt.f32 %v736_v28 }
 0x1b1   : > { %1017 = vmatmul.mubr.bf16.vlgmr.msra.gmra.mrb[16].mxu1 %v772_v29  ;;  %v11291_v36 = vpop.eup %11290  ;;  %v10385_v29 = vld [vmem:[%s14767_s7 + $0x250] ss:$8 sps:$4 sm:$0xff]  }
 0x1b2   : > { %v717_v27 = vpop.xlane.xlu1 %716  ;;  %v720_v34 = vpop.xlane.xlu0 %719  ;;  %2286 = vmatpush1.bf16.msra.mxu1 %v10355_v33  ;;  %v750_v48 = vmul.f32 %v11291_v36, %v628_v8 }
 0x1b3   : > { %v729_v2 = vmul.f32 %v717_v27, %v677_v6  ;;  %v730_v40 = vmul.f32 %v720_v34, %v680_v31  ;;  %2287 = vmatprep.subr.bf16.mxu1 %v10363_v26  ;;  %v12112_v6 = vld [vmem:[#allocation2] sm:$0xff]  ;;  %v1628_v27 = vshll.u32 %v1594_v21, 16 }
 0x1b4   : > { %v760_v54 = vmul.f32 %v750_v48, %v11816_v61  ;;  %v761_v55 = vmul.f32 %v750_v48, %v11819_v63  ;;  %v1605_v61 = vshrl.u32 %v12112_v6, 16  ;;  %v1608_v63 = vshll.u32 %v12112_v6, 16  ;;  %v10393_v31 = vld [vmem:[%s14767_s7 + $0x264] ss:$8 sps:$4 sm:$0xff]   ;;  %v10463_v21 = vld [vmem:[%s14767_s7 + $0x320] ss:$8 sps:$4 sm:$0xff]  }
 0x1b5   : > { %v737_v45 = vmax.f32 %v729_v2, 1e-16  ;;  %v738_v46 = vmax.f32 %v730_v40, 1e-16  ;;  %v10391_v2 = vld [vmem:[%s14767_s7 + $0x260] ss:$8 sps:$4 sm:$0xff]  }
 0x1b6   : > { %v683_v49 = vpop.xlane.xlu1 %682  ;;  %2288 = vmatpush1.bf16.msra.mxu1 %v10361_v35  ;;  %v634_v1 = vpop.xlane.xlu0 %633  ;;  %v1607_v20 = vrot.slane %v1605_v61, 4  ;;  %v10429_v61 = vld [vmem:[%s14767_s7 + $0x2c4] ss:$8 sps:$4 sm:$0xff]  }
 0x1b7   : > { %11296 = vrsqrt.f32 %v737_v45  ;;  %2289 = vmatprep.subr.bf16.mxu1 %v10369_v43  ;;  %v10399_v43 = vld [vmem:[%s14767_s7 + $0x274] ss:$8 sps:$4 sm:$0xff]  }
 0x1b8   : > { %11298 = vrsqrt.f32 %v738_v46 }
 0x1b9   : > { %v11293_v52 = vpop.eup %11292 }
 0x1ba   : > { %v751_v53 = vmul.f32 %v11293_v52, %v631_v30  ;;  %v723_v57 = vpop.xlane.xlu1 %722  ;;  %2290 = vmatpush1.bf16.msra.mxu1 %v10367_v50  ;;  %v11295_v60 = vpop.eup %11294  ;;  %v10405_v52 = vld [vmem:[%s14767_s7 + $0x284] ss:$8 sps:$4 sm:$0xff]  }
 0x1bb   : > { %v731_v56 = vmul.f32 %v723_v57, %v683_v49  ;;  %2291 = vmatprep.subr.bf16.mxu1 %v10375_v51  ;;  %v752_v15 = vmul.f32 %v11295_v60, %v634_v1  ;;  %v640_v3 = vpop.xlane.xlu0 %639  ;;  %v10397_v51 = vld [vmem:[%s14767_s7 + $0x270] ss:$8 sps:$4 sm:$0xff]   ;;  %v10423_v1 = vld [vmem:[%s14767_s7 + $0x2b4] ss:$8 sps:$4 sm:$0xff]  }
 0x1bc   : > { %v762_v8 = vmul.f32 %v751_v53, %v11833_v17  ;;  %v763_v10 = vmul.f32 %v751_v53, %v11836_v22  ;;  %v1610_v17 = vrot.slane %v1608_v63, 5  ;;  %v1593_v22 = vld [vmem:[#allocation2 + $0x8] sm:$0x11] }
 0x1bd   : > { %v739_v11 = vmax.f32 %v731_v56, 1e-16  ;;  %v764_v25 = vmul.f32 %v752_v15, %v11827_v9  ;;  %v765_v28 = vmul.f32 %v752_v15, %v11830_v13  ;;  %v1614_v26 = vshll.u32 %v1593_v22, 16  ;;  %v10411_v56 = vld [vmem:[%s14767_s7 + $0x294] ss:$8 sps:$4 sm:$0xff]  }
 0x1be   : > { %v775_v12 = vpack.c.bf16 %v763_v10, %v761_v55  ;;  %v774_v14 = vpack.c.bf16 %v762_v8, %v760_v54  ;;  %2292 = vmatpush1.bf16.msra.mxu1 %v10373_v59  ;;  %v637_v18 = vpop.xlane.xlu1 %636  ;;  %v1611_v33 = vor.u32 %v1610_v17, %v1607_v20  ;;  %v10403_v59 = vld [vmem:[%s14767_s7 + $0x280] ss:$8 sps:$4 sm:$0xff]   ;;  %v10435_v8 = vld [vmem:[%s14767_s7 + $0x2d4] ss:$8 sps:$4 sm:$0xff]   ;;  %v10433_v10 = vld [vmem:[%s14767_s7 + $0x2d0] ss:$8 sps:$4 sm:$0xff]  }
 0x1bf   : > { %11300 = vrsqrt.f32 %v739_v11  ;;  %2293 = vmatprep.subr.bf16.mxu1 %v10381_v5  ;;  %v1616_v46 = vrot.slane %v1614_v26, 5  ;;  %v10421_v5 = vld [vmem:[%s14767_s7 + $0x2b0] ss:$8 sps:$4 sm:$0xff]   ;;  %v10427_v63 = vld [vmem:[%s14767_s7 + $0x2c0] ss:$8 sps:$4 sm:$0xff]  }
 0x1c0   : > { %1026 = vmatprep.mubr.bf16.mxu1 %v775_v12  ;;  %v12140_v45 = vrot.slane %v1611_v33, 4  ;;  %v10441_v11 = vld [vmem:[%s14767_s7 + $0x2e4] ss:$8 sps:$4 sm:$0xff]   ;;  %v10439_v12 = vld [vmem:[%s14767_s7 + $0x2e0] ss:$8 sps:$4 sm:$0xff]  }
 0x1c1   : > { %v11297_v23 = vpop.eup %11296  ;;  %1027 = vmatmul.mubr.bf16.gmra.mrb[20].mxu1 %v774_v14  ;;  %v10447_v14 = vld [vmem:[%s14767_s7 + $0x2f4] ss:$8 sps:$4 sm:$0xff]   ;;  %v10445_v15 = vld [vmem:[%s14767_s7 + $0x2f0] ss:$8 sps:$4 sm:$0xff]   ;;  %v10465_v22 = vld [vmem:[%s14767_s7 + $0x324] ss:$8 sps:$4 sm:$0xff]  }
 0x1c2   : > { %v753_v24 = vmul.f32 %v11297_v23, %v637_v18  ;;  %2294 = vmatpush1.bf16.msra.mxu1 %v10379_v16  ;;  %v11299_v30 = vpop.eup %11298  ;;  %v643_v40 = vpop.xlane.xlu1 %642  ;;  %v1617_v53 = vsel %vm12001_vm2, %v12140_v45, %v1616_v46  ;;  %v10453_v16 = vld [vmem:[%s14767_s7 + $0x304] ss:$8 sps:$4 sm:$0xff]   ;;  %v10459_v20 = vld [vmem:[%s14767_s7 + $0x314] ss:$8 sps:$4 sm:$0xff]   ;;  %v10457_v17 = vld [vmem:[%s14767_s7 + $0x310] ss:$8 sps:$4 sm:$0xff]  }
 0x1c3   : > { %2295 = vmatprep.subr.bf16.mxu1 %v10387_v19  ;;  %v754_v36 = vmul.f32 %v11299_v30, %v640_v3  ;;  %v10451_v19 = vld [vmem:[%s14767_s7 + $0x300] ss:$8 sps:$4 sm:$0xff]   ;;  %v10471_v23 = vld [vmem:[%s14767_s7 + $0x334] ss:$8 sps:$4 sm:$0xff]  }
 0x1c4   : > { %v766_v34 = vmul.f32 %v753_v24, %v11848_v38  ;;  %v767_v9 = vmul.f32 %v753_v24, %v11851_v42  ;;  %v1630_v38 = vrot.slane %v1628_v27, 5  ;;  %v10469_v24 = vld [vmem:[%s14767_s7 + $0x330] ss:$8 sps:$4 sm:$0xff]   ;;  %v10483_v3 = vld [vmem:[%s14767_s7 + $0x354] ss:$8 sps:$4 sm:$0xff]   ;;  %v4272_v27 = vld [vmem:[#allocation2 + $0x40] sm:$0xff] }
 0x1c5   : > { %v768_v49 = vmul.f32 %v754_v36, %v11861_v0  ;;  %v769_v50 = vmul.f32 %v754_v36, %v11864_v7  ;;  %v1436_v30 = vld [vmem:[#allocation2 + $0x30] sm:$0xff]  ;;  %v4328_v36 = vshll.u32 %v4272_v27, 16  ;;  %v10502_v46 = vld [vmem:[%s14767_s7 + $0x980] ss:$8 sps:$4 sm:$0xff]  }
 0x1c6   : > { %v777_v13 = vpack.c.bf16 %v767_v9, %v765_v28  ;;  %v776_v35 = vpack.c.bf16 %v766_v34, %v764_v25  ;;  %2296 = vmatpush1.bf16.msra.mxu1 %v10385_v29  ;;  %v1631_v0 = vsel %vm12001_vm2, %v11996_v58, %v1630_v38  ;;  %v10415_v58 = vld [vmem:[%s14767_s7 + $0x2a0] ss:$8 sps:$4 sm:$0xff]   ;;  %v10477_v25 = vld [vmem:[%s14767_s7 + $0x344] ss:$8 sps:$4 sm:$0xff]   ;;  %v10498_v29 = vld [vmem:[%s14767_s7 + $0x974] ss:$8 sps:$4 sm:$0xff]  }
 0x1c7   : > { %2297 = vmatprep.subr.bf16.mxu1 %v10393_v31  ;;  %v8668_v60 = vcombine.high %v1617_v53, %v1631_v0  ;;  %v8667_v18 = vcombine.low %v1617_v53, %v1631_v0  ;;  %v10475_v28 = vld [vmem:[%s14767_s7 + $0x340] ss:$8 sps:$4 sm:$0xff]   ;;  %v10496_v31 = vld [vmem:[%s14767_s7 + $0x970] ss:$8 sps:$4 sm:$0xff]   ;;  %v1647_v33 = vshrl.u32 %v1436_v30, 16  ;;  %v1650_v26 = vshll.u32 %v1436_v30, 16  ;;  %5058 = vmatprep.subr.bf16.mxu0 %v10498_v29 }
 0x1c8   : > { %1036 = vmatprep.mubr.bf16.mxu1 %v777_v13  ;;  %v10481_v34 = vld [vmem:[%s14767_s7 + $0x350] ss:$8 sps:$4 sm:$0xff]   ;;  %5059 = vmatpush1.bf16.msra.mxu0 %v10496_v31  ;;  %v10487_v53 = vld [vmem:[%s14767_s7 + $0x360] ss:$8 sps:$4 sm:$0xff]  }
 0x1c9   : > { %v11301_v42 = vpop.eup %11300  ;;  %1037 = vmatmul.mubr.bf16.gmra.mrb[24].mxu1 %v776_v35  ;;  %v1649_v9 = vrot.slane %v1647_v33, 4  ;;  %v1652_v13 = vrot.slane %v1650_v26, 5  ;;  %v4325_v35 = vshrl.u32 %v4272_v27, 16  ;;  %v1596_v38 = vld [vmem:[#allocation2 + $0x38] sm:$0x11] }
 0x1ca   : > { %v755_v48 = vmul.f32 %v11301_v42, %v643_v40  ;;  %2298 = vmatpush1.bf16.msra.mxu1 %v10391_v2  ;;  %v10489_v2 = vld [vmem:[%s14767_s7 + $0x364] ss:$8 sps:$4 sm:$0xff]   ;;  %v4275_v31 = vld [vmem:[#allocation2 + $0x58] sm:$0x11]  ;;  %v10499_v26 = vld [vmem:[%s14767_s7 + $0x380] ss:$8 sps:$4 sm:$0xff]  }
 0x1cb   : > { %2299 = vmatprep.subr.bf16.mxu1 %v10399_v43  ;;  %v10504_v40 = vld [vmem:[%s14767_s7 + $0x984] ss:$8 sps:$4 sm:$0xff]  }
 0x1cc   : > { %v770_v7 = vmul.f32 %v755_v48, %v11883_v32  ;;  %v771_v54 = vmul.f32 %v755_v48, %v11889_v39  ;;  %v10409_v32 = vld [vmem:[%s14767_s7 + $0x290] ss:$8 sps:$4 sm:$0xff]   ;;  %v10417_v39 = vld [vmem:[%s14767_s7 + $0x2a4] ss:$8 sps:$4 sm:$0xff]   ;;  %v1653_v48 = vor.u32 %v1652_v13, %v1649_v9  ;;  %5060 = vmatprep.subr.bf16.mxu0 %v10504_v40  ;;  %v10522_v13 = vld [vmem:[%s14767_s7 + $0x9b4] ss:$8 sps:$4 sm:$0xff]  }
 0x1cd   : > { %v1595_v43 = vld [vmem:[#allocation2 + $0x28] sm:$0x11]  ;;  %5061 = vmatpush1.bf16.msra.mxu0 %v10502_v46  ;;  %v10520_v46 = vld [vmem:[%s14767_s7 + $0x9b0] ss:$8 sps:$4 sm:$0xff]  }
 0x1ce   : > { %v779_v55 = vpack.c.bf16 %v771_v54, %v769_v50  ;;  %v778_v57 = vpack.c.bf16 %v770_v7, %v768_v49  ;;  %2300 = vmatpush1.bf16.msra.mxu1 %v10397_v51  ;;  %v1642_v42 = vshll.u32 %v1595_v43, 16  ;;  %v4327_v49 = vrot.slane %v4325_v35, 4  ;;  %v4271_v51 = vld [vmem:[#allocation2 + $0x38] sm:$0x11]  ;;  %v4273_v54 = vld [vmem:[#allocation2 + $0x48] sm:$0x11] }
 0x1cf   : > { %2301 = vmatprep.subr.bf16.mxu1 %v10405_v52  ;;  %v1656_v50 = vshll.u32 %v1596_v38, 16  ;;  %v4330_v52 = vrot.slane %v4328_v36, 5  ;;  %v1654_v7 = vrot.slane %v1653_v48, 4  ;;  %v4277_v9 = vld [vmem:[#allocation2 + $0x68] sm:$0x11]  ;;  %v4348_v36 = vshll.u32 %v4275_v31, 16 }
 0x1d0   : > { %1046 = vmatprep.mubr.bf16.mxu1 %v779_v55  ;;  %v1644_v0 = vrot.slane %v1642_v42, 5  ;;  %v10510_v55 = vld [vmem:[%s14767_s7 + $0x994] ss:$8 sps:$4 sm:$0xff]   ;;  %v4362_v42 = vshll.u32 %v4277_v9, 16  ;;  %v10540_v9 = vld [vmem:[%s14767_s7 + $0x9e4] ss:$8 sps:$4 sm:$0xff]  }
 0x1d1   : > { %1047 = vmatmul.mubr.bf16.gmra.mrb[28].mxu1 %v778_v57  ;;  %v1658_v57 = vrot.slane %v1656_v50, 5  ;;  %5062 = vmatprep.subr.bf16.mxu0 %v10510_v55  ;;  %v10507_v43 = vld [vmem:[%s14767_s7 + $0x394] ss:$8 sps:$4 sm:$0xff]   ;;  %v4350_v50 = vrot.slane %v4348_v36, 5  ;;  %v10513_v55 = vld [vmem:[%s14767_s7 + $0x3a4] ss:$8 sps:$4 sm:$0xff]  }
 0x1d2   : > { %2302 = vmatpush1.bf16.msra.mxu1 %v10403_v59  ;;  %2317 = vmatprep.mubr.bf16.mxu1 %v8668_v60  ;;  %v4320_v59 = vshll.u32 %v4271_v51, 16  ;;  %v4331_v60 = vor.u32 %v4330_v52, %v4327_v49  ;;  %v1440_v48 = vld [vmem:[#allocation2 + $0x70] sm:$0xff] }
 0x1d3   : > { %2303 = vmatprep.subr.bf16.mxu1 %v10411_v56  ;;  %v4334_v56 = vshll.u32 %v4273_v54, 16  ;;  %v1703_v52 = vshrl.u32 %v1440_v48, 16  ;;  %v1706_v54 = vshll.u32 %v1440_v48, 16  ;;  %v10546_v48 = vld [vmem:[%s14767_s7 + $0x9f4] ss:$8 sps:$4 sm:$0xff]  }
 0x1d6   : > { %2304 = vmatpush1.bf16.msra.mxu1 %v10409_v32  ;;  %v1438_v32 = vld [vmem:[#allocation2 + $0x50] sm:$0xff] }
 0x1d7   : > { %2305 = vmatprep.subr.bf16.mxu1 %v10417_v39  ;;  %v10495_v39 = vld [vmem:[%s14767_s7 + $0x374] ss:$8 sps:$4 sm:$0xff]  }
 0x1da   : > { %2306 = vmatpush1.bf16.msra.mxu1 %v10415_v58  ;;  %v10508_v58 = vld [vmem:[%s14767_s7 + $0x990] ss:$8 sps:$4 sm:$0xff]  }
 0x1db   : > { %2307 = vmatprep.subr.bf16.mxu1 %v10423_v1  ;;  %v1645_v1 = vsel %vm12001_vm2, %v12008_v4, %v1644_v0  ;;  %5063 = vmatpush1.bf16.msra.mxu0 %v10508_v58  ;;  %v10511_v58 = vld [vmem:[%s14767_s7 + $0x3a0] ss:$8 sps:$4 sm:$0xff]  }
 0x1de   : > { %2308 = vmatpush1.bf16.msra.mxu1 %v10421_v5  ;;  %v1675_v5 = vshrl.u32 %v1438_v32, 16 }
 0x1df   : > { %2309 = vmatprep.subr.bf16.mxu1 %v10429_v61  ;;  %v1678_v61 = vshll.u32 %v1438_v32, 16  ;;  %v1599_v32 = vld [vmem:[#allocation2 + $0x68] sm:$0x11] }
 0x1e2   : > { %2310 = vmatpush1.bf16.msra.mxu1 %v10427_v63  ;;  %v1659_v63 = vsel %vm12001_vm2, %v1654_v7, %v1658_v57 }
 0x1e3   : > { %2311 = vmatprep.subr.bf16.mxu1 %v10435_v8  ;;  %v4322_v8 = vrot.slane %v4320_v59, 5  ;;  %v4364_v59 = vrot.slane %v4362_v42, 5  ;;  %v10531_v42 = vld [vmem:[%s14767_s7 + $0x3d4] ss:$8 sps:$4 sm:$0xff]  }
 0x1e5   : > { %v4323_v4 = vsel %vm12001_vm2, %v1654_v7, %v4322_v8  ;;  %v1708_v8 = vrot.slane %v1706_v54, 5  ;;  %v10543_v54 = vld [vmem:[%s14767_s7 + $0x3f4] ss:$8 sps:$4 sm:$0xff]  }
 0x1e6   : > { %2312 = vmatpush1.bf16.msra.mxu1 %v10433_v10  ;;  %v4332_v10 = vrot.slane %v4331_v60, 4  ;;  %v10528_v60 = vld [vmem:[%s14767_s7 + $0x9c4] ss:$8 sps:$4 sm:$0xff]  }
 0x1e7   : > { %2313 = vmatprep.subr.bf16.mxu1 %v10441_v11  ;;  %v4336_v11 = vrot.slane %v4334_v56, 5  ;;  %v10526_v56 = vld [vmem:[%s14767_s7 + $0x9c0] ss:$8 sps:$4 sm:$0xff]  }
 0x1ea   : > { %2314 = vmatpush1.bf16.msra.mxu1 %v10439_v12  ;;  %v10493_v12 = vld [vmem:[%s14767_s7 + $0x370] ss:$8 sps:$4 sm:$0xff]  }
 0x1eb   : > { %2315 = vmatprep.subr.bf16.mxu1 %v10447_v14  ;;  %v8670_v14 = vcombine.high %v1645_v1, %v1659_v63 }
 0x1ee   : > { %2316 = vmatpush1.bf16.msra.mxu1 %v10445_v15  ;;  %v8669_v15 = vcombine.low %v1645_v1, %v1659_v63  ;;  %v1698_v63 = vshll.u32 %v1599_v32, 16  ;;  %v5133_v32 = vld [vmem:[#allocation2 + $0x10] sm:$0xee] }
 0x1ef   : > { %2358 = vmatprep.subr.bf16.mxu1 %v10453_v16  ;;  %v1677_v16 = vrot.slane %v1675_v5, 4 }
 0x1f1   : > { %2318 = vmatmul.mubr.bf16.vlgmr.msra.gmra.mrb[32].mxu1 %v8667_v18  ;;  %v1680_v18 = vrot.slane %v1678_v61, 5  ;;  %v1600_v61 = vld [vmem:[#allocation2 + $0x78] sm:$0x11] }
 0x1f2   : > { %2359 = vmatpush1.bf16.msra.mxu1 %v10451_v19  ;;  %v4276_v19 = vld [vmem:[#allocation2 + $0x60] sm:$0xff]  ;;  %2327 = vmatprep.mubr.bf16.mxu1 %v8670_v14 }
 0x1f3   : > { %2360 = vmatprep.subr.bf16.mxu1 %v10459_v20  ;;  %v4337_v20 = vsel %vm12001_vm2, %v4332_v10, %v4336_v11  ;;  %v1681_v30 = vor.u32 %v1680_v18, %v1677_v16  ;;  %v4353_v33 = vshrl.u32 %v4276_v19, 16  ;;  %v4356_v40 = vshll.u32 %v4276_v19, 16  ;;  %v4279_v11 = vld [vmem:[#allocation2 + $0x78] sm:$0x11]  ;;  %v4281_v18 = vld [vmem:[#allocation2 + $0x88] sm:$0x11] }
 0x1f4   : > { %v1700_v16 = vrot.slane %v1698_v63, 5  ;;  %v4376_v19 = vshll.u32 %v4279_v11, 16 }
 0x1f5   : > { %v4358_v51 = vrot.slane %v4356_v40, 5  ;;  %v10538_v40 = vld [vmem:[%s14767_s7 + $0x9e0] ss:$8 sps:$4 sm:$0xff]  }
 0x1f6   : > { %2361 = vmatpush1.bf16.msra.mxu1 %v10457_v17  ;;  %v10516_v17 = vld [vmem:[%s14767_s7 + $0x9a4] ss:$8 sps:$4 sm:$0xff]   ;;  %v4378_v31 = vrot.slane %v4376_v19, 5 }
 0x1f7   : > { %2362 = vmatprep.subr.bf16.mxu1 %v10465_v22  ;;  %v1597_v22 = vld [vmem:[#allocation2 + $0x48] sm:$0x11]  ;;  %5064 = vmatprep.subr.bf16.mxu0 %v10516_v17 }
 0x1f8   : > { %v1670_v29 = vshll.u32 %v1597_v22, 16  ;;  %v10532_v22 = vld [vmem:[%s14767_s7 + $0x9d0] ss:$8 sps:$4 sm:$0xff]  }
 0x1f9   : > { %2328 = vmatmul.mubr.bf16.gmra.mrb[36].mxu1 %v8669_v15  ;;  %v10534_v15 = vld [vmem:[%s14767_s7 + $0x9d4] ss:$8 sps:$4 sm:$0xff]  }
 0x1fa   : > { %2363 = vmatpush1.bf16.msra.mxu1 %v10463_v21  ;;  %v1598_v21 = vld [vmem:[#allocation2 + $0x58] sm:$0x11]  ;;  %v1672_v27 = vrot.slane %v1670_v29, 5 }
 0x1fb   : > { %2364 = vmatprep.subr.bf16.mxu1 %v10471_v23  ;;  %v10501_v23 = vld [vmem:[%s14767_s7 + $0x384] ss:$8 sps:$4 sm:$0xff]  }
 0x1fc   : > { %v1673_v38 = vsel %vm12001_vm2, %v4332_v10, %v1672_v27  ;;  %v1712_v10 = vshll.u32 %v1600_v61, 16  ;;  %v10525_v27 = vld [vmem:[%s14767_s7 + $0x3c4] ss:$8 sps:$4 sm:$0xff]  }
 0x1fe   : > { %2365 = vmatpush1.bf16.msra.mxu1 %v10469_v24  ;;  %v9182_v24 = vcombine.high %v4323_v4, %v4337_v20 }
 0x1ff   : > { %2366 = vmatprep.subr.bf16.mxu1 %v10477_v25  ;;  %v10514_v25 = vld [vmem:[%s14767_s7 + $0x9a0] ss:$8 sps:$4 sm:$0xff]  }
 0x200   : > { %5013 = vmatprep.mubr.bf16.mxu0 %v9182_v24  ;;  %5065 = vmatpush1.bf16.msra.mxu0 %v10514_v25 }
 0x201   : > { %5066 = vmatprep.subr.bf16.mxu0 %v10522_v13 }
 0x202   : > { %2367 = vmatpush1.bf16.msra.mxu1 %v10475_v28  ;;  %v9181_v28 = vcombine.low %v4323_v4, %v4337_v20  ;;  %v10519_v4 = vld [vmem:[%s14767_s7 + $0x3b4] ss:$8 sps:$4 sm:$0xff]  }
 0x203   : > { %2368 = vmatprep.subr.bf16.mxu1 %v10483_v3  ;;  %v1684_v3 = vshll.u32 %v1598_v21, 16 }
 0x204   : > { %5014 = vmatmul.mubr.bf16.gmra.mrb[4].mxu0 %v9181_v28 }
 0x205   : > { %v1686_v35 = vrot.slane %v1684_v3, 5  ;;  %5067 = vmatpush1.bf16.msra.mxu0 %v10520_v46  ;;  %v10517_v3 = vld [vmem:[%s14767_s7 + $0x3b0] ss:$8 sps:$4 sm:$0xff]  }
 0x206   : > { %2369 = vmatpush1.bf16.msra.mxu1 %v10481_v34  ;;  %v1682_v34 = vrot.slane %v1681_v30, 4  ;;  %5068 = vmatprep.subr.bf16.mxu0 %v10528_v60  ;;  %v4390_v30 = vshll.u32 %v4281_v18, 16  ;;  %v5159_v60 = vrot.slane %v11981_v37, 5 }
 0x207   : > { %2370 = vmatprep.subr.bf16.mxu1 %v10489_v2  ;;  %v4355_v2 = vrot.slane %v4353_v33, 4 }
 0x208   : > { %v1687_v49 = vsel %vm12001_vm2, %v1682_v34, %v1686_v35  ;;  %v4351_v1 = vsel %vm12001_vm2, %v1682_v34, %v4350_v50 }
 0x209   : > { %v8672_v0 = vcombine.high %v1673_v38, %v1687_v49  ;;  %v8671_v7 = vcombine.low %v1673_v38, %v1687_v49  ;;  %v4359_v57 = vor.u32 %v4358_v51, %v4355_v2  ;;  %5069 = vmatpush1.bf16.msra.mxu0 %v10526_v56  ;;  %v4392_v2 = vrot.slane %v4390_v30, 5 }
 0x20a   : > { %2371 = vmatpush1.bf16.msra.mxu1 %v10487_v53  ;;  %v10505_v53 = vld [vmem:[%s14767_s7 + $0x390] ss:$8 sps:$4 sm:$0xff]   ;;  %5070 = vmatprep.subr.bf16.mxu0 %v10534_v15  ;;  %v5163_v56 = vrot.slane %v11983_v44, 5 }
 0x20b   : > { %2372 = vmatprep.subr.bf16.mxu1 %v10495_v39  ;;  %2337 = vmatprep.mubr.bf16.mxu1 %v8672_v0  ;;  %v1705_v39 = vrot.slane %v1703_v52, 4  ;;  %v4360_v5 = vrot.slane %v4359_v57, 4  ;;  %v10544_v52 = vld [vmem:[%s14767_s7 + $0x9f0] ss:$8 sps:$4 sm:$0xff]   ;;  %v10537_v0 = vld [vmem:[%s14767_s7 + $0x3e4] ss:$8 sps:$4 sm:$0xff]  }
 0x20c   : > { %2338 = vmatmul.mubr.bf16.gmra.mrb[40].mxu1 %v8671_v7  ;;  %v10535_v7 = vld [vmem:[%s14767_s7 + $0x3e0] ss:$8 sps:$4 sm:$0xff]   ;;  %v10541_v57 = vld [vmem:[%s14767_s7 + $0x3f0] ss:$8 sps:$4 sm:$0xff]  }
 0x20d   : > { %v4365_v14 = vsel %vm12001_vm2, %v4360_v5, %v4364_v59  ;;  %v1709_v21 = vor.u32 %v1708_v8, %v1705_v39  ;;  %5071 = vmatpush1.bf16.msra.mxu0 %v10532_v22  ;;  %v1701_v28 = vsel %vm12001_vm2, %v4360_v5, %v1700_v16  ;;  %v10549_v59 = vld [vmem:[%s14767_s7 + $0x4] ss:$8 sps:$4 sm:$0xff]   ;;  %v814_v8 = vlaneseq }
 0x20e   : > { %2373 = vmatpush1.bf16.msra.mxu1 %v10493_v12  ;;  %v4280_v12 = vld [vmem:[#allocation2 + $0x80] sm:$0xff]  ;;  %v9184_v20 = vcombine.high %v4351_v1, %v4365_v14  ;;  %v9183_v17 = vcombine.low %v4351_v1, %v4365_v14  ;;  %5072 = vmatprep.subr.bf16.mxu0 %v10540_v9  ;;  %v1388_v9 = vld [vmem:[#allocation3 + $0x18] sm:$0x11] }
 0x20f   : > { %2374 = vmatprep.subr.bf16.mxu1 %v10501_v23  ;;  %v1714_v23 = vrot.slane %v1712_v10, 5  ;;  %v4381_v24 = vshrl.u32 %v4280_v12, 16  ;;  %v4384_v25 = vshll.u32 %v4280_v12, 16  ;;  %v1710_v29 = vrot.slane %v1709_v21, 4  ;;  %v5134_v39 = vld [vmem:[#allocation2 + $0x20] sm:$0xee] }
 0x210   : > { %5023 = vmatprep.mubr.bf16.mxu0 %v9184_v20  ;;  %v9324_v1 = vrot.slane %v5134_v39, 9  ;;  %v815_v10 = vshrl.u32 %v814_v8, 7  ;;  %v812_v12 = vld [vmem:[%s14766_s6] sm:$0x3]  ;;  %v11245_v5 = vld [vmem:[%s14767_s7 + $0x1164] ss:$8 sps:$4 sm:$0xff]  }
 0x211   : > { %5024 = vmatmul.mubr.bf16.gmra.mrb[8].mxu0 %v9183_v17  ;;  %v4383_v33 = vrot.slane %v4381_v24, 4  ;;  %v1715_v34 = vsel %vm12001_vm2, %v1710_v29, %v1714_v23  ;;  %v4379_v46 = vsel %vm12001_vm2, %v1710_v29, %v4378_v31  ;;  %v12439_v39 = vld [vmem:[#allocation3] sm:$0xee] }
 0x212   : > { %2375 = vmatpush1.bf16.msra.mxu1 %v10499_v26  ;;  %v4386_v26 = vrot.slane %v4384_v25, 5  ;;  %v8674_v13 = vcombine.high %v1701_v28, %v1715_v34  ;;  %v8673_v35 = vcombine.low %v1701_v28, %v1715_v34  ;;  %5073 = vmatpush1.bf16.msra.mxu0 %v10538_v40  ;;  %v12396_v63 = vsel %vm12386_vm5, %v9324_v1, %v5163_v56 }
 0x213   : > { %2376 = vmatprep.subr.bf16.mxu1 %v10507_v43  ;;  %v10523_v43 = vld [vmem:[%s14767_s7 + $0x3c0] ss:$8 sps:$4 sm:$0xff]   ;;  %5074 = vmatprep.subr.bf16.mxu0 %v10546_v48  ;;  %v12402_v11 = vsub.s32 0, %v815_v10  ;;  %v12407_v14 = vsub.s32 1, %v815_v10 }
 0x214   : > { %v4387_v36 = vor.u32 %v4386_v26, %v4383_v33  ;;  %2347 = vmatprep.mubr.bf16.mxu1 %v8674_v13  ;;  %v12419_v33 = vld [vmem:[#allocation3 + $0x8] sm:$0x11] }
 0x215   : > { %2348 = vmatmul.mubr.bf16.gmra.mrb[44].mxu1 %v8673_v35  ;;  %v12410_v15 = vrot.slane %v812_v12, %v12402_v11  ;;  %v12413_v16 = vrot.slane %v812_v12, %v12407_v14  ;;  %v1734_v13 = vshll.u32 %v12419_v33, 16 }
 0x216   : > { %2377 = vmatpush1.bf16.msra.mxu1 %v10505_v53  ;;  %v4388_v38 = vrot.slane %v4387_v36, 4  ;;  %v10529_v53 = vld [vmem:[%s14767_s7 + $0x3d0] ss:$8 sps:$4 sm:$0xff]   ;;  %5075 = vmatpush1.bf16.msra.mxu0 %v10544_v52 }
 0x217   : > { %2378 = vmatprep.subr.bf16.mxu1 %v10513_v55  ;;  %v10552_v55 = vld [vmem:[%s14767_s7 + $0xa04] ss:$8 sps:$4 sm:$0xff]  }
 0x218   : > { %v4393_v49 = vsel %vm12001_vm2, %v4388_v38, %v4392_v2  ;;  %5694 = vmatprep.subr.bf16.mxu0 %v10552_v55 }
 0x219   : > { %v9186_v50 = vcombine.high %v4379_v46, %v4393_v49  ;;  %v9185_v51 = vcombine.low %v4379_v46, %v4393_v49 }
 0x21a   : > { %2379 = vmatpush1.bf16.msra.mxu1 %v10511_v58  ;;  %v9323_v58 = vrot.slane %v5133_v32, 9 }
 0x21b   : > { %2380 = vmatprep.subr.bf16.mxu1 %v10519_v4  ;;  %5033 = vmatprep.mubr.bf16.mxu0 %v9186_v50 }
 0x21c   : > { %5034 = vmatmul.mubr.bf16.gmra.mrb[12].mxu0 %v9185_v51  ;;  %v12392_v61 = vsel %vm12386_vm5, %v9323_v58, %v5159_v60 }
 0x21e   : > { %2381 = vmatpush1.bf16.msra.mxu1 %v10517_v3 }
 0x21f   : > { %2382 = vmatprep.subr.bf16.mxu1 %v10525_v27 }
 0x222   : > { %2383 = vmatpush1.bf16.msra.mxu1 %v10523_v43  ;;  %v1394_v43 = vld [vmem:[#allocation3 + $0x28] sm:$0x11] }
 0x223   : > { %2384 = vmatprep.subr.bf16.mxu1 %v10531_v42 }
 0x226   : > { %2385 = vmatpush1.bf16.msra.mxu1 %v10529_v53 }
 0x227   : > { %2386 = vmatprep.subr.bf16.mxu1 %v10537_v0  ;;  %v1736_v0 = vrot.slane %v1734_v13, 5 }
 0x22a   : > { %2387 = vmatpush1.bf16.msra.mxu1 %v10535_v7 }
 0x22b   : > { %2388 = vmatprep.subr.bf16.mxu1 %v10543_v54 }
 0x22e   : > { %2389 = vmatpush1.bf16.msra.mxu1 %v10541_v57 }
 0x22f   : > { %2751 = vmatprep.subr.bf16.mxu1 %v10549_v59 }
 0x284   : > { %v1018_v18 = vpop.f32.mrb[16].mxu1 }
 0x285   : > { %v1019_v19 = vadd.f32 %v1018_v18, %v12410_v15  ;;  %v1020_v4 = vpop.f32.mrb[17].mxu1 }
 0x286   : > { %v1021_v20 = vadd.f32 %v1020_v4, %v12413_v16  ;;  %v1022_v17 = vpop.f32.mrb[18].mxu1  ;;  %v12446_v4 = vsel %vm12001_vm2, %v12140_v45, %v1736_v0 }
 0x287   : > { %v1057_v22 = vmax.f32 %v1019_v19, 0.0  ;;  %v1023_v21 = vadd.f32 %v1022_v17, %v12410_v15  ;;  %v1024_v23 = vpop.f32.mrb[19].mxu1 }
 0x288   : > { %v1058_v24 = vmax.f32 %v1021_v20, 0.0  ;;  %v1025_v25 = vadd.f32 %v1024_v23, %v12413_v16  ;;  %v8883_v23 = vrot.slane %v12439_v39, 9 }
 0x289   : > { %v1059_v28 = vmax.f32 %v1023_v21, 0.0 }
 0x28a   : > { %v9976_v29 = vpack.c.bf16 %v1058_v24, %v1057_v22  ;;  %v1060_v30 = vmax.f32 %v1025_v25, 0.0  ;;  %v12448_v22 = vld [vmem:[#allocation2 + $0x10] sm:$0xff]  ;;  %v2982_v24 = vrot.slane %v12419_v33, 5 }
 0x28b   : > { %v8652_v21 = vcombine.high %v12112_v6, %v12448_v22 }
 0x28c   : > { %v1305_v3 = vshrl.u32 %v9976_v29, 16  ;;  %v9977_v31 = vpack.c.bf16 %v1060_v30, %v1059_v28  ;;  %v1308_v27 = vshll.u32 %v9976_v29, 16 }
 0x28e   : > { %v1307_v26 = vrot.slane %v1305_v3, 7  ;;  %v1313_v34 = vshrl.u32 %v9977_v31, 16  ;;  %v1316_v40 = vshll.u32 %v9977_v31, 16 }
 0x290   : > { %v1310_v35 = vor.u32 %v1308_v27, %v1307_v26  ;;  %v1311_v36 = vrot.slane %v1307_v26, 4  ;;  %v1315_v2 = vrot.slane %v1313_v34, 7 }
 0x292   : > { %v1386_v46 = vsel %vm11663_vm13, %v1310_v35, %v12112_v6  ;;  %v1389_v38 = vsel %vm11671_vm14, %v1311_v36, %v1388_v9  ;;  %v1318_v42 = vor.u32 %v1316_v40, %v1315_v2  ;;  %v1319_v48 = vrot.slane %v1315_v2, 4 }
 0x293   : > { %1387 = vst [vmem:[#allocation3 + $0x10] sm:$0xff] %v1386_v46  ;;  %1390 = vst [vmem:[#allocation3 + $0x18] sm:$0x11] %v1389_v38  ;;  %v1739_v49 = vshrl.u32 %v1386_v46, 16  ;;  %v1742_v50 = vshll.u32 %v1386_v46, 16 }
 0x294   : > { %v12430_v51 = vsel %vm11663_vm13, %v1318_v42, %v12112_v6  ;;  %v1395_v52 = vsel %vm11671_vm14, %v1319_v48, %v1394_v43  ;;  %v1028_v53 = vpop.f32.mrb[20].mxu1 }
 0x295   : > { %1393 = vst [vmem:[#allocation3 + $0x20] sm:$0xff] %v12430_v51  ;;  %1396 = vst [vmem:[#allocation3 + $0x28] sm:$0x11] %v1395_v52  ;;  %v1029_v7 = vadd.f32 %v1028_v53, %v12410_v15  ;;  %v1030_v54 = vpop.f32.mrb[21].mxu1  ;;  %v1741_v55 = vrot.slane %v1739_v49, 4  ;;  %v1744_v57 = vrot.slane %v1742_v50, 5 }
 0x296   : > { %v4425_v59 = vshrl.u32 %v12430_v51, 16  ;;  %v1031_v60 = vadd.f32 %v1030_v54, %v12413_v16  ;;  %v1032_v56 = vpop.f32.mrb[22].mxu1  ;;  %v4428_v32 = vshll.u32 %v12430_v51, 16 }
 0x297   : > { %v1061_v58 = vmax.f32 %v1029_v7, 0.0  ;;  %v1033_v1 = vadd.f32 %v1032_v56, %v12410_v15  ;;  %v1034_v8 = vpop.f32.mrb[23].mxu1  ;;  %v1745_v10 = vor.u32 %v1744_v57, %v1741_v55  ;;  %v1400_v7 = vld [vmem:[#allocation3 + $0x38] sm:$0x11] }
 0x298   : > { %v4427_v12 = vrot.slane %v4425_v59, 4  ;;  %v1062_v18 = vmax.f32 %v1031_v60, 0.0  ;;  %v1035_v19 = vadd.f32 %v1034_v8, %v12413_v16  ;;  %v4430_v20 = vrot.slane %v4428_v32, 5 }
 0x299   : > { %v1063_v17 = vmax.f32 %v1033_v1, 0.0  ;;  %v1746_v30 = vrot.slane %v1745_v10, 4  ;;  %v1406_v10 = vld [vmem:[#allocation3 + $0x48] sm:$0x11] }
 0x29a   : > { %v9978_v25 = vpack.c.bf16 %v1062_v18, %v1061_v58  ;;  %v1064_v28 = vmax.f32 %v1035_v19, 0.0  ;;  %v12454_v29 = vld [vmem:[#allocation3 + $0x18] sm:$0x11]  ;;  %v4431_v45 = vor.u32 %v4430_v20, %v4427_v12 }
 0x29b   : > { %v12456_v3 = vld [vmem:[#allocation3 + $0x18] sm:$0x11]  ;;  %v1748_v31 = vshll.u32 %v12454_v29, 16 }
 0x29c   : > { %v4420_v26 = vshll.u32 %v12456_v3, 16  ;;  %v5215_v27 = vrot.slane %v12456_v3, 5  ;;  %v1321_v9 = vshrl.u32 %v9978_v25, 16  ;;  %v1324_v13 = vshll.u32 %v9978_v25, 16  ;;  %v1038_v36 = vpop.f32.mrb[24].mxu1 }
 0x29d   : > { %v9979_v35 = vpack.c.bf16 %v1064_v28, %v1063_v17  ;;  %v12462_v2 = vld [vmem:[#allocation3 + $0x28] sm:$0x11]  ;;  %v12464_v40 = vrot.slane %v4431_v45, 4  ;;  %v1039_v43 = vadd.f32 %v1038_v36, %v12410_v15  ;;  %v1040_v46 = vpop.f32.mrb[25].mxu1  ;;  %v1750_v38 = vrot.slane %v1748_v31, 5 }
 0x29e   : > { %v4422_v42 = vrot.slane %v4420_v26, 5  ;;  %v4434_v48 = vshll.u32 %v12462_v2, 16  ;;  %v1323_v49 = vrot.slane %v1321_v9, 7  ;;  %v1041_v53 = vadd.f32 %v1040_v46, %v12413_v16  ;;  %v1042_v0 = vpop.f32.mrb[26].mxu1  ;;  %v12476_v8 = vld [vmem:[#allocation3 + $0x28] sm:$0x11] }
 0x29f   : > { %v1329_v50 = vshrl.u32 %v9979_v35, 16  ;;  %v1332_v52 = vshll.u32 %v9979_v35, 16  ;;  %v1065_v54 = vmax.f32 %v1039_v43, 0.0  ;;  %v1043_v55 = vadd.f32 %v1042_v0, %v12410_v15  ;;  %v1044_v57 = vpop.f32.mrb[27].mxu1  ;;  %v10547_v17 = vld [vmem:[%s14767_s7] ss:$8 sps:$4 sm:$0xff]  }
 0x2a0   : > { %v1751_v59 = vsel %vm12001_vm2, %v1746_v30, %v1750_v38  ;;  %v12474_v60 = vsel %vm12001_vm2, %v1746_v30, %v4422_v42  ;;  %v1326_v56 = vor.u32 %v1324_v13, %v1323_v49  ;;  %v1327_v32 = vrot.slane %v1323_v49, 4  ;;  %v10555_v31 = vld [vmem:[%s14767_s7 + $0x14] ss:$8 sps:$4 sm:$0xff]  }
 0x2a1   : > { %v1331_v58 = vrot.slane %v1329_v50, 7  ;;  %v1066_v1 = vmax.f32 %v1041_v53, 0.0  ;;  %v1067_v12 = vmax.f32 %v1043_v55, 0.0  ;;  %v1045_v18 = vadd.f32 %v1044_v57, %v12413_v16  ;;  %v10553_v53 = vld [vmem:[%s14767_s7 + $0x10] ss:$8 sps:$4 sm:$0xff]  }
 0x2a2   : > { %v8675_v19 = vcombine.low %v12446_v4, %v1751_v59  ;;  %v8676_v20 = vcombine.high %v12446_v4, %v1751_v59  ;;  %v12487_v25 = vsel %vm11663_vm13, %v1326_v56, %v12112_v6  ;;  %v1401_v28 = vsel %vm11671_vm14, %v1327_v32, %v1400_v7  ;;  %v1412_v0 = vld [vmem:[#allocation3 + $0x58] sm:$0x11]  ;;  %v10561_v57 = vld [vmem:[%s14767_s7 + $0x24] ss:$8 sps:$4 sm:$0xff]  }
 0x2a3   : > { %v1334_v30 = vor.u32 %v1332_v52, %v1331_v58  ;;  %v1335_v45 = vrot.slane %v1331_v58, 4  ;;  %1399 = vst [vmem:[#allocation3 + $0x30] sm:$0xff] %v12487_v25  ;;  %1402 = vst [vmem:[#allocation3 + $0x38] sm:$0x11] %v1401_v28  ;;  %v9980_v4 = vpack.c.bf16 %v1066_v1, %v1065_v54  ;;  %v1068_v26 = vmax.f32 %v1045_v18, 0.0 }
 0x2a4   : > { %2390 = vmatprep.mubr.bf16.mxu1 %v8676_v20  ;;  %v4436_v9 = vrot.slane %v4434_v48, 5  ;;  %v1762_v13 = vshll.u32 %v12476_v8, 16  ;;  %v1048_v43 = vpop.f32.mrb[28].mxu1  ;;  %v1767_v46 = vshrl.u32 %v12487_v25, 16  ;;  %v1770_v38 = vshll.u32 %v12487_v25, 16 }
 0x2a5   : > { %v12499_v35 = vsel %vm11663_vm13, %v1334_v30, %v12112_v6  ;;  %v1407_v36 = vsel %vm11671_vm14, %v1335_v45, %v1406_v10  ;;  %2391 = vmatmul.mubr.bf16.vlgmr.msra.gmra.mrb[32].mxu1 %v8675_v19  ;;  %v1337_v42 = vshrl.u32 %v9980_v4, 16  ;;  %v1340_v48 = vshll.u32 %v9980_v4, 16  ;;  %v1050_v52 = vpop.f32.mrb[29].mxu1  ;;  %v10550_v18 = vld [vmem:[%s14767_s7 + $0xa00] ss:$8 sps:$4 sm:$0xff]  }
 0x2a6   : > { %1405 = vst [vmem:[#allocation3 + $0x40] sm:$0xff] %v12499_v35  ;;  %1408 = vst [vmem:[#allocation3 + $0x48] sm:$0x11] %v1407_v36  ;;  %v9981_v49 = vpack.c.bf16 %v1068_v26, %v1067_v12  ;;  %v1049_v50 = vadd.f32 %v1048_v43, %v12410_v15  ;;  %2752 = vmatpush1.bf16.msra.mxu1 %v10547_v17  ;;  %v1051_v7 = vadd.f32 %v1050_v52, %v12413_v16  ;;  %v1052_v54 = vpop.f32.mrb[30].mxu1  ;;  %v1418_v19 = vld [vmem:[#allocation3 + $0x68] sm:$0x11] }
 0x2a7   : > { %v4437_v55 = vsel %vm12001_vm2, %v12464_v40, %v4436_v9  ;;  %2753 = vmatprep.subr.bf16.mxu1 %v10555_v31  ;;  %v1764_v59 = vrot.slane %v1762_v13, 5  ;;  %v12517_v56 = vrot.slane %v1767_v46, 4  ;;  %v1339_v32 = vrot.slane %v1337_v42, 7  ;;  %v1054_v12 = vpop.f32.mrb[31].mxu1  ;;  %v10558_v45 = vld [vmem:[%s14767_s7 + $0xa14] ss:$8 sps:$4 sm:$0xff]  }
 0x2a8   : > { %v1345_v58 = vshrl.u32 %v9981_v49, 16  ;;  %v1348_v1 = vshll.u32 %v9981_v49, 16  ;;  %v1069_v10 = vmax.f32 %v1049_v50, 0.0  ;;  %v1070_v20 = vmax.f32 %v1051_v7, 0.0  ;;  %v10559_v13 = vld [vmem:[%s14767_s7 + $0x20] ss:$8 sps:$4 sm:$0xff]  }
 0x2a9   : > { %v1053_v17 = vadd.f32 %v1052_v54, %v12410_v15  ;;  %v1055_v28 = vadd.f32 %v1054_v12, %v12413_v16  ;;  %v9187_v30 = vcombine.low %v12474_v60, %v4437_v55  ;;  %v1342_v31 = vor.u32 %v1340_v48, %v1339_v32  ;;  %v10567_v15 = vld [vmem:[%s14767_s7 + $0x34] ss:$8 sps:$4 sm:$0xff]   ;;  %v10573_v12 = vld [vmem:[%s14767_s7 + $0x44] ss:$8 sps:$4 sm:$0xff]  }
 0x2aa   : > { %v1343_v4 = vrot.slane %v1339_v32, 4  ;;  %v1347_v26 = vrot.slane %v1345_v58, 7  ;;  %v9188_v9 = vcombine.high %v12474_v60, %v4437_v55  ;;  %2754 = vmatpush1.bf16.msra.mxu1 %v10553_v53  ;;  %v9982_v16 = vpack.c.bf16 %v1070_v20, %v1069_v10  ;;  %v12535_v46 = vld [vmem:[#allocation3 + $0x38] sm:$0x11]  ;;  %v10564_v55 = vld [vmem:[%s14767_s7 + $0xa24] ss:$8 sps:$4 sm:$0xff]  }
 0x2ab   : > { %v1071_v36 = vmax.f32 %v1053_v17, 0.0  ;;  %v1072_v43 = vmax.f32 %v1055_v28, 0.0  ;;  %2755 = vmatprep.subr.bf16.mxu1 %v10561_v57  ;;  %v12540_v42 = vsel %vm12001_vm2, %v12464_v40, %v1764_v59  ;;  %v12542_v60 = vld [vmem:[#allocation3 + $0x38] sm:$0x11]  ;;  %v12547_v48 = vsel %vm11663_vm13, %v1342_v31, %v12112_v6  ;;  %v12561_v59 = vld [vmem:[#allocation2] sm:$0xff] }
 0x2ac   : > { %v1413_v49 = vsel %vm11671_vm14, %v1343_v4, %v1412_v0  ;;  %v1350_v50 = vor.u32 %v1348_v1, %v1347_v26  ;;  %v1351_v52 = vrot.slane %v1347_v26, 4  ;;  %5076 = vmatprep.mubr.bf16.mxu0 %v9188_v9  ;;  %v10556_v53 = vld [vmem:[%s14767_s7 + $0xa10] ss:$8 sps:$4 sm:$0xff]   ;;  %1411 = vst [vmem:[#allocation3 + $0x50] sm:$0xff] %v12547_v48  ;;  %v1353_v40 = vshrl.u32 %v9982_v16, 16 }
 0x2ad   : > { %1414 = vst [vmem:[#allocation3 + $0x58] sm:$0x11] %v1413_v49  ;;  %v1356_v7 = vshll.u32 %v9982_v16, 16  ;;  %v9983_v54 = vpack.c.bf16 %v1072_v43, %v1071_v36  ;;  %5077 = vmatmul.mubr.bf16.vlgmr.msra.gmra.mrb[0].mxu0 %v9187_v30  ;;  %v10565_v0 = vld [vmem:[%s14767_s7 + $0x30] ss:$8 sps:$4 sm:$0xff]   ;;  %v1772_v57 = vrot.slane %v1770_v38, 5  ;;  %v14794_v6 = vcombine.high %v12392_v61, %v12396_v63 }
 0x2ae   : > { %v12566_v32 = vsel %vm11663_vm13, %v1350_v50, %v12561_v59  ;;  %v1419_v58 = vsel %vm11671_vm14, %v1351_v52, %v1418_v19  ;;  %v1424_v1 = vld [vmem:[#allocation3 + $0x78] sm:$0x11]  ;;  %5695 = vmatpush1.bf16.msra.mxu0 %v10550_v18  ;;  %2756 = vmatpush1.bf16.msra.mxu1 %v10559_v13  ;;  %v1776_v10 = vshll.u32 %v12535_v46, 16  ;;  %v12574_v38 = vld [vmem:[#allocation3 + $0x48] sm:$0x11]  ;;  %v4448_v20 = vshll.u32 %v12542_v60, 16 }
 0x2af   : > { %1417 = vst [vmem:[#allocation3 + $0x60] sm:$0xff] %v12566_v32  ;;  %1420 = vst [vmem:[#allocation3 + $0x68] sm:$0x11] %v1419_v58  ;;  %v1355_v17 = vrot.slane %v1353_v40, 7  ;;  %v1361_v28 = vshrl.u32 %v9983_v54, 16  ;;  %v1364_v30 = vshll.u32 %v9983_v54, 16  ;;  %5696 = vmatprep.subr.bf16.mxu0 %v10558_v45  ;;  %2757 = vmatprep.subr.bf16.mxu1 %v10567_v15  ;;  %v1773_v18 = vor.u32 %v1772_v57, %v12517_v56 }
 0x2b0   : > { %v12579_v19 = vld [vmem:[#allocation3 + $0x48] sm:$0x11]  ;;  %v1778_v4 = vrot.slane %v1776_v10, 5  ;;  %v4450_v26 = vrot.slane %v4448_v20, 5  ;;  %v4453_v9 = vshrl.u32 %v12499_v35, 16  ;;  %v4456_v13 = vshll.u32 %v12499_v35, 16 }
 0x2b1   : > { %v10562_v31 = vld [vmem:[%s14767_s7 + $0xa20] ss:$8 sps:$4 sm:$0xff]   ;;  %v1358_v16 = vor.u32 %v1356_v7, %v1355_v17  ;;  %v1359_v36 = vrot.slane %v1355_v17, 4  ;;  %v1363_v43 = vrot.slane %v1361_v28, 7  ;;  %v1774_v45 = vrot.slane %v1773_v18, 4 }
 0x2b2   : > { %v1430_v49 = vld [vmem:[#allocation3 + $0x88] sm:$0x11]  ;;  %5697 = vmatpush1.bf16.msra.mxu0 %v10556_v53  ;;  %2758 = vmatpush1.bf16.msra.mxu1 %v10565_v0  ;;  %v4455_v15 = vrot.slane %v4453_v9, 4  ;;  %v4458_v50 = vrot.slane %v4456_v13, 5  ;;  %v4462_v52 = vshll.u32 %v12574_v38, 16  ;;  %v1790_v40 = vshll.u32 %v12579_v19, 16 }
 0x2b3   : > { %v10571_v56 = vld [vmem:[%s14767_s7 + $0x40] ss:$8 sps:$4 sm:$0xff]   ;;  %v12594_v7 = vsel %vm11663_vm13, %v1358_v16, %v12561_v59  ;;  %v1425_v54 = vsel %vm11671_vm14, %v1359_v36, %v1424_v1  ;;  %v1366_v53 = vor.u32 %v1364_v30, %v1363_v43  ;;  %v1367_v0 = vrot.slane %v1363_v43, 4  ;;  %5698 = vmatprep.subr.bf16.mxu0 %v10564_v55  ;;  %v10570_v57 = vld [vmem:[%s14767_s7 + $0xa34] ss:$8 sps:$4 sm:$0xff]   ;;  %2759 = vmatprep.subr.bf16.mxu1 %v10573_v12 }
 0x2b4   : > { %v10579_v58 = vld [vmem:[%s14767_s7 + $0x54] ss:$8 sps:$4 sm:$0xff]   ;;  %1423 = vst [vmem:[#allocation3 + $0x70] sm:$0xff] %v12594_v7  ;;  %1426 = vst [vmem:[#allocation3 + $0x78] sm:$0x11] %v1425_v54  ;;  %v1779_v10 = vsel %vm12001_vm2, %v1774_v45, %v1778_v4  ;;  %v4451_v1 = vsel %vm12001_vm2, %v1774_v45, %v4450_v26  ;;  %v4459_v20 = vor.u32 %v4458_v50, %v4455_v15  ;;  %v4464_v55 = vrot.slane %v4462_v52, 5 }
 0x2b5   : > { %v12609_v17 = vld [vmem:[#allocation3 + $0x58] sm:$0x11]  ;;  %v12616_v12 = vsel %vm11663_vm13, %v1366_v53, %v12561_v59  ;;  %v1431_v30 = vsel %vm11671_vm14, %v1367_v0, %v1430_v49  ;;  %v8678_v4 = vcombine.high %v12540_v42, %v1779_v10  ;;  %v8677_v26 = vcombine.low %v12540_v42, %v1779_v10  ;;  %v10576_v9 = vld [vmem:[%s14767_s7 + $0xa44] ss:$8 sps:$4 sm:$0xff]   ;;  %v10574_v15 = vld [vmem:[%s14767_s7 + $0xa40] ss:$8 sps:$4 sm:$0xff]  }
 0x2b6   : > { %v12611_v28 = vld [vmem:[#allocation3 + $0x58] sm:$0x11]  ;;  %1429 = vst [vmem:[#allocation3 + $0x80] sm:$0xff] %v12616_v12  ;;  %1432 = vst [vmem:[#allocation3 + $0x88] sm:$0x11] %v1431_v30  ;;  %5699 = vmatpush1.bf16.msra.mxu0 %v10562_v31  ;;  %2760 = vmatpush1.bf16.msra.mxu1 %v10571_v56  ;;  %v4460_v41 = vrot.slane %v4459_v20, 4 }
 0x2b7   : > { %v10568_v18 = vld [vmem:[%s14767_s7 + $0xa30] ss:$8 sps:$4 sm:$0xff]   ;;  %v1792_v13 = vrot.slane %v1790_v40, 5  ;;  %v1795_v16 = vshrl.u32 %v12547_v48, 16  ;;  %v1798_v36 = vshll.u32 %v12547_v48, 16  ;;  %5700 = vmatprep.subr.bf16.mxu0 %v10570_v57  ;;  %2400 = vmatprep.mubr.bf16.mxu1 %v8678_v4  ;;  %v1804_v42 = vshll.u32 %v12609_v17, 16 }
 0x2b8   : > { %v12635_v43 = vld [vmem:[#allocation3 + $0x68] sm:$0x11]  ;;  %v4476_v49 = vshll.u32 %v12611_v28, 16  ;;  %v4481_v31 = vshrl.u32 %v12566_v32, 16  ;;  %v4484_v45 = vshll.u32 %v12566_v32, 16  ;;  %2401 = vmatmul.mubr.bf16.gmra.mrb[36].mxu1 %v8677_v26  ;;  %v4465_v56 = vsel %vm12001_vm2, %v4460_v41, %v4464_v55  ;;  %2761 = vmatprep.subr.bf16.mxu1 %v10579_v58 }
 0x2b9   : > { %v12647_v50 = vsel %vm12001_vm2, %v4460_v41, %v1792_v13  ;;  %v1797_v52 = vrot.slane %v1795_v16, 4  ;;  %v1800_v40 = vrot.slane %v1798_v36, 5  ;;  %v10585_v54 = vld [vmem:[%s14767_s7 + $0x64] ss:$8 sps:$4 sm:$0xff]   ;;  %v9190_v0 = vcombine.high %v4451_v1, %v4465_v56  ;;  %v10582_v10 = vld [vmem:[%s14767_s7 + $0xa54] ss:$8 sps:$4 sm:$0xff]  }
 0x2ba   : > { %v12652_v53 = vld [vmem:[#allocation3 + $0x68] sm:$0x11]  ;;  %v9189_v57 = vcombine.low %v4451_v1, %v4465_v56  ;;  %v1806_v20 = vrot.slane %v1804_v42, 5  ;;  %v4478_v55 = vrot.slane %v4476_v49, 5  ;;  %5701 = vmatpush1.bf16.msra.mxu0 %v10568_v18  ;;  %2762 = vmatpush1.bf16.msra.mxu1 %v10577_v47  ;;  %v4483_v4 = vrot.slane %v4481_v31, 4 }
 0x2bb   : > { %v10583_v58 = vld [vmem:[%s14767_s7 + $0x60] ss:$8 sps:$4 sm:$0xff]   ;;  %v1801_v30 = vor.u32 %v1800_v40, %v1797_v52  ;;  %v4486_v26 = vrot.slane %v4484_v45, 5  ;;  %v4490_v41 = vshll.u32 %v12635_v43, 16  ;;  %v10591_v1 = vld [vmem:[%s14767_s7 + $0x74] ss:$8 sps:$4 sm:$0xff]   ;;  %5086 = vmatprep.mubr.bf16.mxu0 %v9190_v0  ;;  %5702 = vmatprep.subr.bf16.mxu0 %v10576_v9 }
 0x2bc   : > { %v12664_v13 = vld [vmem:[#allocation3 + $0x78] sm:$0x11]  ;;  %v1818_v16 = vshll.u32 %v12652_v53, 16  ;;  %v1823_v36 = vshrl.u32 %v12594_v7, 16  ;;  %v1826_v18 = vshll.u32 %v12594_v7, 16  ;;  %v4509_v47 = vshrl.u32 %v12616_v12, 16  ;;  %5087 = vmatmul.mubr.bf16.gmra.mrb[4].mxu0 %v9189_v57  ;;  %2763 = vmatprep.subr.bf16.mxu1 %v10585_v54 }
 0x2bd   : > { %v1802_v42 = vrot.slane %v1801_v30, 4  ;;  %v4487_v49 = vor.u32 %v4486_v26, %v4483_v4  ;;  %v4492_v31 = vrot.slane %v4490_v41, 5  ;;  %v1832_v45 = vshll.u32 %v12664_v13, 16  ;;  %v12671_v56 = vld [vmem:[#allocation3 + $0x78] sm:$0x11] }
 0x2be   : > { %v10580_v9 = vld [vmem:[%s14767_s7 + $0xa50] ss:$8 sps:$4 sm:$0xff]   ;;  %v1820_v52 = vrot.slane %v1818_v16, 5  ;;  %v1825_v40 = vrot.slane %v1823_v36, 4  ;;  %v1828_v0 = vrot.slane %v1826_v18, 5  ;;  %v4504_v37 = vshll.u32 %v12671_v56, 16  ;;  %5703 = vmatpush1.bf16.msra.mxu0 %v10574_v15  ;;  %2764 = vmatpush1.bf16.msra.mxu1 %v10583_v58 }
 0x2bf   : > { %v1807_v57 = vsel %vm12001_vm2, %v1802_v42, %v1806_v20  ;;  %v4479_v54 = vsel %vm12001_vm2, %v1802_v42, %v4478_v55  ;;  %v4488_v30 = vrot.slane %v4487_v49, 4  ;;  %v10588_v4 = vld [vmem:[%s14767_s7 + $0xa64] ss:$8 sps:$4 sm:$0xff]   ;;  %v1834_v26 = vrot.slane %v1832_v45, 5  ;;  %5704 = vmatprep.subr.bf16.mxu0 %v10582_v10  ;;  %2765 = vmatprep.subr.bf16.mxu1 %v10591_v1  ;;  %v5189_v58 = vld [vmem:[#allocation3 + $0x10] sm:$0xee] }
 0x2c0   : > { %v12684_v41 = vld [vmem:[#allocation3 + $0x88] sm:$0x11]  ;;  %v8680_v16 = vcombine.high %v12647_v50, %v1807_v57  ;;  %v8679_v15 = vcombine.low %v12647_v50, %v1807_v57  ;;  %v1829_v36 = vor.u32 %v1828_v0, %v1825_v40  ;;  %v4506_v20 = vrot.slane %v4504_v37, 5  ;;  %v5190_v18 = vld [vmem:[#allocation3 + $0x20] sm:$0xee] }
 0x2c1   : > { %v4493_v55 = vsel %vm12001_vm2, %v4488_v30, %v4492_v31  ;;  %v10586_v42 = vld [vmem:[%s14767_s7 + $0xa60] ss:$8 sps:$4 sm:$0xff]   ;;  %v10589_v10 = vld [vmem:[%s14767_s7 + $0x70] ss:$8 sps:$4 sm:$0xff]   ;;  %v12698_v49 = vsel %vm12001_vm2, %v4488_v30, %v1820_v52  ;;  %v4511_v50 = vrot.slane %v4509_v47, 4  ;;  %v4512_v37 = vshll.u32 %v12616_v12, 16 }
 0x2c2   : > { %2410 = vmatprep.mubr.bf16.mxu1 %v8680_v16  ;;  %v9192_v1 = vcombine.high %v4479_v54, %v4493_v55  ;;  %v9191_v45 = vcombine.low %v4479_v54, %v4493_v55  ;;  %v1830_v40 = vrot.slane %v1829_v36, 4  ;;  %v10597_v31 = vld [vmem:[%s14767_s7 + $0x84] ss:$8 sps:$4 sm:$0xff]   ;;  %v4518_v0 = vshll.u32 %v12684_v41, 16  ;;  %v5191_v57 = vld [vmem:[#allocation3 + $0x30] sm:$0xee]  ;;  %5705 = vmatpush1.bf16.msra.mxu0 %v10580_v9 }
 0x2c3   : > { %2411 = vmatmul.mubr.bf16.gmra.mrb[40].mxu1 %v8679_v15  ;;  %v4514_v34 = vrot.slane %v4512_v37, 5  ;;  %v9331_v44 = vrot.slane %v5189_v58, 9  ;;  %v9332_v52 = vrot.slane %v5190_v18, 9  ;;  %v5219_v47 = vrot.slane %v12462_v2, 5  ;;  %v5192_v30 = vld [vmem:[#allocation3 + $0x40] sm:$0xee]  ;;  %5706 = vmatprep.subr.bf16.mxu0 %v10588_v4 }
 0x2c4   : > { %5096 = vmatprep.mubr.bf16.mxu0 %v9192_v1  ;;  %v10594_v12 = vld [vmem:[%s14767_s7 + $0xa74] ss:$8 sps:$4 sm:$0xff]   ;;  %v1835_v54 = vsel %vm12001_vm2, %v1830_v40, %v1834_v26  ;;  %v4507_v16 = vsel %vm12001_vm2, %v1830_v40, %v4506_v20  ;;  %v4520_v9 = vrot.slane %v4518_v0, 5  ;;  %v8662_v15 = vcombine.high %v12430_v51, %v12487_v25  ;;  %2766 = vmatpush1.bf16.msra.mxu1 %v10589_v10  ;;  %v10595_v4 = vld [vmem:[%s14767_s7 + $0x80] ss:$8 sps:$4 sm:$0xff]  }
 0x2c5   : > { %5097 = vmatmul.mubr.bf16.gmra.mrb[8].mxu0 %v9191_v45  ;;  %v8682_v2 = vcombine.high %v12698_v49, %v1835_v54  ;;  %v8681_v36 = vcombine.low %v12698_v49, %v1835_v54  ;;  %v4515_v58 = vor.u32 %v4514_v34, %v4511_v50  ;;  %v9333_v18 = vrot.slane %v5191_v57, 9  ;;  %v5193_v26 = vld [vmem:[#allocation3 + $0x50] sm:$0xee]  ;;  %2767 = vmatprep.subr.bf16.mxu1 %v10597_v31  ;;  %v5194_v50 = vld [vmem:[#allocation3 + $0x60] sm:$0xee] }
 0x2c6   : > { %v10603_v20 = vld [vmem:[%s14767_s7 + $0x94] ss:$8 sps:$4 sm:$0xff]   ;;  %v12727_v55 = vsel %vm12386_vm5, %v9331_v44, %v5215_v27  ;;  %v12731_v10 = vsel %vm12386_vm5, %v9332_v52, %v5219_v47  ;;  %v5223_v49 = vrot.slane %v12542_v60, 5  ;;  %v9334_v34 = vrot.slane %v5192_v30, 9  ;;  %5707 = vmatpush1.bf16.msra.mxu0 %v10586_v42  ;;  %v10592_v37 = vld [vmem:[%s14767_s7 + $0xa70] ss:$8 sps:$4 sm:$0xff]  }
 0x2c7   : > { %2420 = vmatprep.mubr.bf16.mxu1 %v8682_v2  ;;  %v4516_v1 = vrot.slane %v4515_v58, 4  ;;  %v9347_v3 = vcombine.low %v12727_v55, %v12731_v10  ;;  %v9348_v44 = vcombine.high %v12727_v55, %v12731_v10  ;;  %v5227_v27 = vrot.slane %v12574_v38, 5  ;;  %5708 = vmatprep.subr.bf16.mxu0 %v10594_v12  ;;  %v10600_v60 = vld [vmem:[%s14767_s7 + $0xa84] ss:$8 sps:$4 sm:$0xff]   ;;  %v10601_v42 = vld [vmem:[%s14767_s7 + $0x90] ss:$8 sps:$4 sm:$0xff]  }
 0x2c8   : > { %v12750_v45 = vsel %vm12386_vm5, %v9333_v18, %v5223_v49  ;;  %v9335_v38 = vrot.slane %v5193_v26, 9  ;;  %2768 = vmatpush1.bf16.msra.mxu1 %v10595_v4  ;;  %v5231_v52 = vrot.slane %v12611_v28, 5  ;;  %v9336_v47 = vrot.slane %v5194_v50, 9  ;;  %v5195_v30 = vld [vmem:[#allocation3 + $0x70] sm:$0xee] }
 0x2c9   : > { %v4521_v0 = vsel %vm12001_vm2, %v4516_v1, %v4520_v9  ;;  %v12760_v57 = vsel %vm12386_vm5, %v9334_v34, %v5227_v27  ;;  %v5196_v12 = vld [vmem:[#allocation3 + $0x80] sm:$0xee]  ;;  %2769 = vmatprep.subr.bf16.mxu1 %v10603_v20  ;;  %v2957_v18 = vld [vmem:[#allocation3 + $0x10] sm:$0xee]  ;;  %v5235_v20 = vrot.slane %v12635_v43, 5  ;;  %v9337_v34 = vrot.slane %v5195_v30, 9 }
 0x2ca   : > { %v9194_v54 = vcombine.high %v4507_v16, %v4521_v0  ;;  %v9193_v2 = vcombine.low %v4507_v16, %v4521_v0  ;;  %v10609_v58 = vld [vmem:[%s14767_s7 + $0xa4] ss:$8 sps:$4 sm:$0xff]   ;;  %5709 = vmatpush1.bf16.msra.mxu0 %v10592_v37  ;;  %v10598_v28 = vld [vmem:[%s14767_s7 + $0xa80] ss:$8 sps:$4 sm:$0xff]   ;;  %v10606_v16 = vld [vmem:[%s14767_s7 + $0xa94] ss:$8 sps:$4 sm:$0xff]   ;;  %v12778_v26 = vsel %vm12386_vm5, %v9335_v38, %v5231_v52  ;;  %v14799_v10 = vcombine.high %v12499_v35, %v12547_v48 }
 0x2cb   : > { %2421 = vmatmul.mubr.bf16.gmra.mrb[44].mxu1 %v8681_v36  ;;  %5710 = vmatprep.subr.bf16.mxu0 %v10600_v60  ;;  %v5239_v50 = vrot.slane %v12671_v56, 5  ;;  %v9338_v37 = vrot.slane %v5196_v12, 9  ;;  %v5243_v1 = vrot.slane %v12684_v41, 5  ;;  %v2958_v27 = vld [vmem:[#allocation3 + $0x20] sm:$0xee]  ;;  %v12792_v38 = vsel %vm12386_vm5, %v9336_v47, %v5235_v20 }
 0x2cc   : > { %5106 = vmatprep.mubr.bf16.mxu0 %v9194_v54  ;;  %2770 = vmatpush1.bf16.msra.mxu1 %v10601_v42  ;;  %v10607_v43 = vld [vmem:[%s14767_s7 + $0xa0] ss:$8 sps:$4 sm:$0xff]   ;;  %v12802_v56 = vsel %vm12386_vm5, %v8883_v23, %v2982_v24  ;;  %v8884_v41 = vrot.slane %v2957_v18, 9  ;;  %v10615_v42 = vld [vmem:[%s14767_s7 + $0xb4] ss:$8 sps:$4 sm:$0xff]   ;;  %v14795_v47 = vrot.slane %v12454_v29, 5 }
 0x2cd   : > { %5107 = vmatmul.mubr.bf16.gmra.mrb[12].mxu0 %v9193_v2  ;;  %2771 = vmatprep.subr.bf16.mxu1 %v10609_v58  ;;  %v12816_v39 = vsel %vm12386_vm5, %v9337_v34, %v5239_v50  ;;  %v2959_v23 = vld [vmem:[#allocation3 + $0x30] sm:$0xee]  ;;  %v2960_v24 = vld [vmem:[#allocation3 + $0x40] sm:$0xee]  ;;  %v8885_v12 = vrot.slane %v2958_v27, 9  ;;  %v2990_v54 = vrot.slane %v12476_v8, 5 }
 0x2ce   : > { %2783 = vmatprep.mubr.bf16.mxu1 %v8652_v21  ;;  %5711 = vmatpush1.bf16.msra.mxu0 %v10598_v28  ;;  %v10604_v52 = vld [vmem:[%s14767_s7 + $0xa90] ss:$8 sps:$4 sm:$0xff]   ;;  %v12826_v21 = vsel %vm12386_vm5, %v9338_v37, %v5243_v1  ;;  %v12832_v30 = vsel %vm12386_vm5, %v8884_v41, %v14795_v47  ;;  %v10612_v2 = vld [vmem:[%s14767_s7 + $0xaa4] ss:$8 sps:$4 sm:$0xff]   ;;  %v8886_v34 = vrot.slane %v2959_v23, 9  ;;  %v2994_v50 = vrot.slane %v12535_v46, 5 }
 0x2cf   : > { %5726 = vmatprep.mubr.bf16.mxu0 %v14794_v6  ;;  %5712 = vmatprep.subr.bf16.mxu0 %v10606_v16  ;;  %v10613_v58 = vld [vmem:[%s14767_s7 + $0xb0] ss:$8 sps:$4 sm:$0xff]   ;;  %v10621_v20 = vld [vmem:[%s14767_s7 + $0xc4] ss:$8 sps:$4 sm:$0xff]   ;;  %v8887_v37 = vrot.slane %v2960_v24, 9  ;;  %v2998_v1 = vrot.slane %v12579_v19, 5  ;;  %v12860_v47 = vsel %vm12386_vm5, %v8885_v12, %v2990_v54 }
 0x2d0   : > { %v2961_v16 = vld [vmem:[#allocation3 + $0x50] sm:$0xee]  ;;  %2772 = vmatpush1.bf16.msra.mxu1 %v10607_v43  ;;  %v3002_v41 = vrot.slane %v12609_v17, 5  ;;  %v2962_v6 = vld [vmem:[#allocation3 + $0x60] sm:$0xee]  ;;  %v12864_v46 = vsel %vm12386_vm5, %v8886_v34, %v2994_v50 }
 0x2d1   : > { %2773 = vmatprep.subr.bf16.mxu1 %v10615_v42  ;;  %v8888_v27 = vrot.slane %v2961_v16, 9  ;;  %v10610_v43 = vld [vmem:[%s14767_s7 + $0xaa0] ss:$8 sps:$4 sm:$0xff]   ;;  %v3006_v42 = vrot.slane %v12652_v53, 5  ;;  %v10618_v19 = vld [vmem:[%s14767_s7 + $0xab4] ss:$8 sps:$4 sm:$0xff]   ;;  %v12876_v24 = vsel %vm12386_vm5, %v8887_v37, %v2998_v1 }
 0x2d2   : > { %5713 = vmatpush1.bf16.msra.mxu0 %v10604_v52  ;;  %v2963_v53 = vld [vmem:[#allocation3 + $0x70] sm:$0xee]  ;;  %v10619_v12 = vld [vmem:[%s14767_s7 + $0xc0] ss:$8 sps:$4 sm:$0xff]   ;;  %v8889_v16 = vrot.slane %v2962_v6, 9  ;;  %v3010_v37 = vrot.slane %v12664_v13, 5 }
 0x2d3   : > { %5714 = vmatprep.subr.bf16.mxu0 %v10612_v2  ;;  %v12880_v52 = vsel %vm12386_vm5, %v8888_v27, %v3002_v41  ;;  %v8890_v34 = vrot.slane %v2963_v53, 9  ;;  %v10627_v50 = vld [vmem:[%s14767_s7 + $0xd4] ss:$8 sps:$4 sm:$0xff]   ;;  %v10624_v1 = vld [vmem:[%s14767_s7 + $0xac4] ss:$8 sps:$4 sm:$0xff]   ;;  %v8651_v2 = vcombine.low %v12561_v59, %v12448_v22 }
 0x2d4   : > { %2774 = vmatpush1.bf16.msra.mxu1 %v10613_v58  ;;  %v10616_v58 = vld [vmem:[%s14767_s7 + $0xab0] ss:$8 sps:$4 sm:$0xff]   ;;  %v12901_v27 = vsel %vm12386_vm5, %v8889_v16, %v3006_v42  ;;  %v10622_v42 = vld [vmem:[%s14767_s7 + $0xac0] ss:$8 sps:$4 sm:$0xff]   ;;  %v10762_v55 = vld [vmem:[%s14767_s7 + $0xc24] ss:$8 sps:$4 sm:$0xff]  }
 0x2d5   : > { %2775 = vmatprep.subr.bf16.mxu1 %v10621_v20  ;;  %v12905_v20 = vsel %vm12386_vm5, %v8890_v34, %v3010_v37  ;;  %v10625_v13 = vld [vmem:[%s14767_s7 + $0xd0] ss:$8 sps:$4 sm:$0xff]   ;;  %v10631_v53 = vld [vmem:[%s14767_s7 + $0xe0] ss:$8 sps:$4 sm:$0xff]   ;;  %v10636_v34 = vld [vmem:[%s14767_s7 + $0xae4] ss:$8 sps:$4 sm:$0xff]  }
 0x2d6   : > { %5715 = vmatpush1.bf16.msra.mxu0 %v10610_v43  ;;  %v10633_v43 = vld [vmem:[%s14767_s7 + $0xe4] ss:$8 sps:$4 sm:$0xff]   ;;  %v10628_v16 = vld [vmem:[%s14767_s7 + $0xad0] ss:$8 sps:$4 sm:$0xff]  }
 0x2d7   : > { %5716 = vmatprep.subr.bf16.mxu0 %v10618_v19  ;;  %v10630_v19 = vld [vmem:[%s14767_s7 + $0xad4] ss:$8 sps:$4 sm:$0xff]   ;;  %v5136_v37 = vld [vmem:[#allocation2 + $0x40] sm:$0xee]  ;;  %v11370_v41 = vld [vmem:[#allocation2 + $0x48] sm:$0x11] }
 0x2d8   : > { %2776 = vmatpush1.bf16.msra.mxu1 %v10619_v12  ;;  %v10639_v12 = vld [vmem:[%s14767_s7 + $0xf4] ss:$8 sps:$4 sm:$0xff]   ;;  %v9326_v6 = vrot.slane %v5136_v37, 9  ;;  %v11371_v54 = vld [vmem:[#allocation2 + $0x20] sm:$0xff]  ;;  %v11374_v17 = vld [vmem:[#allocation2 + $0x68] sm:$0x11] }
 0x2d9   : > { %2777 = vmatprep.subr.bf16.mxu1 %v10627_v50  ;;  %v5135_v50 = vld [vmem:[#allocation2 + $0x30] sm:$0xee]  ;;  %v5179_v28 = vrot.slane %v11374_v17, 5  ;;  %v12986_v8 = vld [vmem:[#allocation2 + $0x40] sm:$0xff]  ;;  %v14796_v17 = vcombine.low %v12392_v61, %v12396_v63  ;;  %v11378_v60 = vld [vmem:[#allocation2 + $0x88] sm:$0x11] }
 0x2da   : > { %5717 = vmatpush1.bf16.msra.mxu0 %v10616_v58  ;;  %v10637_v58 = vld [vmem:[%s14767_s7 + $0xf0] ss:$8 sps:$4 sm:$0xff]   ;;  %v5187_v18 = vrot.slane %v11378_v60, 5  ;;  %v7428_v9 = vld [vmem:[#allocation3 + $0x60] sm:$0xee] }
 0x2db   : > { %5718 = vmatprep.subr.bf16.mxu0 %v10624_v1  ;;  %v10645_v1 = vld [vmem:[%s14767_s7 + $0x104] ss:$8 sps:$4 sm:$0xff]   ;;  %v12988_v29 = vld [vmem:[#allocation2 + $0x50] sm:$0xff]  ;;  %v9783_v31 = vrot.slane %v7428_v9, 9  ;;  %v10685_v9 = vld [vmem:[%s14767_s7 + $0x160] ss:$8 sps:$4 sm:$0xff]  }
 0x2dc   : > { %2778 = vmatpush1.bf16.msra.mxu1 %v10625_v13  ;;  %v10634_v13 = vld [vmem:[%s14767_s7 + $0xae0] ss:$8 sps:$4 sm:$0xff]   ;;  %v5139_v63 = vld [vmem:[#allocation2 + $0x70] sm:$0xee] }
 0x2dd   : > { %2779 = vmatprep.subr.bf16.mxu1 %v10633_v43  ;;  %v9325_v43 = vrot.slane %v5135_v50, 9  ;;  %v11372_v50 = vld [vmem:[#allocation2 + $0x30] sm:$0xff]  ;;  %v7430_v4 = vld [vmem:[#allocation3 + $0x80] sm:$0xee] }
 0x2de   : > { %5719 = vmatpush1.bf16.msra.mxu0 %v10622_v42  ;;  %v11369_v42 = vld [vmem:[#allocation2 + $0x38] sm:$0x11]  ;;  %v8654_v23 = vcombine.high %v11371_v54, %v11372_v50  ;;  %v13037_v60 = vld [vmem:[#allocation2 + $0x70] sm:$0xff] }
 0x2df   : > { %5720 = vmatprep.subr.bf16.mxu0 %v10630_v19  ;;  %v5167_v19 = vrot.slane %v11369_v42, 5  ;;  %v10649_v42 = vld [vmem:[%s14767_s7 + $0x110] ss:$8 sps:$4 sm:$0xff]  }
 0x2e0   : > { %2780 = vmatpush1.bf16.msra.mxu1 %v10631_v53  ;;  %v5171_v53 = vrot.slane %v11370_v41, 5  ;;  %v10651_v41 = vld [vmem:[%s14767_s7 + $0x114] ss:$8 sps:$4 sm:$0xff]  }
 0x2e1   : > { %2781 = vmatprep.subr.bf16.mxu1 %v10639_v12  ;;  %v10642_v12 = vld [vmem:[%s14767_s7 + $0xaf4] ss:$8 sps:$4 sm:$0xff]   ;;  %v12960_v22 = vsel %vm12386_vm5, %v9325_v43, %v5167_v19  ;;  %v10646_v43 = vld [vmem:[%s14767_s7 + $0xb00] ss:$8 sps:$4 sm:$0xff]  }
 0x2e2   : > { %5721 = vmatpush1.bf16.msra.mxu0 %v10628_v16  ;;  %v10643_v16 = vld [vmem:[%s14767_s7 + $0x100] ss:$8 sps:$4 sm:$0xff]   ;;  %v12964_v37 = vsel %vm12386_vm5, %v9326_v6, %v5171_v53  ;;  %v10659_v6 = vld [vmem:[%s14767_s7 + $0x124] ss:$8 sps:$4 sm:$0xff]   ;;  %v11373_v53 = vld [vmem:[#allocation2 + $0x58] sm:$0x11] }
 0x2e3   : > { %5722 = vmatprep.subr.bf16.mxu0 %v10636_v34  ;;  %v10640_v34 = vld [vmem:[%s14767_s7 + $0xaf0] ss:$8 sps:$4 sm:$0xff]  }
 0x2e4   : > { %2782 = vmatpush1.bf16.msra.mxu1 %v10637_v58  ;;  %v10648_v58 = vld [vmem:[%s14767_s7 + $0xb04] ss:$8 sps:$4 sm:$0xff]   ;;  %v7431_v49 = vld [vmem:[#allocation3 + $0x90] sm:$0xee] }
 0x2e5   : > { %2824 = vmatprep.subr.bf16.mxu1 %v10645_v1  ;;  %v5137_v1 = vld [vmem:[#allocation2 + $0x50] sm:$0xee] }
 0x2e6   : > { %5723 = vmatpush1.bf16.msra.mxu0 %v10634_v13  ;;  %v5138_v13 = vld [vmem:[#allocation2 + $0x60] sm:$0xee]  ;;  %v9327_v19 = vrot.slane %v5137_v1, 9  ;;  %v8656_v1 = vcombine.high %v12986_v8, %v12988_v29 }
 0x2e7   : > { %5724 = vmatprep.subr.bf16.mxu0 %v10642_v12  ;;  %2784 = vmatmul.mubr.bf16.vlgmr.msra.gmra.mrb[32].mxu1 %v8651_v2  ;;  %v9342_v2 = vcombine.high %v12960_v22, %v12964_v37  ;;  %v5175_v12 = vrot.slane %v11373_v53, 5 }
 0x2e8   : > { %2825 = vmatpush1.bf16.msra.mxu1 %v10643_v16  ;;  %2793 = vmatprep.mubr.bf16.mxu1 %v8654_v23  ;;  %v9328_v16 = vrot.slane %v5138_v13, 9  ;;  %v10654_v23 = vld [vmem:[%s14767_s7 + $0xb14] ss:$8 sps:$4 sm:$0xff]  }
 0x2e9   : > { %2826 = vmatprep.subr.bf16.mxu1 %v10651_v41  ;;  %v8653_v41 = vcombine.low %v11371_v54, %v11372_v50  ;;  %v10665_v54 = vld [vmem:[%s14767_s7 + $0x134] ss:$8 sps:$4 sm:$0xff]   ;;  %v10652_v50 = vld [vmem:[%s14767_s7 + $0xb10] ss:$8 sps:$4 sm:$0xff]   ;;  %v13006_v13 = vsel %vm12386_vm5, %v9327_v19, %v5175_v12  ;;  %v10673_v19 = vld [vmem:[%s14767_s7 + $0x144] ss:$8 sps:$4 sm:$0xff]  }
 0x2ea   : > { %5725 = vmatpush1.bf16.msra.mxu0 %v10640_v34  ;;  %v10657_v34 = vld [vmem:[%s14767_s7 + $0x120] ss:$8 sps:$4 sm:$0xff]   ;;  %v13010_v61 = vsel %vm12386_vm5, %v9328_v16, %v5179_v28  ;;  %v9341_v28 = vcombine.low %v12960_v22, %v12964_v37  ;;  %v9329_v12 = vrot.slane %v5139_v63, 9  ;;  %v11377_v16 = vld [vmem:[#allocation2 + $0x78] sm:$0x11]  ;;  %v8655_v37 = vcombine.low %v12986_v8, %v12988_v29 }
 0x2eb   : > { %5767 = vmatprep.subr.bf16.mxu0 %v10648_v58  ;;  %v10662_v58 = vld [vmem:[%s14767_s7 + $0xb24] ss:$8 sps:$4 sm:$0xff]   ;;  %v9344_v53 = vcombine.high %v13006_v13, %v13010_v61  ;;  %v10668_v22 = vld [vmem:[%s14767_s7 + $0xb34] ss:$8 sps:$4 sm:$0xff]   ;;  %v10666_v29 = vld [vmem:[%s14767_s7 + $0xb30] ss:$8 sps:$4 sm:$0xff]  }
 0x2ec   : > { %2827 = vmatpush1.bf16.msra.mxu1 %v10649_v42  ;;  %v5140_v42 = vld [vmem:[#allocation2 + $0x80] sm:$0xee]  ;;  %v10679_v8 = vld [vmem:[%s14767_s7 + $0x154] ss:$8 sps:$4 sm:$0xff]  }
 0x2ed   : > { %5727 = vmatmul.mubr.bf16.vlgmr.msra.gmra.mrb[0].mxu0 %v14796_v17  ;;  %2828 = vmatprep.subr.bf16.mxu1 %v10659_v6  ;;  %v6630_v6 = vld [vmem:[#allocation3 + $0x28] sm:$0x11]  ;;  %v9330_v17 = vrot.slane %v5140_v42, 9  ;;  %v13035_v63 = vld [vmem:[#allocation2 + $0x60] sm:$0xff] }
 0x2ee   : > { %5768 = vmatpush1.bf16.msra.mxu0 %v10646_v43  ;;  %5736 = vmatprep.mubr.bf16.mxu0 %v9342_v2  ;;  %v7424_v43 = vld [vmem:[#allocation3 + $0x20] sm:$0xee]  ;;  %v10663_v2 = vld [vmem:[%s14767_s7 + $0x130] ss:$8 sps:$4 sm:$0xff]   ;;  %v7450_v36 = vrot.slane %v6630_v6, 5 }
 0x2ef   : > { %5769 = vmatprep.subr.bf16.mxu0 %v10654_v23  ;;  %2794 = vmatmul.mubr.bf16.gmra.mrb[36].mxu1 %v8653_v41  ;;  %v5183_v23 = vrot.slane %v11377_v16, 5  ;;  %v6632_v41 = vld [vmem:[#allocation3 + $0x38] sm:$0x11]  ;;  %v9779_v33 = vrot.slane %v7424_v43, 9  ;;  %v6634_v42 = vld [vmem:[#allocation3 + $0x48] sm:$0x11] }
 0x2f0   : > { %2829 = vmatpush1.bf16.msra.mxu1 %v10657_v34  ;;  %2803 = vmatprep.mubr.bf16.mxu1 %v8656_v1  ;;  %v7425_v34 = vld [vmem:[#allocation3 + $0x30] sm:$0xee]  ;;  %v10660_v1 = vld [vmem:[%s14767_s7 + $0xb20] ss:$8 sps:$4 sm:$0xff]   ;;  %v7454_v43 = vrot.slane %v6632_v41, 5  ;;  %v13056_v41 = vsel %vm12386_vm5, %v9330_v17, %v5187_v18  ;;  %v7458_v0 = vrot.slane %v6634_v42, 5  ;;  %v9343_v42 = vcombine.low %v13006_v13, %v13010_v61 }
 0x2f1   : > { %2830 = vmatprep.subr.bf16.mxu1 %v10665_v54  ;;  %v10671_v54 = vld [vmem:[%s14767_s7 + $0x140] ss:$8 sps:$4 sm:$0xff]   ;;  %v9780_v6 = vrot.slane %v7425_v34, 9  ;;  %v13060_v34 = vsel %vm12386_vm5, %v9779_v33, %v7450_v36  ;;  %v10677_v33 = vld [vmem:[%s14767_s7 + $0x150] ss:$8 sps:$4 sm:$0xff]   ;;  %v8657_v13 = vcombine.low %v13035_v63, %v13037_v60 }
 0x2f2   : > { %5770 = vmatpush1.bf16.msra.mxu0 %v10652_v50  ;;  %v13033_v50 = vld [vmem:[#allocation3 + $0x98] sm:$0x11]  ;;  %v7426_v16 = vld [vmem:[#allocation3 + $0x40] sm:$0xee] }
 0x2f3   : > { %5771 = vmatprep.subr.bf16.mxu0 %v10662_v58  ;;  %v8658_v58 = vcombine.high %v13035_v63, %v13037_v60  ;;  %v9781_v17 = vrot.slane %v7426_v16, 9  ;;  %v10674_v36 = vld [vmem:[%s14767_s7 + $0xb40] ss:$8 sps:$4 sm:$0xff]  }
 0x2f4   : > { %2831 = vmatpush1.bf16.msra.mxu1 %v10663_v2  ;;  %v13049_v2 = vsel %vm12386_vm5, %v9329_v12, %v5183_v23  ;;  %v13064_v12 = vsel %vm12386_vm5, %v9780_v6, %v7454_v43  ;;  %v7427_v23 = vld [vmem:[#allocation3 + $0x50] sm:$0xee]  ;;  %v7478_v6 = vrot.slane %v13033_v50, 5 }
 0x2f5   : > { %5737 = vmatmul.mubr.bf16.gmra.mrb[4].mxu0 %v9341_v28  ;;  %2832 = vmatprep.subr.bf16.mxu1 %v10673_v19  ;;  %v10676_v28 = vld [vmem:[%s14767_s7 + $0xb44] ss:$8 sps:$4 sm:$0xff]   ;;  %v6636_v19 = vld [vmem:[#allocation3 + $0x58] sm:$0x11]  ;;  %v9782_v43 = vrot.slane %v7427_v23, 9  ;;  %v9346_v18 = vcombine.high %v13049_v2, %v13056_v41  ;;  %v13091_v61 = vsel %vm12386_vm5, %v9781_v17, %v7458_v0  ;;  %v13104_v0 = vld [vmem:[#allocation3 + $0x10] sm:$0xff] }
 0x2f6   : > { %5772 = vmatpush1.bf16.msra.mxu0 %v10660_v1  ;;  %5746 = vmatprep.mubr.bf16.mxu0 %v9344_v53  ;;  %v6638_v53 = vld [vmem:[#allocation3 + $0x68] sm:$0x11]  ;;  %v7462_v16 = vrot.slane %v6636_v19, 5  ;;  %v7429_v1 = vld [vmem:[#allocation3 + $0x70] sm:$0xee]  ;;  %v9785_v23 = vrot.slane %v7430_v4, 9 }
 0x2f7   : > { %5773 = vmatprep.subr.bf16.mxu0 %v10668_v22  ;;  %2804 = vmatmul.mubr.bf16.gmra.mrb[40].mxu1 %v8655_v37  ;;  %v10687_v22 = vld [vmem:[%s14767_s7 + $0x164] ss:$8 sps:$4 sm:$0xff]   ;;  %v9786_v37 = vrot.slane %v7431_v49, 9  ;;  %v7466_v40 = vrot.slane %v6638_v53, 5  ;;  %v10682_v49 = vld [vmem:[%s14767_s7 + $0xb54] ss:$8 sps:$4 sm:$0xff]  }
 0x2f8   : > { %2833 = vmatpush1.bf16.msra.mxu1 %v10671_v54  ;;  %2813 = vmatprep.mubr.bf16.mxu1 %v8658_v58  ;;  %v6640_v54 = vld [vmem:[#allocation3 + $0x78] sm:$0x11]  ;;  %v6642_v58 = vld [vmem:[#allocation3 + $0x88] sm:$0x11]  ;;  %v13095_v50 = vsel %vm12386_vm5, %v9782_v43, %v7462_v16  ;;  %v9784_v63 = vrot.slane %v7429_v1, 9 }
 0x2f9   : > { %2834 = vmatprep.subr.bf16.mxu1 %v10679_v8  ;;  %v9797_v8 = vcombine.low %v13091_v61, %v13095_v50  ;;  %v7470_v60 = vrot.slane %v6640_v54, 5  ;;  %v10693_v19 = vld [vmem:[%s14767_s7 + $0x174] ss:$8 sps:$4 sm:$0xff]   ;;  %v7474_v53 = vrot.slane %v6642_v58, 5  ;;  %v10680_v17 = vld [vmem:[%s14767_s7 + $0xb50] ss:$8 sps:$4 sm:$0xff]   ;;  %v13116_v1 = vsel %vm12386_vm5, %v9783_v31, %v7466_v40 }
 0x2fa   : > { %5774 = vmatpush1.bf16.msra.mxu0 %v10666_v29  ;;  %v9798_v29 = vcombine.high %v13091_v61, %v13095_v50  ;;  %v10690_v4 = vld [vmem:[%s14767_s7 + $0xb64] ss:$8 sps:$4 sm:$0xff]   ;;  %v10688_v54 = vld [vmem:[%s14767_s7 + $0xb60] ss:$8 sps:$4 sm:$0xff]   ;;  %v10705_v43 = vld [vmem:[%s14767_s7 + $0x194] ss:$8 sps:$4 sm:$0xff]  }
 0x2fb   : > { %5775 = vmatprep.subr.bf16.mxu0 %v10676_v28  ;;  %v8660_v28 = vcombine.high %v12561_v59, %v13104_v0  ;;  %v13124_v59 = vsel %vm12386_vm5, %v9786_v37, %v7478_v6  ;;  %v13135_v31 = vsel %vm12386_vm5, %v9785_v23, %v7474_v53  ;;  %v10699_v37 = vld [vmem:[%s14767_s7 + $0x184] ss:$8 sps:$4 sm:$0xff]   ;;  %v10694_v16 = vld [vmem:[%s14767_s7 + $0xb70] ss:$8 sps:$4 sm:$0xff]  }
 0x2fc   : > { %2835 = vmatpush1.bf16.msra.mxu1 %v10677_v33  ;;  %v13120_v33 = vsel %vm12386_vm5, %v9784_v63, %v7470_v60  ;;  %v9802_v6 = vcombine.high %v13135_v31, %v13124_v59  ;;  %v10702_v58 = vld [vmem:[%s14767_s7 + $0xb84] ss:$8 sps:$4 sm:$0xff]   ;;  %v10709_v63 = vld [vmem:[%s14767_s7 + $0x1a0] ss:$8 sps:$4 sm:$0xff]   ;;  %v10717_v60 = vld [vmem:[%s14767_s7 + $0x1b4] ss:$8 sps:$4 sm:$0xff]  }
 0x2fd   : > { %5747 = vmatmul.mubr.bf16.gmra.mrb[8].mxu0 %v9343_v42  ;;  %2836 = vmatprep.subr.bf16.mxu1 %v10687_v22  ;;  %v9799_v40 = vcombine.low %v13116_v1, %v13120_v33  ;;  %v9345_v22 = vcombine.low %v13049_v2, %v13056_v41  ;;  %v9801_v42 = vcombine.low %v13135_v31, %v13124_v59  ;;  %v10696_v2 = vld [vmem:[%s14767_s7 + $0xb74] ss:$8 sps:$4 sm:$0xff]   ;;  %v10697_v41 = vld [vmem:[%s14767_s7 + $0x180] ss:$8 sps:$4 sm:$0xff]   ;;  %v10715_v23 = vld [vmem:[%s14767_s7 + $0x1b0] ss:$8 sps:$4 sm:$0xff]  }
 0x2fe   : > { %5776 = vmatpush1.bf16.msra.mxu0 %v10674_v36  ;;  %5756 = vmatprep.mubr.bf16.mxu0 %v9346_v18  ;;  %v9800_v18 = vcombine.high %v13116_v1, %v13120_v33  ;;  %v10691_v36 = vld [vmem:[%s14767_s7 + $0x170] ss:$8 sps:$4 sm:$0xff]   ;;  %v10723_v53 = vld [vmem:[%s14767_s7 + $0x1c4] ss:$8 sps:$4 sm:$0xff]  }
 0x2ff   : > { %5777 = vmatprep.subr.bf16.mxu0 %v10682_v49  ;;  %2814 = vmatmul.mubr.bf16.gmra.mrb[44].mxu1 %v8657_v13  ;;  %v10703_v49 = vld [vmem:[%s14767_s7 + $0x190] ss:$8 sps:$4 sm:$0xff]   ;;  %v10711_v13 = vld [vmem:[%s14767_s7 + $0x1a4] ss:$8 sps:$4 sm:$0xff]  }
 0x300   : > { %2837 = vmatpush1.bf16.msra.mxu1 %v10685_v9  ;;  %2856 = vmatprep.mubr.bf16.mxu1 %v8660_v28  ;;  %v10708_v9 = vld [vmem:[%s14767_s7 + $0xb94] ss:$8 sps:$4 sm:$0xff]   ;;  %v10706_v28 = vld [vmem:[%s14767_s7 + $0xb90] ss:$8 sps:$4 sm:$0xff]  }
 0x301   : > { %2838 = vmatprep.subr.bf16.mxu1 %v10693_v19  ;;  %v10714_v19 = vld [vmem:[%s14767_s7 + $0xba4] ss:$8 sps:$4 sm:$0xff]  }
 0x302   : > { %5778 = vmatpush1.bf16.msra.mxu0 %v10680_v17  ;;  %v10712_v17 = vld [vmem:[%s14767_s7 + $0xba0] ss:$8 sps:$4 sm:$0xff]  }
 0x303   : > { %5779 = vmatprep.subr.bf16.mxu0 %v10690_v4  ;;  %v10720_v4 = vld [vmem:[%s14767_s7 + $0xbb4] ss:$8 sps:$4 sm:$0xff]  }
 0x304   : > { %2839 = vmatpush1.bf16.msra.mxu1 %v10691_v36  ;;  %v10721_v36 = vld [vmem:[%s14767_s7 + $0x1c0] ss:$8 sps:$4 sm:$0xff]  }
 0x305   : > { %5757 = vmatmul.mubr.bf16.gmra.mrb[12].mxu0 %v9345_v22  ;;  %2840 = vmatprep.subr.bf16.mxu1 %v10699_v37  ;;  %v10729_v22 = vld [vmem:[%s14767_s7 + $0x1d4] ss:$8 sps:$4 sm:$0xff]   ;;  %v10718_v37 = vld [vmem:[%s14767_s7 + $0xbb0] ss:$8 sps:$4 sm:$0xff]  }
 0x306   : > { %5780 = vmatpush1.bf16.msra.mxu0 %v10688_v54  ;;  %5799 = vmatprep.mubr.bf16.mxu0 %v9348_v44  ;;  %v10700_v44 = vld [vmem:[%s14767_s7 + $0xb80] ss:$8 sps:$4 sm:$0xff]   ;;  %v10726_v54 = vld [vmem:[%s14767_s7 + $0xbc4] ss:$8 sps:$4 sm:$0xff]  }
 0x307   : > { %5781 = vmatprep.subr.bf16.mxu0 %v10696_v2  ;;  %v10727_v2 = vld [vmem:[%s14767_s7 + $0x1d0] ss:$8 sps:$4 sm:$0xff]  }
 0x308   : > { %2841 = vmatpush1.bf16.msra.mxu1 %v10697_v41  ;;  %v10735_v41 = vld [vmem:[%s14767_s7 + $0x1e4] ss:$8 sps:$4 sm:$0xff]  }
 0x309   : > { %2842 = vmatprep.subr.bf16.mxu1 %v10705_v43  ;;  %v10724_v43 = vld [vmem:[%s14767_s7 + $0xbc0] ss:$8 sps:$4 sm:$0xff]  }
 0x30a   : > { %5782 = vmatpush1.bf16.msra.mxu0 %v10694_v16  ;;  %v10732_v16 = vld [vmem:[%s14767_s7 + $0xbd4] ss:$8 sps:$4 sm:$0xff]  }
 0x30b   : > { %5783 = vmatprep.subr.bf16.mxu0 %v10702_v58  ;;  %v10733_v58 = vld [vmem:[%s14767_s7 + $0x1e0] ss:$8 sps:$4 sm:$0xff]  }
 0x30c   : > { %2843 = vmatpush1.bf16.msra.mxu1 %v10703_v49  ;;  %v10741_v49 = vld [vmem:[%s14767_s7 + $0x1f4] ss:$8 sps:$4 sm:$0xff]  }
 0x30d   : > { %2844 = vmatprep.subr.bf16.mxu1 %v10711_v13  ;;  %v10730_v13 = vld [vmem:[%s14767_s7 + $0xbd0] ss:$8 sps:$4 sm:$0xff]  }
 0x30e   : > { %5784 = vmatpush1.bf16.msra.mxu0 %v10700_v44  ;;  %v10738_v44 = vld [vmem:[%s14767_s7 + $0xbe4] ss:$8 sps:$4 sm:$0xff]  }
 0x30f   : > { %5785 = vmatprep.subr.bf16.mxu0 %v10708_v9  ;;  %v10739_v9 = vld [vmem:[%s14767_s7 + $0x1f0] ss:$8 sps:$4 sm:$0xff]  }
 0x310   : > { %2845 = vmatpush1.bf16.msra.mxu1 %v10709_v63  ;;  %v10747_v63 = vld [vmem:[%s14767_s7 + $0x404] ss:$8 sps:$4 sm:$0xff]  }
 0x311   : > { %2846 = vmatprep.subr.bf16.mxu1 %v10717_v60  ;;  %v10736_v60 = vld [vmem:[%s14767_s7 + $0xbe0] ss:$8 sps:$4 sm:$0xff]  }
 0x312   : > { %5786 = vmatpush1.bf16.msra.mxu0 %v10706_v28  ;;  %v10744_v28 = vld [vmem:[%s14767_s7 + $0xbf4] ss:$8 sps:$4 sm:$0xff]  }
 0x313   : > { %5787 = vmatprep.subr.bf16.mxu0 %v10714_v19  ;;  %v10745_v19 = vld [vmem:[%s14767_s7 + $0x400] ss:$8 sps:$4 sm:$0xff]  }
 0x314   : > { %2847 = vmatpush1.bf16.msra.mxu1 %v10715_v23  ;;  %v13257_v23 = vld [vmem:[#allocation2] sm:$0xff] }
 0x315   : > { %2848 = vmatprep.subr.bf16.mxu1 %v10723_v53  ;;  %v8659_v53 = vcombine.low %v13257_v23, %v13104_v0  ;;  %v10751_v0 = vld [vmem:[%s14767_s7 + $0x410] ss:$8 sps:$4 sm:$0xff]  }
 0x316   : > { %5788 = vmatpush1.bf16.msra.mxu0 %v10712_v17  ;;  %v10753_v17 = vld [vmem:[%s14767_s7 + $0x414] ss:$8 sps:$4 sm:$0xff]  }
 0x317   : > { %5789 = vmatprep.subr.bf16.mxu0 %v10720_v4  ;;  %v10742_v4 = vld [vmem:[%s14767_s7 + $0xbf0] ss:$8 sps:$4 sm:$0xff]  }
 0x318   : > { %2849 = vmatpush1.bf16.msra.mxu1 %v10721_v36  ;;  %v10750_v36 = vld [vmem:[%s14767_s7 + $0xc04] ss:$8 sps:$4 sm:$0xff]  }
 0x319   : > { %2850 = vmatprep.subr.bf16.mxu1 %v10729_v22  ;;  %v10759_v22 = vld [vmem:[%s14767_s7 + $0x424] ss:$8 sps:$4 sm:$0xff]  }
 0x31a   : > { %5790 = vmatpush1.bf16.msra.mxu0 %v10718_v37  ;;  %v10748_v37 = vld [vmem:[%s14767_s7 + $0xc00] ss:$8 sps:$4 sm:$0xff]  }
 0x31b   : > { %5791 = vmatprep.subr.bf16.mxu0 %v10726_v54  ;;  %v10757_v54 = vld [vmem:[%s14767_s7 + $0x420] ss:$8 sps:$4 sm:$0xff]  }
 0x31c   : > { %2851 = vmatpush1.bf16.msra.mxu1 %v10727_v2  ;;  %v10765_v2 = vld [vmem:[%s14767_s7 + $0x434] ss:$8 sps:$4 sm:$0xff]  }
 0x31d   : > { %2852 = vmatprep.subr.bf16.mxu1 %v10735_v41  ;;  %v14797_v41 = vcombine.high %v12750_v45, %v12760_v57 }
 0x31e   : > { %5792 = vmatpush1.bf16.msra.mxu0 %v10724_v43  ;;  %v10754_v43 = vld [vmem:[%s14767_s7 + $0xc10] ss:$8 sps:$4 sm:$0xff]  }
 0x31f   : > { %5793 = vmatprep.subr.bf16.mxu0 %v10732_v16  ;;  %v14798_v16 = vcombine.low %v12430_v51, %v12487_v25  ;;  %v10760_v51 = vld [vmem:[%s14767_s7 + $0xc20] ss:$8 sps:$4 sm:$0xff]  }
 0x320   : > { %2853 = vmatpush1.bf16.msra.mxu1 %v10733_v58  ;;  %v10771_v58 = vld [vmem:[%s14767_s7 + $0x444] ss:$8 sps:$4 sm:$0xff]  }
 0x321   : > { %2854 = vmatprep.subr.bf16.mxu1 %v10741_v49  ;;  %v2897_v25 = vld [vmem:[#allocation2] sm:$0xee]  ;;  %v2898_v49 = vld [vmem:[#allocation2 + $0x10] sm:$0xee] }
 0x322   : > { %5794 = vmatpush1.bf16.msra.mxu0 %v10730_v13  ;;  %v10768_v13 = vld [vmem:[%s14767_s7 + $0xc34] ss:$8 sps:$4 sm:$0xff]  }
 0x323   : > { %5795 = vmatprep.subr.bf16.mxu0 %v10738_v44  ;;  %v10769_v44 = vld [vmem:[%s14767_s7 + $0x440] ss:$8 sps:$4 sm:$0xff]  }
 0x324   : > { %2855 = vmatpush1.bf16.msra.mxu1 %v10739_v9  ;;  %v14800_v9 = vcombine.low %v12750_v45, %v12760_v57  ;;  %v10766_v45 = vld [vmem:[%s14767_s7 + $0xc30] ss:$8 sps:$4 sm:$0xff]   ;;  %v14802_v57 = vcombine.low %v12499_v35, %v12547_v48 }
 0x325   : > { %3461 = vmatprep.subr.bf16.mxu1 %v10747_v63  ;;  %v10777_v63 = vld [vmem:[%s14767_s7 + $0x454] ss:$8 sps:$4 sm:$0xff]  }
 0x326   : > { %5796 = vmatpush1.bf16.msra.mxu0 %v10736_v60  ;;  %v8875_v60 = vrot.slane %v2897_v25, 9  ;;  %v10787_v25 = vld [vmem:[%s14767_s7 + $0x470] ss:$8 sps:$4 sm:$0xff]  }
 0x327   : > { %5797 = vmatprep.subr.bf16.mxu0 %v10744_v28  ;;  %2857 = vmatmul.mubr.bf16.vlgmr.msra.gmra.mrb[32].mxu1 %v8659_v53  ;;  %v11383_v28 = vld [vmem:[#allocation2 + $0x8] sm:$0x11]  ;;  %v8876_v53 = vrot.slane %v2898_v49, 9 }
 0x328   : > { %2866 = vmatprep.mubr.bf16.mxu1 %v8662_v15  ;;  %3462 = vmatpush1.bf16.msra.mxu1 %v10745_v19  ;;  %v10756_v15 = vld [vmem:[%s14767_s7 + $0xc14] ss:$8 sps:$4 sm:$0xff]   ;;  %v2926_v19 = vrot.slane %v11383_v28, 5  ;;  %v10798_v28 = vld [vmem:[%s14767_s7 + $0xc84] ss:$8 sps:$4 sm:$0xff]  }
 0x329   : > { %3463 = vmatprep.subr.bf16.mxu1 %v10753_v17  ;;  %v11384_v17 = vld [vmem:[#allocation2 + $0x18] sm:$0x11] }
 0x32a   : > { %5798 = vmatpush1.bf16.msra.mxu0 %v10742_v4  ;;  %v2930_v4 = vrot.slane %v11384_v17, 5  ;;  %v13353_v35 = vsel %vm12386_vm5, %v8875_v60, %v2926_v19  ;;  %v10790_v60 = vld [vmem:[%s14767_s7 + $0xc70] ss:$8 sps:$4 sm:$0xff]   ;;  %v10796_v19 = vld [vmem:[%s14767_s7 + $0xc80] ss:$8 sps:$4 sm:$0xff]  }
 0x32b   : > { %6339 = vmatprep.subr.bf16.mxu0 %v10750_v36  ;;  %v14801_v36 = vcombine.high %v12778_v26, %v12792_v38  ;;  %v10805_v17 = vld [vmem:[%s14767_s7 + $0x4a0] ss:$8 sps:$4 sm:$0xff]  }
 0x32c   : > { %3464 = vmatpush1.bf16.msra.mxu1 %v10751_v0  ;;  %v10774_v0 = vld [vmem:[%s14767_s7 + $0xc44] ss:$8 sps:$4 sm:$0xff]   ;;  %v13357_v48 = vsel %vm12386_vm5, %v8876_v53, %v2930_v4  ;;  %v10804_v53 = vld [vmem:[%s14767_s7 + $0xc94] ss:$8 sps:$4 sm:$0xff]  }
 0x32d   : > { %5800 = vmatmul.mubr.bf16.vlgmr.msra.gmra.mrb[0].mxu0 %v9347_v3  ;;  %3465 = vmatprep.subr.bf16.mxu1 %v10759_v22  ;;  %v10763_v3 = vld [vmem:[%s14767_s7 + $0x430] ss:$8 sps:$4 sm:$0xff]   ;;  %v14803_v22 = vcombine.high %v12566_v32, %v12594_v7  ;;  %v10813_v4 = vld [vmem:[%s14767_s7 + $0x4b4] ss:$8 sps:$4 sm:$0xff]  }
 0x32e   : > { %5809 = vmatprep.mubr.bf16.mxu0 %v14797_v41  ;;  %6340 = vmatpush1.bf16.msra.mxu0 %v10748_v37  ;;  %v10775_v37 = vld [vmem:[%s14767_s7 + $0x450] ss:$8 sps:$4 sm:$0xff]   ;;  %v10781_v41 = vld [vmem:[%s14767_s7 + $0x460] ss:$8 sps:$4 sm:$0xff]  }
 0x32f   : > { %6341 = vmatprep.subr.bf16.mxu0 %v10756_v15  ;;  %2867 = vmatmul.mubr.bf16.gmra.mrb[36].mxu1 %v14798_v16  ;;  %v10783_v15 = vld [vmem:[%s14767_s7 + $0x464] ss:$8 sps:$4 sm:$0xff]   ;;  %v14804_v16 = vcombine.low %v12778_v26, %v12792_v38 }
 0x330   : > { %2876 = vmatprep.mubr.bf16.mxu1 %v14799_v10  ;;  %3466 = vmatpush1.bf16.msra.mxu1 %v10757_v54  ;;  %v10772_v54 = vld [vmem:[%s14767_s7 + $0xc40] ss:$8 sps:$4 sm:$0xff]   ;;  %v14805_v10 = vcombine.high %v12816_v39, %v12826_v21  ;;  %v10786_v26 = vld [vmem:[%s14767_s7 + $0xc64] ss:$8 sps:$4 sm:$0xff]  }
 0x331   : > { %3467 = vmatprep.subr.bf16.mxu1 %v10765_v2  ;;  %v10780_v2 = vld [vmem:[%s14767_s7 + $0xc54] ss:$8 sps:$4 sm:$0xff]   ;;  %v13388_v38 = vld [vmem:[#allocation2 + $0x20] sm:$0xff] }
 0x332   : > { %6342 = vmatpush1.bf16.msra.mxu0 %v10754_v43  ;;  %v8892_v43 = vcombine.high %v13353_v35, %v13357_v48 }
 0x333   : > { %6343 = vmatprep.subr.bf16.mxu0 %v10762_v55  ;;  %v10789_v55 = vld [vmem:[%s14767_s7 + $0x474] ss:$8 sps:$4 sm:$0xff]  }
 0x334   : > { %3468 = vmatpush1.bf16.msra.mxu1 %v10763_v3  ;;  %v10778_v3 = vld [vmem:[%s14767_s7 + $0xc50] ss:$8 sps:$4 sm:$0xff]  }
 0x335   : > { %5810 = vmatmul.mubr.bf16.gmra.mrb[4].mxu0 %v14800_v9  ;;  %3469 = vmatprep.subr.bf16.mxu1 %v10771_v58  ;;  %v14806_v58 = vcombine.low %v12566_v32, %v12594_v7  ;;  %v10795_v32 = vld [vmem:[%s14767_s7 + $0x484] ss:$8 sps:$4 sm:$0xff]   ;;  %v10784_v7 = vld [vmem:[%s14767_s7 + $0xc60] ss:$8 sps:$4 sm:$0xff]   ;;  %v14807_v9 = vcombine.low %v12816_v39, %v12826_v21  ;;  %v10799_v39 = vld [vmem:[%s14767_s7 + $0x490] ss:$8 sps:$4 sm:$0xff]  }
 0x336   : > { %5819 = vmatprep.mubr.bf16.mxu0 %v14801_v36  ;;  %6344 = vmatpush1.bf16.msra.mxu0 %v10760_v51  ;;  %v13390_v51 = vld [vmem:[#allocation2 + $0x30] sm:$0xff]  ;;  %v10807_v21 = vld [vmem:[%s14767_s7 + $0x4a4] ss:$8 sps:$4 sm:$0xff]  }
 0x337   : > { %6345 = vmatprep.subr.bf16.mxu0 %v10768_v13  ;;  %2877 = vmatmul.mubr.bf16.gmra.mrb[40].mxu1 %v14802_v57  ;;  %v9484_v49 = vcombine.high %v13388_v38, %v13390_v51  ;;  %v10792_v13 = vld [vmem:[%s14767_s7 + $0xc74] ss:$8 sps:$4 sm:$0xff]   ;;  %v10802_v36 = vld [vmem:[%s14767_s7 + $0xc90] ss:$8 sps:$4 sm:$0xff]  }
 0x338   : > { %2886 = vmatprep.mubr.bf16.mxu1 %v14803_v22  ;;  %3470 = vmatpush1.bf16.msra.mxu1 %v10769_v44  ;;  %v10793_v44 = vld [vmem:[%s14767_s7 + $0x480] ss:$8 sps:$4 sm:$0xff]   ;;  %v10811_v57 = vld [vmem:[%s14767_s7 + $0x4b0] ss:$8 sps:$4 sm:$0xff]  }
 0x339   : > { %3471 = vmatprep.subr.bf16.mxu1 %v10777_v63  ;;  %v10801_v63 = vld [vmem:[%s14767_s7 + $0x494] ss:$8 sps:$4 sm:$0xff]   ;;  %v10808_v22 = vld [vmem:[%s14767_s7 + $0xca0] ss:$8 sps:$4 sm:$0xff]  }
 0x33a   : > { %6346 = vmatpush1.bf16.msra.mxu0 %v10766_v45  ;;  %v10810_v45 = vld [vmem:[%s14767_s7 + $0xca4] ss:$8 sps:$4 sm:$0xff]  }
 0x33b   : > { %6347 = vmatprep.subr.bf16.mxu0 %v10774_v0  ;;  %v10819_v0 = vld [vmem:[%s14767_s7 + $0x4c4] ss:$8 sps:$4 sm:$0xff]  }
 0x33c   : > { %3472 = vmatpush1.bf16.msra.mxu1 %v10775_v37  ;;  %v10816_v37 = vld [vmem:[%s14767_s7 + $0xcb4] ss:$8 sps:$4 sm:$0xff]  }
 0x33d   : > { %5820 = vmatmul.mubr.bf16.gmra.mrb[8].mxu0 %v14804_v16  ;;  %3473 = vmatprep.subr.bf16.mxu1 %v10783_v15  ;;  %v10817_v15 = vld [vmem:[%s14767_s7 + $0x4c0] ss:$8 sps:$4 sm:$0xff]   ;;  %v10831_v16 = vld [vmem:[%s14767_s7 + $0x4e4] ss:$8 sps:$4 sm:$0xff]  }
 0x33e   : > { %5829 = vmatprep.mubr.bf16.mxu0 %v14805_v10  ;;  %6348 = vmatpush1.bf16.msra.mxu0 %v10772_v54  ;;  %v10825_v54 = vld [vmem:[%s14767_s7 + $0x4d4] ss:$8 sps:$4 sm:$0xff]   ;;  %v2899_v10 = vld [vmem:[#allocation2 + $0x20] sm:$0xee] }
 0x33f   : > { %6349 = vmatprep.subr.bf16.mxu0 %v10780_v2  ;;  %2887 = vmatmul.mubr.bf16.gmra.mrb[44].mxu1 %v14806_v58  ;;  %v10814_v2 = vld [vmem:[%s14767_s7 + $0xcb0] ss:$8 sps:$4 sm:$0xff]   ;;  %v10828_v58 = vld [vmem:[%s14767_s7 + $0xcd4] ss:$8 sps:$4 sm:$0xff]  }
 0x340   : > { %3474 = vmatpush1.bf16.msra.mxu1 %v10781_v41  ;;  %3493 = vmatprep.mubr.bf16.mxu1 %v8892_v43  ;;  %v10822_v41 = vld [vmem:[%s14767_s7 + $0xcc4] ss:$8 sps:$4 sm:$0xff]   ;;  %v10823_v43 = vld [vmem:[%s14767_s7 + $0x4d0] ss:$8 sps:$4 sm:$0xff]  }
 0x341   : > { %3475 = vmatprep.subr.bf16.mxu1 %v10789_v55  ;;  %v10820_v55 = vld [vmem:[%s14767_s7 + $0xcc0] ss:$8 sps:$4 sm:$0xff]  }
 0x342   : > { %6350 = vmatpush1.bf16.msra.mxu0 %v10778_v3  ;;  %v2900_v3 = vld [vmem:[#allocation2 + $0x30] sm:$0xee] }
 0x343   : > { %6351 = vmatprep.subr.bf16.mxu0 %v10786_v26  ;;  %v10829_v26 = vld [vmem:[%s14767_s7 + $0x4e0] ss:$8 sps:$4 sm:$0xff]  }
 0x344   : > { %3476 = vmatpush1.bf16.msra.mxu1 %v10787_v25  ;;  %v10837_v25 = vld [vmem:[%s14767_s7 + $0x4f4] ss:$8 sps:$4 sm:$0xff]  }
 0x345   : > { %5830 = vmatmul.mubr.bf16.gmra.mrb[12].mxu0 %v14807_v9  ;;  %3477 = vmatprep.subr.bf16.mxu1 %v10795_v32  ;;  %v8877_v32 = vrot.slane %v2899_v10, 9  ;;  %v10846_v10 = vld [vmem:[%s14767_s7 + $0xd00] ss:$8 sps:$4 sm:$0xff]  }
 0x346   : > { %6352 = vmatpush1.bf16.msra.mxu0 %v10784_v7  ;;  %6371 = vmatprep.mubr.bf16.mxu0 %v9484_v49  ;;  %v11385_v7 = vld [vmem:[#allocation2 + $0x28] sm:$0x11] }
 0x347   : > { %6353 = vmatprep.subr.bf16.mxu0 %v10792_v13  ;;  %v2934_v49 = vrot.slane %v11385_v7, 5  ;;  %v8878_v13 = vrot.slane %v2900_v3, 9  ;;  %v10857_v3 = vld [vmem:[%s14767_s7 + $0x524] ss:$8 sps:$4 sm:$0xff]   ;;  %v2904_v7 = vld [vmem:[#allocation2 + $0x70] sm:$0xee] }
 0x348   : > { %3478 = vmatpush1.bf16.msra.mxu1 %v10793_v44  ;;  %v11386_v44 = vld [vmem:[#allocation2 + $0x38] sm:$0x11] }
 0x349   : > { %3479 = vmatprep.subr.bf16.mxu1 %v10801_v63  ;;  %v2938_v9 = vrot.slane %v11386_v44, 5  ;;  %v10826_v63 = vld [vmem:[%s14767_s7 + $0xcd0] ss:$8 sps:$4 sm:$0xff]  }
 0x34a   : > { %6354 = vmatpush1.bf16.msra.mxu0 %v10790_v60  ;;  %v10834_v60 = vld [vmem:[%s14767_s7 + $0xce4] ss:$8 sps:$4 sm:$0xff]  }
 0x34b   : > { %6355 = vmatprep.subr.bf16.mxu0 %v10798_v28  ;;  %v10835_v28 = vld [vmem:[%s14767_s7 + $0x4f0] ss:$8 sps:$4 sm:$0xff]  }
 0x34c   : > { %3480 = vmatpush1.bf16.msra.mxu1 %v10799_v39  ;;  %v10843_v39 = vld [vmem:[%s14767_s7 + $0x504] ss:$8 sps:$4 sm:$0xff]  }
 0x34d   : > { %3481 = vmatprep.subr.bf16.mxu1 %v10807_v21  ;;  %v2935_v21 = vsel %vm12386_vm5, %v8877_v32, %v2934_v49  ;;  %v2903_v32 = vld [vmem:[#allocation2 + $0x60] sm:$0xee] }
 0x34e   : > { %6356 = vmatpush1.bf16.msra.mxu0 %v10796_v19  ;;  %v2939_v19 = vsel %vm12386_vm5, %v8878_v13, %v2938_v9  ;;  %v10855_v13 = vld [vmem:[%s14767_s7 + $0x520] ss:$8 sps:$4 sm:$0xff]   ;;  %v10866_v9 = vld [vmem:[%s14767_s7 + $0x534] ss:$8 sps:$4 sm:$0xff]  }
 0x34f   : > { %6357 = vmatprep.subr.bf16.mxu0 %v10804_v53  ;;  %v10832_v53 = vld [vmem:[%s14767_s7 + $0xce0] ss:$8 sps:$4 sm:$0xff]   ;;  %v8893_v49 = vcombine.low %v2935_v21, %v2939_v19 }
 0x350   : > { %3482 = vmatpush1.bf16.msra.mxu1 %v10805_v17  ;;  %v2901_v17 = vld [vmem:[#allocation2 + $0x40] sm:$0xee] }
 0x351   : > { %3483 = vmatprep.subr.bf16.mxu1 %v10813_v4  ;;  %v2902_v4 = vld [vmem:[#allocation2 + $0x50] sm:$0xee] }
 0x352   : > { %6358 = vmatpush1.bf16.msra.mxu0 %v10802_v36  ;;  %v10840_v36 = vld [vmem:[%s14767_s7 + $0xcf4] ss:$8 sps:$4 sm:$0xff]  }
 0x353   : > { %6359 = vmatprep.subr.bf16.mxu0 %v10810_v45  ;;  %v8891_v45 = vcombine.low %v13353_v35, %v13357_v48  ;;  %v10838_v35 = vld [vmem:[%s14767_s7 + $0xcf0] ss:$8 sps:$4 sm:$0xff]   ;;  %v10848_v48 = vld [vmem:[%s14767_s7 + $0xd04] ss:$8 sps:$4 sm:$0xff]  }
 0x354   : > { %3484 = vmatpush1.bf16.msra.mxu1 %v10811_v57  ;;  %v10841_v57 = vld [vmem:[%s14767_s7 + $0x500] ss:$8 sps:$4 sm:$0xff]  }
 0x355   : > { %3485 = vmatprep.subr.bf16.mxu1 %v10819_v0  ;;  %v8894_v0 = vcombine.high %v2935_v21, %v2939_v19  ;;  %v10852_v21 = vld [vmem:[%s14767_s7 + $0xd10] ss:$8 sps:$4 sm:$0xff]   ;;  %v10863_v19 = vld [vmem:[%s14767_s7 + $0xd24] ss:$8 sps:$4 sm:$0xff]  }
 0x356   : > { %6360 = vmatpush1.bf16.msra.mxu0 %v10808_v22  ;;  %v10851_v22 = vld [vmem:[%s14767_s7 + $0x514] ss:$8 sps:$4 sm:$0xff]  }
 0x357   : > { %6361 = vmatprep.subr.bf16.mxu0 %v10816_v37  ;;  %v8879_v37 = vrot.slane %v2901_v17, 9 }
 0x358   : > { %3486 = vmatpush1.bf16.msra.mxu1 %v10817_v15  ;;  %v11387_v15 = vld [vmem:[#allocation2 + $0x48] sm:$0x11] }
 0x359   : > { %3487 = vmatprep.subr.bf16.mxu1 %v10825_v54  ;;  %v2942_v54 = vrot.slane %v11387_v15, 5  ;;  %v10869_v15 = vld [vmem:[%s14767_s7 + $0xd34] ss:$8 sps:$4 sm:$0xff]  }
 0x35a   : > { %6362 = vmatpush1.bf16.msra.mxu0 %v10814_v2  ;;  %v8880_v2 = vrot.slane %v2902_v4, 9  ;;  %v10864_v4 = vld [vmem:[%s14767_s7 + $0x530] ss:$8 sps:$4 sm:$0xff]  }
 0x35b   : > { %6363 = vmatprep.subr.bf16.mxu0 %v10822_v41  ;;  %v11388_v41 = vld [vmem:[#allocation2 + $0x58] sm:$0x11] }
 0x35c   : > { %3488 = vmatpush1.bf16.msra.mxu1 %v10823_v43  ;;  %v2946_v43 = vrot.slane %v11388_v41, 5 }
 0x35d   : > { %3489 = vmatprep.subr.bf16.mxu1 %v10831_v16  ;;  %v10849_v16 = vld [vmem:[%s14767_s7 + $0x510] ss:$8 sps:$4 sm:$0xff]  }
 0x35e   : > { %6364 = vmatpush1.bf16.msra.mxu0 %v10820_v55  ;;  %v9483_v55 = vcombine.low %v13388_v38, %v13390_v51  ;;  %v10854_v51 = vld [vmem:[%s14767_s7 + $0xd14] ss:$8 sps:$4 sm:$0xff]  }
 0x35f   : > { %6365 = vmatprep.subr.bf16.mxu0 %v10828_v58  ;;  %v2943_v58 = vsel %vm12386_vm5, %v8879_v37, %v2942_v54  ;;  %v10873_v37 = vld [vmem:[#allocation2 + $0x64] ss:$16 sps:$4 sm:$0xff]  }
 0x360   : > { %3490 = vmatpush1.bf16.msra.mxu1 %v10829_v26  ;;  %v2947_v26 = vsel %vm12386_vm5, %v8880_v2, %v2946_v43  ;;  %v10870_v2 = vld [vmem:[%s14767_s7 + $0x540] ss:$8 sps:$4 sm:$0xff]   ;;  %v10881_v43 = vld [vmem:[%s14767_s7 + $0x554] ss:$8 sps:$4 sm:$0xff]  }
 0x361   : > { %3491 = vmatprep.subr.bf16.mxu1 %v10837_v25  ;;  %v10858_v25 = vld [vmem:[#allocation2 + $0x44] ss:$16 sps:$4 sm:$0xff]   ;;  %v8896_v44 = vcombine.high %v2943_v58, %v2947_v26  ;;  %v8895_v54 = vcombine.low %v2943_v58, %v2947_v26  ;;  %v10876_v58 = vld [vmem:[%s14767_s7 + $0xd40] ss:$8 sps:$4 sm:$0xff]  }
 0x362   : > { %6366 = vmatpush1.bf16.msra.mxu0 %v10826_v63  ;;  %v8881_v63 = vrot.slane %v2903_v32, 9 }
 0x363   : > { %6367 = vmatprep.subr.bf16.mxu0 %v10834_v60  ;;  %v11389_v60 = vld [vmem:[#allocation2 + $0x68] sm:$0x11] }
 0x364   : > { %3492 = vmatpush1.bf16.msra.mxu1 %v10835_v28  ;;  %v2950_v28 = vrot.slane %v11389_v60, 5  ;;  %v10902_v60 = vld [vmem:[%s14767_s7 + $0x584] ss:$8 sps:$4 sm:$0xff]  }
 0x365   : > { %3534 = vmatprep.subr.bf16.mxu1 %v10843_v39  ;;  %v8882_v39 = vrot.slane %v2904_v7, 9  ;;  %v10885_v7 = vld [vmem:[%s14767_s7 + $0x560] ss:$8 sps:$4 sm:$0xff]  }
 0x366   : > { %6368 = vmatpush1.bf16.msra.mxu0 %v10832_v53  ;;  %v11390_v53 = vld [vmem:[#allocation2 + $0x78] sm:$0x11] }
 0x367   : > { %6369 = vmatprep.subr.bf16.mxu0 %v10840_v36  ;;  %3494 = vmatmul.mubr.bf16.vlgmr.msra.gmra.mrb[32].mxu1 %v8891_v45  ;;  %v2954_v17 = vrot.slane %v11390_v53, 5  ;;  %v10860_v36 = vld [vmem:[#allocation2 + $0x40] ss:$16 sps:$4 sm:$0xff]   ;;  %v10872_v45 = vld [vmem:[%s14767_s7 + $0x544] ss:$8 sps:$4 sm:$0xff]  }
 0x368   : > { %3535 = vmatpush1.bf16.msra.mxu1 %v10841_v57  ;;  %3503 = vmatprep.mubr.bf16.mxu1 %v8894_v0  ;;  %v2951_v57 = vsel %vm12386_vm5, %v8881_v63, %v2950_v28  ;;  %v10888_v28 = vld [vmem:[%s14767_s7 + $0xd60] ss:$8 sps:$4 sm:$0xff]   ;;  %v10893_v53 = vld [vmem:[#allocation3 + $0x24] ss:$16 sps:$4 sm:$0xff]  }
 0x369   : > { %3536 = vmatprep.subr.bf16.mxu1 %v10851_v22  ;;  %v2955_v0 = vsel %vm12386_vm5, %v8882_v39, %v2954_v17  ;;  %v10861_v22 = vld [vmem:[%s14767_s7 + $0xd20] ss:$8 sps:$4 sm:$0xff]   ;;  %v10899_v39 = vld [vmem:[%s14767_s7 + $0xd74] ss:$8 sps:$4 sm:$0xff]  }
 0x36a   : > { %6370 = vmatpush1.bf16.msra.mxu0 %v10838_v35  ;;  %v8898_v41 = vcombine.high %v2951_v57, %v2955_v0  ;;  %v10867_v35 = vld [vmem:[%s14767_s7 + $0xd30] ss:$8 sps:$4 sm:$0xff]   ;;  %v8897_v32 = vcombine.low %v2951_v57, %v2955_v0  ;;  %v10900_v17 = vld [vmem:[%s14767_s7 + $0x580] ss:$8 sps:$4 sm:$0xff]   ;;  %v10911_v0 = vld [vmem:[%s14767_s7 + $0xd94] ss:$8 sps:$4 sm:$0xff]  }
 0x36b   : > { %6412 = vmatprep.subr.bf16.mxu0 %v10848_v48  ;;  %v10878_v48 = vld [vmem:[%s14767_s7 + $0xd44] ss:$8 sps:$4 sm:$0xff]   ;;  %v10903_v57 = vld [vmem:[%s14767_s7 + $0xd80] ss:$8 sps:$4 sm:$0xff]  }
 0x36c   : > { %3537 = vmatpush1.bf16.msra.mxu1 %v10849_v16  ;;  %v5863_v16 = vld [vmem:[#allocation2 + $0x80] sm:$0xff] }
 0x36d   : > { %6372 = vmatmul.mubr.bf16.vlgmr.msra.gmra.mrb[0].mxu0 %v9483_v55  ;;  %3538 = vmatprep.subr.bf16.mxu1 %v10857_v3  ;;  %v10879_v55 = vld [vmem:[%s14767_s7 + $0x550] ss:$8 sps:$4 sm:$0xff]   ;;  %v10887_v3 = vld [vmem:[%s14767_s7 + $0x564] ss:$8 sps:$4 sm:$0xff]   ;;  %v9490_v26 = vcombine.high %v5863_v16, %v13257_v23  ;;  %v9489_v63 = vcombine.low %v5863_v16, %v13257_v23  ;;  %v10932_v16 = vld [vmem:[%s14767_s7 + $0x5d4] ss:$8 sps:$4 sm:$0xff]  }
 0x36e   : > { %6413 = vmatpush1.bf16.msra.mxu0 %v10846_v10  ;;  %6381 = vmatprep.mubr.bf16.mxu0 %v10858_v25  ;;  %v10875_v10 = vld [vmem:[#allocation2 + $0x60] ss:$16 sps:$4 sm:$0xff]   ;;  %v10884_v25 = vld [vmem:[%s14767_s7 + $0xd54] ss:$8 sps:$4 sm:$0xff]  }
 0x36f   : > { %6414 = vmatprep.subr.bf16.mxu0 %v10854_v51  ;;  %3504 = vmatmul.mubr.bf16.gmra.mrb[36].mxu1 %v8893_v49  ;;  %v10896_v51 = vld [vmem:[%s14767_s7 + $0x574] ss:$8 sps:$4 sm:$0xff]   ;;  %v10882_v49 = vld [vmem:[%s14767_s7 + $0xd50] ss:$8 sps:$4 sm:$0xff]  }
 0x370   : > { %3539 = vmatpush1.bf16.msra.mxu1 %v10855_v13  ;;  %3513 = vmatprep.mubr.bf16.mxu1 %v8896_v44  ;;  %v10890_v13 = vld [vmem:[%s14767_s7 + $0xd64] ss:$8 sps:$4 sm:$0xff]   ;;  %v14808_v44 = vcombine.high %v12802_v56, %v12832_v30 }
 0x371   : > { %3540 = vmatprep.subr.bf16.mxu1 %v10866_v9  ;;  %v10894_v9 = vld [vmem:[%s14767_s7 + $0x570] ss:$8 sps:$4 sm:$0xff]  }
 0x372   : > { %6415 = vmatpush1.bf16.msra.mxu0 %v10852_v21  ;;  %v10908_v21 = vld [vmem:[%s14767_s7 + $0x594] ss:$8 sps:$4 sm:$0xff]  }
 0x373   : > { %6416 = vmatprep.subr.bf16.mxu0 %v10863_v19  ;;  %v10897_v19 = vld [vmem:[%s14767_s7 + $0xd70] ss:$8 sps:$4 sm:$0xff]  }
 0x374   : > { %3541 = vmatpush1.bf16.msra.mxu1 %v10864_v4  ;;  %v10905_v4 = vld [vmem:[%s14767_s7 + $0xd84] ss:$8 sps:$4 sm:$0xff]  }
 0x375   : > { %6382 = vmatmul.mubr.bf16.gmra.mrb[4].mxu0 %v10860_v36  ;;  %3542 = vmatprep.subr.bf16.mxu1 %v10872_v45  ;;  %v10906_v36 = vld [vmem:[%s14767_s7 + $0x590] ss:$8 sps:$4 sm:$0xff]   ;;  %v10914_v45 = vld [vmem:[%s14767_s7 + $0x5a4] ss:$8 sps:$4 sm:$0xff]  }
 0x376   : > { %6417 = vmatpush1.bf16.msra.mxu0 %v10861_v22  ;;  %6391 = vmatprep.mubr.bf16.mxu0 %v10873_v37  ;;  %v10912_v22 = vld [vmem:[%s14767_s7 + $0x5a0] ss:$8 sps:$4 sm:$0xff]   ;;  %v10920_v37 = vld [vmem:[%s14767_s7 + $0x5b4] ss:$8 sps:$4 sm:$0xff]  }
 0x377   : > { %6418 = vmatprep.subr.bf16.mxu0 %v10869_v15  ;;  %3514 = vmatmul.mubr.bf16.gmra.mrb[40].mxu1 %v8895_v54  ;;  %v10909_v15 = vld [vmem:[%s14767_s7 + $0xd90] ss:$8 sps:$4 sm:$0xff]   ;;  %v10917_v54 = vld [vmem:[%s14767_s7 + $0xda4] ss:$8 sps:$4 sm:$0xff]  }
 0x378   : > { %3543 = vmatpush1.bf16.msra.mxu1 %v10870_v2  ;;  %3523 = vmatprep.mubr.bf16.mxu1 %v8898_v41  ;;  %v10918_v2 = vld [vmem:[%s14767_s7 + $0x5b0] ss:$8 sps:$4 sm:$0xff]   ;;  %v10926_v41 = vld [vmem:[%s14767_s7 + $0x5c4] ss:$8 sps:$4 sm:$0xff]  }
 0x379   : > { %3544 = vmatprep.subr.bf16.mxu1 %v10881_v43  ;;  %v10915_v43 = vld [vmem:[%s14767_s7 + $0xda0] ss:$8 sps:$4 sm:$0xff]  }
 0x37a   : > { %6419 = vmatpush1.bf16.msra.mxu0 %v10867_v35  ;;  %v10923_v35 = vld [vmem:[%s14767_s7 + $0xdb4] ss:$8 sps:$4 sm:$0xff]  }
 0x37b   : > { %6420 = vmatprep.subr.bf16.mxu0 %v10878_v48  ;;  %v10924_v48 = vld [vmem:[%s14767_s7 + $0x5c0] ss:$8 sps:$4 sm:$0xff]  }
 0x37c   : > { %3545 = vmatpush1.bf16.msra.mxu1 %v10879_v55  ;;  %v10921_v55 = vld [vmem:[%s14767_s7 + $0xdb0] ss:$8 sps:$4 sm:$0xff]  }
 0x37d   : > { %6392 = vmatmul.mubr.bf16.gmra.mrb[8].mxu0 %v10875_v10  ;;  %3546 = vmatprep.subr.bf16.mxu1 %v10887_v3  ;;  %v10929_v10 = vld [vmem:[%s14767_s7 + $0xdc4] ss:$8 sps:$4 sm:$0xff]   ;;  %v10930_v3 = vld [vmem:[%s14767_s7 + $0x5d0] ss:$8 sps:$4 sm:$0xff]  }
 0x37e   : > { %6421 = vmatpush1.bf16.msra.mxu0 %v10876_v58  ;;  %6401 = vmatprep.mubr.bf16.mxu0 %v9490_v26  ;;  %v10938_v58 = vld [vmem:[%s14767_s7 + $0x5e4] ss:$8 sps:$4 sm:$0xff]   ;;  %v10927_v26 = vld [vmem:[%s14767_s7 + $0xdc0] ss:$8 sps:$4 sm:$0xff]  }
 0x37f   : > { %6422 = vmatprep.subr.bf16.mxu0 %v10884_v25  ;;  %3524 = vmatmul.mubr.bf16.gmra.mrb[44].mxu1 %v8897_v32  ;;  %v10935_v25 = vld [vmem:[%s14767_s7 + $0xdd4] ss:$8 sps:$4 sm:$0xff]   ;;  %v10936_v32 = vld [vmem:[%s14767_s7 + $0x5e0] ss:$8 sps:$4 sm:$0xff]  }
 0x380   : > { %3547 = vmatpush1.bf16.msra.mxu1 %v10885_v7  ;;  %3566 = vmatprep.mubr.bf16.mxu1 %v14808_v44  ;;  %v10944_v7 = vld [vmem:[%s14767_s7 + $0x5f4] ss:$8 sps:$4 sm:$0xff]   ;;  %v10950_v44 = vld [vmem:[%s14767_s7 + $0x604] ss:$8 sps:$4 sm:$0xff]  }
 0x381   : > { %3548 = vmatprep.subr.bf16.mxu1 %v10896_v51  ;;  %v10933_v51 = vld [vmem:[%s14767_s7 + $0xdd0] ss:$8 sps:$4 sm:$0xff]  }
 0x382   : > { %6423 = vmatpush1.bf16.msra.mxu0 %v10882_v49  ;;  %v10941_v49 = vld [vmem:[%s14767_s7 + $0xde4] ss:$8 sps:$4 sm:$0xff]  }
 0x383   : > { %6424 = vmatprep.subr.bf16.mxu0 %v10890_v13  ;;  %v10942_v13 = vld [vmem:[%s14767_s7 + $0x5f0] ss:$8 sps:$4 sm:$0xff]  }
 0x384   : > { %3549 = vmatpush1.bf16.msra.mxu1 %v10894_v9  ;;  %v10939_v9 = vld [vmem:[%s14767_s7 + $0xde0] ss:$8 sps:$4 sm:$0xff]  }
 0x385   : > { %6402 = vmatmul.mubr.bf16.gmra.mrb[12].mxu0 %v9489_v63  ;;  %3550 = vmatprep.subr.bf16.mxu1 %v10902_v60  ;;  %v10947_v63 = vld [vmem:[%s14767_s7 + $0xdf4] ss:$8 sps:$4 sm:$0xff]   ;;  %v10948_v60 = vld [vmem:[%s14767_s7 + $0x600] ss:$8 sps:$4 sm:$0xff]  }
 0x386   : > { %6425 = vmatpush1.bf16.msra.mxu0 %v10888_v28  ;;  %6444 = vmatprep.mubr.bf16.mxu0 %v10893_v53  ;;  %v10958_v28 = vld [vmem:[%s14767_s7 + $0x614] ss:$8 sps:$4 sm:$0xff]   ;;  %v14809_v53 = vcombine.low %v12802_v56, %v12832_v30  ;;  %v10951_v56 = vld [vmem:[%s14767_s7 + $0xe00] ss:$8 sps:$4 sm:$0xff]  }
 0x387   : > { %6426 = vmatprep.subr.bf16.mxu0 %v10899_v39  ;;  %v10945_v39 = vld [vmem:[%s14767_s7 + $0xdf0] ss:$8 sps:$4 sm:$0xff]  }
 0x388   : > { %3551 = vmatpush1.bf16.msra.mxu1 %v10900_v17  ;;  %v10953_v17 = vld [vmem:[%s14767_s7 + $0xe04] ss:$8 sps:$4 sm:$0xff]   ;;  %v10891_v30 = vld [vmem:[#allocation3 + $0x20] ss:$16 sps:$4 sm:$0xff]  }
 0x389   : > { %3552 = vmatprep.subr.bf16.mxu1 %v10908_v21  ;;  %v14810_v21 = vcombine.high %v12860_v47, %v12864_v46 }
 0x38a   : > { %6427 = vmatpush1.bf16.msra.mxu0 %v10897_v19  ;;  %v10956_v19 = vld [vmem:[%s14767_s7 + $0x610] ss:$8 sps:$4 sm:$0xff]  }
 0x38b   : > { %6428 = vmatprep.subr.bf16.mxu0 %v10905_v4  ;;  %v10964_v4 = vld [vmem:[%s14767_s7 + $0x624] ss:$8 sps:$4 sm:$0xff]  }
 0x38c   : > { %3553 = vmatpush1.bf16.msra.mxu1 %v10906_v36  ;;  %v10954_v36 = vld [vmem:[#allocation3 + $0x44] ss:$16 sps:$4 sm:$0xff]  }
 0x38d   : > { %3554 = vmatprep.subr.bf16.mxu1 %v10914_v45  ;;  %v10961_v45 = vld [vmem:[%s14767_s7 + $0xe14] ss:$8 sps:$4 sm:$0xff]  }
 0x38e   : > { %6429 = vmatpush1.bf16.msra.mxu0 %v10903_v57  ;;  %v10962_v57 = vld [vmem:[%s14767_s7 + $0x620] ss:$8 sps:$4 sm:$0xff]  }
 0x38f   : > { %6430 = vmatprep.subr.bf16.mxu0 %v10911_v0  ;;  %v6501_v0 = vld [vmem:[#allocation2 + $0x20] sm:$0xff] }
 0x390   : > { %3555 = vmatpush1.bf16.msra.mxu1 %v10912_v22  ;;  %v13751_v22 = vld [vmem:[#allocation2 + $0x30] sm:$0xff] }
 0x391   : > { %3556 = vmatprep.subr.bf16.mxu1 %v10920_v37  ;;  %v10973_v37 = vld [vmem:[%s14767_s7 + $0x634] ss:$8 sps:$4 sm:$0xff]  }
 0x392   : > { %6431 = vmatpush1.bf16.msra.mxu0 %v10909_v15  ;;  %v10959_v15 = vld [vmem:[%s14767_s7 + $0xe10] ss:$8 sps:$4 sm:$0xff]  }
 0x393   : > { %6432 = vmatprep.subr.bf16.mxu0 %v10917_v54  ;;  %v14811_v54 = vcombine.low %v12860_v47, %v12864_v46  ;;  %v10971_v47 = vld [vmem:[%s14767_s7 + $0x630] ss:$8 sps:$4 sm:$0xff]   ;;  %v10979_v46 = vld [vmem:[%s14767_s7 + $0x644] ss:$8 sps:$4 sm:$0xff]  }
 0x394   : > { %3557 = vmatpush1.bf16.msra.mxu1 %v10918_v2  ;;  %v10968_v2 = vld [vmem:[%s14767_s7 + $0xe24] ss:$8 sps:$4 sm:$0xff]  }
 0x395   : > { %3558 = vmatprep.subr.bf16.mxu1 %v10926_v41  ;;  %v6518_v41 = vshrl.u32 %v6501_v0, 16 }
 0x396   : > { %6433 = vmatpush1.bf16.msra.mxu0 %v10915_v43  ;;  %v6521_v43 = vshll.u32 %v6501_v0, 16 }
 0x397   : > { %6434 = vmatprep.subr.bf16.mxu0 %v10923_v35  ;;  %v6532_v35 = vshrl.u32 %v13751_v22, 16 }
 0x398   : > { %3559 = vmatpush1.bf16.msra.mxu1 %v10924_v48  ;;  %v6535_v48 = vshll.u32 %v13751_v22, 16 }
 0x399   : > { %3560 = vmatprep.subr.bf16.mxu1 %v10932_v16  ;;  %v14812_v16 = vcombine.high %v12876_v24, %v12880_v52 }
 0x39a   : > { %6435 = vmatpush1.bf16.msra.mxu0 %v10921_v55  ;;  %v10965_v55 = vld [vmem:[#allocation3 + $0x40] ss:$16 sps:$4 sm:$0xff]  }
 0x39b   : > { %6436 = vmatprep.subr.bf16.mxu0 %v10929_v10  ;;  %v10966_v10 = vld [vmem:[%s14767_s7 + $0xe20] ss:$8 sps:$4 sm:$0xff]  }
 0x39c   : > { %3561 = vmatpush1.bf16.msra.mxu1 %v10930_v3  ;;  %v10969_v3 = vld [vmem:[#allocation3 + $0x64] ss:$16 sps:$4 sm:$0xff]  }
 0x39d   : > { %3562 = vmatprep.subr.bf16.mxu1 %v10938_v58  ;;  %v10976_v58 = vld [vmem:[%s14767_s7 + $0xe34] ss:$8 sps:$4 sm:$0xff]  }
 0x39e   : > { %6437 = vmatpush1.bf16.msra.mxu0 %v10927_v26  ;;  %v6520_v26 = vrot.slane %v6518_v41, 4  ;;  %v10998_v41 = vld [vmem:[%s14767_s7 + $0x674] ss:$8 sps:$4 sm:$0xff]  }
 0x39f   : > { %6438 = vmatprep.subr.bf16.mxu0 %v10935_v25  ;;  %v6523_v25 = vrot.slane %v6521_v43, 5  ;;  %v10987_v43 = vld [vmem:[%s14767_s7 + $0xe50] ss:$8 sps:$4 sm:$0xff]  }
 0x3a0   : > { %3563 = vmatpush1.bf16.msra.mxu1 %v10936_v32  ;;  %v6534_v32 = vrot.slane %v6532_v35, 4  ;;  %v14815_v35 = vcombine.low %v12901_v27, %v12905_v20 }
 0x3a1   : > { %3564 = vmatprep.subr.bf16.mxu1 %v10944_v7  ;;  %v6537_v7 = vrot.slane %v6535_v48, 5  ;;  %v10995_v48 = vld [vmem:[%s14767_s7 + $0xe64] ss:$8 sps:$4 sm:$0xff]  }
 0x3a2   : > { %6439 = vmatpush1.bf16.msra.mxu0 %v10933_v51  ;;  %v10977_v51 = vld [vmem:[%s14767_s7 + $0x640] ss:$8 sps:$4 sm:$0xff]  }
 0x3a3   : > { %6440 = vmatprep.subr.bf16.mxu0 %v10941_v49  ;;  %v13785_v49 = vld [vmem:[#allocation2 + $0x28] sm:$0x11] }
 0x3a4   : > { %3565 = vmatpush1.bf16.msra.mxu1 %v10942_v13  ;;  %v13787_v13 = vld [vmem:[#allocation2 + $0x38] sm:$0x11]  ;;  %v7394_v62 = vrot.slane %v13785_v49, 5 }
 0x3a5   : > { %4104 = vmatprep.subr.bf16.mxu1 %v10950_v44  ;;  %v10986_v44 = vld [vmem:[%s14767_s7 + $0x654] ss:$8 sps:$4 sm:$0xff]  }
 0x3a6   : > { %6441 = vmatpush1.bf16.msra.mxu0 %v10939_v9  ;;  %v10974_v9 = vld [vmem:[%s14767_s7 + $0xe30] ss:$8 sps:$4 sm:$0xff]  }
 0x3a7   : > { %6442 = vmatprep.subr.bf16.mxu0 %v10947_v63  ;;  %3567 = vmatmul.mubr.bf16.vlgmr.msra.gmra.mrb[32].mxu1 %v14809_v53  ;;  %v14813_v63 = vcombine.low %v12876_v24, %v12880_v52  ;;  %v6538_v53 = vor.u32 %v6537_v7, %v6534_v32  ;;  %v10984_v24 = vld [vmem:[%s14767_s7 + $0x650] ss:$8 sps:$4 sm:$0xff]   ;;  %v5872_v52 = vld [vmem:[#allocation3 + $0x80] sm:$0xff] }
 0x3a8   : > { %3576 = vmatprep.mubr.bf16.mxu1 %v14810_v21  ;;  %4105 = vmatpush1.bf16.msra.mxu1 %v10948_v60  ;;  %v10983_v60 = vld [vmem:[%s14767_s7 + $0xe44] ss:$8 sps:$4 sm:$0xff]   ;;  %v14814_v21 = vcombine.high %v12901_v27, %v12905_v20  ;;  %v10993_v20 = vld [vmem:[%s14767_s7 + $0xe60] ss:$8 sps:$4 sm:$0xff]   ;;  %v11008_v32 = vld [vmem:[%s14767_s7 + $0x690] ss:$8 sps:$4 sm:$0xff]  }
 0x3a9   : > { %4106 = vmatprep.subr.bf16.mxu1 %v10958_v28  ;;  %v6524_v28 = vor.u32 %v6523_v25, %v6520_v26  ;;  %v6539_v0 = vrot.slane %v6538_v53, 4  ;;  %v11004_v27 = vld [vmem:[%s14767_s7 + $0x684] ss:$8 sps:$4 sm:$0xff]   ;;  %v11010_v26 = vld [vmem:[%s14767_s7 + $0x694] ss:$8 sps:$4 sm:$0xff]  }
 0x3aa   : > { %6443 = vmatpush1.bf16.msra.mxu0 %v10945_v39  ;;  %v6527_v39 = vshll.u32 %v13785_v49, 16  ;;  %v11007_v25 = vld [vmem:[%s14767_s7 + $0xe84] ss:$8 sps:$4 sm:$0xff]   ;;  %v11176_v49 = vld [vmem:[%s14767_s7 + $0x1050] ss:$8 sps:$4 sm:$0xff]  }
 0x3ab   : > { %7206 = vmatprep.subr.bf16.mxu0 %v10953_v17  ;;  %v6541_v17 = vshll.u32 %v13787_v13, 16  ;;  %v11016_v7 = vld [vmem:[%s14767_s7 + $0x6a4] ss:$8 sps:$4 sm:$0xff]  }
 0x3ac   : > { %4107 = vmatpush1.bf16.msra.mxu1 %v10956_v19  ;;  %v10992_v19 = vld [vmem:[%s14767_s7 + $0x664] ss:$8 sps:$4 sm:$0xff]  }
 0x3ad   : > { %6445 = vmatmul.mubr.bf16.vlgmr.msra.gmra.mrb[0].mxu0 %v10891_v30  ;;  %4108 = vmatprep.subr.bf16.mxu1 %v10964_v4  ;;  %v13812_v4 = vld [vmem:[#allocation2 + $0x10] sm:$0xff]  ;;  %v10981_v30 = vld [vmem:[%s14767_s7 + $0xe40] ss:$8 sps:$4 sm:$0xff]   ;;  %v11028_v53 = vld [vmem:[%s14767_s7 + $0x6c4] ss:$8 sps:$4 sm:$0xff]  }
 0x3ae   : > { %6454 = vmatprep.mubr.bf16.mxu0 %v10954_v36  ;;  %7207 = vmatpush1.bf16.msra.mxu0 %v10951_v56  ;;  %v10980_v56 = vld [vmem:[#allocation3 + $0x60] ss:$16 sps:$4 sm:$0xff]   ;;  %v10989_v36 = vld [vmem:[%s14767_s7 + $0xe54] ss:$8 sps:$4 sm:$0xff]  }
 0x3af   : > { %7208 = vmatprep.subr.bf16.mxu0 %v10961_v45  ;;  %3577 = vmatmul.mubr.bf16.gmra.mrb[36].mxu1 %v14811_v54  ;;  %v6525_v45 = vrot.slane %v6524_v28, 4  ;;  %v10990_v54 = vld [vmem:[%s14767_s7 + $0x660] ss:$8 sps:$4 sm:$0xff]   ;;  %v11019_v28 = vld [vmem:[%s14767_s7 + $0xea4] ss:$8 sps:$4 sm:$0xff]  }
 0x3b0   : > { %3586 = vmatprep.mubr.bf16.mxu1 %v14812_v16  ;;  %4109 = vmatpush1.bf16.msra.mxu1 %v10962_v57  ;;  %v6529_v57 = vrot.slane %v6527_v39, 5  ;;  %v11020_v39 = vld [vmem:[%s14767_s7 + $0x6b0] ss:$8 sps:$4 sm:$0xff]  }
 0x3b1   : > { %4110 = vmatprep.subr.bf16.mxu1 %v10973_v37  ;;  %v6543_v37 = vrot.slane %v6541_v17, 5  ;;  %v11017_v17 = vld [vmem:[%s14767_s7 + $0xea0] ss:$8 sps:$4 sm:$0xff]  }
 0x3b2   : > { %7209 = vmatpush1.bf16.msra.mxu0 %v10959_v15  ;;  %v9498_v15 = vcombine.high %v5872_v52, %v13257_v23  ;;  %v13840_v16 = vsel %vm12001_vm2, %v6525_v45, %v6529_v57  ;;  %v11031_v57 = vld [vmem:[%s14767_s7 + $0xec4] ss:$8 sps:$4 sm:$0xff]  }
 0x3b3   : > { %7210 = vmatprep.subr.bf16.mxu0 %v10968_v2  ;;  %v9036_v2 = vcombine.high %v13812_v4, %v13388_v38 }
 0x3b4   : > { %4111 = vmatpush1.bf16.msra.mxu1 %v10971_v47  ;;  %v13844_v47 = vsel %vm12001_vm2, %v6539_v0, %v6543_v37 }
 0x3b5   : > { %6455 = vmatmul.mubr.bf16.gmra.mrb[4].mxu0 %v10965_v55  ;;  %4112 = vmatprep.subr.bf16.mxu1 %v10979_v46  ;;  %v10996_v46 = vld [vmem:[%s14767_s7 + $0x670] ss:$8 sps:$4 sm:$0xff]   ;;  %v9628_v55 = vcombine.high %v13840_v16, %v13844_v47 }
 0x3b6   : > { %6464 = vmatprep.mubr.bf16.mxu0 %v10969_v3  ;;  %7211 = vmatpush1.bf16.msra.mxu0 %v10966_v10  ;;  %v9497_v10 = vcombine.low %v5872_v52, %v13257_v23  ;;  %v11001_v3 = vld [vmem:[%s14767_s7 + $0xe74] ss:$8 sps:$4 sm:$0xff]   ;;  %v10999_v23 = vld [vmem:[%s14767_s7 + $0xe70] ss:$8 sps:$4 sm:$0xff]   ;;  %v11026_v52 = vld [vmem:[%s14767_s7 + $0x6c0] ss:$8 sps:$4 sm:$0xff]  }
 0x3b7   : > { %7212 = vmatprep.subr.bf16.mxu0 %v10976_v58  ;;  %3587 = vmatmul.mubr.bf16.gmra.mrb[40].mxu1 %v14813_v63  ;;  %v11002_v58 = vld [vmem:[%s14767_s7 + $0x680] ss:$8 sps:$4 sm:$0xff]   ;;  %v11022_v63 = vld [vmem:[%s14767_s7 + $0x6b4] ss:$8 sps:$4 sm:$0xff]  }
 0x3b8   : > { %3596 = vmatprep.mubr.bf16.mxu1 %v14814_v21  ;;  %4113 = vmatpush1.bf16.msra.mxu1 %v10977_v51  ;;  %v11005_v51 = vld [vmem:[%s14767_s7 + $0xe80] ss:$8 sps:$4 sm:$0xff]   ;;  %v11025_v21 = vld [vmem:[%s14767_s7 + $0xeb4] ss:$8 sps:$4 sm:$0xff]  }
 0x3b9   : > { %4114 = vmatprep.subr.bf16.mxu1 %v10986_v44  ;;  %v11013_v44 = vld [vmem:[%s14767_s7 + $0xe94] ss:$8 sps:$4 sm:$0xff]  }
 0x3ba   : > { %7213 = vmatpush1.bf16.msra.mxu0 %v10974_v9  ;;  %v11014_v9 = vld [vmem:[%s14767_s7 + $0x6a0] ss:$8 sps:$4 sm:$0xff]  }
 0x3bb   : > { %7214 = vmatprep.subr.bf16.mxu0 %v10983_v60  ;;  %v11011_v60 = vld [vmem:[%s14767_s7 + $0xe90] ss:$8 sps:$4 sm:$0xff]  }
 0x3bc   : > { %4115 = vmatpush1.bf16.msra.mxu1 %v10984_v24  ;;  %v13909_v24 = vld [vmem:[#allocation2 + $0x40] sm:$0xff] }
 0x3bd   : > { %6465 = vmatmul.mubr.bf16.gmra.mrb[8].mxu0 %v10980_v56  ;;  %4116 = vmatprep.subr.bf16.mxu1 %v10992_v19  ;;  %v13914_v19 = vld [vmem:[#allocation2 + $0x50] sm:$0xff]  ;;  %v6549_v45 = vshll.u32 %v13909_v24, 16 }
 0x3be   : > { %6474 = vmatprep.mubr.bf16.mxu0 %v9498_v15  ;;  %7215 = vmatpush1.bf16.msra.mxu0 %v10981_v30  ;;  %v11034_v56 = vld [vmem:[%s14767_s7 + $0x6d4] ss:$8 sps:$4 sm:$0xff]   ;;  %v11023_v30 = vld [vmem:[%s14767_s7 + $0xeb0] ss:$8 sps:$4 sm:$0xff]   ;;  %v6560_v0 = vshrl.u32 %v13914_v19, 16  ;;  %v6563_v37 = vshll.u32 %v13914_v19, 16 }
 0x3bf   : > { %7216 = vmatprep.subr.bf16.mxu0 %v10989_v36  ;;  %3597 = vmatmul.mubr.bf16.gmra.mrb[44].mxu1 %v14815_v35  ;;  %v6546_v36 = vshrl.u32 %v13909_v24, 16  ;;  %v11032_v15 = vld [vmem:[%s14767_s7 + $0x6d0] ss:$8 sps:$4 sm:$0xff]   ;;  %v6551_v35 = vrot.slane %v6549_v45, 5 }
 0x3c0   : > { %4117 = vmatpush1.bf16.msra.mxu1 %v10990_v54  ;;  %4136 = vmatprep.mubr.bf16.mxu1 %v9036_v2  ;;  %v11040_v54 = vld [vmem:[%s14767_s7 + $0x6e4] ss:$8 sps:$4 sm:$0xff]   ;;  %v11029_v2 = vld [vmem:[%s14767_s7 + $0xec0] ss:$8 sps:$4 sm:$0xff]  }
 0x3c1   : > { %4118 = vmatprep.subr.bf16.mxu1 %v10998_v41  ;;  %v11037_v41 = vld [vmem:[%s14767_s7 + $0xed4] ss:$8 sps:$4 sm:$0xff]  }
 0x3c2   : > { %7217 = vmatpush1.bf16.msra.mxu0 %v10987_v43  ;;  %v6548_v43 = vrot.slane %v6546_v36, 4 }
 0x3c3   : > { %7218 = vmatprep.subr.bf16.mxu0 %v10995_v48  ;;  %v13941_v48 = vld [vmem:[#allocation2 + $0x48] sm:$0x11] }
 0x3c4   : > { %4119 = vmatpush1.bf16.msra.mxu1 %v10996_v46  ;;  %v6562_v46 = vrot.slane %v6560_v0, 4 }
 0x3c5   : > { %6475 = vmatmul.mubr.bf16.gmra.mrb[12].mxu0 %v9497_v10  ;;  %4120 = vmatprep.subr.bf16.mxu1 %v11004_v27  ;;  %v6565_v27 = vrot.slane %v6563_v37, 5  ;;  %v13948_v10 = vld [vmem:[#allocation2 + $0x58] sm:$0x11] }
 0x3c6   : > { %7219 = vmatpush1.bf16.msra.mxu0 %v10993_v20  ;;  %7238 = vmatprep.mubr.bf16.mxu0 %v9628_v55  ;;  %v13943_v20 = vld [vmem:[#allocation2 + $0x60] sm:$0xff]  ;;  %v13983_v37 = vld [vmem:[#allocation2 + $0x78] sm:$0x11] }
 0x3c7   : > { %7220 = vmatprep.subr.bf16.mxu0 %v11001_v3  ;;  %v11038_v55 = vld [vmem:[%s14767_s7 + $0x6e0] ss:$8 sps:$4 sm:$0xff]   ;;  %v13950_v3 = vld [vmem:[#allocation2 + $0x70] sm:$0xff] }
 0x3c8   : > { %4121 = vmatpush1.bf16.msra.mxu1 %v11002_v58  ;;  %v11046_v58 = vld [vmem:[%s14767_s7 + $0x6f4] ss:$8 sps:$4 sm:$0xff]  }
 0x3c9   : > { %4122 = vmatprep.subr.bf16.mxu1 %v11010_v26  ;;  %v11035_v26 = vld [vmem:[%s14767_s7 + $0xed0] ss:$8 sps:$4 sm:$0xff]  }
 0x3ca   : > { %7221 = vmatpush1.bf16.msra.mxu0 %v10999_v23  ;;  %v6552_v23 = vor.u32 %v6551_v35, %v6548_v43  ;;  %v11047_v43 = vld [vmem:[%s14767_s7 + $0xef0] ss:$8 sps:$4 sm:$0xff]  }
 0x3cb   : > { %7222 = vmatprep.subr.bf16.mxu0 %v11007_v25  ;;  %v6555_v25 = vshll.u32 %v13941_v48, 16 }
 0x3cc   : > { %4123 = vmatpush1.bf16.msra.mxu1 %v11008_v32  ;;  %v6574_v32 = vshrl.u32 %v13943_v20, 16 }
 0x3cd   : > { %4124 = vmatprep.subr.bf16.mxu1 %v11016_v7  ;;  %v6577_v7 = vshll.u32 %v13943_v20, 16 }
 0x3ce   : > { %7223 = vmatpush1.bf16.msra.mxu0 %v11005_v51  ;;  %v11043_v51 = vld [vmem:[%s14767_s7 + $0xee4] ss:$8 sps:$4 sm:$0xff]   ;;  %v6576_v36 = vrot.slane %v6574_v32, 4 }
 0x3cf   : > { %7224 = vmatprep.subr.bf16.mxu0 %v11013_v44  ;;  %v6566_v44 = vor.u32 %v6565_v27, %v6562_v46  ;;  %v6579_v45 = vrot.slane %v6577_v7, 5  ;;  %v11058_v7 = vld [vmem:[%s14767_s7 + $0x710] ss:$8 sps:$4 sm:$0xff]  }
 0x3d0   : > { %4125 = vmatpush1.bf16.msra.mxu1 %v11014_v9  ;;  %v6569_v9 = vshll.u32 %v13948_v10, 16 }
 0x3d1   : > { %4126 = vmatprep.subr.bf16.mxu1 %v11022_v63  ;;  %v6588_v63 = vshrl.u32 %v13950_v3, 16  ;;  %v6580_v46 = vor.u32 %v6579_v45, %v6576_v36  ;;  %v11066_v45 = vld [vmem:[%s14767_s7 + $0x720] ss:$8 sps:$4 sm:$0xff]  }
 0x3d2   : > { %7225 = vmatpush1.bf16.msra.mxu0 %v11011_v60  ;;  %v6591_v60 = vshll.u32 %v13950_v3, 16  ;;  %v6571_v0 = vrot.slane %v6569_v9, 5  ;;  %v14021_v9 = vld [vmem:[#allocation2] sm:$0xff] }
 0x3d3   : > { %7226 = vmatprep.subr.bf16.mxu0 %v11019_v28  ;;  %v11044_v28 = vld [vmem:[%s14767_s7 + $0x6f0] ss:$8 sps:$4 sm:$0xff]  }
 0x3d4   : > { %4127 = vmatpush1.bf16.msra.mxu1 %v11020_v39  ;;  %v11041_v39 = vld [vmem:[%s14767_s7 + $0xee0] ss:$8 sps:$4 sm:$0xff]  }
 0x3d5   : > { %4128 = vmatprep.subr.bf16.mxu1 %v11028_v53  ;;  %v11049_v53 = vld [vmem:[%s14767_s7 + $0xef4] ss:$8 sps:$4 sm:$0xff]  }
 0x3d6   : > { %7227 = vmatpush1.bf16.msra.mxu0 %v11017_v17  ;;  %v9035_v17 = vcombine.low %v13812_v4, %v13388_v38  ;;  %v11052_v38 = vld [vmem:[%s14767_s7 + $0x700] ss:$8 sps:$4 sm:$0xff]   ;;  %v9038_v4 = vcombine.high %v13751_v22, %v13909_v24 }
 0x3d7   : > { %7228 = vmatprep.subr.bf16.mxu0 %v11025_v21  ;;  %v11054_v21 = vld [vmem:[%s14767_s7 + $0x704] ss:$8 sps:$4 sm:$0xff]  }
 0x3d8   : > { %4129 = vmatpush1.bf16.msra.mxu1 %v11026_v52  ;;  %v6553_v52 = vrot.slane %v6552_v23, 4 }
 0x3d9   : > { %4130 = vmatprep.subr.bf16.mxu1 %v11034_v56  ;;  %v6557_v56 = vrot.slane %v6555_v25, 5 }
 0x3da   : > { %7229 = vmatpush1.bf16.msra.mxu0 %v11023_v30  ;;  %v13981_v30 = vld [vmem:[#allocation2 + $0x68] sm:$0x11] }
 0x3db   : > { %7230 = vmatprep.subr.bf16.mxu0 %v11031_v57  ;;  %v6567_v57 = vrot.slane %v6566_v44, 4  ;;  %v14000_v35 = vsel %vm12001_vm2, %v6553_v52, %v6557_v56  ;;  %v6583_v27 = vshll.u32 %v13981_v30, 16  ;;  %v11068_v44 = vld [vmem:[%s14767_s7 + $0x724] ss:$8 sps:$4 sm:$0xff]  }
 0x3dc   : > { %4131 = vmatpush1.bf16.msra.mxu1 %v11032_v15  ;;  %v6590_v15 = vrot.slane %v6588_v63, 4  ;;  %v6616_v63 = vshrl.u32 %v14021_v9, 16 }
 0x3dd   : > { %4132 = vmatprep.subr.bf16.mxu1 %v11040_v54  ;;  %v6593_v54 = vrot.slane %v6591_v60, 5  ;;  %v6619_v60 = vshll.u32 %v14021_v9, 16 }
 0x3de   : > { %7231 = vmatpush1.bf16.msra.mxu0 %v11029_v2  ;;  %v13990_v2 = vld [vmem:[#allocation2 + $0x80] sm:$0xff] }
 0x3df   : > { %7232 = vmatprep.subr.bf16.mxu0 %v11037_v41  ;;  %v11060_v41 = vld [vmem:[%s14767_s7 + $0x714] ss:$8 sps:$4 sm:$0xff]   ;;  %v6594_v23 = vor.u32 %v6593_v54, %v6590_v15  ;;  %v6602_v25 = vshrl.u32 %v13990_v2, 16  ;;  %v6605_v32 = vshll.u32 %v13990_v2, 16  ;;  %v6618_v15 = vrot.slane %v6616_v63, 4 }
 0x3e0   : > { %4133 = vmatpush1.bf16.msra.mxu1 %v11038_v55  ;;  %v6597_v55 = vshll.u32 %v13983_v37, 16  ;;  %v6621_v54 = vrot.slane %v6619_v60, 5  ;;  %v11069_v60 = vld [vmem:[%s14767_s7 + $0xf20] ss:$8 sps:$4 sm:$0xff]  }
 0x3e1   : > { %4134 = vmatprep.subr.bf16.mxu1 %v11046_v58  ;;  %v11057_v58 = vld [vmem:[%s14767_s7 + $0xf04] ss:$8 sps:$4 sm:$0xff]   ;;  %v6604_v56 = vrot.slane %v6602_v25, 4  ;;  %v6607_v36 = vrot.slane %v6605_v32, 5  ;;  %v11072_v25 = vld [vmem:[%s14767_s7 + $0x730] ss:$8 sps:$4 sm:$0xff]  }
 0x3e2   : > { %7233 = vmatpush1.bf16.msra.mxu0 %v11035_v26  ;;  %v14009_v26 = vsel %vm12001_vm2, %v6567_v57, %v6571_v0  ;;  %v6599_v52 = vrot.slane %v6597_v55, 5  ;;  %v14042_v57 = vld [vmem:[#allocation2 + $0x98] sm:$0x11] }
 0x3e3   : > { %7234 = vmatprep.subr.bf16.mxu0 %v11043_v51  ;;  %v9627_v51 = vcombine.low %v13840_v16, %v13844_v47  ;;  %v9630_v16 = vcombine.high %v14000_v35, %v14009_v26  ;;  %v6581_v47 = vrot.slane %v6580_v46, 4  ;;  %v11074_v0 = vld [vmem:[%s14767_s7 + $0x734] ss:$8 sps:$4 sm:$0xff]   ;;  %v6608_v55 = vor.u32 %v6607_v36, %v6604_v56 }
 0x3e4   : > { %4135 = vmatpush1.bf16.msra.mxu1 %v11044_v28  ;;  %v11055_v28 = vld [vmem:[%s14767_s7 + $0xf00] ss:$8 sps:$4 sm:$0xff]   ;;  %v9629_v32 = vcombine.low %v14000_v35, %v14009_v26  ;;  %v11077_v26 = vld [vmem:[%s14767_s7 + $0xf34] ss:$8 sps:$4 sm:$0xff]  }
 0x3e5   : > { %4177 = vmatprep.subr.bf16.mxu1 %v11054_v21  ;;  %v6595_v21 = vrot.slane %v6594_v23, 4  ;;  %v6625_v23 = vshll.u32 %v14042_v57, 16  ;;  %v11088_v56 = vld [vmem:[%s14767_s7 + $0x754] ss:$8 sps:$4 sm:$0xff]  }
 0x3e6   : > { %7235 = vmatpush1.bf16.msra.mxu0 %v11041_v39  ;;  %v9037_v39 = vcombine.low %v13751_v22, %v13909_v24  ;;  %v9040_v22 = vcombine.high %v13914_v19, %v13943_v20  ;;  %v14040_v24 = vld [vmem:[#allocation2 + $0x88] sm:$0x11] }
 0x3e7   : > { %7236 = vmatprep.subr.bf16.mxu0 %v11049_v53  ;;  %4137 = vmatmul.mubr.bf16.vlgmr.msra.gmra.mrb[32].mxu1 %v9035_v17  ;;  %v6585_v53 = vrot.slane %v6583_v27, 5  ;;  %v11063_v17 = vld [vmem:[%s14767_s7 + $0xf14] ss:$8 sps:$4 sm:$0xff]   ;;  %v6600_v46 = vsel %vm12001_vm2, %v6595_v21, %v6599_v52  ;;  %v14061_v27 = vld [vmem:[#allocation3 + $0x20] sm:$0xff]  ;;  %v9042_v52 = vcombine.high %v13950_v3, %v13990_v2 }
 0x3e8   : > { %4178 = vmatpush1.bf16.msra.mxu1 %v11052_v38  ;;  %4146 = vmatprep.mubr.bf16.mxu1 %v9038_v4  ;;  %v11061_v38 = vld [vmem:[%s14767_s7 + $0xf10] ss:$8 sps:$4 sm:$0xff]   ;;  %v6649_v35 = vshll.u32 %v14061_v27, 16  ;;  %v11080_v21 = vld [vmem:[%s14767_s7 + $0x740] ss:$8 sps:$4 sm:$0xff]  }
 0x3e9   : > { %4179 = vmatprep.subr.bf16.mxu1 %v11060_v41  ;;  %v14052_v4 = vsel %vm12001_vm2, %v6581_v47, %v6585_v53  ;;  %v14054_v41 = vld [vmem:[#allocation3 + $0x30] sm:$0xff]  ;;  %v6609_v47 = vrot.slane %v6608_v55, 4 }
 0x3ea   : > { %7237 = vmatpush1.bf16.msra.mxu0 %v11047_v43  ;;  %v11071_v43 = vld [vmem:[%s14767_s7 + $0xf24] ss:$8 sps:$4 sm:$0xff]   ;;  %v6663_v63 = vshll.u32 %v14054_v41, 16  ;;  %v9631_v55 = vcombine.low %v14052_v4, %v6600_v46 }
 0x3eb   : > { %7279 = vmatprep.subr.bf16.mxu0 %v11057_v58  ;;  %v6611_v58 = vshll.u32 %v14040_v24, 16 }
 0x3ec   : > { %4180 = vmatpush1.bf16.msra.mxu1 %v11058_v7  ;;  %v11082_v7 = vld [vmem:[%s14767_s7 + $0x744] ss:$8 sps:$4 sm:$0xff]  }
 0x3ed   : > { %7239 = vmatmul.mubr.bf16.vlgmr.msra.gmra.mrb[0].mxu0 %v9627_v51  ;;  %4181 = vmatprep.subr.bf16.mxu1 %v11068_v44  ;;  %v6622_v51 = vor.u32 %v6621_v54, %v6618_v15  ;;  %v6660_v44 = vshrl.u32 %v14054_v41, 16  ;;  %v6613_v53 = vrot.slane %v6611_v58, 5  ;;  %v11096_v58 = vld [vmem:[%s14767_s7 + $0x764] ss:$8 sps:$4 sm:$0xff]  }
 0x3ee   : > { %7280 = vmatpush1.bf16.msra.mxu0 %v11055_v28  ;;  %7248 = vmatprep.mubr.bf16.mxu0 %v9630_v16  ;;  %v9632_v28 = vcombine.high %v14052_v4, %v6600_v46  ;;  %v9039_v16 = vcombine.low %v13914_v19, %v13943_v20  ;;  %v6665_v20 = vrot.slane %v6663_v63, 5  ;;  %v9041_v4 = vcombine.low %v13950_v3, %v13990_v2  ;;  %v11094_v63 = vld [vmem:[%s14767_s7 + $0x760] ss:$8 sps:$4 sm:$0xff]   ;;  %v11089_v3 = vld [vmem:[%s14767_s7 + $0xf50] ss:$8 sps:$4 sm:$0xff]  }
 0x3ef   : > { %7281 = vmatprep.subr.bf16.mxu0 %v11063_v17  ;;  %4147 = vmatmul.mubr.bf16.gmra.mrb[36].mxu1 %v9037_v39  ;;  %v6646_v39 = vshrl.u32 %v14061_v27, 16  ;;  %v6627_v17 = vrot.slane %v6625_v23, 5  ;;  %v14094_v36 = vrot.slane %v6622_v51, 4  ;;  %v6662_v19 = vrot.slane %v6660_v44, 4  ;;  %v11091_v44 = vld [vmem:[%s14767_s7 + $0xf54] ss:$8 sps:$4 sm:$0xff]  }
 0x3f0   : > { %4182 = vmatpush1.bf16.msra.mxu1 %v11066_v45  ;;  %4156 = vmatprep.mubr.bf16.mxu1 %v9040_v22  ;;  %v11075_v45 = vld [vmem:[%s14767_s7 + $0xf30] ss:$8 sps:$4 sm:$0xff]   ;;  %v11085_v22 = vld [vmem:[%s14767_s7 + $0xf44] ss:$8 sps:$4 sm:$0xff]  }
 0x3f1   : > { %4183 = vmatprep.subr.bf16.mxu1 %v11074_v0  ;;  %v6614_v0 = vsel %vm12001_vm2, %v6609_v47, %v6613_v53  ;;  %v6628_v15 = vsel %vm12001_vm2, %v14094_v36, %v6627_v17  ;;  %v6648_v54 = vrot.slane %v6646_v39, 4  ;;  %v6666_v23 = vor.u32 %v6665_v20, %v6662_v19  ;;  %v11101_v47 = vld [vmem:[%s14767_s7 + $0xf64] ss:$8 sps:$4 sm:$0xff]   ;;  %v11102_v17 = vld [vmem:[%s14767_s7 + $0x770] ss:$8 sps:$4 sm:$0xff]  }
 0x3f2   : > { %7282 = vmatpush1.bf16.msra.mxu0 %v11061_v38  ;;  %v6651_v38 = vrot.slane %v6649_v35, 5  ;;  %v9634_v51 = vcombine.high %v6614_v0, %v6628_v15  ;;  %v11110_v19 = vld [vmem:[%s14767_s7 + $0x784] ss:$8 sps:$4 sm:$0xff]   ;;  %v11099_v20 = vld [vmem:[%s14767_s7 + $0xf60] ss:$8 sps:$4 sm:$0xff]  }
 0x3f3   : > { %7283 = vmatprep.subr.bf16.mxu0 %v11071_v43  ;;  %v11086_v43 = vld [vmem:[%s14767_s7 + $0x750] ss:$8 sps:$4 sm:$0xff]   ;;  %v6667_v35 = vrot.slane %v6666_v23, 4  ;;  %v11111_v23 = vld [vmem:[%s14767_s7 + $0xf80] ss:$8 sps:$4 sm:$0xff]  }
 0x3f4   : > { %4184 = vmatpush1.bf16.msra.mxu1 %v11072_v25  ;;  %v11392_v25 = vld [vmem:[#allocation3 + $0x38] sm:$0x11]  ;;  %v6652_v46 = vor.u32 %v6651_v38, %v6648_v54 }
 0x3f5   : > { %7249 = vmatmul.mubr.bf16.gmra.mrb[4].mxu0 %v9629_v32  ;;  %4185 = vmatprep.subr.bf16.mxu1 %v11082_v7  ;;  %v6669_v32 = vshll.u32 %v11392_v25, 16  ;;  %v11083_v7 = vld [vmem:[%s14767_s7 + $0xf40] ss:$8 sps:$4 sm:$0xff]   ;;  %v11116_v54 = vld [vmem:[%s14767_s7 + $0x794] ss:$8 sps:$4 sm:$0xff]  }
 0x3f6   : > { %7284 = vmatpush1.bf16.msra.mxu0 %v11069_v60  ;;  %7258 = vmatprep.mubr.bf16.mxu0 %v9632_v28  ;;  %v14125_v60 = vld [vmem:[#allocation3 + $0x10] sm:$0xff]  ;;  %v11393_v28 = vld [vmem:[#allocation3 + $0x28] sm:$0x11]  ;;  %v6653_v53 = vrot.slane %v6652_v46, 4 }
 0x3f7   : > { %7285 = vmatprep.subr.bf16.mxu0 %v11077_v26  ;;  %4157 = vmatmul.mubr.bf16.gmra.mrb[40].mxu1 %v9039_v16  ;;  %v6655_v39 = vshll.u32 %v11393_v28, 16  ;;  %v6671_v26 = vrot.slane %v6669_v32, 5  ;;  %v11104_v16 = vld [vmem:[%s14767_s7 + $0x774] ss:$8 sps:$4 sm:$0xff]   ;;  %v9044_v2 = vcombine.high %v14125_v60, %v14061_v27  ;;  %v11105_v38 = vld [vmem:[%s14767_s7 + $0xf70] ss:$8 sps:$4 sm:$0xff]  }
 0x3f8   : > { %4186 = vmatpush1.bf16.msra.mxu1 %v11080_v21  ;;  %4166 = vmatprep.mubr.bf16.mxu1 %v9042_v52  ;;  %v9633_v21 = vcombine.low %v6614_v0, %v6628_v15  ;;  %v11108_v15 = vld [vmem:[%s14767_s7 + $0x780] ss:$8 sps:$4 sm:$0xff]   ;;  %v11119_v25 = vld [vmem:[%s14767_s7 + $0xf94] ss:$8 sps:$4 sm:$0xff]   ;;  %v11134_v46 = vld [vmem:[%s14767_s7 + $0x7c4] ss:$8 sps:$4 sm:$0xff]  }
 0x3f9   : > { %4187 = vmatprep.subr.bf16.mxu1 %v11088_v56  ;;  %v6657_v52 = vrot.slane %v6655_v39, 5  ;;  %v14143_v56 = vsel %vm12001_vm2, %v6667_v35, %v6671_v26  ;;  %v11120_v32 = vld [vmem:[%s14767_s7 + $0x7a0] ss:$8 sps:$4 sm:$0xff]   ;;  %v11131_v28 = vld [vmem:[%s14767_s7 + $0xfb4] ss:$8 sps:$4 sm:$0xff]  }
 0x3fa   : > { %7286 = vmatpush1.bf16.msra.mxu0 %v11075_v45  ;;  %v11132_v39 = vld [vmem:[%s14767_s7 + $0x7c0] ss:$8 sps:$4 sm:$0xff]   ;;  %v11140_v35 = vld [vmem:[%s14767_s7 + $0x7d4] ss:$8 sps:$4 sm:$0xff]   ;;  %v11129_v26 = vld [vmem:[%s14767_s7 + $0xfb0] ss:$8 sps:$4 sm:$0xff]  }
 0x3fb   : > { %7287 = vmatprep.subr.bf16.mxu0 %v11085_v22  ;;  %v14153_v45 = vsel %vm12001_vm2, %v6653_v53, %v6657_v52  ;;  %v11107_v22 = vld [vmem:[%s14767_s7 + $0xf74] ss:$8 sps:$4 sm:$0xff]   ;;  %v11146_v53 = vld [vmem:[%s14767_s7 + $0x7e4] ss:$8 sps:$4 sm:$0xff]   ;;  %v11135_v52 = vld [vmem:[%s14767_s7 + $0xfc0] ss:$8 sps:$4 sm:$0xff]  }
 0x3fc   : > { %4188 = vmatpush1.bf16.msra.mxu1 %v11086_v43  ;;  %v9636_v0 = vcombine.high %v14153_v45, %v14143_v56  ;;  %v11113_v43 = vld [vmem:[%s14767_s7 + $0xf84] ss:$8 sps:$4 sm:$0xff]  }
 0x3fd   : > { %7259 = vmatmul.mubr.bf16.gmra.mrb[8].mxu0 %v9631_v55  ;;  %4189 = vmatprep.subr.bf16.mxu1 %v11096_v58  ;;  %v11114_v55 = vld [vmem:[%s14767_s7 + $0x790] ss:$8 sps:$4 sm:$0xff]   ;;  %v11122_v58 = vld [vmem:[%s14767_s7 + $0x7a4] ss:$8 sps:$4 sm:$0xff]  }
 0x3fe   : > { %7288 = vmatpush1.bf16.msra.mxu0 %v11083_v7  ;;  %7268 = vmatprep.mubr.bf16.mxu0 %v9634_v51  ;;  %v11128_v7 = vld [vmem:[%s14767_s7 + $0x7b4] ss:$8 sps:$4 sm:$0xff]   ;;  %v11117_v51 = vld [vmem:[%s14767_s7 + $0xf90] ss:$8 sps:$4 sm:$0xff]  }
 0x3ff   : > { %7289 = vmatprep.subr.bf16.mxu0 %v11091_v44  ;;  %4167 = vmatmul.mubr.bf16.gmra.mrb[44].mxu1 %v9041_v4  ;;  %v11125_v44 = vld [vmem:[%s14767_s7 + $0xfa4] ss:$8 sps:$4 sm:$0xff]   ;;  %v11126_v4 = vld [vmem:[%s14767_s7 + $0x7b0] ss:$8 sps:$4 sm:$0xff]  }
 0x400   : > { %4190 = vmatpush1.bf16.msra.mxu1 %v11094_v63  ;;  %4209 = vmatprep.mubr.bf16.mxu1 %v9044_v2  ;;  %v11123_v63 = vld [vmem:[%s14767_s7 + $0xfa0] ss:$8 sps:$4 sm:$0xff]   ;;  %v11138_v2 = vld [vmem:[%s14767_s7 + $0x7d0] ss:$8 sps:$4 sm:$0xff]  }
 0x401   : > { %4191 = vmatprep.subr.bf16.mxu1 %v11104_v16  ;;  %v14217_v16 = vld [vmem:[#allocation3 + $0x50] sm:$0xff] }
 0x402   : > { %7290 = vmatpush1.bf16.msra.mxu0 %v11089_v3  ;;  %v11137_v3 = vld [vmem:[%s14767_s7 + $0xfc4] ss:$8 sps:$4 sm:$0xff]  }
 0x403   : > { %7291 = vmatprep.subr.bf16.mxu0 %v11101_v47  ;;  %v14225_v47 = vld [vmem:[#allocation3 + $0x40] sm:$0xff] }
 0x404   : > { %4192 = vmatpush1.bf16.msra.mxu1 %v11102_v17  ;;  %v6688_v17 = vshrl.u32 %v14217_v16, 16 }
 0x405   : > { %7269 = vmatmul.mubr.bf16.gmra.mrb[12].mxu0 %v9633_v21  ;;  %4193 = vmatprep.subr.bf16.mxu1 %v11110_v19  ;;  %v6691_v21 = vshll.u32 %v14217_v16, 16  ;;  %v11143_v19 = vld [vmem:[%s14767_s7 + $0xfd4] ss:$8 sps:$4 sm:$0xff]  }
 0x406   : > { %7292 = vmatpush1.bf16.msra.mxu0 %v11099_v20  ;;  %7311 = vmatprep.mubr.bf16.mxu0 %v9636_v0  ;;  %v6674_v20 = vshrl.u32 %v14225_v47, 16  ;;  %v11144_v0 = vld [vmem:[%s14767_s7 + $0x7e0] ss:$8 sps:$4 sm:$0xff]  }
 0x407   : > { %7293 = vmatprep.subr.bf16.mxu0 %v11107_v22  ;;  %v6677_v22 = vshll.u32 %v14225_v47, 16 }
 0x408   : > { %4194 = vmatpush1.bf16.msra.mxu1 %v11108_v15  ;;  %v11152_v15 = vld [vmem:[%s14767_s7 + $0x7f4] ss:$8 sps:$4 sm:$0xff]  }
 0x409   : > { %4195 = vmatprep.subr.bf16.mxu1 %v11116_v54  ;;  %v6690_v54 = vrot.slane %v6688_v17, 4  ;;  %v11395_v17 = vld [vmem:[#allocation3 + $0x48] sm:$0x11] }
 0x40a   : > { %7294 = vmatpush1.bf16.msra.mxu0 %v11105_v38  ;;  %v6693_v38 = vrot.slane %v6691_v21, 5  ;;  %v6683_v21 = vshll.u32 %v11395_v17, 16 }
 0x40b   : > { %7295 = vmatprep.subr.bf16.mxu0 %v11113_v43  ;;  %v11141_v43 = vld [vmem:[%s14767_s7 + $0xfd0] ss:$8 sps:$4 sm:$0xff]  }
 0x40c   : > { %4196 = vmatpush1.bf16.msra.mxu1 %v11114_v55  ;;  %v14249_v55 = vld [vmem:[#allocation3 + $0x70] sm:$0xff] }
 0x40d   : > { %4197 = vmatprep.subr.bf16.mxu1 %v11122_v58  ;;  %v11149_v58 = vld [vmem:[%s14767_s7 + $0xfe4] ss:$8 sps:$4 sm:$0xff]  }
 0x40e   : > { %7296 = vmatpush1.bf16.msra.mxu0 %v11111_v23  ;;  %v6676_v23 = vrot.slane %v6674_v20, 4 }
 0x40f   : > { %7297 = vmatprep.subr.bf16.mxu0 %v11119_v25  ;;  %v6679_v25 = vrot.slane %v6677_v22, 5 }
 0x410   : > { %4198 = vmatpush1.bf16.msra.mxu1 %v11120_v32  ;;  %v11150_v32 = vld [vmem:[%s14767_s7 + $0x7f0] ss:$8 sps:$4 sm:$0xff]  }
 0x411   : > { %4199 = vmatprep.subr.bf16.mxu1 %v11128_v7  ;;  %v14257_v7 = vld [vmem:[#allocation3 + $0x60] sm:$0xff] }
 0x412   : > { %7298 = vmatpush1.bf16.msra.mxu0 %v11117_v51  ;;  %v6694_v51 = vor.u32 %v6693_v38, %v6690_v54  ;;  %v14285_v54 = vld [vmem:[#allocation3 + $0x80] sm:$0xff] }
 0x413   : > { %7299 = vmatprep.subr.bf16.mxu0 %v11125_v44  ;;  %v11394_v44 = vld [vmem:[#allocation3 + $0x58] sm:$0x11]  ;;  %v11159_v38 = vld [vmem:[%s14767_s7 + $0x1004] ss:$8 sps:$4 sm:$0xff]  }
 0x414   : > { %4200 = vmatpush1.bf16.msra.mxu1 %v11126_v4  ;;  %v6697_v4 = vshll.u32 %v11394_v44, 16  ;;  %v11222_v44 = vld [vmem:[%s14769_s9 + $0x10] ss:$8 sps:$4 sm:$0xff]  }
 0x415   : > { %4201 = vmatprep.subr.bf16.mxu1 %v11134_v46  ;;  %v6716_v46 = vshrl.u32 %v14249_v55, 16 }
 0x416   : > { %7300 = vmatpush1.bf16.msra.mxu0 %v11123_v63  ;;  %v6719_v63 = vshll.u32 %v14249_v55, 16  ;;  %v6699_v20 = vrot.slane %v6697_v4, 5 }
 0x417   : > { %7301 = vmatprep.subr.bf16.mxu0 %v11131_v28  ;;  %v11218_v28 = vld [vmem:[%s14769_s9 + $0x4] ss:$8 sps:$4 sm:$0xff]   ;;  %v6718_v22 = vrot.slane %v6716_v46, 4 }
 0x418   : > { %4202 = vmatpush1.bf16.msra.mxu1 %v11132_v39  ;;  %v11147_v39 = vld [vmem:[%s14767_s7 + $0xfe0] ss:$8 sps:$4 sm:$0xff]  }
 0x419   : > { %4203 = vmatprep.subr.bf16.mxu1 %v11140_v35  ;;  %v11155_v35 = vld [vmem:[%s14767_s7 + $0xff4] ss:$8 sps:$4 sm:$0xff]  }
 0x41a   : > { %7302 = vmatpush1.bf16.msra.mxu0 %v11129_v26  ;;  %v6680_v26 = vor.u32 %v6679_v25, %v6676_v23  ;;  %v6685_v25 = vrot.slane %v6683_v21, 5  ;;  %v9045_v21 = vcombine.low %v14054_v41, %v14225_v47 }
 0x41b   : > { %7303 = vmatprep.subr.bf16.mxu0 %v11137_v3  ;;  %v6702_v3 = vshrl.u32 %v14257_v7, 16 }
 0x41c   : > { %4204 = vmatpush1.bf16.msra.mxu1 %v11138_v2  ;;  %v6705_v2 = vshll.u32 %v14257_v7, 16 }
 0x41d   : > { %4205 = vmatprep.subr.bf16.mxu1 %v11146_v53  ;;  %v9043_v53 = vcombine.low %v14125_v60, %v14061_v27  ;;  %v11153_v27 = vld [vmem:[%s14767_s7 + $0xff0] ss:$8 sps:$4 sm:$0xff]   ;;  %v9046_v60 = vcombine.high %v14054_v41, %v14225_v47  ;;  %v9048_v47 = vcombine.high %v14217_v16, %v14257_v7 }
 0x41e   : > { %7304 = vmatpush1.bf16.msra.mxu0 %v11135_v52  ;;  %v11216_v52 = vld [vmem:[%s14769_s9] ss:$8 sps:$4 sm:$0xff]   ;;  %v6707_v23 = vrot.slane %v6705_v2, 5  ;;  %v11162_v2 = vld [vmem:[%s14767_s7 + $0x1014] ss:$8 sps:$4 sm:$0xff]  }
 0x41f   : > { %7305 = vmatprep.subr.bf16.mxu0 %v11143_v19  ;;  %v6695_v19 = vrot.slane %v6694_v51, 4  ;;  %v11160_v41 = vld [vmem:[%s14767_s7 + $0x1010] ss:$8 sps:$4 sm:$0xff]  }
 0x420   : > { %4206 = vmatpush1.bf16.msra.mxu1 %v11144_v0  ;;  %v6721_v0 = vrot.slane %v6719_v63, 5  ;;  %v6730_v63 = vshrl.u32 %v14285_v54, 16 }
 0x421   : > { %4207 = vmatprep.subr.bf16.mxu1 %v11152_v15  ;;  %v11224_v15 = vld [vmem:[%s14769_s9 + $0x14] ss:$8 sps:$4 sm:$0xff]   ;;  %v6700_v4 = vsel %vm12001_vm2, %v6695_v19, %v6699_v20 }
 0x422   : > { %7306 = vmatpush1.bf16.msra.mxu0 %v11141_v43  ;;  %v6681_v43 = vrot.slane %v6680_v26, 4  ;;  %v6722_v46 = vor.u32 %v6721_v0, %v6718_v22  ;;  %v9635_v26 = vcombine.low %v14153_v45, %v14143_v56  ;;  %v11228_v56 = vld [vmem:[%s14769_s9 + $0x20] ss:$8 sps:$4 sm:$0xff]   ;;  %v6732_v22 = vrot.slane %v6730_v63, 4 }
 0x423   : > { %7307 = vmatprep.subr.bf16.mxu0 %v11149_v58  ;;  %v6704_v58 = vrot.slane %v6702_v3, 4 }
 0x424   : > { %4208 = vmatpush1.bf16.msra.mxu1 %v11150_v32  ;;  %v11396_v32 = vld [vmem:[#allocation3 + $0x78] sm:$0x11]  ;;  %v6686_v3 = vsel %vm12001_vm2, %v6681_v43, %v6685_v25  ;;  %v6723_v45 = vrot.slane %v6722_v46, 4 }
 0x425   : > { %8275 = vmatprep.subr.bf16.mxu1 %v11218_v28  ;;  %v6725_v51 = vshll.u32 %v11396_v32, 16  ;;  %v6733_v28 = vshll.u32 %v14285_v54, 16  ;;  %v9638_v17 = vcombine.high %v6686_v3, %v6700_v4  ;;  %v11398_v25 = vld [vmem:[#allocation3 + $0x98] sm:$0x11]  ;;  %v9637_v46 = vcombine.low %v6686_v3, %v6700_v4 }
 0x426   : > { %7308 = vmatpush1.bf16.msra.mxu0 %v11147_v39  ;;  %v11230_v39 = vld [vmem:[%s14769_s9 + $0x24] ss:$8 sps:$4 sm:$0xff]   ;;  %v6753_v32 = vshll.u32 %v11398_v25, 16  ;;  %v9047_v4 = vcombine.low %v14217_v16, %v14257_v7  ;;  %v11258_v25 = vld [vmem:[%s14769_s9 + $0x70] ss:$8 sps:$4 sm:$0xff]  }
 0x427   : > { %7309 = vmatprep.subr.bf16.mxu0 %v11155_v35  ;;  %4210 = vmatmul.mubr.bf16.vlgmr.msra.gmra.mrb[32].mxu1 %v9043_v53  ;;  %v11157_v35 = vld [vmem:[%s14767_s7 + $0x1000] ss:$8 sps:$4 sm:$0xff]   ;;  %v6708_v53 = vor.u32 %v6707_v23, %v6704_v58  ;;  %v6727_v20 = vrot.slane %v6725_v51, 5  ;;  %v6735_v0 = vrot.slane %v6733_v28, 5  ;;  %v11242_v51 = vld [vmem:[%s14769_s9 + $0x44] ss:$8 sps:$4 sm:$0xff]  }
 0x428   : > { %4219 = vmatprep.mubr.bf16.mxu1 %v9046_v60  ;;  %8276 = vmatpush1.bf16.msra.mxu1 %v11216_v52  ;;  %v11397_v52 = vld [vmem:[#allocation3 + $0x68] sm:$0x11]  ;;  %v11170_v28 = vld [vmem:[%s14767_s7 + $0x1034] ss:$8 sps:$4 sm:$0xff]  }
 0x429   : > { %8277 = vmatprep.subr.bf16.mxu1 %v11224_v15  ;;  %v6711_v19 = vshll.u32 %v11397_v52, 16  ;;  %v11236_v15 = vld [vmem:[%s14769_s9 + $0x34] ss:$8 sps:$4 sm:$0xff]   ;;  %v6709_v60 = vrot.slane %v6708_v53, 4  ;;  %v6728_v58 = vsel %vm12001_vm2, %v6723_v45, %v6727_v20  ;;  %v6736_v23 = vor.u32 %v6735_v0, %v6732_v22  ;;  %v11175_v16 = vld [vmem:[%s14767_s7 + $0x1044] ss:$8 sps:$4 sm:$0xff]  }
 0x42a   : > { %7310 = vmatpush1.bf16.msra.mxu0 %v11153_v27  ;;  %v11167_v27 = vld [vmem:[%s14767_s7 + $0x1024] ss:$8 sps:$4 sm:$0xff]   ;;  %v6755_v53 = vrot.slane %v6753_v32, 5  ;;  %v9050_v52 = vcombine.high %v14249_v55, %v14285_v54  ;;  %v11246_v45 = vld [vmem:[%s14769_s9 + $0x50] ss:$8 sps:$4 sm:$0xff]  }
 0x42b   : > { %7929 = vmatprep.subr.bf16.mxu0 %v11159_v38  ;;  %v11234_v38 = vld [vmem:[%s14769_s9 + $0x30] ss:$8 sps:$4 sm:$0xff]   ;;  %v6713_v43 = vrot.slane %v6711_v19, 5  ;;  %v6737_v3 = vrot.slane %v6736_v23, 4  ;;  %v7368_v19 = vld [vmem:[#allocation2 + $0x20] sm:$0xee] }
 0x42c   : > { %8278 = vmatpush1.bf16.msra.mxu1 %v11222_v44  ;;  %v11165_v44 = vld [vmem:[%s14767_s7 + $0x1020] ss:$8 sps:$4 sm:$0xff]   ;;  %v6756_v22 = vsel %vm12001_vm2, %v14094_v36, %v6755_v53  ;;  %v11254_v0 = vld [vmem:[%s14769_s9 + $0x64] ss:$8 sps:$4 sm:$0xff]   ;;  %v11260_v23 = vld [vmem:[%s14769_s9 + $0x74] ss:$8 sps:$4 sm:$0xff]  }
 0x42d   : > { %7312 = vmatmul.mubr.bf16.vlgmr.msra.gmra.mrb[0].mxu0 %v9635_v26  ;;  %8279 = vmatprep.subr.bf16.mxu1 %v11230_v39  ;;  %v6714_v63 = vsel %vm12001_vm2, %v6709_v60, %v6713_v43  ;;  %v11399_v39 = vld [vmem:[#allocation3 + $0x88] sm:$0x11]  ;;  %v7398_v60 = vrot.slane %v13787_v13, 5 }
 0x42e   : > { %7321 = vmatprep.mubr.bf16.mxu0 %v9638_v17  ;;  %7930 = vmatpush1.bf16.msra.mxu0 %v11157_v35  ;;  %v6739_v35 = vshll.u32 %v11399_v39, 16  ;;  %v9640_v26 = vcombine.high %v6714_v63, %v6728_v58  ;;  %v11248_v17 = vld [vmem:[%s14769_s9 + $0x54] ss:$8 sps:$4 sm:$0xff]   ;;  %v11252_v43 = vld [vmem:[%s14769_s9 + $0x60] ss:$8 sps:$4 sm:$0xff]  }
 0x42f   : > { %7931 = vmatprep.subr.bf16.mxu0 %v11162_v2  ;;  %4220 = vmatmul.mubr.bf16.gmra.mrb[36].mxu1 %v9045_v21  ;;  %v11240_v2 = vld [vmem:[%s14769_s9 + $0x40] ss:$8 sps:$4 sm:$0xff]   ;;  %v11168_v21 = vld [vmem:[%s14767_s7 + $0x1030] ss:$8 sps:$4 sm:$0xff]   ;;  %v11182_v13 = vld [vmem:[%s14767_s7 + $0x1064] ss:$8 sps:$4 sm:$0xff]  }
 0x430   : > { %4229 = vmatprep.mubr.bf16.mxu1 %v9048_v47  ;;  %8280 = vmatpush1.bf16.msra.mxu1 %v11228_v56  ;;  %v6741_v7 = vrot.slane %v6739_v35, 5  ;;  %v7369_v56 = vld [vmem:[#allocation2 + $0x30] sm:$0xee]  ;;  %v11180_v32 = vld [vmem:[%s14767_s7 + $0x1060] ss:$8 sps:$4 sm:$0xff]  }
 0x431   : > { %8281 = vmatprep.subr.bf16.mxu1 %v11236_v15  ;;  %v9639_v15 = vcombine.low %v6714_v63, %v6728_v58  ;;  %v11178_v47 = vld [vmem:[%s14767_s7 + $0x1054] ss:$8 sps:$4 sm:$0xff]   ;;  %v9772_v36 = vrot.slane %v7369_v56, 9  ;;  %v9049_v58 = vcombine.low %v14249_v55, %v14285_v54  ;;  %v11264_v63 = vld [vmem:[%s11814_s16] sm:$0xff]  }
 0x432   : > { %7932 = vmatpush1.bf16.msra.mxu0 %v11160_v41  ;;  %v6742_v20 = vsel %vm12001_vm2, %v6737_v3, %v6741_v7  ;;  %v11173_v41 = vld [vmem:[%s14767_s7 + $0x1040] ss:$8 sps:$4 sm:$0xff]   ;;  %v11188_v39 = vld [vmem:[%s14767_s7 + $0x1084] ss:$8 sps:$4 sm:$0xff]   ;;  %v11285_v56 = vld [vmem:[%s11814_s16 + $0x18] sm:$0xff]  }
 0x433   : > { %7933 = vmatprep.subr.bf16.mxu0 %v11167_v27  ;;  %v9771_v27 = vrot.slane %v7368_v19, 9  ;;  %v14397_v54 = vsel %vm12386_vm5, %v9772_v36, %v7398_v60  ;;  %v11186_v35 = vld [vmem:[%s14767_s7 + $0x1080] ss:$8 sps:$4 sm:$0xff]   ;;  %v11194_v3 = vld [vmem:[%s14767_s7 + $0x10a4] ss:$8 sps:$4 sm:$0xff]  }
 0x434   : > { %8282 = vmatpush1.bf16.msra.mxu1 %v11234_v38  ;;  %v9642_v38 = vcombine.high %v6742_v20, %v6756_v22  ;;  %v11192_v53 = vld [vmem:[%s14767_s7 + $0x10a0] ss:$8 sps:$4 sm:$0xff]   ;;  %v11203_v19 = vld [vmem:[%s14767_s7 + $0x10d4] ss:$8 sps:$4 sm:$0xff]   ;;  %v11207_v36 = vld [vmem:[%s14767_s7 + $0x10f0] ss:$8 sps:$4 sm:$0xff]  }
 0x435   : > { %7322 = vmatmul.mubr.bf16.gmra.mrb[4].mxu0 %v9637_v46  ;;  %8283 = vmatprep.subr.bf16.mxu1 %v11242_v51  ;;  %v14393_v55 = vsel %vm12386_vm5, %v9771_v27, %v7394_v62  ;;  %v11185_v46 = vld [vmem:[%s14767_s7 + $0x1074] ss:$8 sps:$4 sm:$0xff]   ;;  %v11198_v7 = vld [vmem:[%s14767_s7 + $0x10c0] ss:$8 sps:$4 sm:$0xff]   ;;  %v7406_v62 = vrot.slane %v13948_v10, 5 }
 0x436   : > { %7331 = vmatprep.mubr.bf16.mxu0 %v9640_v26  ;;  %7934 = vmatpush1.bf16.msra.mxu0 %v11165_v44  ;;  %v9788_v51 = vcombine.high %v14393_v55, %v14397_v54  ;;  %v9641_v44 = vcombine.low %v6742_v20, %v6756_v22  ;;  %v11191_v26 = vld [vmem:[%s14767_s7 + $0x1094] ss:$8 sps:$4 sm:$0xff]   ;;  %v7370_v20 = vld [vmem:[#allocation2 + $0x40] sm:$0xee]  ;;  %v9787_v10 = vcombine.low %v14393_v55, %v14397_v54  ;;  %v11213_v55 = vld [vmem:[%s14767_s7 + $0x1110] ss:$8 sps:$4 sm:$0xff]  }
 0x437   : > { %7935 = vmatprep.subr.bf16.mxu0 %v11170_v28  ;;  %4230 = vmatmul.mubr.bf16.gmra.mrb[40].mxu1 %v9047_v4  ;;  %v11183_v28 = vld [vmem:[%s14767_s7 + $0x1070] ss:$8 sps:$4 sm:$0xff]   ;;  %v11212_v60 = vld [vmem:[%s14767_s7 + $0x1104] ss:$8 sps:$4 sm:$0xff]  }
 0x438   : > { %4239 = vmatprep.mubr.bf16.mxu1 %v9050_v52  ;;  %8284 = vmatpush1.bf16.msra.mxu1 %v11240_v2  ;;  %v11271_v2 = vld [vmem:[%s11814_s16 + $0x8] sm:$0xff]   ;;  %v11189_v4 = vld [vmem:[%s14767_s7 + $0x1090] ss:$8 sps:$4 sm:$0xff]  }
 0x439   : > { %8285 = vmatprep.subr.bf16.mxu1 %v11248_v17  ;;  %v11197_v17 = vld [vmem:[%s14767_s7 + $0x10b4] ss:$8 sps:$4 sm:$0xff]   ;;  %v11195_v52 = vld [vmem:[%s14767_s7 + $0x10b0] ss:$8 sps:$4 sm:$0xff]   ;;  %v11221_v54 = vld [vmem:[%s14767_s7 + $0x1124] ss:$8 sps:$4 sm:$0xff]  }
 0x43a   : > { %7936 = vmatpush1.bf16.msra.mxu0 %v11168_v21  ;;  %v11278_v21 = vld [vmem:[%s11814_s16 + $0x10] sm:$0xff]   ;;  %s422_s16 = sand.u32 1, %s11454_s18  }
 0x43b   : > { %7937 = vmatprep.subr.bf16.mxu0 %v11175_v16  ;;  %v11200_v16 = vld [vmem:[%s14767_s7 + $0x10c4] ss:$8 sps:$4 sm:$0xff]   ;;  %v7371_v22 = vld [vmem:[#allocation2 + $0x50] sm:$0xee]  ;;  %s8592_s14 = sshll.u32 %s422_s16, 7  ;;  %s14719_s21 = scalar_lea.sflag [#allocation5], %s422_s16 }
 0x43c   : > { %8286 = vmatpush1.bf16.msra.mxu1 %v11246_v45  ;;  %v11201_v45 = vld [vmem:[%s14767_s7 + $0x10d0] ss:$8 sps:$4 sm:$0xff]   ;;  %v9774_v27 = vrot.slane %v7371_v22, 9  ;;  %v14816_v22 = vcombine.high %v13060_v34, %v13064_v12  ;;  %s14666_s15 = scalar_lea.vmem [#allocation4], %s8592_s14 }
 0x43d   : > { %7332 = vmatmul.mubr.bf16.gmra.mrb[8].mxu0 %v9639_v15  ;;  %8287 = vmatprep.subr.bf16.mxu1 %v11254_v0  ;;  %v11204_v0 = vld [vmem:[%s14767_s7 + $0x10e0] ss:$8 sps:$4 sm:$0xff]   ;;  %v11209_v15 = vld [vmem:[%s14767_s7 + $0x10f4] ss:$8 sps:$4 sm:$0xff]   ;;  %s8490_s22 = sshll.u32 %s14666_s15, 4  ;;  %s14712_s22 = int_to_ptr.vmem [resolvable:$true] %s8490_s22 }
 0x43e   : > { %7341 = vmatprep.mubr.bf16.mxu0 %v9642_v38  ;;  %7938 = vmatpush1.bf16.msra.mxu0 %v11173_v41  ;;  %v9773_v41 = vrot.slane %v7370_v20, 9  ;;  %v11251_v20 = vld [vmem:[%s14767_s7 + $0x1174] ss:$8 sps:$4 sm:$0xff]   ;;  %s11400_s0 = scalar_lea.vmem %s14712_s22, 2048  ;;  %p11407_p0 = scmp.lt.s32.totalorder %s14712_s22, %s11405_s30 }
 0x43f   : > { %7939 = vmatprep.subr.bf16.mxu0 %v11178_v47  ;;  %4240 = vmatmul.mubr.bf16.gmra.mrb[44].mxu1 %v9049_v58  ;;  %v7402_v47 = vrot.slane %v13941_v48, 5  ;;  %v7372_v48 = vld [vmem:[#allocation2 + $0x60] sm:$0xee]  ;;  %v7373_v58 = vld [vmem:[#allocation2 + $0x70] sm:$0xee]  ;;  %p11401_p11 = scmp.ne.s32.totalorder %s14712_s22, %s11400_s0  ;;  %p11408_p1 = scmp.lt.s32.totalorder %s11406_s13, %s11400_s0 }
 0x440   : > { %8288 = vmatpush1.bf16.msra.mxu1 %v11252_v43  ;;  %8307 = vmatprep.mubr.bf16.mxu1 %v14021_v9  ;;  %v7407_v43 = vsel %vm12386_vm5, %v9774_v27, %v7406_v62  ;;  %v11261_v27 = vld [vmem:[%s14767_s7 + $0x1190] ss:$8 sps:$4 sm:$0xff]   ;;  %v11267_v62 = vld [vmem:[%s14767_s7 + $0x11a4] ss:$8 sps:$4 sm:$0xff]  }
 0x441   : > { %8289 = vmatprep.subr.bf16.mxu1 %v11260_v23  ;;  %v7403_v38 = vsel %vm12386_vm5, %v9773_v41, %v7402_v47  ;;  %v11210_v23 = vld [vmem:[%s14767_s7 + $0x1100] ss:$8 sps:$4 sm:$0xff]   ;;  %v11263_v47 = vld [vmem:[%s14767_s7 + $0x1194] ss:$8 sps:$4 sm:$0xff]   ;;  %p11402_p12 = pnand %p11401_p11, %p11567_p5  ;;  %p11409_p2 = por %p11408_p1, %p11407_p0 }
 0x442   : > { %7940 = vmatpush1.bf16.msra.mxu0 %v11176_v49  ;;  %v9790_v49 = vcombine.high %v7403_v38, %v7407_v43  ;;  %v11255_v41 = vld [vmem:[%s14767_s7 + $0x1180] ss:$8 sps:$4 sm:$0xff]  }
 0x443   : > { %7941 = vmatprep.subr.bf16.mxu0 %v11182_v13  ;;  %v11215_v13 = vld [vmem:[%s14767_s7 + $0x1114] ss:$8 sps:$4 sm:$0xff]   ;;  %p11403_p13 = pneg %p11402_p12 }
 0x444   : > { %8290 = vmatpush1.bf16.msra.mxu1 %v11258_v25  ;;  %v9775_v25 = vrot.slane %v7372_v48, 9  ;;  %v11272_v48 = vld [vmem:[%s14767_s7 + $0x11c0] ss:$8 sps:$4 sm:$0xff]  }
 0x445   : > { %7342 = vmatmul.mubr.bf16.gmra.mrb[12].mxu0 %v9641_v44  ;;  %v7414_v44 = vrot.slane %v13983_v37, 5  ;;  %v7375_v37 = vld [vmem:[#allocation2 + $0x90] sm:$0xee]  ;;  %p11410_p3 = pnand %p11409_p2, %p11403_p13 }
 0x446   : > { %7942 = vmatpush1.bf16.msra.mxu0 %v11180_v32  ;;  %7961 = vmatprep.mubr.bf16.mxu0 %v9788_v51  ;;  %v7410_v32 = vrot.slane %v13981_v30, 5  ;;  %v9776_v51 = vrot.slane %v7373_v58, 9  ;;  %v11277_v58 = vld [vmem:[%s14767_s7 + $0x11d4] ss:$8 sps:$4 sm:$0xff]  }
 0x447   : > { %7943 = vmatprep.subr.bf16.mxu0 %v11185_v46  ;;  %8308 = vmatmul.mubr.bf16.vlgmr.msra.gmra.mrb[48].mxu1 %v11264_v63  ;;  %v7374_v63 = vld [vmem:[#allocation2 + $0x80] sm:$0xee] }
 0x448   : > { %8317 = vmatprep.mubr.bf16.mxu1 %v14021_v9  ;;  %v7411_v46 = vsel %vm12386_vm5, %v9775_v25, %v7410_v32  ;;  %v7415_v30 = vsel %vm12386_vm5, %v9776_v51, %v7414_v44  ;;  %v11282_v25 = vld [vmem:[%s14767_s7 + $0x11f0] ss:$8 sps:$4 sm:$0xff]   ;;  %v14817_v32 = vcombine.low %v13060_v34, %v13064_v12 }
 0x44a   : > { %7944 = vmatpush1.bf16.msra.mxu0 %v11183_v28  ;;  %v9789_v28 = vcombine.low %v7403_v38, %v7407_v43  ;;  %v11268_v38 = vld [vmem:[%s14767_s7 + $0x11b0] ss:$8 sps:$4 sm:$0xff]   ;;  %v11274_v43 = vld [vmem:[%s14767_s7 + $0x11c4] ss:$8 sps:$4 sm:$0xff]  }
 0x44b   : > { %7945 = vmatprep.subr.bf16.mxu0 %v11188_v39  ;;  %v11219_v39 = vld [vmem:[%s14767_s7 + $0x1120] ss:$8 sps:$4 sm:$0xff]  }
 0x44e   : > { %7946 = vmatpush1.bf16.msra.mxu0 %v11186_v35  ;;  %v9792_v35 = vcombine.high %v7411_v46, %v7415_v30 }
 0x44f   : > { %7947 = vmatprep.subr.bf16.mxu0 %v11191_v26  ;;  %8318 = vmatmul.mubr.bf16.gmra.mrb[52].mxu1 %v11271_v2  ;;  %v11227_v26 = vld [vmem:[%s14767_s7 + $0x1134] ss:$8 sps:$4 sm:$0xff]   ;;  %v9777_v2 = vrot.slane %v7374_v63, 9 }
 0x450   : > { %8327 = vmatprep.mubr.bf16.mxu1 %v14021_v9 }
 0x452   : > { %7948 = vmatpush1.bf16.msra.mxu0 %v11189_v4  ;;  %v7418_v4 = vrot.slane %v14040_v24, 5 }
 0x453   : > { %7949 = vmatprep.subr.bf16.mxu0 %v11194_v3  ;;  %v9778_v3 = vrot.slane %v7375_v37, 9 }
 0x456   : > { %7950 = vmatpush1.bf16.msra.mxu0 %v11192_v53  ;;  %v7422_v53 = vrot.slane %v14042_v57, 5  ;;  %v11231_v57 = vld [vmem:[%s14767_s7 + $0x1140] ss:$8 sps:$4 sm:$0xff]  }
 0x457   : > { %7951 = vmatprep.subr.bf16.mxu0 %v11197_v17  ;;  %8328 = vmatmul.mubr.bf16.gmra.mrb[56].mxu1 %v11278_v21  ;;  %v11225_v17 = vld [vmem:[%s14767_s7 + $0x1130] ss:$8 sps:$4 sm:$0xff]   ;;  %v11233_v21 = vld [vmem:[%s14767_s7 + $0x1144] ss:$8 sps:$4 sm:$0xff]  }
 0x458   : > { %8337 = vmatprep.mubr.bf16.mxu1 %v14021_v9  ;;  %v11206_v9 = vld [vmem:[%s14767_s7 + $0x10e4] ss:$8 sps:$4 sm:$0xff]   ;;  %v7423_v24 = vsel %vm12386_vm5, %v9778_v3, %v7422_v53 }
 0x45a   : > { %7952 = vmatpush1.bf16.msra.mxu0 %v11195_v52  ;;  %v7419_v52 = vsel %vm12386_vm5, %v9777_v2, %v7418_v4 }
 0x45b   : > { %7953 = vmatprep.subr.bf16.mxu0 %v11200_v16  ;;  %v9791_v16 = vcombine.low %v7411_v46, %v7415_v30 }
 0x45e   : > { %7954 = vmatpush1.bf16.msra.mxu0 %v11198_v7  ;;  %v9794_v7 = vcombine.high %v7419_v52, %v7423_v24 }
 0x45f   : > { %7955 = vmatprep.subr.bf16.mxu0 %v11203_v19  ;;  %8338 = vmatmul.mubr.bf16.gmra.mrb[60].mxu1 %v11285_v56  ;;  %v11239_v19 = vld [vmem:[%s14767_s7 + $0x1154] ss:$8 sps:$4 sm:$0xff]   ;;  %v11237_v56 = vld [vmem:[%s14767_s7 + $0x1150] ss:$8 sps:$4 sm:$0xff]  }
 0x462   : > { %7956 = vmatpush1.bf16.msra.mxu0 %v11201_v45  ;;  %v9793_v45 = vcombine.low %v7419_v52, %v7423_v24  ;;  %v8159_v52 = vld [vmem:[%s14770_s10] sm:$0x3] }
 0x463   : > { %7957 = vmatprep.subr.bf16.mxu0 %v11206_v9  ;;  %v11243_v9 = vld [vmem:[%s14767_s7 + $0x1160] ss:$8 sps:$4 sm:$0xff]   ;;  %v8164_v24 = vrot.slane %v8159_v52, %v12402_v11 }
 0x466   : > { %7958 = vmatpush1.bf16.msra.mxu0 %v11204_v0  ;;  %v11249_v0 = vld [vmem:[%s14767_s7 + $0x1170] ss:$8 sps:$4 sm:$0xff]  }
 0x467   : > { %7959 = vmatprep.subr.bf16.mxu0 %v11209_v15  ;;  %v11257_v15 = vld [vmem:[%s14767_s7 + $0x1184] ss:$8 sps:$4 sm:$0xff]  }
 0x46a   : > { %7960 = vmatpush1.bf16.msra.mxu0 %v11207_v36  ;;  %v11265_v36 = vld [vmem:[%s14767_s7 + $0x11a0] ss:$8 sps:$4 sm:$0xff]  }
 0x46b   : > { %8002 = vmatprep.subr.bf16.mxu0 %v11212_v60  ;;  %v11270_v60 = vld [vmem:[%s14767_s7 + $0x11b4] ss:$8 sps:$4 sm:$0xff]  }
 0x46d   : > { %7962 = vmatmul.mubr.bf16.vlgmr.msra.gmra.mrb[0].mxu0 %v9787_v10  ;;  %v11275_v10 = vld [vmem:[%s14767_s7 + $0x11d0] ss:$8 sps:$4 sm:$0xff]  }
 0x46e   : > { %8003 = vmatpush1.bf16.msra.mxu0 %v11210_v23  ;;  %7971 = vmatprep.mubr.bf16.mxu0 %v9790_v49  ;;  %v11281_v23 = vld [vmem:[%s14767_s7 + $0x11e4] ss:$8 sps:$4 sm:$0xff]   ;;  %v11279_v49 = vld [vmem:[%s14767_s7 + $0x11e0] ss:$8 sps:$4 sm:$0xff]  }
 0x46f   : > { %8004 = vmatprep.subr.bf16.mxu0 %v11215_v13  ;;  %v11284_v13 = vld [vmem:[%s14767_s7 + $0x11f4] ss:$8 sps:$4 sm:$0xff]  }
 0x472   : > { %8005 = vmatpush1.bf16.msra.mxu0 %v11213_v55 }
 0x473   : > { %8006 = vmatprep.subr.bf16.mxu0 %v11221_v54 }
 0x475   : > { %7972 = vmatmul.mubr.bf16.gmra.mrb[4].mxu0 %v9789_v28 }
 0x476   : > { %8007 = vmatpush1.bf16.msra.mxu0 %v11219_v39  ;;  %7981 = vmatprep.mubr.bf16.mxu0 %v9792_v35 }
 0x477   : > { %8008 = vmatprep.subr.bf16.mxu0 %v11227_v26 }
 0x47a   : > { %8009 = vmatpush1.bf16.msra.mxu0 %v11225_v17 }
 0x47b   : > { %8010 = vmatprep.subr.bf16.mxu0 %v11233_v21 }
 0x47d   : > { %7982 = vmatmul.mubr.bf16.gmra.mrb[8].mxu0 %v9791_v16  ;;  %v8168_v16 = vrot.slane %v8159_v52, %v12407_v14 }
 0x47e   : > { %8011 = vmatpush1.bf16.msra.mxu0 %v11231_v57  ;;  %7991 = vmatprep.mubr.bf16.mxu0 %v9794_v7 }
 0x47f   : > { %8012 = vmatprep.subr.bf16.mxu0 %v11239_v19 }
 0x482   : > { %8013 = vmatpush1.bf16.msra.mxu0 %v11237_v56 }
 0x483   : > { %8014 = vmatprep.subr.bf16.mxu0 %v11245_v5 }
 0x485   : > { %7992 = vmatmul.mubr.bf16.gmra.mrb[12].mxu0 %v9793_v45 }
 0x486   : > { %8015 = vmatpush1.bf16.msra.mxu0 %v11243_v9  ;;  %8034 = vmatprep.mubr.bf16.mxu0 %v14816_v22 }
 0x487   : > { %8016 = vmatprep.subr.bf16.mxu0 %v11251_v20 }
 0x48a   : > { %8017 = vmatpush1.bf16.msra.mxu0 %v11249_v0 }
 0x48b   : > { %8018 = vmatprep.subr.bf16.mxu0 %v11257_v15 }
 0x48e   : > { %8019 = vmatpush1.bf16.msra.mxu0 %v11255_v41 }
 0x48f   : > { %8020 = vmatprep.subr.bf16.mxu0 %v11263_v47 }
 0x492   : > { %8021 = vmatpush1.bf16.msra.mxu0 %v11261_v27 }
 0x493   : > { %8022 = vmatprep.subr.bf16.mxu0 %v11267_v62 }
 0x496   : > { %8023 = vmatpush1.bf16.msra.mxu0 %v11265_v36 }
 0x497   : > { %8024 = vmatprep.subr.bf16.mxu0 %v11270_v60 }
 0x49a   : > { %8025 = vmatpush1.bf16.msra.mxu0 %v11268_v38 }
 0x49b   : > { %8026 = vmatprep.subr.bf16.mxu0 %v11274_v43 }
 0x49e   : > { %8027 = vmatpush1.bf16.msra.mxu0 %v11272_v48 }
 0x49f   : > { %8028 = vmatprep.subr.bf16.mxu0 %v11277_v58 }
 0x4a2   : > { %8029 = vmatpush1.bf16.msra.mxu0 %v11275_v10 }
 0x4a3   : > { %8030 = vmatprep.subr.bf16.mxu0 %v11281_v23 }
 0x4a6   : > { %8031 = vmatpush1.bf16.msra.mxu0 %v11279_v49 }
 0x4a7   : > { %8032 = vmatprep.subr.bf16.mxu0 %v11284_v13 }
 0x4aa   : > { %8033 = vmatpush1.bf16.msra.mxu0 %v11282_v25 }
 0x4ad   : > { %8035 = vmatmul.mubr.bf16.vlgmr.msra.gmra.mrb[0].mxu0 %v14817_v32 }
 0x4ae   : > { %8044 = vmatprep.mubr.bf16.mxu0 %v9798_v29 }
 0x4b5   : > { %8045 = vmatmul.mubr.bf16.gmra.mrb[4].mxu0 %v9797_v8 }
 0x4b6   : > { %8054 = vmatprep.mubr.bf16.mxu0 %v9800_v18 }
 0x4bd   : > { %8055 = vmatmul.mubr.bf16.gmra.mrb[8].mxu0 %v9799_v40 }
 0x4be   : > { %8064 = vmatprep.mubr.bf16.mxu0 %v9802_v6 }
 0x4c5   : > { %8065 = vmatmul.mubr.bf16.gmra.mrb[12].mxu0 %v9801_v42 }
 0x4fa   : > { %v14609_v34 = vpop.f32.mrb[32].mxu1 }
 0x4fb   : > { %v14611_v12 = vpop.f32.mrb[33].mxu1 }
 0x4fc   : > { %v14613_v61 = vpop.f32.mrb[34].mxu1 }
 0x4fd   : > { %v14615_v50 = vpop.f32.mrb[35].mxu1 }
 0x502   : > { %v14617_v29 = vpop.f32.mrb[36].mxu1 }
 0x503   : > { %v14619_v8 = vpop.f32.mrb[37].mxu1 }
 0x504   : > { %v14621_v1 = vpop.f32.mrb[38].mxu1 }
 0x505   : > { %v14623_v33 = vpop.f32.mrb[39].mxu1 }
 0x50a   : > { %v14625_v18 = vpop.f32.mrb[40].mxu1 }
 0x50b   : > { %v14627_v59 = vpop.f32.mrb[41].mxu1 }
 0x50c   : > { %v14629_v40 = vpop.f32.mrb[42].mxu1 }
 0x50d   : > { %v14631_v31 = vpop.f32.mrb[43].mxu1 }
 0x512   : > { %v14633_v6 = vpop.f32.mrb[44].mxu1 }
 0x513   : > { %v14635_v42 = vpop.f32.mrb[45].mxu1 }
 0x514   : > { %v14637_v51 = vpop.f32.mrb[46].mxu1 }
 0x515   : > { %v14639_v44 = vpop.f32.mrb[47].mxu1 }
 0x51a   : > { %v8309_v55 = vpop.f32.mrb[48].mxu1 }
 0x51b   : > { %v8311_v54 = vpop.f32.mrb[49].mxu1  ;;  %v8310_v57 = vadd.f32 %v8309_v55, %v8164_v24 }
 0x51c   : > { %v8313_v46 = vpop.f32.mrb[50].mxu1  ;;  %v8312_v7 = vadd.f32 %v8311_v54, %v8168_v16 }
 0x51d   : > { %v8315_v30 = vpop.f32.mrb[51].mxu1  ;;  %v9951_v19 = vmul.f32 -1.442695, %v8310_v57  ;;  %v8314_v56 = vadd.f32 %v8313_v46, %v8164_v24 }
 0x51e   : > { %v9952_v5 = vmul.f32 -1.442695, %v8312_v7  ;;  %v8316_v45 = vadd.f32 %v8315_v30, %v8168_v16 }
 0x51f   : > { %11302 = vpow2.f32 %v9951_v19  ;;  %v9953_v9 = vmul.f32 -1.442695, %v8314_v56 }
 0x520   : > { %11304 = vpow2.f32 %v9952_v5  ;;  %v9954_v22 = vmul.f32 -1.442695, %v8316_v45 }
 0x521   : > { %11306 = vpow2.f32 %v9953_v9 }
 0x522   : > { %v8319_v63 = vpop.f32.mrb[52].mxu1  ;;  %11308 = vpow2.f32 %v9954_v22 }
 0x523   : > { %v8321_v37 = vpop.f32.mrb[53].mxu1  ;;  %v8320_v20 = vadd.f32 %v8319_v63, %v8164_v24 }
 0x524   : > { %v8323_v28 = vpop.f32.mrb[54].mxu1  ;;  %v8322_v0 = vadd.f32 %v8321_v37, %v8168_v16 }
 0x525   : > { %v8325_v39 = vpop.f32.mrb[55].mxu1  ;;  %v9955_v15 = vmul.f32 -1.442695, %v8320_v20  ;;  %v8324_v41 = vadd.f32 %v8323_v28, %v8164_v24 }
 0x526   : > { %v9956_v47 = vmul.f32 -1.442695, %v8322_v0  ;;  %v8326_v27 = vadd.f32 %v8325_v39, %v8168_v16 }
 0x527   : > { %11310 = vpow2.f32 %v9955_v15  ;;  %v9957_v62 = vmul.f32 -1.442695, %v8324_v41 }
 0x528   : > { %11312 = vpow2.f32 %v9956_v47  ;;  %v9958_v38 = vmul.f32 -1.442695, %v8326_v27 }
 0x529   : > { %v11303_v36 = vpop.eup %11302  ;;  %11314 = vpow2.f32 %v9957_v62 }
 0x52a   : > { %v8329_v35 = vpop.f32.mrb[56].mxu1  ;;  %v11305_v48 = vpop.eup %11304  ;;  %v8396_v58 = vadd.f32 1.0, %v11303_v36  ;;  %11316 = vpow2.f32 %v9958_v38 }
 0x52b   : > { %v8331_v26 = vpop.f32.mrb[57].mxu1  ;;  %v8330_v60 = vadd.f32 %v8329_v35, %v8164_v24  ;;  %v11307_v10 = vpop.eup %11306  ;;  %v8397_v32 = vadd.f32 1.0, %v11305_v48 }
 0x52c   : > { %v8333_v2 = vpop.f32.mrb[58].mxu1  ;;  %v8332_v43 = vadd.f32 %v8331_v26, %v8168_v16  ;;  %v11309_v55 = vpop.eup %11308  ;;  %11318 = vrcp.f32 %v8396_v58  ;;  %v8398_v54 = vadd.f32 1.0, %v11307_v10 }
 0x52d   : > { %v8335_v4 = vpop.f32.mrb[59].mxu1  ;;  %v9959_v23 = vmul.f32 -1.442695, %v8330_v60  ;;  %v8334_v49 = vadd.f32 %v8333_v2, %v8164_v24  ;;  %v8399_v39 = vadd.f32 1.0, %v11309_v55  ;;  %v8091_v2 = vld [vmem:[%s14768_s8] sm:$0x3] }
 0x52e   : > { %v9960_v13 = vmul.f32 -1.442695, %v8332_v43  ;;  %v8336_v25 = vadd.f32 %v8335_v4, %v8168_v16  ;;  %v14654_v9 = vrot.slane %v8091_v2, %v12407_v14 }
 0x52f   : > { %11320 = vpow2.f32 %v9959_v23  ;;  %v9961_v30 = vmul.f32 -1.442695, %v8334_v49 }
 0x530   : > { %11322 = vpow2.f32 %v9960_v13  ;;  %v9962_v37 = vmul.f32 -1.442695, %v8336_v25 }
 0x531   : > { %v11311_v46 = vpop.eup %11310  ;;  %11324 = vrcp.f32 %v8397_v32 }
 0x532   : > { %v8339_v3 = vpop.f32.mrb[60].mxu1  ;;  %v11313_v35 = vpop.eup %11312  ;;  %11326 = vrcp.f32 %v8398_v54  ;;  %v8400_v26 = vadd.f32 1.0, %v11311_v46 }
 0x533   : > { %v8341_v53 = vpop.f32.mrb[61].mxu1  ;;  %v8340_v63 = vadd.f32 %v8339_v3, %v8164_v24  ;;  %v11315_v4 = vpop.eup %11314  ;;  %11328 = vpow2.f32 %v9961_v30  ;;  %v8401_v19 = vadd.f32 1.0, %v11313_v35 }
 0x534   : > { %v8343_v17 = vpop.f32.mrb[62].mxu1  ;;  %v8342_v28 = vadd.f32 %v8341_v53, %v8168_v16  ;;  %11330 = vpow2.f32 %v9962_v37  ;;  %v14650_v53 = vrot.slane %v8091_v2, %v12402_v11  ;;  %v11317_v56 = vpop.eup %11316  ;;  %v8402_v5 = vadd.f32 1.0, %v11315_v4 }
 0x535   : > { %v8345_v21 = vpop.f32.mrb[63].mxu1  ;;  %v9963_v52 = vmul.f32 -1.442695, %v8340_v63  ;;  %v8344_v57 = vadd.f32 %v8343_v17, %v8164_v24  ;;  %11332 = vrcp.f32 %v8399_v39  ;;  %v8403_v15 = vadd.f32 1.0, %v11317_v56 }
 0x536   : > { %v9964_v7 = vmul.f32 -1.442695, %v8342_v28  ;;  %v8346_v3 = vadd.f32 %v8345_v21, %v8168_v16  ;;  %11334 = vrcp.f32 %v8400_v26  ;;  %v11319_v21 = vpop.eup %11318 }
 0x537   : > { %11336 = vpow2.f32 %v9963_v52  ;;  %v9965_v20 = vmul.f32 -1.442695, %v8344_v57 }
 0x538   : > { %11338 = vpow2.f32 %v9964_v7  ;;  %v9966_v22 = vmul.f32 -1.442695, %v8346_v3 }
 0x539   : > { %v11321_v0 = vpop.eup %11320  ;;  %11340 = vrcp.f32 %v8401_v19 }
 0x53a   : > { %v11323_v27 = vpop.eup %11322  ;;  %11342 = vrcp.f32 %v8402_v5  ;;  %v8404_v43 = vadd.f32 1.0, %v11321_v0 }
 0x53b   : > { %v11325_v36 = vpop.eup %11324  ;;  %11344 = vpow2.f32 %v9965_v20 }
 0x53c   : > { %v11327_v38 = vpop.eup %11326  ;;  %11346 = vpow2.f32 %v9966_v22 }
 0x53d   : > { %v11329_v10 = vpop.eup %11328  ;;  %11348 = vrcp.f32 %v8403_v15 }
 0x53e   : > { %v11331_v13 = vpop.eup %11330  ;;  %11350 = vrcp.f32 %v8404_v43  ;;  %v8406_v37 = vadd.f32 1.0, %v11329_v10 }
 0x53f   : > { %v11333_v55 = vpop.eup %11332  ;;  %v8407_v2 = vadd.f32 1.0, %v11331_v13 }
 0x540   : > { %v11335_v63 = vpop.eup %11334 }
 0x541   : > { %v11337_v26 = vpop.eup %11336 }
 0x580   : > { %v8036_v45 = vpop.f32.mrb[0].mxu0 }
 0x581   : > { %v9985_v17 = vadd.f32 %v8036_v45, %v14609_v34  ;;  %v8038_v24 = vpop.f32.mrb[1].mxu0  ;;  %v8408_v45 = vadd.f32 1.0, %v11337_v26 }
 0x582   : > { %v9986_v16 = vadd.f32 %v8038_v24, %v14611_v12  ;;  %v8040_v11 = vpop.f32.mrb[2].mxu0 }
 0x583   : > { %v8103_v41 = vadd.f32 %v9985_v17, %v14650_v53  ;;  %v9987_v14 = vadd.f32 %v8040_v11, %v14613_v61  ;;  %v8042_v47 = vpop.f32.mrb[3].mxu0  ;;  %v8405_v61 = vadd.f32 1.0, %v11323_v27 }
 0x584   : > { %v8104_v34 = vadd.f32 %v9986_v16, %v14654_v9  ;;  %v9988_v62 = vadd.f32 %v8042_v47, %v14615_v50 }
 0x585   : > { %v8119_v12 = vmax.f32 %v8103_v41, 0.0  ;;  %v8105_v60 = vadd.f32 %v9987_v14, %v14650_v53  ;;  %11352 = vrcp.f32 %v8405_v61 }
 0x586   : > { %v8120_v48 = vmax.f32 %v8104_v34, 0.0  ;;  %v8106_v58 = vadd.f32 %v9988_v62, %v14654_v9  ;;  %11354 = vrcp.f32 %v8406_v37 }
 0x587   : > { %v8444_v23 = vmul.f32 %v11319_v21, %v8119_v12  ;;  %v8121_v49 = vmax.f32 %v8105_v60, 0.0  ;;  %11356 = vrcp.f32 %v8407_v2 }
 0x588   : > { %v8445_v25 = vmul.f32 %v11325_v36, %v8120_v48  ;;  %v8122_v32 = vmax.f32 %v8106_v58, 0.0  ;;  %v8046_v50 = vpop.f32.mrb[4].mxu0  ;;  %11358 = vrcp.f32 %v8408_v45 }
 0x589   : > { %8460 = vst [vmem:[%s14666_s15] sm:$0xff] %v8444_v23  ;;  %v8446_v54 = vmul.f32 %v11327_v38, %v8121_v49  ;;  %v9989_v46 = vadd.f32 %v8046_v50, %v14617_v29  ;;  %v8048_v30 = vpop.f32.mrb[5].mxu0  ;;  %v11339_v29 = vpop.eup %11338 }
 0x58a   : > { %8461 = vst [vmem:[%s14666_s15 + $0x8] sm:$0xff] %v8445_v25  ;;  %v8447_v28 = vmul.f32 %v11333_v55, %v8122_v32  ;;  %v9990_v39 = vadd.f32 %v8048_v30, %v14619_v8  ;;  %v8050_v35 = vpop.f32.mrb[6].mxu0  ;;  %v11341_v19 = vpop.eup %11340 }
 0x58b   : > { %8462 = vst [vmem:[%s14666_s15 + $0x10] sm:$0xff] %v8446_v54  ;;  %v8107_v4 = vadd.f32 %v9989_v46, %v14650_v53  ;;  %v9991_v52 = vadd.f32 %v8050_v35, %v14621_v1  ;;  %v8052_v57 = vpop.f32.mrb[7].mxu0  ;;  %v11343_v5 = vpop.eup %11342  ;;  %v8409_v1 = vadd.f32 1.0, %v11339_v29 }
 0x58c   : > { %8463 = vst [vmem:[%s14666_s15 + $0x18] sm:$0xff] %v8447_v28  ;;  %v8108_v7 = vadd.f32 %v9990_v39, %v14654_v9  ;;  %v9992_v3 = vadd.f32 %v8052_v57, %v14623_v33  ;;  %v11345_v20 = vpop.eup %11344 }
 0x58d   : > { %v8123_v56 = vmax.f32 %v8107_v4, 0.0  ;;  %v8109_v8 = vadd.f32 %v9991_v52, %v14650_v53  ;;  %v11347_v11 = vpop.eup %11346  ;;  %v8410_v27 = vadd.f32 1.0, %v11345_v20  ;;  %11360 = vrcp.f32 %v8409_v1 }
 0x58e   : > { %v8124_v17 = vmax.f32 %v8108_v7, 0.0  ;;  %v8110_v24 = vadd.f32 %v9992_v3, %v14654_v9  ;;  %v11349_v15 = vpop.eup %11348  ;;  %v8411_v12 = vadd.f32 1.0, %v11347_v11 }
 0x58f   : > { %v8448_v21 = vmul.f32 %v11335_v63, %v8123_v56  ;;  %v8125_v16 = vmax.f32 %v8109_v8, 0.0  ;;  %v11351_v48 = vpop.eup %11350  ;;  %11362 = vrcp.f32 %v8410_v27 }
 0x590   : > { %v8449_v22 = vmul.f32 %v11341_v19, %v8124_v17  ;;  %v8126_v33 = vmax.f32 %v8110_v24, 0.0  ;;  %v8056_v0 = vpop.f32.mrb[8].mxu0  ;;  %v11353_v10 = vpop.eup %11352  ;;  %11364 = vrcp.f32 %v8411_v12 }
 0x591   : > { %8464 = vst [vmem:[%s14666_s15 + $0x20] sm:$0xff] %v8448_v21  ;;  %v8450_v41 = vmul.f32 %v11343_v5, %v8125_v16  ;;  %v9993_v14 = vadd.f32 %v8056_v0, %v14625_v18  ;;  %v8058_v47 = vpop.f32.mrb[9].mxu0  ;;  %v11355_v25 = vpop.eup %11354 }
 0x592   : > { %8465 = vst [vmem:[%s14666_s15 + $0x28] sm:$0xff] %v8449_v22  ;;  %v8451_v34 = vmul.f32 %v11349_v15, %v8126_v33  ;;  %v9994_v62 = vadd.f32 %v8058_v47, %v14627_v59  ;;  %v8060_v36 = vpop.f32.mrb[10].mxu0  ;;  %v11357_v54 = vpop.eup %11356 }
 0x593   : > { %8466 = vst [vmem:[%s14666_s15 + $0x30] sm:$0xff] %v8450_v41  ;;  %v8111_v60 = vadd.f32 %v9993_v14, %v14650_v53  ;;  %v9995_v38 = vadd.f32 %v8060_v36, %v14629_v40  ;;  %v8062_v43 = vpop.f32.mrb[11].mxu0  ;;  %v11359_v2 = vpop.eup %11358 }
 0x594   : > { %8467 = vst [vmem:[%s14666_s15 + $0x38] sm:$0xff] %v8451_v34  ;;  %v8112_v18 = vadd.f32 %v9994_v62, %v14654_v9  ;;  %v9996_v58 = vadd.f32 %v8062_v43, %v14631_v31 }
 0x595   : > { %v8127_v61 = vmax.f32 %v8111_v60, 0.0  ;;  %v8113_v59 = vadd.f32 %v9995_v38, %v14650_v53 }
 0x596   : > { %v8128_v23 = vmax.f32 %v8112_v18, 0.0  ;;  %v8114_v49 = vadd.f32 %v9996_v58, %v14654_v9 }
 0x597   : > { %v8452_v40 = vmul.f32 %v11351_v48, %v8127_v61  ;;  %v8129_v13 = vmax.f32 %v8113_v59, 0.0  ;;  %v11361_v52 = vpop.eup %11360 }
 0x598   : > { %v8453_v32 = vmul.f32 %v11353_v10, %v8128_v23  ;;  %v8130_v50 = vmax.f32 %v8114_v49, 0.0  ;;  %v8066_v55 = vpop.f32.mrb[12].mxu0 }
 0x599   : > { %8468 = vst [vmem:[%s14666_s15 + $0x40] sm:$0xff] %v8452_v40  ;;  %v8454_v31 = vmul.f32 %v11355_v25, %v8129_v13  ;;  %v9997_v46 = vadd.f32 %v8066_v55, %v14633_v6  ;;  %v8068_v30 = vpop.f32.mrb[13].mxu0  ;;  %v11363_v19 = vpop.eup %11362 }
 0x59a   : > { %8469 = vst [vmem:[%s14666_s15 + $0x48] sm:$0xff] %v8453_v32  ;;  %v8455_v63 = vmul.f32 %v11357_v54, %v8130_v50  ;;  %v9998_v37 = vadd.f32 %v8068_v30, %v14635_v42  ;;  %v8070_v28 = vpop.f32.mrb[14].mxu0 }
 0x59b   : > { %8470 = vst [vmem:[%s14666_s15 + $0x50] sm:$0xff] %v8454_v31  ;;  %v8115_v39 = vadd.f32 %v9997_v46, %v14650_v53  ;;  %v9999_v35 = vadd.f32 %v8070_v28, %v14637_v51  ;;  %v8072_v26 = vpop.f32.mrb[15].mxu0 }
 0x59c   : > { %8471 = vst [vmem:[%s14666_s15 + $0x58] sm:$0xff] %v8455_v63  ;;  %v8116_v4 = vadd.f32 %v9998_v37, %v14654_v9  ;;  %v10000_v6 = vadd.f32 %v8072_v26, %v14639_v44  ;;  %v11365_v44 = vpop.eup %11364 }
 0x59d   : > { %v8131_v57 = vmax.f32 %v8115_v39, 0.0  ;;  %v8117_v42 = vadd.f32 %v9999_v35, %v14650_v53 }
 0x59e   : > { %v8132_v29 = vmax.f32 %v8116_v4, 0.0  ;;  %v8118_v7 = vadd.f32 %v10000_v6, %v14654_v9 }
 0x59f   : > { %v8456_v51 = vmul.f32 %v11359_v2, %v8131_v57  ;;  %v8133_v3 = vmax.f32 %v8117_v42, 0.0 }
 0x5a0   : > { %v8457_v56 = vmul.f32 %v11361_v52, %v8132_v29  ;;  %v8134_v8 = vmax.f32 %v8118_v7, 0.0 }
 0x5a1   : > { %8472 = vst [vmem:[%s14666_s15 + $0x60] sm:$0xff] %v8456_v51  ;;  %v8458_v5 = vmul.f32 %v11363_v19, %v8133_v3 }
 0x5a2   : > { %8473 = vst [vmem:[%s14666_s15 + $0x68] sm:$0xff] %v8457_v56  ;;  %v8459_v53 = vmul.f32 %v11365_v44, %v8134_v8 }
 0x5a3   : > { %8474 = vst [vmem:[%s14666_s15 + $0x70] sm:$0xff] %v8458_v5 }
 0x5a4   : > { %8475 = vst [vmem:[%s14666_s15 + $0x78] sm:$0xff] %v8459_v53 }
 0x5a5   : > { %11413 = shalt.err (!%p11410_p3)
}
 0x5a6   : > { %s11414_s16 = scalar_lea.hbm %s14710_s12, 2048  ;;  %s11418_s29 = scalar_lea.hbm %s14771_s11, 4096 }
 0x5a7   : > { %p11415_p4 = scmp.ne.s32.totalorder %s14710_s12, %s11414_s16  ;;  %p11419_p9 = scmp.lt.u32.totalorder %s14710_s12, %s14771_s11 }
 0x5a8   : > { %p11420_p10 = scmp.lt.u32.totalorder %s11418_s29, %s11414_s16  ;;  %p11422_p12 = scmp.lt.u32.totalorder %s11414_s16, %s14710_s12 }
 0x5a9   : > { %p11416_p7 = pnand %p11415_p4, %p11567_p5 }
 0x5aa   : > { %p11421_p11 = por %p11420_p10, %p11419_p9 }
 0x5ab   : > { %p11417_p8 = pneg %p11416_p7 }
 0x5ac   : > { %p11423_p13 = por %p11422_p12, %p11421_p11 }
 0x5ae   : > { %p11424_p0 = pnand %p11423_p13, %p11417_p8 }
 0x5b0   : > { %11427 = shalt.err (!%p11424_p0)
}
 0x5b1   : > { %s11467_s0 = smov 256   ;;  %s11468_s1 = smov 16  }
 0x5b2   : > { %10257 = dma.vmem_to_hbm [thread:$0]  (%p11567_p5), %s14712_s22, 2048, %s14710_s12, %s14719_s21, %s11467_s0, %s11467_s0, %s11468_s1  }
 0x5b3 PF: > { %p10263_p1 = scmp.ge.s32.totalorder %s11462_s20, 2  ;;  %s8505_s30 = sand.u32 1, %s11450_s17  }
 0x5b4   : > { %s8506_s13 = scalar_lea.sflag [#allocation5], %s8505_s30 }
 0x5b5   : > { %p10260_p2 = pnand %p10263_p1, %p11571_p6 }
 0x5b7   : > { %11445 = dma.done.wait (!%p10260_p2), %s8506_s13, 2048  }
 0x5b8   : > { %11447 = vsyncadd (!%p10260_p2), %s8506_s13, 4294965248  ;;  %p21_p3 = scmp.ge.s32.totalorder %s11554_s23, 4   ;;  %s14818_s17 = smov %s11454_s18 }
 0x5b9   : > { %s14819_s18 = smov %s11458_s19  ;;  %s14820_s19 = smov %s11565_s26 }
 0x5ba   : > { %s14821_s20 = smov %s11554_s23  ;;  %23 = sbr.rel (!%p21_p3) target bundleno = 6 (0x6), region = 120 }
 0x5c1   :  { %8511 = vsyncpa [#allocation5], 1 }
 0x5c2   :  { %8513 = vsyncpa [#allocation5 + $0x1], 1 }

</bundles_post_ra>
